<compile_context>
chip_gen: v7x
topology: tpu7x:2x2x1
jax: 0.10.0
libtpu: 0.0.40
codegen_flags: <defaults>
</compile_context>

<pallas_src>
import math
import functools

import jax
import jax.numpy as jnp
from jax import lax
from jax.experimental import pallas as pl
from jax.experimental.pallas import tpu as pltpu

LN_EPS = 1e-5
NEG_INF = -1e9


# ------------- kernel 1/2: fused attention block (one grid step per batch) -------------

def _attn_block_kernel(x_ref, kv_ref, wq_ref, bq_ref, wkv_ref, bkv_ref,
                       e_ref, mask_ref, wo_ref, bo_ref, g_ref, beta_ref,
                       o_ref, ctx_ref, *, num_heads, head_dim):
    S, D = x_ref.shape
    x = x_ref[...]                                   # (S, D) f32; also the residual
    xb = x.astype(jnp.bfloat16)
    kvb = kv_ref[...].astype(jnp.bfloat16)

    # Projections: bf16 MXU inputs, f32 accumulation.  The K columns of wkv/bkv carry
    # the 1/sqrt(head_dim) factor (folded at init), so scores come out pre-scaled while
    # the relative term (q . e) stays unscaled -- exactly as in the reference.
    q = (jnp.dot(xb, wq_ref[...], preferred_element_type=jnp.float32)
         + bq_ref[...]).astype(jnp.bfloat16)         # (S, D)
    kv = (jnp.dot(kvb, wkv_ref[...], preferred_element_type=jnp.float32)
          + bkv_ref[...])                            # (S, 2D) f32
    k = kv[:, :D].astype(jnp.bfloat16)
    v = kv[:, D:].astype(jnp.bfloat16)

    e = e_ref[...]                                   # (S, head_dim) bf16
    drop = mask_ref[...] == 0.0                      # (S, S) bool: masked positions
    row = lax.broadcasted_iota(jnp.int32, (S, S), 0)
    col = lax.broadcasted_iota(jnp.int32, (S, S), 1)
    keep_rel = col >= (S - 1 - row)                  # rel-pos keep mask, shared by heads
    # TODO(synk): utils.mask_relative_position is not provided; we assume the standard
    # Music-Transformer QE mask (keep entries with column k >= S-1-q).

    for h in range(num_heads):                       # static, unrolled head loop
        lo = h * head_dim
        qh = q[:, lo:lo + head_dim]
        kh = k[:, lo:lo + head_dim]
        vh = v[:, lo:lo + head_dim]

        scores = lax.dot_general(qh, kh, (((1,), (1,)), ((), ())),
                                 preferred_element_type=jnp.float32)     # (S, S)
        scores = jnp.where(drop, NEG_INF, scores)    # masked_fill before adding S_rel
        qe = lax.dot_general(qh, e, (((1,), (1,)), ((), ())),
                             preferred_element_type=jnp.float32)         # (S, S)
        qe = jnp.where(keep_rel, qe, 0.0)
        # Music-Transformer skew entirely in VMEM: row i rotated right by i+1, which is
        # identical to the reference pad-left / reshape / drop-first-row skew applied to
        # the masked qe.
        srel = pltpu.roll(qe, shift=1, axis=1, stride=1, stride_axis=0)

        logits = scores + srel
        logits = logits - jnp.max(logits, axis=-1, keepdims=True)
        p = jnp.exp(logits)
        denom = jnp.sum(p, axis=-1, keepdims=True)
        p = (p * pl.reciprocal(denom, approx=True)).astype(jnp.bfloat16)  # EUP recip
        ctx_ref[:, lo:lo + head_dim] = jnp.dot(
            p, vh, preferred_element_type=jnp.float32).astype(jnp.bfloat16)

    # Out-projection (single full-depth matmul) + residual + LayerNorm.
    y = jnp.dot(ctx_ref[...], wo_ref[...], preferred_element_type=jnp.float32)
    y = y + bo_ref[...] + x
    mu = jnp.mean(y, axis=-1, keepdims=True)
    var = jnp.mean(jnp.square(y - mu), axis=-1, keepdims=True)
    o_ref[...] = (y - mu) * lax.rsqrt(var + LN_EPS) * g_ref[...] + beta_ref[...]


def attention_block(x3, kv3, mask, p_attn, gamma, beta, num_heads):
    """Fused projection + relative attention + out-proj + residual + LayerNorm."""
    B, Sq, D = x3.shape
    Skv = kv3.shape[1]
    # The reference adds a (Sq, Sq) S_rel to the (Sq, Skv) scores, so it has the same
    # Sq == Skv restriction (true for this decoder layer).
    assert Sq == Skv, "relative attention requires query/key lengths to match"
    hd = D // num_heads
    if mask is None:
        mask = jnp.ones((Sq, Skv), jnp.float32)
    max_len = p_attn["e_r"].shape[0]
    e_sub = p_attn["e_r"][max_len - Sq:, :]          # (Sq, hd) bf16, static slice

    kernel = functools.partial(_attn_block_kernel, num_heads=num_heads, head_dim=hd)
    cost = pl.CostEstimate(
        flops=int(B * (8 * Sq * D * D + 6 * Sq * Sq * D)),
        transcendentals=int(B * num_heads * Sq * Sq),
        bytes_accessed=int(3 * B * Sq * D * 4 + 8 * D * D + Sq * Skv * 4
                           + Sq * hd * 2 + 10 * D * 4))

    return pl.pallas_call(
        kernel,
        out_shape=jax.ShapeDtypeStruct((B, Sq, D), jnp.float32),
        grid=(B,),
        in_specs=[
            pl.BlockSpec((None, Sq, D), lambda b: (b, 0, 0)),    # x (queries + residual)
            pl.BlockSpec((None, Skv, D), lambda b: (b, 0, 0)),   # kv source
            pl.BlockSpec((D, D), lambda b: (0, 0)),              # wq (bf16)
            pl.BlockSpec((1, D), lambda b: (0, 0)),              # bq
            pl.BlockSpec((D, 2 * D), lambda b: (0, 0)),          # wkv (K cols pre-scaled)
            pl.BlockSpec((1, 2 * D), lambda b: (0, 0)),          # bkv
            pl.BlockSpec((Sq, hd), lambda b: (0, 0)),            # e_sub (bf16)
            pl.BlockSpec((Sq, Skv), lambda b: (0, 0)),           # mask (1 keep / 0 drop)
            pl.BlockSpec((D, D), lambda b: (0, 0)),              # wo (bf16)
            pl.BlockSpec((1, D), lambda b: (0, 0)),              # bo
            pl.BlockSpec((1, D), lambda b: (0, 0)),              # LN gamma
            pl.BlockSpec((1, D), lambda b: (0, 0)),              # LN beta
        ],
        out_specs=pl.BlockSpec((None, Sq, D), lambda b: (b, 0, 0)),
        scratch_shapes=[pltpu.VMEM((Sq, D), jnp.bfloat16)],      # per-head ctx accumulator
        compiler_params=pltpu.CompilerParams(dimension_semantics=("parallel",)),
        cost_estimate=cost,
    )(x3, kv3, p_attn["wq"], p_attn["bq"], p_attn["wkv"], p_attn["bkv"],
      e_sub, mask, p_attn["wo"], p_attn["bo"], gamma, beta)


# --------------- kernel 3: FFN (Linear-ReLU-Linear) + residual + LayerNorm ---------------

def _ffn_res_ln_kernel(x_ref, w1_ref, b1_ref, w2_ref, b2_ref, g_ref, beta_ref, o_ref):
    x = x_ref[...]
    h = jnp.dot(x.astype(jnp.bfloat16), w1_ref[...],
                preferred_element_type=jnp.float32)
    h = jnp.maximum(h + b1_ref[...], 0.0).astype(jnp.bfloat16)
    y = jnp.dot(h, w2_ref[...], preferred_element_type=jnp.float32)
    y = y + b2_ref[...] + x
    mu = jnp.mean(y, axis=-1, keepdims=True)
    var = jnp.mean(jnp.square(y - mu), axis=-1, keepdims=True)
    o_ref[...] = (y - mu) * lax.rsqrt(var + LN_EPS) * g_ref[...] + beta_ref[...]


def ffn_residual_layernorm(x2d, w1, b1, w2, b2, gamma, beta):
    N, D = x2d.shape
    Dff = w1.shape[1]
    tile = 128 if N % 128 == 0 else N
    cost = pl.CostEstimate(flops=int(4 * N * D * Dff), transcendentals=0,
                           bytes_accessed=int(2 * N * D * 4 + 4 * D * Dff + 5 * D * 4))
    return pl.pallas_call(
        _ffn_res_ln_kernel,
        out_shape=jax.ShapeDtypeStruct((N, D), jnp.float32),
        grid=(N // tile,),
        in_specs=[
            pl.BlockSpec((tile, D), lambda i: (i, 0)),
            pl.BlockSpec((D, Dff), lambda i: (0, 0)),
            pl.BlockSpec((1, Dff), lambda i: (0, 0)),
            pl.BlockSpec((Dff, D), lambda i: (0, 0)),
            pl.BlockSpec((1, D), lambda i: (0, 0)),
            pl.BlockSpec((1, D), lambda i: (0, 0)),
            pl.BlockSpec((1, D), lambda i: (0, 0)),
        ],
        out_specs=pl.BlockSpec((tile, D), lambda i: (i, 0)),
        compiler_params=pltpu.CompilerParams(dimension_semantics=("parallel",)),
        cost_estimate=cost,
    )(x2d, w1, b1, w2, b2, gamma, beta)


# --------------------------------- module glue -------------------------------------------

def decoder_layer(params, x, encoder_output, src_mask, tgt_mask, num_heads):
    # Reference adds the attention *tuple* to x; we use the primary attention output.
    # Dropout layers are identity (eval mode).
    B, S, D = x.shape
    x = attention_block(x, x, tgt_mask, params["self_attn"],
                        params["ln1_g"], params["ln1_b"], num_heads)
    x = attention_block(x, encoder_output, src_mask, params["cross_attn"],
                        params["ln2_g"], params["ln2_b"], num_heads)
    y = ffn_residual_layernorm(x.reshape(B * S, D),
                               params["w_ff1"], params["b_ff1"],
                               params["w_ff2"], params["b_ff2"],
                               params["ln3_g"], params["ln3_b"])
    return y.reshape(B, S, D)


# ---------------------------------- parameters -------------------------------------------

def init_params(key, d_model, num_heads, d_ff, max_seq_len):
    hd = d_model // num_heads
    k_scale = 1.0 / math.sqrt(hd)   # attention scale, folded into the K projection only

    def lin(k, din, dout):
        kw, kb = jax.random.split(k)
        w = jax.random.normal(kw, (din, dout), jnp.float32) / math.sqrt(din)
        b = 0.02 * jax.random.normal(kb, (1, dout), jnp.float32)
        return w, b

    def attn(k):
        kq, kk, kv, ko, ke = jax.random.split(k, 5)
        wq, bq = lin(kq, d_model, d_model)
        wk, bk = lin(kk, d_model, d_model)
        wv, bv = lin(kv, d_model, d_model)
        wo, bo = lin(ko, d_model, d_model)
        # Reference: scores = (Q K^T)/sqrt(hd); S_rel = Q e^T is NOT scaled.  Folding the
        # scale into wk/bk reproduces this exactly (q is left unscaled for the rel term).
        wkv = jnp.concatenate([wk * k_scale, wv], axis=1)
        bkv = jnp.concatenate([bk * k_scale, bv], axis=1)
        e_r = jax.random.normal(ke, (max_seq_len, hd), jnp.float32)
        return dict(wq=wq.astype(jnp.bfloat16), bq=bq,
                    wkv=wkv.astype(jnp.bfloat16), bkv=bkv,
                    wo=wo.astype(jnp.bfloat16), bo=bo,
                    e_r=e_r.astype(jnp.bfloat16))

    k0, k1, k2, k3 = jax.random.split(key, 4)
    params = dict(self_attn=attn(k0), cross_attn=attn(k1))
    w1, b1 = lin(k2, d_model, d_ff)
    w2, b2 = lin(k3, d_ff, d_model)
    params["w_ff1"], params["b_ff1"] = w1.astype(jnp.bfloat16), b1
    params["w_ff2"], params["b_ff2"] = w2.astype(jnp.bfloat16), b2
    for name in ("ln1", "ln2", "ln3"):
        params[f"{name}_g"] = jnp.ones((1, d_model), jnp.float32)
        params[f"{name}_b"] = jnp.zeros((1, d_model), jnp.float32)
    return params


# ------------------------------------- main -----------------------------------------------

if __name__ == "__main__":
    # Small but lane-dense shapes (last dims multiples of 128 for full-width stores).
    B, S, D, H, D_FF, MAX_SEQ_LEN = 2, 128, 128, 4, 256, 256

    key = jax.random.PRNGKey(0)
    kp, kx, ke = jax.random.split(key, 3)
    params = init_params(kp, D, H, D_FF, MAX_SEQ_LEN)

    x = jax.random.normal(kx, (B, S, D), jnp.float32)
    encoder_output = jax.random.normal(ke, (B, S, D), jnp.float32)
    tgt_mask = jnp.tril(jnp.ones((S, S), jnp.float32))   # causal self-attention mask
    src_mask = jnp.ones((S, S), jnp.float32)             # no masking for cross-attention

    fwd = jax.jit(decoder_layer, static_argnums=(5,))
    out = fwd(params, x, encoder_output, src_mask, tgt_mask, H)
    out = jax.block_until_ready(out)
    assert out.shape == (B, S, D)
    assert bool(jnp.all(jnp.isfinite(out)))
    print("KERNEL_OK")
</pallas_src>

<mosaic_0001>
module attributes {stable_mosaic.version = 11 : i64} {
  func.func @_attn_block_kernel(%arg0: i32, %arg1: memref<1x128x128xf32, #tpu.memory_space<vmem>>, %arg2: memref<1x128x128xf32, #tpu.memory_space<vmem>>, %arg3: memref<128x128xbf16, #tpu.memory_space<vmem>>, %arg4: memref<1x128xf32, #tpu.memory_space<vmem>>, %arg5: memref<128x256xbf16, #tpu.memory_space<vmem>>, %arg6: memref<1x256xf32, #tpu.memory_space<vmem>>, %arg7: memref<128x32xbf16, #tpu.memory_space<vmem>>, %arg8: memref<128x128xf32, #tpu.memory_space<vmem>>, %arg9: memref<128x128xbf16, #tpu.memory_space<vmem>>, %arg10: memref<1x128xf32, #tpu.memory_space<vmem>>, %arg11: memref<1x128xf32, #tpu.memory_space<vmem>>, %arg12: memref<1x128xf32, #tpu.memory_space<vmem>>, %arg13: memref<1x128x128xf32, #tpu.memory_space<vmem>>, %arg14: memref<128x128xbf16, #tpu.memory_space<vmem>>) attributes {dimension_semantics = [#tpu.dimension_semantics<parallel>], iteration_bounds = array<i64: 2>, scalar_prefetch = 0 : i64, scratch_operands = 1 : i64, tpu.core_type = #tpu.core_type<tc>, window_params = [{transform_indices = @transform_0, window_bounds = array<i64: 1, 128, 128>}, {transform_indices = @transform_1, window_bounds = array<i64: 1, 128, 128>}, {pipeline_mode = #tpu.pipeline_mode<synchronous>, transform_indices = @transform_2, window_bounds = array<i64: 128, 128>}, {pipeline_mode = #tpu.pipeline_mode<synchronous>, transform_indices = @transform_3, window_bounds = array<i64: 1, 128>}, {pipeline_mode = #tpu.pipeline_mode<synchronous>, transform_indices = @transform_4, window_bounds = array<i64: 128, 256>}, {pipeline_mode = #tpu.pipeline_mode<synchronous>, transform_indices = @transform_5, window_bounds = array<i64: 1, 256>}, {pipeline_mode = #tpu.pipeline_mode<synchronous>, transform_indices = @transform_6, window_bounds = array<i64: 128, 32>}, {pipeline_mode = #tpu.pipeline_mode<synchronous>, transform_indices = @transform_7, window_bounds = array<i64: 128, 128>}, {pipeline_mode = #tpu.pipeline_mode<synchronous>, transform_indices = @transform_8, window_bounds = array<i64: 128, 128>}, {pipeline_mode = #tpu.pipeline_mode<synchronous>, transform_indices = @transform_9, window_bounds = array<i64: 1, 128>}, {pipeline_mode = #tpu.pipeline_mode<synchronous>, transform_indices = @transform_10, window_bounds = array<i64: 1, 128>}, {pipeline_mode = #tpu.pipeline_mode<synchronous>, transform_indices = @transform_11, window_bounds = array<i64: 1, 128>}, {transform_indices = @transform_12, window_bounds = array<i64: 1, 128, 128>}]} {
    %c0 = arith.constant 0 : index
    %c0_0 = arith.constant 0 : index
    %c0_1 = arith.constant 0 : index
    %0 = vector.load %arg1[%c0, %c0_0, %c0_1] : memref<1x128x128xf32, #tpu.memory_space<vmem>>, vector<1x128x128xf32>
    %1 = vector.shape_cast %0 : vector<1x128x128xf32> to vector<128x128xf32>
    %2 = arith.truncf %1 : vector<128x128xf32> to vector<128x128xbf16>
    %c0_2 = arith.constant 0 : index
    %c0_3 = arith.constant 0 : index
    %c0_4 = arith.constant 0 : index
    %3 = vector.load %arg2[%c0_2, %c0_3, %c0_4] : memref<1x128x128xf32, #tpu.memory_space<vmem>>, vector<1x128x128xf32>
    %4 = vector.shape_cast %3 : vector<1x128x128xf32> to vector<128x128xf32>
    %5 = arith.truncf %4 : vector<128x128xf32> to vector<128x128xbf16>
    %c0_5 = arith.constant 0 : index
    %c0_6 = arith.constant 0 : index
    %6 = vector.load %arg3[%c0_5, %c0_6] : memref<128x128xbf16, #tpu.memory_space<vmem>>, vector<128x128xbf16>
    %cst = arith.constant dense<0.000000e+00> : vector<128x128xf32>
    %7 = tpu.matmul %2, %6, %cst {dimension_numbers = #tpu.dot_dimension_numbers<[1], [0], [0], [1], [0, 0, 1, 1], [], []>} : vector<128x128xbf16>, vector<128x128xbf16>, vector<128x128xf32> -> vector<128x128xf32>
    %c0_7 = arith.constant 0 : index
    %c0_8 = arith.constant 0 : index
    %8 = vector.load %arg4[%c0_7, %c0_8] : memref<1x128xf32, #tpu.memory_space<vmem>>, vector<1x128xf32>
    %9 = vector.broadcast %8 : vector<1x128xf32> to vector<128x128xf32>
    %10 = arith.addf %7, %9 : vector<128x128xf32>
    %11 = arith.truncf %10 : vector<128x128xf32> to vector<128x128xbf16>
    %c0_9 = arith.constant 0 : index
    %c0_10 = arith.constant 0 : index
    %12 = vector.load %arg5[%c0_9, %c0_10] : memref<128x256xbf16, #tpu.memory_space<vmem>>, vector<128x256xbf16>
    %cst_11 = arith.constant dense<0.000000e+00> : vector<128x256xf32>
    %13 = tpu.matmul %5, %12, %cst_11 {dimension_numbers = #tpu.dot_dimension_numbers<[1], [0], [0], [1], [0, 0, 1, 1], [], []>} : vector<128x128xbf16>, vector<128x256xbf16>, vector<128x256xf32> -> vector<128x256xf32>
    %c0_12 = arith.constant 0 : index
    %c0_13 = arith.constant 0 : index
    %14 = vector.load %arg6[%c0_12, %c0_13] : memref<1x256xf32, #tpu.memory_space<vmem>>, vector<1x256xf32>
    %15 = vector.broadcast %14 : vector<1x256xf32> to vector<128x256xf32>
    %16 = arith.addf %13, %15 : vector<128x256xf32>
    %17 = vector.extract_strided_slice %16 {offsets = [0, 0], sizes = [128, 128], strides = [1, 1]} : vector<128x256xf32> to vector<128x128xf32>
    %18 = arith.truncf %17 : vector<128x128xf32> to vector<128x128xbf16>
    %19 = vector.extract_strided_slice %16 {offsets = [0, 128], sizes = [128, 128], strides = [1, 1]} : vector<128x256xf32> to vector<128x128xf32>
    %20 = arith.truncf %19 : vector<128x128xf32> to vector<128x128xbf16>
    %c0_14 = arith.constant 0 : index
    %c0_15 = arith.constant 0 : index
    %21 = vector.load %arg7[%c0_14, %c0_15] : memref<128x32xbf16, #tpu.memory_space<vmem>>, vector<128x32xbf16>
    %c0_16 = arith.constant 0 : index
    %c0_17 = arith.constant 0 : index
    %22 = vector.load %arg8[%c0_16, %c0_17] : memref<128x128xf32, #tpu.memory_space<vmem>>, vector<128x128xf32>
    %cst_18 = arith.constant 0.000000e+00 : f32
    %23 = vector.broadcast %cst_18 : f32 to vector<128x128xf32>
    %24 = arith.cmpf oeq, %22, %23 : vector<128x128xf32>
    %25 = tpu.iota {dimensions = array<i32: 0>} : vector<128x128xi32>
    %26 = tpu.iota {dimensions = array<i32: 1>} : vector<128x128xi32>
    %c127_i32 = arith.constant 127 : i32
    %27 = vector.broadcast %c127_i32 : i32 to vector<128x128xi32>
    %28 = arith.subi %27, %25 : vector<128x128xi32>
    %29 = arith.cmpi sge, %26, %28 : vector<128x128xi32>
    %30 = vector.extract_strided_slice %11 {offsets = [0, 0], sizes = [128, 32], strides = [1, 1]} : vector<128x128xbf16> to vector<128x32xbf16>
    %31 = vector.extract_strided_slice %18 {offsets = [0, 0], sizes = [128, 32], strides = [1, 1]} : vector<128x128xbf16> to vector<128x32xbf16>
    %32 = vector.extract_strided_slice %20 {offsets = [0, 0], sizes = [128, 32], strides = [1, 1]} : vector<128x128xbf16> to vector<128x32xbf16>
    %cst_19 = arith.constant dense<0.000000e+00> : vector<128x128xf32>
    %33 = tpu.matmul %30, %31, %cst_19 {dimension_numbers = #tpu.dot_dimension_numbers<[1], [1], [0], [0], [0, 0, 1, 0], [], []>} : vector<128x32xbf16>, vector<128x32xbf16>, vector<128x128xf32> -> vector<128x128xf32>
    %cst_20 = arith.constant -1.000000e+09 : f32
    %34 = vector.broadcast %cst_20 : f32 to vector<128x128xf32>
    %35 = arith.select %24, %34, %33 : vector<128x128xi1>, vector<128x128xf32>
    %cst_21 = arith.constant dense<0.000000e+00> : vector<128x128xf32>
    %36 = tpu.matmul %30, %21, %cst_21 {dimension_numbers = #tpu.dot_dimension_numbers<[1], [1], [0], [0], [0, 0, 1, 0], [], []>} : vector<128x32xbf16>, vector<128x32xbf16>, vector<128x128xf32> -> vector<128x128xf32>
    %cst_22 = arith.constant 0.000000e+00 : f32
    %37 = vector.broadcast %cst_22 : f32 to vector<128x128xf32>
    %38 = arith.select %29, %36, %37 : vector<128x128xi1>, vector<128x128xf32>
    %c1_i32 = arith.constant 1 : i32
    %39 = tpu.dynamic_rotate %38 by %c1_i32 dim 1 {stride = 1 : si32, stride_dimension = 0 : si32} : vector<128x128xf32>, i32 -> vector<128x128xf32>
    %40 = arith.addf %35, %39 : vector<128x128xf32>
    %cst_23 = arith.constant dense<0xFF800000> : vector<128xf32>
    %41 = vector.multi_reduction <maximumf>, %40, %cst_23 [1] : vector<128x128xf32> to vector<128xf32>
    %42 = vector.shape_cast %41 : vector<128xf32> to vector<128x1xf32>
    %43 = vector.broadcast %42 : vector<128x1xf32> to vector<128x128xf32>
    %44 = arith.subf %40, %43 : vector<128x128xf32>
    %45 = math.exp %44 : vector<128x128xf32>
    %cst_24 = arith.constant dense<0.000000e+00> : vector<128xf32>
    %46 = vector.multi_reduction <add>, %45, %cst_24 [1] : vector<128x128xf32> to vector<128xf32>
    %47 = vector.shape_cast %46 : vector<128xf32> to vector<128x1xf32>
    %48 = tpu.reciprocal %47 {approx = true} : vector<128x1xf32> -> vector<128x1xf32>
    %49 = vector.broadcast %48 : vector<128x1xf32> to vector<128x128xf32>
    %50 = arith.mulf %45, %49 : vector<128x128xf32>
    %51 = arith.truncf %50 : vector<128x128xf32> to vector<128x128xbf16>
    %cst_25 = arith.constant dense<0.000000e+00> : vector<128x32xf32>
    %52 = tpu.matmul %51, %32, %cst_25 {dimension_numbers = #tpu.dot_dimension_numbers<[1], [0], [0], [1], [0, 0, 1, 1], [], []>} : vector<128x128xbf16>, vector<128x32xbf16>, vector<128x32xf32> -> vector<128x32xf32>
    %53 = arith.truncf %52 : vector<128x32xf32> to vector<128x32xbf16>
    %c0_26 = arith.constant 0 : index
    %c0_27 = arith.constant 0 : index
    %54 = vector.load %arg14[%c0_26, %c0_27] : memref<128x128xbf16, #tpu.memory_space<vmem>>, vector<128x32xbf16>
    tpu.vector_store %arg14[%c0_26, %c0_27], %53 {strides = array<i32>} : memref<128x128xbf16, #tpu.memory_space<vmem>>, vector<128x32xbf16>,
    %55 = vector.extract_strided_slice %11 {offsets = [0, 32], sizes = [128, 32], strides = [1, 1]} : vector<128x128xbf16> to vector<128x32xbf16>
    %56 = vector.extract_strided_slice %18 {offsets = [0, 32], sizes = [128, 32], strides = [1, 1]} : vector<128x128xbf16> to vector<128x32xbf16>
    %57 = vector.extract_strided_slice %20 {offsets = [0, 32], sizes = [128, 32], strides = [1, 1]} : vector<128x128xbf16> to vector<128x32xbf16>
    %cst_28 = arith.constant dense<0.000000e+00> : vector<128x128xf32>
    %58 = tpu.matmul %55, %56, %cst_28 {dimension_numbers = #tpu.dot_dimension_numbers<[1], [1], [0], [0], [0, 0, 1, 0], [], []>} : vector<128x32xbf16>, vector<128x32xbf16>, vector<128x128xf32> -> vector<128x128xf32>
    %cst_29 = arith.constant -1.000000e+09 : f32
    %59 = vector.broadcast %cst_29 : f32 to vector<128x128xf32>
    %60 = arith.select %24, %59, %58 : vector<128x128xi1>, vector<128x128xf32>
    %cst_30 = arith.constant dense<0.000000e+00> : vector<128x128xf32>
    %61 = tpu.matmul %55, %21, %cst_30 {dimension_numbers = #tpu.dot_dimension_numbers<[1], [1], [0], [0], [0, 0, 1, 0], [], []>} : vector<128x32xbf16>, vector<128x32xbf16>, vector<128x128xf32> -> vector<128x128xf32>
    %cst_31 = arith.constant 0.000000e+00 : f32
    %62 = vector.broadcast %cst_31 : f32 to vector<128x128xf32>
    %63 = arith.select %29, %61, %62 : vector<128x128xi1>, vector<128x128xf32>
    %c1_i32_32 = arith.constant 1 : i32
    %64 = tpu.dynamic_rotate %63 by %c1_i32_32 dim 1 {stride = 1 : si32, stride_dimension = 0 : si32} : vector<128x128xf32>, i32 -> vector<128x128xf32>
    %65 = arith.addf %60, %64 : vector<128x128xf32>
    %cst_33 = arith.constant dense<0xFF800000> : vector<128xf32>
    %66 = vector.multi_reduction <maximumf>, %65, %cst_33 [1] : vector<128x128xf32> to vector<128xf32>
    %67 = vector.shape_cast %66 : vector<128xf32> to vector<128x1xf32>
    %68 = vector.broadcast %67 : vector<128x1xf32> to vector<128x128xf32>
    %69 = arith.subf %65, %68 : vector<128x128xf32>
    %70 = math.exp %69 : vector<128x128xf32>
    %cst_34 = arith.constant dense<0.000000e+00> : vector<128xf32>
    %71 = vector.multi_reduction <add>, %70, %cst_34 [1] : vector<128x128xf32> to vector<128xf32>
    %72 = vector.shape_cast %71 : vector<128xf32> to vector<128x1xf32>
    %73 = tpu.reciprocal %72 {approx = true} : vector<128x1xf32> -> vector<128x1xf32>
    %74 = vector.broadcast %73 : vector<128x1xf32> to vector<128x128xf32>
    %75 = arith.mulf %70, %74 : vector<128x128xf32>
    %76 = arith.truncf %75 : vector<128x128xf32> to vector<128x128xbf16>
    %cst_35 = arith.constant dense<0.000000e+00> : vector<128x32xf32>
    %77 = tpu.matmul %76, %57, %cst_35 {dimension_numbers = #tpu.dot_dimension_numbers<[1], [0], [0], [1], [0, 0, 1, 1], [], []>} : vector<128x128xbf16>, vector<128x32xbf16>, vector<128x32xf32> -> vector<128x32xf32>
    %78 = arith.truncf %77 : vector<128x32xf32> to vector<128x32xbf16>
    %c0_36 = arith.constant 0 : index
    %c32 = arith.constant 32 : index
    %79 = vector.load %arg14[%c0_36, %c32] : memref<128x128xbf16, #tpu.memory_space<vmem>>, vector<128x32xbf16>
    tpu.vector_store %arg14[%c0_36, %c32], %78 {strides = array<i32>} : memref<128x128xbf16, #tpu.memory_space<vmem>>, vector<128x32xbf16>,
    %80 = vector.extract_strided_slice %11 {offsets = [0, 64], sizes = [128, 32], strides = [1, 1]} : vector<128x128xbf16> to vector<128x32xbf16>
    %81 = vector.extract_strided_slice %18 {offsets = [0, 64], sizes = [128, 32], strides = [1, 1]} : vector<128x128xbf16> to vector<128x32xbf16>
    %82 = vector.extract_strided_slice %20 {offsets = [0, 64], sizes = [128, 32], strides = [1, 1]} : vector<128x128xbf16> to vector<128x32xbf16>
    %cst_37 = arith.constant dense<0.000000e+00> : vector<128x128xf32>
    %83 = tpu.matmul %80, %81, %cst_37 {dimension_numbers = #tpu.dot_dimension_numbers<[1], [1], [0], [0], [0, 0, 1, 0], [], []>} : vector<128x32xbf16>, vector<128x32xbf16>, vector<128x128xf32> -> vector<128x128xf32>
    %cst_38 = arith.constant -1.000000e+09 : f32
    %84 = vector.broadcast %cst_38 : f32 to vector<128x128xf32>
    %85 = arith.select %24, %84, %83 : vector<128x128xi1>, vector<128x128xf32>
    %cst_39 = arith.constant dense<0.000000e+00> : vector<128x128xf32>
    %86 = tpu.matmul %80, %21, %cst_39 {dimension_numbers = #tpu.dot_dimension_numbers<[1], [1], [0], [0], [0, 0, 1, 0], [], []>} : vector<128x32xbf16>, vector<128x32xbf16>, vector<128x128xf32> -> vector<128x128xf32>
    %cst_40 = arith.constant 0.000000e+00 : f32
    %87 = vector.broadcast %cst_40 : f32 to vector<128x128xf32>
    %88 = arith.select %29, %86, %87 : vector<128x128xi1>, vector<128x128xf32>
    %c1_i32_41 = arith.constant 1 : i32
    %89 = tpu.dynamic_rotate %88 by %c1_i32_41 dim 1 {stride = 1 : si32, stride_dimension = 0 : si32} : vector<128x128xf32>, i32 -> vector<128x128xf32>
    %90 = arith.addf %85, %89 : vector<128x128xf32>
    %cst_42 = arith.constant dense<0xFF800000> : vector<128xf32>
    %91 = vector.multi_reduction <maximumf>, %90, %cst_42 [1] : vector<128x128xf32> to vector<128xf32>
    %92 = vector.shape_cast %91 : vector<128xf32> to vector<128x1xf32>
    %93 = vector.broadcast %92 : vector<128x1xf32> to vector<128x128xf32>
    %94 = arith.subf %90, %93 : vector<128x128xf32>
    %95 = math.exp %94 : vector<128x128xf32>
    %cst_43 = arith.constant dense<0.000000e+00> : vector<128xf32>
    %96 = vector.multi_reduction <add>, %95, %cst_43 [1] : vector<128x128xf32> to vector<128xf32>
    %97 = vector.shape_cast %96 : vector<128xf32> to vector<128x1xf32>
    %98 = tpu.reciprocal %97 {approx = true} : vector<128x1xf32> -> vector<128x1xf32>
    %99 = vector.broadcast %98 : vector<128x1xf32> to vector<128x128xf32>
    %100 = arith.mulf %95, %99 : vector<128x128xf32>
    %101 = arith.truncf %100 : vector<128x128xf32> to vector<128x128xbf16>
    %cst_44 = arith.constant dense<0.000000e+00> : vector<128x32xf32>
    %102 = tpu.matmul %101, %82, %cst_44 {dimension_numbers = #tpu.dot_dimension_numbers<[1], [0], [0], [1], [0, 0, 1, 1], [], []>} : vector<128x128xbf16>, vector<128x32xbf16>, vector<128x32xf32> -> vector<128x32xf32>
    %103 = arith.truncf %102 : vector<128x32xf32> to vector<128x32xbf16>
    %c0_45 = arith.constant 0 : index
    %c64 = arith.constant 64 : index
    %104 = vector.load %arg14[%c0_45, %c64] : memref<128x128xbf16, #tpu.memory_space<vmem>>, vector<128x32xbf16>
    tpu.vector_store %arg14[%c0_45, %c64], %103 {strides = array<i32>} : memref<128x128xbf16, #tpu.memory_space<vmem>>, vector<128x32xbf16>,
    %105 = vector.extract_strided_slice %11 {offsets = [0, 96], sizes = [128, 32], strides = [1, 1]} : vector<128x128xbf16> to vector<128x32xbf16>
    %106 = vector.extract_strided_slice %18 {offsets = [0, 96], sizes = [128, 32], strides = [1, 1]} : vector<128x128xbf16> to vector<128x32xbf16>
    %107 = vector.extract_strided_slice %20 {offsets = [0, 96], sizes = [128, 32], strides = [1, 1]} : vector<128x128xbf16> to vector<128x32xbf16>
    %cst_46 = arith.constant dense<0.000000e+00> : vector<128x128xf32>
    %108 = tpu.matmul %105, %106, %cst_46 {dimension_numbers = #tpu.dot_dimension_numbers<[1], [1], [0], [0], [0, 0, 1, 0], [], []>} : vector<128x32xbf16>, vector<128x32xbf16>, vector<128x128xf32> -> vector<128x128xf32>
    %cst_47 = arith.constant -1.000000e+09 : f32
    %109 = vector.broadcast %cst_47 : f32 to vector<128x128xf32>
    %110 = arith.select %24, %109, %108 : vector<128x128xi1>, vector<128x128xf32>
    %cst_48 = arith.constant dense<0.000000e+00> : vector<128x128xf32>
    %111 = tpu.matmul %105, %21, %cst_48 {dimension_numbers = #tpu.dot_dimension_numbers<[1], [1], [0], [0], [0, 0, 1, 0], [], []>} : vector<128x32xbf16>, vector<128x32xbf16>, vector<128x128xf32> -> vector<128x128xf32>
    %cst_49 = arith.constant 0.000000e+00 : f32
    %112 = vector.broadcast %cst_49 : f32 to vector<128x128xf32>
    %113 = arith.select %29, %111, %112 : vector<128x128xi1>, vector<128x128xf32>
    %c1_i32_50 = arith.constant 1 : i32
    %114 = tpu.dynamic_rotate %113 by %c1_i32_50 dim 1 {stride = 1 : si32, stride_dimension = 0 : si32} : vector<128x128xf32>, i32 -> vector<128x128xf32>
    %115 = arith.addf %110, %114 : vector<128x128xf32>
    %cst_51 = arith.constant dense<0xFF800000> : vector<128xf32>
    %116 = vector.multi_reduction <maximumf>, %115, %cst_51 [1] : vector<128x128xf32> to vector<128xf32>
    %117 = vector.shape_cast %116 : vector<128xf32> to vector<128x1xf32>
    %118 = vector.broadcast %117 : vector<128x1xf32> to vector<128x128xf32>
    %119 = arith.subf %115, %118 : vector<128x128xf32>
    %120 = math.exp %119 : vector<128x128xf32>
    %cst_52 = arith.constant dense<0.000000e+00> : vector<128xf32>
    %121 = vector.multi_reduction <add>, %120, %cst_52 [1] : vector<128x128xf32> to vector<128xf32>
    %122 = vector.shape_cast %121 : vector<128xf32> to vector<128x1xf32>
    %123 = tpu.reciprocal %122 {approx = true} : vector<128x1xf32> -> vector<128x1xf32>
    %124 = vector.broadcast %123 : vector<128x1xf32> to vector<128x128xf32>
    %125 = arith.mulf %120, %124 : vector<128x128xf32>
    %126 = arith.truncf %125 : vector<128x128xf32> to vector<128x128xbf16>
    %cst_53 = arith.constant dense<0.000000e+00> : vector<128x32xf32>
    %127 = tpu.matmul %126, %107, %cst_53 {dimension_numbers = #tpu.dot_dimension_numbers<[1], [0], [0], [1], [0, 0, 1, 1], [], []>} : vector<128x128xbf16>, vector<128x32xbf16>, vector<128x32xf32> -> vector<128x32xf32>
    %128 = arith.truncf %127 : vector<128x32xf32> to vector<128x32xbf16>
    %c0_54 = arith.constant 0 : index
    %c96 = arith.constant 96 : index
    %129 = vector.load %arg14[%c0_54, %c96] : memref<128x128xbf16, #tpu.memory_space<vmem>>, vector<128x32xbf16>
    tpu.vector_store %arg14[%c0_54, %c96], %128 {strides = array<i32>} : memref<128x128xbf16, #tpu.memory_space<vmem>>, vector<128x32xbf16>,
    %c0_55 = arith.constant 0 : index
    %c0_56 = arith.constant 0 : index
    %130 = vector.load %arg14[%c0_55, %c0_56] : memref<128x128xbf16, #tpu.memory_space<vmem>>, vector<128x128xbf16>
    %c0_57 = arith.constant 0 : index
    %c0_58 = arith.constant 0 : index
    %131 = vector.load %arg9[%c0_57, %c0_58] : memref<128x128xbf16, #tpu.memory_space<vmem>>, vector<128x128xbf16>
    %cst_59 = arith.constant dense<0.000000e+00> : vector<128x128xf32>
    %132 = tpu.matmul %130, %131, %cst_59 {dimension_numbers = #tpu.dot_dimension_numbers<[1], [0], [0], [1], [0, 0, 1, 1], [], []>} : vector<128x128xbf16>, vector<128x128xbf16>, vector<128x128xf32> -> vector<128x128xf32>
    %c0_60 = arith.constant 0 : index
    %c0_61 = arith.constant 0 : index
    %133 = vector.load %arg10[%c0_60, %c0_61] : memref<1x128xf32, #tpu.memory_space<vmem>>, vector<1x128xf32>
    %134 = vector.broadcast %133 : vector<1x128xf32> to vector<128x128xf32>
    %135 = arith.addf %132, %134 : vector<128x128xf32>
    %136 = arith.addf %135, %1 : vector<128x128xf32>
    %cst_62 = arith.constant dense<0.000000e+00> : vector<128xf32>
    %137 = vector.multi_reduction <add>, %136, %cst_62 [1] : vector<128x128xf32> to vector<128xf32>
    %138 = vector.shape_cast %137 : vector<128xf32> to vector<128x1xf32>
    %cst_63 = arith.constant 1.280000e+02 : f32
    %139 = vector.broadcast %cst_63 : f32 to vector<128x1xf32>
    %140 = arith.divf %138, %139 : vector<128x1xf32>
    %141 = vector.broadcast %140 : vector<128x1xf32> to vector<128x128xf32>
    %142 = arith.subf %136, %141 : vector<128x128xf32>
    %143 = arith.mulf %142, %142 : vector<128x128xf32>
    %cst_64 = arith.constant dense<0.000000e+00> : vector<128xf32>
    %144 = vector.multi_reduction <add>, %143, %cst_64 [1] : vector<128x128xf32> to vector<128xf32>
    %145 = vector.shape_cast %144 : vector<128xf32> to vector<128x1xf32>
    %cst_65 = arith.constant 1.280000e+02 : f32
    %146 = vector.broadcast %cst_65 : f32 to vector<128x1xf32>
    %147 = arith.divf %145, %146 : vector<128x1xf32>
    %148 = vector.broadcast %140 : vector<128x1xf32> to vector<128x128xf32>
    %149 = arith.subf %136, %148 : vector<128x128xf32>
    %cst_66 = arith.constant 9.99999974E-6 : f32
    %150 = vector.broadcast %cst_66 : f32 to vector<128x1xf32>
    %151 = arith.addf %147, %150 : vector<128x1xf32>
    %152 = math.rsqrt %151 : vector<128x1xf32>
    %153 = vector.broadcast %152 : vector<128x1xf32> to vector<128x128xf32>
    %154 = arith.mulf %149, %153 : vector<128x128xf32>
    %c0_67 = arith.constant 0 : index
    %c0_68 = arith.constant 0 : index
    %155 = vector.load %arg11[%c0_67, %c0_68] : memref<1x128xf32, #tpu.memory_space<vmem>>, vector<1x128xf32>
    %156 = vector.broadcast %155 : vector<1x128xf32> to vector<128x128xf32>
    %157 = arith.mulf %154, %156 : vector<128x128xf32>
    %c0_69 = arith.constant 0 : index
    %c0_70 = arith.constant 0 : index
    %158 = vector.load %arg12[%c0_69, %c0_70] : memref<1x128xf32, #tpu.memory_space<vmem>>, vector<1x128xf32>
    %159 = vector.broadcast %158 : vector<1x128xf32> to vector<128x128xf32>
    %160 = arith.addf %157, %159 : vector<128x128xf32>
    %c0_71 = arith.constant 0 : index
    %c0_72 = arith.constant 0 : index
    %c0_73 = arith.constant 0 : index
    %161 = vector.load %arg13[%c0_71, %c0_72, %c0_73] : memref<1x128x128xf32, #tpu.memory_space<vmem>>, vector<1x128x128xf32>
    %162 = vector.shape_cast %161 : vector<1x128x128xf32> to vector<128x128xf32>
    %163 = vector.shape_cast %160 : vector<128x128xf32> to vector<1x128x128xf32>
    tpu.vector_store %arg13[%c0_71, %c0_72, %c0_73], %163 {strides = array<i32>} : memref<1x128x128xf32, #tpu.memory_space<vmem>>, vector<1x128x128xf32>,
    return
  }
  func.func @transform_0(%arg0: i32) -> (i32, i32, i32) {
    %c0_i32 = arith.constant 0 : i32
    %c0_i32_0 = arith.constant 0 : i32
    %c0_i32_1 = arith.constant 0 : i32
    return %arg0, %c0_i32, %c0_i32_0 : i32, i32, i32
  }
  func.func @transform_1(%arg0: i32) -> (i32, i32, i32) {
    %c0_i32 = arith.constant 0 : i32
    %c0_i32_0 = arith.constant 0 : i32
    %c0_i32_1 = arith.constant 0 : i32
    return %arg0, %c0_i32, %c0_i32_0 : i32, i32, i32
  }
  func.func @transform_2(%arg0: i32) -> (i32, i32) {
    %c0_i32 = arith.constant 0 : i32
    %c0_i32_0 = arith.constant 0 : i32
    %c0_i32_1 = arith.constant 0 : i32
    return %c0_i32, %c0_i32_0 : i32, i32
  }
  func.func @transform_3(%arg0: i32) -> (i32, i32) {
    %c0_i32 = arith.constant 0 : i32
    %c0_i32_0 = arith.constant 0 : i32
    %c0_i32_1 = arith.constant 0 : i32
    return %c0_i32, %c0_i32_0 : i32, i32
  }
  func.func @transform_4(%arg0: i32) -> (i32, i32) {
    %c0_i32 = arith.constant 0 : i32
    %c0_i32_0 = arith.constant 0 : i32
    %c0_i32_1 = arith.constant 0 : i32
    return %c0_i32, %c0_i32_0 : i32, i32
  }
  func.func @transform_5(%arg0: i32) -> (i32, i32) {
    %c0_i32 = arith.constant 0 : i32
    %c0_i32_0 = arith.constant 0 : i32
    %c0_i32_1 = arith.constant 0 : i32
    return %c0_i32, %c0_i32_0 : i32, i32
  }
  func.func @transform_6(%arg0: i32) -> (i32, i32) {
    %c0_i32 = arith.constant 0 : i32
    %c0_i32_0 = arith.constant 0 : i32
    %c0_i32_1 = arith.constant 0 : i32
    return %c0_i32, %c0_i32_0 : i32, i32
  }
  func.func @transform_7(%arg0: i32) -> (i32, i32) {
    %c0_i32 = arith.constant 0 : i32
    %c0_i32_0 = arith.constant 0 : i32
    %c0_i32_1 = arith.constant 0 : i32
    return %c0_i32, %c0_i32_0 : i32, i32
  }
  func.func @transform_8(%arg0: i32) -> (i32, i32) {
    %c0_i32 = arith.constant 0 : i32
    %c0_i32_0 = arith.constant 0 : i32
    %c0_i32_1 = arith.constant 0 : i32
    return %c0_i32, %c0_i32_0 : i32, i32
  }
  func.func @transform_9(%arg0: i32) -> (i32, i32) {
    %c0_i32 = arith.constant 0 : i32
    %c0_i32_0 = arith.constant 0 : i32
    %c0_i32_1 = arith.constant 0 : i32
    return %c0_i32, %c0_i32_0 : i32, i32
  }
  func.func @transform_10(%arg0: i32) -> (i32, i32) {
    %c0_i32 = arith.constant 0 : i32
    %c0_i32_0 = arith.constant 0 : i32
    %c0_i32_1 = arith.constant 0 : i32
    return %c0_i32, %c0_i32_0 : i32, i32
  }
  func.func @transform_11(%arg0: i32) -> (i32, i32) {
    %c0_i32 = arith.constant 0 : i32
    %c0_i32_0 = arith.constant 0 : i32
    %c0_i32_1 = arith.constant 0 : i32
    return %c0_i32, %c0_i32_0 : i32, i32
  }
  func.func @transform_12(%arg0: i32) -> (i32, i32, i32) {
    %c0_i32 = arith.constant 0 : i32
    %c0_i32_0 = arith.constant 0 : i32
    %c0_i32_1 = arith.constant 0 : i32
    return %arg0, %c0_i32, %c0_i32_0 : i32, i32, i32
  }
}

module attributes {stable_mosaic.version = 11 : i64} {
  func.func @_attn_block_kernel(%arg0: i32, %arg1: memref<1x128x128xf32, #tpu.memory_space<vmem>>, %arg2: memref<1x128x128xf32, #tpu.memory_space<vmem>>, %arg3: memref<128x128xbf16, #tpu.memory_space<vmem>>, %arg4: memref<1x128xf32, #tpu.memory_space<vmem>>, %arg5: memref<128x256xbf16, #tpu.memory_space<vmem>>, %arg6: memref<1x256xf32, #tpu.memory_space<vmem>>, %arg7: memref<128x32xbf16, #tpu.memory_space<vmem>>, %arg8: memref<128x128xf32, #tpu.memory_space<vmem>>, %arg9: memref<128x128xbf16, #tpu.memory_space<vmem>>, %arg10: memref<1x128xf32, #tpu.memory_space<vmem>>, %arg11: memref<1x128xf32, #tpu.memory_space<vmem>>, %arg12: memref<1x128xf32, #tpu.memory_space<vmem>>, %arg13: memref<1x128x128xf32, #tpu.memory_space<vmem>>, %arg14: memref<128x128xbf16, #tpu.memory_space<vmem>>) attributes {dimension_semantics = [#tpu.dimension_semantics<parallel>], iteration_bounds = array<i64: 2>, scalar_prefetch = 0 : i64, scratch_operands = 1 : i64, tpu.core_type = #tpu.core_type<tc>, window_params = [{transform_indices = @transform_0, window_bounds = array<i64: 1, 128, 128>}, {transform_indices = @transform_1, window_bounds = array<i64: 1, 128, 128>}, {pipeline_mode = #tpu.pipeline_mode<synchronous>, transform_indices = @transform_2, window_bounds = array<i64: 128, 128>}, {pipeline_mode = #tpu.pipeline_mode<synchronous>, transform_indices = @transform_3, window_bounds = array<i64: 1, 128>}, {pipeline_mode = #tpu.pipeline_mode<synchronous>, transform_indices = @transform_4, window_bounds = array<i64: 128, 256>}, {pipeline_mode = #tpu.pipeline_mode<synchronous>, transform_indices = @transform_5, window_bounds = array<i64: 1, 256>}, {pipeline_mode = #tpu.pipeline_mode<synchronous>, transform_indices = @transform_6, window_bounds = array<i64: 128, 32>}, {pipeline_mode = #tpu.pipeline_mode<synchronous>, transform_indices = @transform_7, window_bounds = array<i64: 128, 128>}, {pipeline_mode = #tpu.pipeline_mode<synchronous>, transform_indices = @transform_8, window_bounds = array<i64: 128, 128>}, {pipeline_mode = #tpu.pipeline_mode<synchronous>, transform_indices = @transform_9, window_bounds = array<i64: 1, 128>}, {pipeline_mode = #tpu.pipeline_mode<synchronous>, transform_indices = @transform_10, window_bounds = array<i64: 1, 128>}, {pipeline_mode = #tpu.pipeline_mode<synchronous>, transform_indices = @transform_11, window_bounds = array<i64: 1, 128>}, {transform_indices = @transform_12, window_bounds = array<i64: 1, 128, 128>}]} {
    %c0 = arith.constant 0 : index
    %c0_0 = arith.constant 0 : index
    %c0_1 = arith.constant 0 : index
    %0 = vector.load %arg1[%c0, %c0_0, %c0_1] : memref<1x128x128xf32, #tpu.memory_space<vmem>>, vector<1x128x128xf32>
    %1 = vector.shape_cast %0 : vector<1x128x128xf32> to vector<128x128xf32>
    %2 = arith.truncf %1 : vector<128x128xf32> to vector<128x128xbf16>
    %c0_2 = arith.constant 0 : index
    %c0_3 = arith.constant 0 : index
    %c0_4 = arith.constant 0 : index
    %3 = vector.load %arg2[%c0_2, %c0_3, %c0_4] : memref<1x128x128xf32, #tpu.memory_space<vmem>>, vector<1x128x128xf32>
    %4 = vector.shape_cast %3 : vector<1x128x128xf32> to vector<128x128xf32>
    %5 = arith.truncf %4 : vector<128x128xf32> to vector<128x128xbf16>
    %c0_5 = arith.constant 0 : index
    %c0_6 = arith.constant 0 : index
    %6 = vector.load %arg3[%c0_5, %c0_6] : memref<128x128xbf16, #tpu.memory_space<vmem>>, vector<128x128xbf16>
    %cst = arith.constant dense<0.000000e+00> : vector<128x128xf32>
    %7 = tpu.matmul %2, %6, %cst {dimension_numbers = #tpu.dot_dimension_numbers<[1], [0], [0], [1], [0, 0, 1, 1], [], []>} : vector<128x128xbf16>, vector<128x128xbf16>, vector<128x128xf32> -> vector<128x128xf32>
    %c0_7 = arith.constant 0 : index
    %c0_8 = arith.constant 0 : index
    %8 = vector.load %arg4[%c0_7, %c0_8] : memref<1x128xf32, #tpu.memory_space<vmem>>, vector<1x128xf32>
    %9 = vector.broadcast %8 : vector<1x128xf32> to vector<128x128xf32>
    %10 = arith.addf %7, %9 : vector<128x128xf32>
    %11 = arith.truncf %10 : vector<128x128xf32> to vector<128x128xbf16>
    %c0_9 = arith.constant 0 : index
    %c0_10 = arith.constant 0 : index
    %12 = vector.load %arg5[%c0_9, %c0_10] : memref<128x256xbf16, #tpu.memory_space<vmem>>, vector<128x256xbf16>
    %cst_11 = arith.constant dense<0.000000e+00> : vector<128x256xf32>
    %13 = tpu.matmul %5, %12, %cst_11 {dimension_numbers = #tpu.dot_dimension_numbers<[1], [0], [0], [1], [0, 0, 1, 1], [], []>} : vector<128x128xbf16>, vector<128x256xbf16>, vector<128x256xf32> -> vector<128x256xf32>
    %c0_12 = arith.constant 0 : index
    %c0_13 = arith.constant 0 : index
    %14 = vector.load %arg6[%c0_12, %c0_13] : memref<1x256xf32, #tpu.memory_space<vmem>>, vector<1x256xf32>
    %15 = vector.broadcast %14 : vector<1x256xf32> to vector<128x256xf32>
    %16 = arith.addf %13, %15 : vector<128x256xf32>
    %17 = vector.extract_strided_slice %16 {offsets = [0, 0], sizes = [128, 128], strides = [1, 1]} : vector<128x256xf32> to vector<128x128xf32>
    %18 = arith.truncf %17 : vector<128x128xf32> to vector<128x128xbf16>
    %19 = vector.extract_strided_slice %16 {offsets = [0, 128], sizes = [128, 128], strides = [1, 1]} : vector<128x256xf32> to vector<128x128xf32>
    %20 = arith.truncf %19 : vector<128x128xf32> to vector<128x128xbf16>
    %c0_14 = arith.constant 0 : index
    %c0_15 = arith.constant 0 : index
    %21 = vector.load %arg7[%c0_14, %c0_15] : memref<128x32xbf16, #tpu.memory_space<vmem>>, vector<128x32xbf16>
    %c0_16 = arith.constant 0 : index
    %c0_17 = arith.constant 0 : index
    %22 = vector.load %arg8[%c0_16, %c0_17] : memref<128x128xf32, #tpu.memory_space<vmem>>, vector<128x128xf32>
    %cst_18 = arith.constant 0.000000e+00 : f32
    %23 = vector.broadcast %cst_18 : f32 to vector<128x128xf32>
    %24 = arith.cmpf oeq, %22, %23 : vector<128x128xf32>
    %25 = tpu.iota {dimensions = array<i32: 0>} : vector<128x128xi32>
    %26 = tpu.iota {dimensions = array<i32: 1>} : vector<128x128xi32>
    %c127_i32 = arith.constant 127 : i32
    %27 = vector.broadcast %c127_i32 : i32 to vector<128x128xi32>
    %28 = arith.subi %27, %25 : vector<128x128xi32>
    %29 = arith.cmpi sge, %26, %28 : vector<128x128xi32>
    %30 = vector.extract_strided_slice %11 {offsets = [0, 0], sizes = [128, 32], strides = [1, 1]} : vector<128x128xbf16> to vector<128x32xbf16>
    %31 = vector.extract_strided_slice %18 {offsets = [0, 0], sizes = [128, 32], strides = [1, 1]} : vector<128x128xbf16> to vector<128x32xbf16>
    %32 = vector.extract_strided_slice %20 {offsets = [0, 0], sizes = [128, 32], strides = [1, 1]} : vector<128x128xbf16> to vector<128x32xbf16>
    %cst_19 = arith.constant dense<0.000000e+00> : vector<128x128xf32>
    %33 = tpu.matmul %30, %31, %cst_19 {dimension_numbers = #tpu.dot_dimension_numbers<[1], [1], [0], [0], [0, 0, 1, 0], [], []>} : vector<128x32xbf16>, vector<128x32xbf16>, vector<128x128xf32> -> vector<128x128xf32>
    %cst_20 = arith.constant -1.000000e+09 : f32
    %34 = vector.broadcast %cst_20 : f32 to vector<128x128xf32>
    %35 = arith.select %24, %34, %33 : vector<128x128xi1>, vector<128x128xf32>
    %cst_21 = arith.constant dense<0.000000e+00> : vector<128x128xf32>
    %36 = tpu.matmul %30, %21, %cst_21 {dimension_numbers = #tpu.dot_dimension_numbers<[1], [1], [0], [0], [0, 0, 1, 0], [], []>} : vector<128x32xbf16>, vector<128x32xbf16>, vector<128x128xf32> -> vector<128x128xf32>
    %cst_22 = arith.constant 0.000000e+00 : f32
    %37 = vector.broadcast %cst_22 : f32 to vector<128x128xf32>
    %38 = arith.select %29, %36, %37 : vector<128x128xi1>, vector<128x128xf32>
    %c1_i32 = arith.constant 1 : i32
    %39 = tpu.dynamic_rotate %38 by %c1_i32 dim 1 {stride = 1 : si32, stride_dimension = 0 : si32} : vector<128x128xf32>, i32 -> vector<128x128xf32>
    %40 = arith.addf %35, %39 : vector<128x128xf32>
    %cst_23 = arith.constant dense<0xFF800000> : vector<128xf32>
    %41 = vector.multi_reduction <maximumf>, %40, %cst_23 [1] : vector<128x128xf32> to vector<128xf32>
    %42 = vector.shape_cast %41 : vector<128xf32> to vector<128x1xf32>
    %43 = vector.broadcast %42 : vector<128x1xf32> to vector<128x128xf32>
    %44 = arith.subf %40, %43 : vector<128x128xf32>
    %45 = math.exp %44 : vector<128x128xf32>
    %cst_24 = arith.constant dense<0.000000e+00> : vector<128xf32>
    %46 = vector.multi_reduction <add>, %45, %cst_24 [1] : vector<128x128xf32> to vector<128xf32>
    %47 = vector.shape_cast %46 : vector<128xf32> to vector<128x1xf32>
    %48 = tpu.reciprocal %47 {approx = true} : vector<128x1xf32> -> vector<128x1xf32>
    %49 = vector.broadcast %48 : vector<128x1xf32> to vector<128x128xf32>
    %50 = arith.mulf %45, %49 : vector<128x128xf32>
    %51 = arith.truncf %50 : vector<128x128xf32> to vector<128x128xbf16>
    %cst_25 = arith.constant dense<0.000000e+00> : vector<128x32xf32>
    %52 = tpu.matmul %51, %32, %cst_25 {dimension_numbers = #tpu.dot_dimension_numbers<[1], [0], [0], [1], [0, 0, 1, 1], [], []>} : vector<128x128xbf16>, vector<128x32xbf16>, vector<128x32xf32> -> vector<128x32xf32>
    %53 = arith.truncf %52 : vector<128x32xf32> to vector<128x32xbf16>
    %c0_26 = arith.constant 0 : index
    %c0_27 = arith.constant 0 : index
    %54 = vector.load %arg14[%c0_26, %c0_27] : memref<128x128xbf16, #tpu.memory_space<vmem>>, vector<128x32xbf16>
    tpu.vector_store %arg14[%c0_26, %c0_27], %53 {strides = array<i32>} : memref<128x128xbf16, #tpu.memory_space<vmem>>, vector<128x32xbf16>,
    %55 = vector.extract_strided_slice %11 {offsets = [0, 32], sizes = [128, 32], strides = [1, 1]} : vector<128x128xbf16> to vector<128x32xbf16>
    %56 = vector.extract_strided_slice %18 {offsets = [0, 32], sizes = [128, 32], strides = [1, 1]} : vector<128x128xbf16> to vector<128x32xbf16>
    %57 = vector.extract_strided_slice %20 {offsets = [0, 32], sizes = [128, 32], strides = [1, 1]} : vector<128x128xbf16> to vector<128x32xbf16>
    %cst_28 = arith.constant dense<0.000000e+00> : vector<128x128xf32>
    %58 = tpu.matmul %55, %56, %cst_28 {dimension_numbers = #tpu.dot_dimension_numbers<[1], [1], [0], [0], [0, 0, 1, 0], [], []>} : vector<128x32xbf16>, vector<128x32xbf16>, vector<128x128xf32> -> vector<128x128xf32>
    %cst_29 = arith.constant -1.000000e+09 : f32
    %59 = vector.broadcast %cst_29 : f32 to vector<128x128xf32>
    %60 = arith.select %24, %59, %58 : vector<128x128xi1>, vector<128x128xf32>
    %cst_30 = arith.constant dense<0.000000e+00> : vector<128x128xf32>
    %61 = tpu.matmul %55, %21, %cst_30 {dimension_numbers = #tpu.dot_dimension_numbers<[1], [1], [0], [0], [0, 0, 1, 0], [], []>} : vector<128x32xbf16>, vector<128x32xbf16>, vector<128x128xf32> -> vector<128x128xf32>
    %cst_31 = arith.constant 0.000000e+00 : f32
    %62 = vector.broadcast %cst_31 : f32 to vector<128x128xf32>
    %63 = arith.select %29, %61, %62 : vector<128x128xi1>, vector<128x128xf32>
    %c1_i32_32 = arith.constant 1 : i32
    %64 = tpu.dynamic_rotate %63 by %c1_i32_32 dim 1 {stride = 1 : si32, stride_dimension = 0 : si32} : vector<128x128xf32>, i32 -> vector<128x128xf32>
    %65 = arith.addf %60, %64 : vector<128x128xf32>
    %cst_33 = arith.constant dense<0xFF800000> : vector<128xf32>
    %66 = vector.multi_reduction <maximumf>, %65, %cst_33 [1] : vector<128x128xf32> to vector<128xf32>
    %67 = vector.shape_cast %66 : vector<128xf32> to vector<128x1xf32>
    %68 = vector.broadcast %67 : vector<128x1xf32> to vector<128x128xf32>
    %69 = arith.subf %65, %68 : vector<128x128xf32>
    %70 = math.exp %69 : vector<128x128xf32>
    %cst_34 = arith.constant dense<0.000000e+00> : vector<128xf32>
    %71 = vector.multi_reduction <add>, %70, %cst_34 [1] : vector<128x128xf32> to vector<128xf32>
    %72 = vector.shape_cast %71 : vector<128xf32> to vector<128x1xf32>
    %73 = tpu.reciprocal %72 {approx = true} : vector<128x1xf32> -> vector<128x1xf32>
    %74 = vector.broadcast %73 : vector<128x1xf32> to vector<128x128xf32>
    %75 = arith.mulf %70, %74 : vector<128x128xf32>
    %76 = arith.truncf %75 : vector<128x128xf32> to vector<128x128xbf16>
    %cst_35 = arith.constant dense<0.000000e+00> : vector<128x32xf32>
    %77 = tpu.matmul %76, %57, %cst_35 {dimension_numbers = #tpu.dot_dimension_numbers<[1], [0], [0], [1], [0, 0, 1, 1], [], []>} : vector<128x128xbf16>, vector<128x32xbf16>, vector<128x32xf32> -> vector<128x32xf32>
    %78 = arith.truncf %77 : vector<128x32xf32> to vector<128x32xbf16>
    %c0_36 = arith.constant 0 : index
    %c32 = arith.constant 32 : index
    %79 = vector.load %arg14[%c0_36, %c32] : memref<128x128xbf16, #tpu.memory_space<vmem>>, vector<128x32xbf16>
    tpu.vector_store %arg14[%c0_36, %c32], %78 {strides = array<i32>} : memref<128x128xbf16, #tpu.memory_space<vmem>>, vector<128x32xbf16>,
    %80 = vector.extract_strided_slice %11 {offsets = [0, 64], sizes = [128, 32], strides = [1, 1]} : vector<128x128xbf16> to vector<128x32xbf16>
    %81 = vector.extract_strided_slice %18 {offsets = [0, 64], sizes = [128, 32], strides = [1, 1]} : vector<128x128xbf16> to vector<128x32xbf16>
    %82 = vector.extract_strided_slice %20 {offsets = [0, 64], sizes = [128, 32], strides = [1, 1]} : vector<128x128xbf16> to vector<128x32xbf16>
    %cst_37 = arith.constant dense<0.000000e+00> : vector<128x128xf32>
    %83 = tpu.matmul %80, %81, %cst_37 {dimension_numbers = #tpu.dot_dimension_numbers<[1], [1], [0], [0], [0, 0, 1, 0], [], []>} : vector<128x32xbf16>, vector<128x32xbf16>, vector<128x128xf32> -> vector<128x128xf32>
    %cst_38 = arith.constant -1.000000e+09 : f32
    %84 = vector.broadcast %cst_38 : f32 to vector<128x128xf32>
    %85 = arith.select %24, %84, %83 : vector<128x128xi1>, vector<128x128xf32>
    %cst_39 = arith.constant dense<0.000000e+00> : vector<128x128xf32>
    %86 = tpu.matmul %80, %21, %cst_39 {dimension_numbers = #tpu.dot_dimension_numbers<[1], [1], [0], [0], [0, 0, 1, 0], [], []>} : vector<128x32xbf16>, vector<128x32xbf16>, vector<128x128xf32> -> vector<128x128xf32>
    %cst_40 = arith.constant 0.000000e+00 : f32
    %87 = vector.broadcast %cst_40 : f32 to vector<128x128xf32>
    %88 = arith.select %29, %86, %87 : vector<128x128xi1>, vector<128x128xf32>
    %c1_i32_41 = arith.constant 1 : i32
    %89 = tpu.dynamic_rotate %88 by %c1_i32_41 dim 1 {stride = 1 : si32, stride_dimension = 0 : si32} : vector<128x128xf32>, i32 -> vector<128x128xf32>
    %90 = arith.addf %85, %89 : vector<128x128xf32>
    %cst_42 = arith.constant dense<0xFF800000> : vector<128xf32>
    %91 = vector.multi_reduction <maximumf>, %90, %cst_42 [1] : vector<128x128xf32> to vector<128xf32>
    %92 = vector.shape_cast %91 : vector<128xf32> to vector<128x1xf32>
    %93 = vector.broadcast %92 : vector<128x1xf32> to vector<128x128xf32>
    %94 = arith.subf %90, %93 : vector<128x128xf32>
    %95 = math.exp %94 : vector<128x128xf32>
    %cst_43 = arith.constant dense<0.000000e+00> : vector<128xf32>
    %96 = vector.multi_reduction <add>, %95, %cst_43 [1] : vector<128x128xf32> to vector<128xf32>
    %97 = vector.shape_cast %96 : vector<128xf32> to vector<128x1xf32>
    %98 = tpu.reciprocal %97 {approx = true} : vector<128x1xf32> -> vector<128x1xf32>
    %99 = vector.broadcast %98 : vector<128x1xf32> to vector<128x128xf32>
    %100 = arith.mulf %95, %99 : vector<128x128xf32>
    %101 = arith.truncf %100 : vector<128x128xf32> to vector<128x128xbf16>
    %cst_44 = arith.constant dense<0.000000e+00> : vector<128x32xf32>
    %102 = tpu.matmul %101, %82, %cst_44 {dimension_numbers = #tpu.dot_dimension_numbers<[1], [0], [0], [1], [0, 0, 1, 1], [], []>} : vector<128x128xbf16>, vector<128x32xbf16>, vector<128x32xf32> -> vector<128x32xf32>
    %103 = arith.truncf %102 : vector<128x32xf32> to vector<128x32xbf16>
    %c0_45 = arith.constant 0 : index
    %c64 = arith.constant 64 : index
    %104 = vector.load %arg14[%c0_45, %c64] : memref<128x128xbf16, #tpu.memory_space<vmem>>, vector<128x32xbf16>
    tpu.vector_store %arg14[%c0_45, %c64], %103 {strides = array<i32>} : memref<128x128xbf16, #tpu.memory_space<vmem>>, vector<128x32xbf16>,
    %105 = vector.extract_strided_slice %11 {offsets = [0, 96], sizes = [128, 32], strides = [1, 1]} : vector<128x128xbf16> to vector<128x32xbf16>
    %106 = vector.extract_strided_slice %18 {offsets = [0, 96], sizes = [128, 32], strides = [1, 1]} : vector<128x128xbf16> to vector<128x32xbf16>
    %107 = vector.extract_strided_slice %20 {offsets = [0, 96], sizes = [128, 32], strides = [1, 1]} : vector<128x128xbf16> to vector<128x32xbf16>
    %cst_46 = arith.constant dense<0.000000e+00> : vector<128x128xf32>
    %108 = tpu.matmul %105, %106, %cst_46 {dimension_numbers = #tpu.dot_dimension_numbers<[1], [1], [0], [0], [0, 0, 1, 0], [], []>} : vector<128x32xbf16>, vector<128x32xbf16>, vector<128x128xf32> -> vector<128x128xf32>
    %cst_47 = arith.constant -1.000000e+09 : f32
    %109 = vector.broadcast %cst_47 : f32 to vector<128x128xf32>
    %110 = arith.select %24, %109, %108 : vector<128x128xi1>, vector<128x128xf32>
    %cst_48 = arith.constant dense<0.000000e+00> : vector<128x128xf32>
    %111 = tpu.matmul %105, %21, %cst_48 {dimension_numbers = #tpu.dot_dimension_numbers<[1], [1], [0], [0], [0, 0, 1, 0], [], []>} : vector<128x32xbf16>, vector<128x32xbf16>, vector<128x128xf32> -> vector<128x128xf32>
    %cst_49 = arith.constant 0.000000e+00 : f32
    %112 = vector.broadcast %cst_49 : f32 to vector<128x128xf32>
    %113 = arith.select %29, %111, %112 : vector<128x128xi1>, vector<128x128xf32>
    %c1_i32_50 = arith.constant 1 : i32
    %114 = tpu.dynamic_rotate %113 by %c1_i32_50 dim 1 {stride = 1 : si32, stride_dimension = 0 : si32} : vector<128x128xf32>, i32 -> vector<128x128xf32>
    %115 = arith.addf %110, %114 : vector<128x128xf32>
    %cst_51 = arith.constant dense<0xFF800000> : vector<128xf32>
    %116 = vector.multi_reduction <maximumf>, %115, %cst_51 [1] : vector<128x128xf32> to vector<128xf32>
    %117 = vector.shape_cast %116 : vector<128xf32> to vector<128x1xf32>
    %118 = vector.broadcast %117 : vector<128x1xf32> to vector<128x128xf32>
    %119 = arith.subf %115, %118 : vector<128x128xf32>
    %120 = math.exp %119 : vector<128x128xf32>
    %cst_52 = arith.constant dense<0.000000e+00> : vector<128xf32>
    %121 = vector.multi_reduction <add>, %120, %cst_52 [1] : vector<128x128xf32> to vector<128xf32>
    %122 = vector.shape_cast %121 : vector<128xf32> to vector<128x1xf32>
    %123 = tpu.reciprocal %122 {approx = true} : vector<128x1xf32> -> vector<128x1xf32>
    %124 = vector.broadcast %123 : vector<128x1xf32> to vector<128x128xf32>
    %125 = arith.mulf %120, %124 : vector<128x128xf32>
    %126 = arith.truncf %125 : vector<128x128xf32> to vector<128x128xbf16>
    %cst_53 = arith.constant dense<0.000000e+00> : vector<128x32xf32>
    %127 = tpu.matmul %126, %107, %cst_53 {dimension_numbers = #tpu.dot_dimension_numbers<[1], [0], [0], [1], [0, 0, 1, 1], [], []>} : vector<128x128xbf16>, vector<128x32xbf16>, vector<128x32xf32> -> vector<128x32xf32>
    %128 = arith.truncf %127 : vector<128x32xf32> to vector<128x32xbf16>
    %c0_54 = arith.constant 0 : index
    %c96 = arith.constant 96 : index
    %129 = vector.load %arg14[%c0_54, %c96] : memref<128x128xbf16, #tpu.memory_space<vmem>>, vector<128x32xbf16>
    tpu.vector_store %arg14[%c0_54, %c96], %128 {strides = array<i32>} : memref<128x128xbf16, #tpu.memory_space<vmem>>, vector<128x32xbf16>,
    %c0_55 = arith.constant 0 : index
    %c0_56 = arith.constant 0 : index
    %130 = vector.load %arg14[%c0_55, %c0_56] : memref<128x128xbf16, #tpu.memory_space<vmem>>, vector<128x128xbf16>
    %c0_57 = arith.constant 0 : index
    %c0_58 = arith.constant 0 : index
    %131 = vector.load %arg9[%c0_57, %c0_58] : memref<128x128xbf16, #tpu.memory_space<vmem>>, vector<128x128xbf16>
    %cst_59 = arith.constant dense<0.000000e+00> : vector<128x128xf32>
    %132 = tpu.matmul %130, %131, %cst_59 {dimension_numbers = #tpu.dot_dimension_numbers<[1], [0], [0], [1], [0, 0, 1, 1], [], []>} : vector<128x128xbf16>, vector<128x128xbf16>, vector<128x128xf32> -> vector<128x128xf32>
    %c0_60 = arith.constant 0 : index
    %c0_61 = arith.constant 0 : index
    %133 = vector.load %arg10[%c0_60, %c0_61] : memref<1x128xf32, #tpu.memory_space<vmem>>, vector<1x128xf32>
    %134 = vector.broadcast %133 : vector<1x128xf32> to vector<128x128xf32>
    %135 = arith.addf %132, %134 : vector<128x128xf32>
    %136 = arith.addf %135, %1 : vector<128x128xf32>
    %cst_62 = arith.constant dense<0.000000e+00> : vector<128xf32>
    %137 = vector.multi_reduction <add>, %136, %cst_62 [1] : vector<128x128xf32> to vector<128xf32>
    %138 = vector.shape_cast %137 : vector<128xf32> to vector<128x1xf32>
    %cst_63 = arith.constant 1.280000e+02 : f32
    %139 = vector.broadcast %cst_63 : f32 to vector<128x1xf32>
    %140 = arith.divf %138, %139 : vector<128x1xf32>
    %141 = vector.broadcast %140 : vector<128x1xf32> to vector<128x128xf32>
    %142 = arith.subf %136, %141 : vector<128x128xf32>
    %143 = arith.mulf %142, %142 : vector<128x128xf32>
    %cst_64 = arith.constant dense<0.000000e+00> : vector<128xf32>
    %144 = vector.multi_reduction <add>, %143, %cst_64 [1] : vector<128x128xf32> to vector<128xf32>
    %145 = vector.shape_cast %144 : vector<128xf32> to vector<128x1xf32>
    %cst_65 = arith.constant 1.280000e+02 : f32
    %146 = vector.broadcast %cst_65 : f32 to vector<128x1xf32>
    %147 = arith.divf %145, %146 : vector<128x1xf32>
    %148 = vector.broadcast %140 : vector<128x1xf32> to vector<128x128xf32>
    %149 = arith.subf %136, %148 : vector<128x128xf32>
    %cst_66 = arith.constant 9.99999974E-6 : f32
    %150 = vector.broadcast %cst_66 : f32 to vector<128x1xf32>
    %151 = arith.addf %147, %150 : vector<128x1xf32>
    %152 = math.rsqrt %151 : vector<128x1xf32>
    %153 = vector.broadcast %152 : vector<128x1xf32> to vector<128x128xf32>
    %154 = arith.mulf %149, %153 : vector<128x128xf32>
    %c0_67 = arith.constant 0 : index
    %c0_68 = arith.constant 0 : index
    %155 = vector.load %arg11[%c0_67, %c0_68] : memref<1x128xf32, #tpu.memory_space<vmem>>, vector<1x128xf32>
    %156 = vector.broadcast %155 : vector<1x128xf32> to vector<128x128xf32>
    %157 = arith.mulf %154, %156 : vector<128x128xf32>
    %c0_69 = arith.constant 0 : index
    %c0_70 = arith.constant 0 : index
    %158 = vector.load %arg12[%c0_69, %c0_70] : memref<1x128xf32, #tpu.memory_space<vmem>>, vector<1x128xf32>
    %159 = vector.broadcast %158 : vector<1x128xf32> to vector<128x128xf32>
    %160 = arith.addf %157, %159 : vector<128x128xf32>
    %c0_71 = arith.constant 0 : index
    %c0_72 = arith.constant 0 : index
    %c0_73 = arith.constant 0 : index
    %161 = vector.load %arg13[%c0_71, %c0_72, %c0_73] : memref<1x128x128xf32, #tpu.memory_space<vmem>>, vector<1x128x128xf32>
    %162 = vector.shape_cast %161 : vector<1x128x128xf32> to vector<128x128xf32>
    %163 = vector.shape_cast %160 : vector<128x128xf32> to vector<1x128x128xf32>
    tpu.vector_store %arg13[%c0_71, %c0_72, %c0_73], %163 {strides = array<i32>} : memref<1x128x128xf32, #tpu.memory_space<vmem>>, vector<1x128x128xf32>,
    return
  }
  func.func @transform_0(%arg0: i32) -> (i32, i32, i32) {
    %c0_i32 = arith.constant 0 : i32
    %c0_i32_0 = arith.constant 0 : i32
    %c0_i32_1 = arith.constant 0 : i32
    return %arg0, %c0_i32, %c0_i32_0 : i32, i32, i32
  }
  func.func @transform_1(%arg0: i32) -> (i32, i32, i32) {
    %c0_i32 = arith.constant 0 : i32
    %c0_i32_0 = arith.constant 0 : i32
    %c0_i32_1 = arith.constant 0 : i32
    return %arg0, %c0_i32, %c0_i32_0 : i32, i32, i32
  }
  func.func @transform_2(%arg0: i32) -> (i32, i32) {
    %c0_i32 = arith.constant 0 : i32
    %c0_i32_0 = arith.constant 0 : i32
    %c0_i32_1 = arith.constant 0 : i32
    return %c0_i32, %c0_i32_0 : i32, i32
  }
  func.func @transform_3(%arg0: i32) -> (i32, i32) {
    %c0_i32 = arith.constant 0 : i32
    %c0_i32_0 = arith.constant 0 : i32
    %c0_i32_1 = arith.constant 0 : i32
    return %c0_i32, %c0_i32_0 : i32, i32
  }
  func.func @transform_4(%arg0: i32) -> (i32, i32) {
    %c0_i32 = arith.constant 0 : i32
    %c0_i32_0 = arith.constant 0 : i32
    %c0_i32_1 = arith.constant 0 : i32
    return %c0_i32, %c0_i32_0 : i32, i32
  }
  func.func @transform_5(%arg0: i32) -> (i32, i32) {
    %c0_i32 = arith.constant 0 : i32
    %c0_i32_0 = arith.constant 0 : i32
    %c0_i32_1 = arith.constant 0 : i32
    return %c0_i32, %c0_i32_0 : i32, i32
  }
  func.func @transform_6(%arg0: i32) -> (i32, i32) {
    %c0_i32 = arith.constant 0 : i32
    %c0_i32_0 = arith.constant 0 : i32
    %c0_i32_1 = arith.constant 0 : i32
    return %c0_i32, %c0_i32_0 : i32, i32
  }
  func.func @transform_7(%arg0: i32) -> (i32, i32) {
    %c0_i32 = arith.constant 0 : i32
    %c0_i32_0 = arith.constant 0 : i32
    %c0_i32_1 = arith.constant 0 : i32
    return %c0_i32, %c0_i32_0 : i32, i32
  }
  func.func @transform_8(%arg0: i32) -> (i32, i32) {
    %c0_i32 = arith.constant 0 : i32
    %c0_i32_0 = arith.constant 0 : i32
    %c0_i32_1 = arith.constant 0 : i32
    return %c0_i32, %c0_i32_0 : i32, i32
  }
  func.func @transform_9(%arg0: i32) -> (i32, i32) {
    %c0_i32 = arith.constant 0 : i32
    %c0_i32_0 = arith.constant 0 : i32
    %c0_i32_1 = arith.constant 0 : i32
    return %c0_i32, %c0_i32_0 : i32, i32
  }
  func.func @transform_10(%arg0: i32) -> (i32, i32) {
    %c0_i32 = arith.constant 0 : i32
    %c0_i32_0 = arith.constant 0 : i32
    %c0_i32_1 = arith.constant 0 : i32
    return %c0_i32, %c0_i32_0 : i32, i32
  }
  func.func @transform_11(%arg0: i32) -> (i32, i32) {
    %c0_i32 = arith.constant 0 : i32
    %c0_i32_0 = arith.constant 0 : i32
    %c0_i32_1 = arith.constant 0 : i32
    return %c0_i32, %c0_i32_0 : i32, i32
  }
  func.func @transform_12(%arg0: i32) -> (i32, i32, i32) {
    %c0_i32 = arith.constant 0 : i32
    %c0_i32_0 = arith.constant 0 : i32
    %c0_i32_1 = arith.constant 0 : i32
    return %arg0, %c0_i32, %c0_i32_0 : i32, i32, i32
  }
}

module attributes {stable_mosaic.version = 11 : i64} {
  func.func @_ffn_res_ln_kernel(%arg0: i32, %arg1: memref<128x128xf32, #tpu.memory_space<vmem>>, %arg2: memref<128x256xbf16, #tpu.memory_space<vmem>>, %arg3: memref<1x256xf32, #tpu.memory_space<vmem>>, %arg4: memref<256x128xbf16, #tpu.memory_space<vmem>>, %arg5: memref<1x128xf32, #tpu.memory_space<vmem>>, %arg6: memref<1x128xf32, #tpu.memory_space<vmem>>, %arg7: memref<1x128xf32, #tpu.memory_space<vmem>>, %arg8: memref<128x128xf32, #tpu.memory_space<vmem>>) attributes {dimension_semantics = [#tpu.dimension_semantics<parallel>], iteration_bounds = array<i64: 2>, scalar_prefetch = 0 : i64, scratch_operands = 0 : i64, tpu.core_type = #tpu.core_type<tc>, window_params = [{transform_indices = @transform_0, window_bounds = array<i64: 128, 128>}, {pipeline_mode = #tpu.pipeline_mode<synchronous>, transform_indices = @transform_1, window_bounds = array<i64: 128, 256>}, {pipeline_mode = #tpu.pipeline_mode<synchronous>, transform_indices = @transform_2, window_bounds = array<i64: 1, 256>}, {pipeline_mode = #tpu.pipeline_mode<synchronous>, transform_indices = @transform_3, window_bounds = array<i64: 256, 128>}, {pipeline_mode = #tpu.pipeline_mode<synchronous>, transform_indices = @transform_4, window_bounds = array<i64: 1, 128>}, {pipeline_mode = #tpu.pipeline_mode<synchronous>, transform_indices = @transform_5, window_bounds = array<i64: 1, 128>}, {pipeline_mode = #tpu.pipeline_mode<synchronous>, transform_indices = @transform_6, window_bounds = array<i64: 1, 128>}, {transform_indices = @transform_7, window_bounds = array<i64: 128, 128>}]} {
    %c0 = arith.constant 0 : index
    %c0_0 = arith.constant 0 : index
    %0 = vector.load %arg1[%c0, %c0_0] : memref<128x128xf32, #tpu.memory_space<vmem>>, vector<128x128xf32>
    %1 = arith.truncf %0 : vector<128x128xf32> to vector<128x128xbf16>
    %c0_1 = arith.constant 0 : index
    %c0_2 = arith.constant 0 : index
    %2 = vector.load %arg2[%c0_1, %c0_2] : memref<128x256xbf16, #tpu.memory_space<vmem>>, vector<128x256xbf16>
    %cst = arith.constant dense<0.000000e+00> : vector<128x256xf32>
    %3 = tpu.matmul %1, %2, %cst {dimension_numbers = #tpu.dot_dimension_numbers<[1], [0], [0], [1], [0, 0, 1, 1], [], []>} : vector<128x128xbf16>, vector<128x256xbf16>, vector<128x256xf32> -> vector<128x256xf32>
    %c0_3 = arith.constant 0 : index
    %c0_4 = arith.constant 0 : index
    %4 = vector.load %arg3[%c0_3, %c0_4] : memref<1x256xf32, #tpu.memory_space<vmem>>, vector<1x256xf32>
    %5 = vector.broadcast %4 : vector<1x256xf32> to vector<128x256xf32>
    %6 = arith.addf %3, %5 : vector<128x256xf32>
    %cst_5 = arith.constant 0.000000e+00 : f32
    %7 = vector.broadcast %cst_5 : f32 to vector<128x256xf32>
    %8 = arith.maximumf %6, %7 : vector<128x256xf32>
    %9 = arith.truncf %8 : vector<128x256xf32> to vector<128x256xbf16>
    %c0_6 = arith.constant 0 : index
    %c0_7 = arith.constant 0 : index
    %10 = vector.load %arg4[%c0_6, %c0_7] : memref<256x128xbf16, #tpu.memory_space<vmem>>, vector<256x128xbf16>
    %cst_8 = arith.constant dense<0.000000e+00> : vector<128x128xf32>
    %11 = tpu.matmul %9, %10, %cst_8 {dimension_numbers = #tpu.dot_dimension_numbers<[1], [0], [0], [1], [0, 0, 1, 1], [], []>} : vector<128x256xbf16>, vector<256x128xbf16>, vector<128x128xf32> -> vector<128x128xf32>
    %c0_9 = arith.constant 0 : index
    %c0_10 = arith.constant 0 : index
    %12 = vector.load %arg5[%c0_9, %c0_10] : memref<1x128xf32, #tpu.memory_space<vmem>>, vector<1x128xf32>
    %13 = vector.broadcast %12 : vector<1x128xf32> to vector<128x128xf32>
    %14 = arith.addf %11, %13 : vector<128x128xf32>
    %15 = arith.addf %14, %0 : vector<128x128xf32>
    %cst_11 = arith.constant dense<0.000000e+00> : vector<128xf32>
    %16 = vector.multi_reduction <add>, %15, %cst_11 [1] : vector<128x128xf32> to vector<128xf32>
    %17 = vector.shape_cast %16 : vector<128xf32> to vector<128x1xf32>
    %cst_12 = arith.constant 1.280000e+02 : f32
    %18 = vector.broadcast %cst_12 : f32 to vector<128x1xf32>
    %19 = arith.divf %17, %18 : vector<128x1xf32>
    %20 = vector.broadcast %19 : vector<128x1xf32> to vector<128x128xf32>
    %21 = arith.subf %15, %20 : vector<128x128xf32>
    %22 = arith.mulf %21, %21 : vector<128x128xf32>
    %cst_13 = arith.constant dense<0.000000e+00> : vector<128xf32>
    %23 = vector.multi_reduction <add>, %22, %cst_13 [1] : vector<128x128xf32> to vector<128xf32>
    %24 = vector.shape_cast %23 : vector<128xf32> to vector<128x1xf32>
    %cst_14 = arith.constant 1.280000e+02 : f32
    %25 = vector.broadcast %cst_14 : f32 to vector<128x1xf32>
    %26 = arith.divf %24, %25 : vector<128x1xf32>
    %27 = vector.broadcast %19 : vector<128x1xf32> to vector<128x128xf32>
    %28 = arith.subf %15, %27 : vector<128x128xf32>
    %cst_15 = arith.constant 9.99999974E-6 : f32
    %29 = vector.broadcast %cst_15 : f32 to vector<128x1xf32>
    %30 = arith.addf %26, %29 : vector<128x1xf32>
    %31 = math.rsqrt %30 : vector<128x1xf32>
    %32 = vector.broadcast %31 : vector<128x1xf32> to vector<128x128xf32>
    %33 = arith.mulf %28, %32 : vector<128x128xf32>
    %c0_16 = arith.constant 0 : index
    %c0_17 = arith.constant 0 : index
    %34 = vector.load %arg6[%c0_16, %c0_17] : memref<1x128xf32, #tpu.memory_space<vmem>>, vector<1x128xf32>
    %35 = vector.broadcast %34 : vector<1x128xf32> to vector<128x128xf32>
    %36 = arith.mulf %33, %35 : vector<128x128xf32>
    %c0_18 = arith.constant 0 : index
    %c0_19 = arith.constant 0 : index
    %37 = vector.load %arg7[%c0_18, %c0_19] : memref<1x128xf32, #tpu.memory_space<vmem>>, vector<1x128xf32>
    %38 = vector.broadcast %37 : vector<1x128xf32> to vector<128x128xf32>
    %39 = arith.addf %36, %38 : vector<128x128xf32>
    %c0_20 = arith.constant 0 : index
    %c0_21 = arith.constant 0 : index
    %40 = vector.load %arg8[%c0_20, %c0_21] : memref<128x128xf32, #tpu.memory_space<vmem>>, vector<128x128xf32>
    tpu.vector_store %arg8[%c0_20, %c0_21], %39 {strides = array<i32>} : memref<128x128xf32, #tpu.memory_space<vmem>>, vector<128x128xf32>,
    return
  }
  func.func @transform_0(%arg0: i32) -> (i32, i32) {
    %c0_i32 = arith.constant 0 : i32
    %c0_i32_0 = arith.constant 0 : i32
    return %arg0, %c0_i32 : i32, i32
  }
  func.func @transform_1(%arg0: i32) -> (i32, i32) {
    %c0_i32 = arith.constant 0 : i32
    %c0_i32_0 = arith.constant 0 : i32
    %c0_i32_1 = arith.constant 0 : i32
    return %c0_i32, %c0_i32_0 : i32, i32
  }
  func.func @transform_2(%arg0: i32) -> (i32, i32) {
    %c0_i32 = arith.constant 0 : i32
    %c0_i32_0 = arith.constant 0 : i32
    %c0_i32_1 = arith.constant 0 : i32
    return %c0_i32, %c0_i32_0 : i32, i32
  }
  func.func @transform_3(%arg0: i32) -> (i32, i32) {
    %c0_i32 = arith.constant 0 : i32
    %c0_i32_0 = arith.constant 0 : i32
    %c0_i32_1 = arith.constant 0 : i32
    return %c0_i32, %c0_i32_0 : i32, i32
  }
  func.func @transform_4(%arg0: i32) -> (i32, i32) {
    %c0_i32 = arith.constant 0 : i32
    %c0_i32_0 = arith.constant 0 : i32
    %c0_i32_1 = arith.constant 0 : i32
    return %c0_i32, %c0_i32_0 : i32, i32
  }
  func.func @transform_5(%arg0: i32) -> (i32, i32) {
    %c0_i32 = arith.constant 0 : i32
    %c0_i32_0 = arith.constant 0 : i32
    %c0_i32_1 = arith.constant 0 : i32
    return %c0_i32, %c0_i32_0 : i32, i32
  }
  func.func @transform_6(%arg0: i32) -> (i32, i32) {
    %c0_i32 = arith.constant 0 : i32
    %c0_i32_0 = arith.constant 0 : i32
    %c0_i32_1 = arith.constant 0 : i32
    return %c0_i32, %c0_i32_0 : i32, i32
  }
  func.func @transform_7(%arg0: i32) -> (i32, i32) {
    %c0_i32 = arith.constant 0 : i32
    %c0_i32_0 = arith.constant 0 : i32
    return %arg0, %c0_i32 : i32, i32
  }
}

</mosaic_0001>

<bundles_post_ra>
// kernel: decoder_layer.5
= control target key start
LH: loop header
LB: loop body
LE: loop exit
PB: predicated region body
PF: predicated region fallthrough
CT: control target
= control target key end

     0   :  { %12 = vsyncpa [#allocation3], 0  ;;  %s2028_s0 = inlined_call_operand.vmem [shape: f32[256,128], index: 0, kind: input, shape index: {}]   ;;  %s2029_s1 = inlined_call_operand.vmem [shape: bf16[128,256], index: 1, kind: input, shape index: {}]   ;;  %s2030_s2 = inlined_call_operand.vmem [shape: f32[1,256], index: 2, kind: input, shape index: {}]   ;;  %s2031_s3 = inlined_call_operand.vmem [shape: bf16[256,128], index: 3, kind: input, shape index: {}]   ;;  %s2032_s4 = inlined_call_operand.vmem [shape: f32[1,128], index: 4, kind: input, shape index: {}]   ;;  %s2033_s5 = inlined_call_operand.vmem [shape: f32[1,128], index: 5, kind: input, shape index: {}]   ;;  %s2034_s6 = inlined_call_operand.vmem [shape: f32[1,128], index: 6, kind: input, shape index: {}]   ;;  %s2035_s7 = inlined_call_operand.hbm [shape: f32[256,128], index: 7, kind: output, shape index: {}]  }
   0x1   :  { %14 = vsyncpa [#allocation3 + $0x1], 0  ;;  %s1471_s24 = smov 0   ;;  %s1473_s25 = smov 0  }
   0x2   :  { %s1475_s26 = smov 0   ;;  %s1477_s27 = smov 0  }
   0x3 LB: > { %s1492_s28 = sadd.s32 4294967295, %s1425_s27   ;;  %s1137_s29 = sadd.s32 4294967294, %s1425_s27   ;;  %s1425_s27 = sphi %s1477_s27, %s2041_s27   ;;  %s1421_s26 = sphi %s1475_s26, %s2040_s26   ;;  %s1417_s25 = sphi %s1473_s25, %s2039_s25   ;;  %s1413_s24 = sphi %s1471_s24, %s2038_s24  }
   0x4   : > { %s1496_s30 = sadd.s32 1, %s1425_s27   ;;  %s179_s8 = sadd.s32 1, %s1421_s26 }
   0x5   : > { %s176_s9 = ssub.s32 %s1425_s27, %s1496_s30  ;;  %p189_p0 = scmp.ne.s32.totalorder %s1421_s26, %s1417_s25 }
   0x6   : > { %p177_p1 = scmp.eq.s32.totalorder %s176_s9, 0  ;;  %p190_p2 = scmp.eq.s32.totalorder %s1492_s28, 1 }
   0x7   : > { %p195_p3 = scmp.ne.s32.totalorder %s1417_s25, %s1413_s24  ;;  %p196_p4 = scmp.eq.s32.totalorder %s1137_s29, 1 }
   0x8   : > { %s1507_s10 = scalar_select %p177_p1, %s1421_s26, %s179_s8  }
   0x9   : > { %p1509_p5 = por %p190_p2, %p189_p0  ;;  %p1513_p6 = por %p196_p4, %p195_p3 }
   0xa   : > { %p1140_p7 = scmp.ge.s32.totalorder %s1425_s27, 1  ;;  %p241_p8 = scmp.lt.s32.totalorder %s1425_s27, 3 }
   0xc   : > { %p242_p9 = pnand %p1140_p7, %p241_p8 }
   0xd   : > { %v1291_v0 = vld [vmem:[%s2029_s1 + $0x4] ss:$8 sps:$4 sm:$0xff] (!%p242_p9)   ;;  %v1293_v1 = vld [vmem:[%s2029_s1] ss:$8 sps:$4 sm:$0xff] (!%p242_p9)   ;;  %v1427_v2 = vmov (!%p242_p9), 0   ;;  %s1142_s13 = sshll.u32 (!%p242_p9), %s1492_s28, 4  ;;  %v323_v57 = vlaneseq (!%p242_p9) }
   0xe   : > { %245 = sbr.rel (%p242_p9) target bundleno = 871 (0x367), region = 48  ;;  %445 = vmatprep.mubr.bf16.mxu0 (!%p242_p9), %v1427_v2  ;;  %413 = vmatprep.subr.bf16.mxu0 (!%p242_p9), %v1291_v0  ;;  %v1294_v3 = vld [vmem:[%s2029_s1 + $0x14] ss:$8 sps:$4 sm:$0xff] (!%p242_p9)   ;;  %v1296_v4 = vld [vmem:[%s2029_s1 + $0x10] ss:$8 sps:$4 sm:$0xff] (!%p242_p9)   ;;  %p274_p10 = scmp.lt.s32.totalorder (!%p242_p9), %s1142_s13, 31 }
   0xf   : > { %414 = vmatpush1.bf16.msra.mxu0 (!%p242_p9), %v1293_v1  ;;  %v1297_v5 = vld [vmem:[%s2029_s1 + $0x24] ss:$8 sps:$4 sm:$0xff] (!%p242_p9)   ;;  %v1299_v6 = vld [vmem:[%s2029_s1 + $0x20] ss:$8 sps:$4 sm:$0xff] (!%p242_p9)   ;;  %v1300_v7 = vld [vmem:[%s2029_s1 + $0x34] ss:$8 sps:$4 sm:$0xff] (!%p242_p9)  }
  0x10   : > { %415 = vmatprep.subr.bf16.mxu0 (!%p242_p9), %v1294_v3  ;;  %v1302_v8 = vld [vmem:[%s2029_s1 + $0x30] ss:$8 sps:$4 sm:$0xff] (!%p242_p9)   ;;  %v1303_v9 = vld [vmem:[%s2029_s1 + $0x44] ss:$8 sps:$4 sm:$0xff] (!%p242_p9)   ;;  %v1305_v10 = vld [vmem:[%s2029_s1 + $0x40] ss:$8 sps:$4 sm:$0xff] (!%p242_p9)  }
  0x11   : > { %v1306_v11 = vld [vmem:[%s2029_s1 + $0x54] ss:$8 sps:$4 sm:$0xff] (!%p242_p9)   ;;  %v1315_v12 = vld [vmem:[%s2031_s3 + $0x40] sm:$0xff] (!%p242_p9)   ;;  %v1308_v13 = vld [vmem:[%s2029_s1 + $0x50] ss:$8 sps:$4 sm:$0xff] (!%p242_p9)   ;;  %v324_v58 = vshrl.u32 (!%p242_p9), %v323_v57, 7 }
  0x12   : > { %v1316_v14 = vld [vmem:[%s2031_s3] sm:$0xff] (!%p242_p9)   ;;  %1185 = vmatprep.subr.bf16.mxu1 (!%p242_p9), %v1315_v12  ;;  %v1317_v16 = vld [vmem:[%s2031_s3 + $0x48] sm:$0xff] (!%p242_p9)   ;;  %v1319_v18 = vld [vmem:[%s2031_s3 + $0x50] sm:$0xff] (!%p242_p9)   ;;  %s270_s18 = sand.u32 (!%p242_p9), 1, %s1417_s25   ;;  %s1184_s29 = sshll.u32 (!%p242_p9), %s1492_s28, 11 }
  0x13   : > { %416 = vmatpush1.bf16.msra.mxu0 (!%p242_p9), %v1296_v4  ;;  %v1309_v15 = vld [vmem:[%s2029_s1 + $0x64] ss:$8 sps:$4 sm:$0xff] (!%p242_p9)   ;;  %1186 = vmatpush3.bf16.msra.mxu1 (!%p242_p9), %v1316_v14  ;;  %v1311_v19 = vld [vmem:[%s2029_s1 + $0x60] ss:$8 sps:$4 sm:$0xff] (!%p242_p9)   ;;  %v1312_v20 = vld [vmem:[%s2029_s1 + $0x74] ss:$8 sps:$4 sm:$0xff] (!%p242_p9)  }
  0x14   : > { %417 = vmatprep.subr.bf16.mxu0 (!%p242_p9), %v1297_v5  ;;  %v1318_v17 = vld [vmem:[%s2031_s3 + $0x8] sm:$0xff] (!%p242_p9)   ;;  %1187 = vmatprep.subr.bf16.mxu1 (!%p242_p9), %v1317_v16  ;;  %v1320_v21 = vld [vmem:[%s2031_s3 + $0x10] sm:$0xff] (!%p242_p9)   ;;  %v1321_v22 = vld [vmem:[%s2031_s3 + $0x58] sm:$0xff] (!%p242_p9)   ;;  %v325_v59 = vsub.s32 (!%p242_p9), 0, %v324_v58  ;;  %v329_v61 = vsub.s32 (!%p242_p9), 1, %v324_v58  ;;  %s1141_s22 = sshll.u32 (!%p242_p9), %s270_s18, 7 }
  0x15   : > { %s2043_s13 = smov (!%p274_p10, %s1142_s13), 31  ;;  %v1314_v23 = vld [vmem:[%s2029_s1 + $0x70] ss:$8 sps:$4 sm:$0xff]   ;;  %v1323_v27 = vld [vmem:[%s2031_s3 + $0x60] sm:$0xff]   ;;  %v1325_v30 = vld [vmem:[%s2031_s3 + $0x68] sm:$0xff]   ;;  %s1987_s28 = scalar_lea.sflag [#allocation3], %s270_s18 }
  0x16   : > { %s1143_s19 = sshll.u32 %s2043_s13, 3  ;;  %v1322_v26 = vld [vmem:[%s2031_s3 + $0x18] sm:$0xff]   ;;  %v1324_v29 = vld [vmem:[%s2031_s3 + $0x20] sm:$0xff]   ;;  %v1326_v52 = vld [vmem:[%s2031_s3 + $0x28] sm:$0xff]   ;;  %s1978_s13 = scalar_lea.hbm %s2035_s7, %s1184_s29 }
  0x17   : > { %418 = vmatpush1.bf16.msra.mxu0 %v1299_v6  ;;  %s1584_s16 = scalar_lea.vmem %s2028_s0, %s1143_s19  ;;  %1188 = vmatpush3.bf16.msra.mxu1 %v1318_v17  ;;  %v1327_v53 = vld [vmem:[%s2031_s3 + $0x70] sm:$0xff]   ;;  %v1329_v55 = vld [vmem:[%s2031_s3 + $0x78] sm:$0xff]   ;;  %v321_v60 = vld [vmem:[%s2030_s2] sm:$0x3]  ;;  %s1428_s17 = smov [#allocation2]  }
  0x18   : > { %419 = vmatprep.subr.bf16.mxu0 %v1300_v7  ;;  %1189 = vmatprep.subr.bf16.mxu1 %v1319_v18  ;;  %v1596_v24 = vld [vmem:[%s1584_s16] sm:$0xff]  ;;  %v1599_v25 = vld [vmem:[%s1584_s16 + $0x8] sm:$0xff]  ;;  %v1617_v31 = vld [vmem:[%s1584_s16 + $0x10] sm:$0xff]  ;;  %v1696_v62 = vrot.slane %v321_v60, %v325_v59  ;;  %v1698_v63 = vrot.slane %v321_v60, %v329_v61  ;;  %s1367_s20 = sshll.u32 %s1428_s17, 4  ;;  %s1368_s20 = int_to_ptr.vmem [resolvable:$false] %s1367_s20 }
  0x19   : > { %v297_v28 = vpack.c.bf16 %v1599_v25, %v1596_v24  ;;  %v1620_v32 = vld [vmem:[%s1584_s16 + $0x18] sm:$0xff]  ;;  %v1626_v34 = vld [vmem:[%s1584_s16 + $0x20] sm:$0xff]  ;;  %v1629_v35 = vld [vmem:[%s1584_s16 + $0x28] sm:$0xff]  ;;  %s1369_s21 = scalar_lea.vmem %s1368_s20, 4096 }
  0x1a   : > { %v298_v33 = vpack.c.bf16 %v1620_v32, %v1617_v31  ;;  %v299_v36 = vpack.c.bf16 %v1629_v35, %v1626_v34  ;;  %v1635_v37 = vld [vmem:[%s1584_s16 + $0x30] sm:$0xff]  ;;  %v1638_v38 = vld [vmem:[%s1584_s16 + $0x38] sm:$0xff]  ;;  %v1644_v40 = vld [vmem:[%s1584_s16 + $0x40] sm:$0xff] }
  0x1b   : > { %420 = vmatpush1.bf16.msra.mxu0 %v1302_v8  ;;  %1190 = vmatpush3.bf16.msra.mxu1 %v1320_v21  ;;  %v300_v39 = vpack.c.bf16 %v1638_v38, %v1635_v37  ;;  %v1647_v41 = vld [vmem:[%s1584_s16 + $0x48] sm:$0xff]  ;;  %v1653_v43 = vld [vmem:[%s1584_s16 + $0x50] sm:$0xff]  ;;  %v1656_v44 = vld [vmem:[%s1584_s16 + $0x58] sm:$0xff] }
  0x1c   : > { %421 = vmatprep.subr.bf16.mxu0 %v1303_v9  ;;  %1191 = vmatprep.subr.bf16.mxu1 %v1321_v22  ;;  %v301_v42 = vpack.c.bf16 %v1647_v41, %v1644_v40  ;;  %v302_v45 = vpack.c.bf16 %v1656_v44, %v1653_v43  ;;  %v1662_v46 = vld [vmem:[%s1584_s16 + $0x60] sm:$0xff]  ;;  %v1665_v47 = vld [vmem:[%s1584_s16 + $0x68] sm:$0xff]  ;;  %v1671_v49 = vld [vmem:[%s1584_s16 + $0x70] sm:$0xff] }
  0x1d   : > { %v303_v48 = vpack.c.bf16 %v1665_v47, %v1662_v46  ;;  %v1674_v50 = vld [vmem:[%s1584_s16 + $0x78] sm:$0xff]  ;;  %v1328_v54 = vld [vmem:[%s2031_s3 + $0x30] sm:$0xff]   ;;  %s1914_s16 = scalar_lea.vmem [#allocation2], %s1141_s22 }
  0x1e   : > { %v304_v51 = vpack.c.bf16 %v1674_v50, %v1671_v49  ;;  %v1330_v56 = vld [vmem:[%s2031_s3 + $0x38] sm:$0xff]   ;;  %s1075_s8 = sshll.u32 %s1914_s16, 4  ;;  %s1980_s8 = int_to_ptr.vmem [resolvable:$true] %s1075_s8 }
  0x1f   : > { %422 = vmatpush1.bf16.msra.mxu0 %v1305_v10  ;;  %1192 = vmatpush3.bf16.msra.mxu1 %v1322_v26  ;;  %s1363_s15 = scalar_lea.vmem %s1980_s8, 2048  ;;  %p1370_p0 = scmp.lt.s32.totalorder %s1980_s8, %s1368_s20 }
  0x20   : > { %423 = vmatprep.subr.bf16.mxu0 %v1306_v11  ;;  %1193 = vmatprep.subr.bf16.mxu1 %v1323_v27  ;;  %p1364_p11 = scmp.ne.s32.totalorder %s1980_s8, %s1363_s15  ;;  %p1371_p1 = scmp.lt.s32.totalorder %s1369_s21, %s1363_s15 }
  0x22   : > { %p1365_p12 = pnand %p1364_p11, %p1509_p5  ;;  %p1372_p2 = por %p1371_p1, %p1370_p0 }
  0x23   : > { %424 = vmatpush1.bf16.msra.mxu0 %v1308_v13  ;;  %1194 = vmatpush3.bf16.msra.mxu1 %v1324_v29 }
  0x24   : > { %425 = vmatprep.subr.bf16.mxu0 %v1309_v15  ;;  %1195 = vmatprep.subr.bf16.mxu1 %v1325_v30  ;;  %p1366_p13 = pneg %p1365_p12 }
  0x26   : > { %p1373_p3 = pnand %p1372_p2, %p1366_p13 }
  0x27   : > { %426 = vmatpush1.bf16.msra.mxu0 %v1311_v19  ;;  %1196 = vmatpush3.bf16.msra.mxu1 %v1326_v52 }
  0x28   : > { %427 = vmatprep.subr.bf16.mxu0 %v1312_v20  ;;  %1197 = vmatprep.subr.bf16.mxu1 %v1327_v53 }
  0x2b   : > { %428 = vmatpush1.bf16.msra.mxu0 %v1314_v23  ;;  %1198 = vmatpush3.bf16.msra.mxu1 %v1328_v54 }
  0x2c   : > { %1199 = vmatprep.subr.bf16.mxu1 %v1329_v55 }
  0x2e   : > { %446 = vmatmul.mubr.bf16.vlgmr.msra.gmra.mrb[0].mxu0 %v297_v28 }
  0x2f   : > { %455 = vmatprep.mubr.bf16.mxu0 %v1427_v2  ;;  %1200 = vmatpush3.bf16.msra.mxu1 %v1330_v56 }
  0x36   : > { %456 = vmatmul.mubr.bf16.gmra.mrb[4].mxu0 %v298_v33 }
  0x37   : > { %465 = vmatprep.mubr.bf16.mxu0 %v1427_v2 }
  0x3e   : > { %466 = vmatmul.mubr.bf16.gmra.mrb[8].mxu0 %v299_v36 }
  0x3f   : > { %475 = vmatprep.mubr.bf16.mxu0 %v1427_v2 }
  0x46   : > { %476 = vmatmul.mubr.bf16.gmra.mrb[12].mxu0 %v300_v39 }
  0x47   : > { %485 = vmatprep.mubr.bf16.mxu0 %v1427_v2 }
  0x4e   : > { %486 = vmatmul.mubr.bf16.gmra.mrb[16].mxu0 %v301_v42 }
  0x4f   : > { %495 = vmatprep.mubr.bf16.mxu0 %v1427_v2 }
  0x56   : > { %496 = vmatmul.mubr.bf16.gmra.mrb[20].mxu0 %v302_v45 }
  0x57   : > { %505 = vmatprep.mubr.bf16.mxu0 %v1427_v2 }
  0x5e   : > { %506 = vmatmul.mubr.bf16.gmra.mrb[24].mxu0 %v303_v48 }
  0x5f   : > { %515 = vmatprep.mubr.bf16.mxu0 %v1427_v2 }
  0x66   : > { %516 = vmatmul.mubr.bf16.gmra.mrb[28].mxu0 %v304_v51 }
 0x101   : > { %v447_v0 = vpop.f32.mrb[0].mxu0 }
 0x102   : > { %v448_v1 = vadd.f32 %v447_v0, %v1696_v62  ;;  %v449_v2 = vpop.f32.mrb[1].mxu0 }
 0x103   : > { %v450_v3 = vadd.f32 %v449_v2, %v1698_v63  ;;  %v451_v4 = vpop.f32.mrb[2].mxu0 }
 0x104   : > { %v452_v5 = vadd.f32 %v451_v4, %v1696_v62  ;;  %v453_v6 = vpop.f32.mrb[3].mxu0  ;;  %v526_v8 = vmax.f32 %v448_v1, 0.0 }
 0x105   : > { %v454_v7 = vadd.f32 %v453_v6, %v1698_v63  ;;  %v527_v10 = vmax.f32 %v450_v3, 0.0 }
 0x106   : > { %v528_v9 = vmax.f32 %v452_v5, 0.0 }
 0x107   : > { %v529_v11 = vmax.f32 %v454_v7, 0.0 }
 0x108   : > { %v558_v12 = vpack.c.bf16 %v528_v9, %v526_v8 }
 0x109   : > { %v457_v13 = vpop.f32.mrb[4].mxu0  ;;  %v559_v14 = vpack.c.bf16 %v529_v11, %v527_v10 }
 0x10a   : > { %v458_v15 = vadd.f32 %v457_v13, %v1696_v62  ;;  %v459_v16 = vpop.f32.mrb[5].mxu0 }
 0x10b   : > { %v460_v17 = vadd.f32 %v459_v16, %v1698_v63  ;;  %v461_v18 = vpop.f32.mrb[6].mxu0  ;;  %741 = vmatprep.mubr.bf16.mxu1 %v559_v14 }
 0x10c   : > { %v462_v19 = vadd.f32 %v461_v18, %v1696_v62  ;;  %v463_v20 = vpop.f32.mrb[7].mxu0  ;;  %742 = vmatmul.mubr.bf16.vlgmr.msra.gmra.mrb[0].mxu1 %v558_v12  ;;  %v530_v22 = vmax.f32 %v458_v15, 0.0 }
 0x10d   : > { %v464_v21 = vadd.f32 %v463_v20, %v1698_v63  ;;  %v531_v26 = vmax.f32 %v460_v17, 0.0 }
 0x10e   : > { %v532_v23 = vmax.f32 %v462_v19, 0.0 }
 0x10f   : > { %v533_v27 = vmax.f32 %v464_v21, 0.0 }
 0x110   : > { %v560_v28 = vpack.c.bf16 %v532_v23, %v530_v22 }
 0x111   : > { %v561_v29 = vpack.c.bf16 %v533_v27, %v531_v26  ;;  %v467_v30 = vpop.f32.mrb[8].mxu0 }
 0x112   : > { %v468_v33 = vadd.f32 %v467_v30, %v1696_v62  ;;  %v469_v36 = vpop.f32.mrb[9].mxu0 }
 0x113   : > { %v470_v39 = vadd.f32 %v469_v36, %v1698_v63  ;;  %v471_v42 = vpop.f32.mrb[10].mxu0  ;;  %749 = vmatprep.mubr.bf16.mxu1 %v561_v29 }
 0x114   : > { %v472_v45 = vadd.f32 %v471_v42, %v1696_v62  ;;  %v473_v48 = vpop.f32.mrb[11].mxu0  ;;  %750 = vmatmul.mubr.bf16.gmra.mrb[4].mxu1 %v560_v28  ;;  %v534_v52 = vmax.f32 %v468_v33, 0.0 }
 0x115   : > { %v474_v51 = vadd.f32 %v473_v48, %v1698_v63  ;;  %v535_v54 = vmax.f32 %v470_v39, 0.0 }
 0x116   : > { %v536_v53 = vmax.f32 %v472_v45, 0.0 }
 0x117   : > { %v537_v55 = vmax.f32 %v474_v51, 0.0 }
 0x118   : > { %v562_v56 = vpack.c.bf16 %v536_v53, %v534_v52 }
 0x119   : > { %v563_v57 = vpack.c.bf16 %v537_v55, %v535_v54  ;;  %v477_v58 = vpop.f32.mrb[12].mxu0 }
 0x11a   : > { %v478_v59 = vadd.f32 %v477_v58, %v1696_v62  ;;  %v479_v60 = vpop.f32.mrb[13].mxu0 }
 0x11b   : > { %v480_v61 = vadd.f32 %v479_v60, %v1698_v63  ;;  %v481_v0 = vpop.f32.mrb[14].mxu0  ;;  %757 = vmatprep.mubr.bf16.mxu1 %v563_v57 }
 0x11c   : > { %v482_v1 = vadd.f32 %v481_v0, %v1696_v62  ;;  %v483_v2 = vpop.f32.mrb[15].mxu0  ;;  %758 = vmatmul.mubr.bf16.gmra.mrb[8].mxu1 %v562_v56  ;;  %v538_v4 = vmax.f32 %v478_v59, 0.0 }
 0x11d   : > { %v484_v3 = vadd.f32 %v483_v2, %v1698_v63  ;;  %v539_v6 = vmax.f32 %v480_v61, 0.0 }
 0x11e   : > { %v540_v5 = vmax.f32 %v482_v1, 0.0 }
 0x11f   : > { %v541_v7 = vmax.f32 %v484_v3, 0.0 }
 0x120   : > { %v564_v8 = vpack.c.bf16 %v540_v5, %v538_v4 }
 0x121   : > { %v565_v9 = vpack.c.bf16 %v541_v7, %v539_v6  ;;  %v487_v10 = vpop.f32.mrb[16].mxu0 }
 0x122   : > { %v488_v11 = vadd.f32 %v487_v10, %v1696_v62  ;;  %v489_v12 = vpop.f32.mrb[17].mxu0 }
 0x123   : > { %v490_v13 = vadd.f32 %v489_v12, %v1698_v63  ;;  %v491_v14 = vpop.f32.mrb[18].mxu0  ;;  %765 = vmatprep.mubr.bf16.mxu1 %v565_v9 }
 0x124   : > { %v492_v15 = vadd.f32 %v491_v14, %v1696_v62  ;;  %v493_v16 = vpop.f32.mrb[19].mxu0  ;;  %766 = vmatmul.mubr.bf16.gmra.mrb[12].mxu1 %v564_v8  ;;  %v542_v18 = vmax.f32 %v488_v11, 0.0 }
 0x125   : > { %v494_v17 = vadd.f32 %v493_v16, %v1698_v63  ;;  %v543_v20 = vmax.f32 %v490_v13, 0.0 }
 0x126   : > { %v544_v19 = vmax.f32 %v492_v15, 0.0 }
 0x127   : > { %v545_v21 = vmax.f32 %v494_v17, 0.0 }
 0x128   : > { %v566_v22 = vpack.c.bf16 %v544_v19, %v542_v18 }
 0x129   : > { %v567_v23 = vpack.c.bf16 %v545_v21, %v543_v20  ;;  %v497_v26 = vpop.f32.mrb[20].mxu0  ;;  %v1735_v21 = vld [vmem:[%s2032_s4] ss:$0 sm:$0xff] }
 0x12a   : > { %v498_v27 = vadd.f32 %v497_v26, %v1696_v62  ;;  %v499_v28 = vpop.f32.mrb[21].mxu0 }
 0x12b   : > { %v500_v29 = vadd.f32 %v499_v28, %v1698_v63  ;;  %v501_v30 = vpop.f32.mrb[22].mxu0  ;;  %773 = vmatprep.mubr.bf16.mxu1 %v567_v23 }
 0x12c   : > { %v502_v33 = vadd.f32 %v501_v30, %v1696_v62  ;;  %v503_v36 = vpop.f32.mrb[23].mxu0  ;;  %774 = vmatmul.mubr.bf16.gmra.mrb[16].mxu1 %v566_v22  ;;  %v546_v42 = vmax.f32 %v498_v27, 0.0 }
 0x12d   : > { %v504_v39 = vadd.f32 %v503_v36, %v1698_v63  ;;  %v547_v48 = vmax.f32 %v500_v29, 0.0 }
 0x12e   : > { %v548_v45 = vmax.f32 %v502_v33, 0.0 }
 0x12f   : > { %v549_v51 = vmax.f32 %v504_v39, 0.0 }
 0x130   : > { %v568_v52 = vpack.c.bf16 %v548_v45, %v546_v42 }
 0x131   : > { %v569_v53 = vpack.c.bf16 %v549_v51, %v547_v48  ;;  %v507_v54 = vpop.f32.mrb[24].mxu0 }
 0x132   : > { %v508_v55 = vadd.f32 %v507_v54, %v1696_v62  ;;  %v509_v56 = vpop.f32.mrb[25].mxu0 }
 0x133   : > { %v510_v57 = vadd.f32 %v509_v56, %v1698_v63  ;;  %v511_v58 = vpop.f32.mrb[26].mxu0  ;;  %781 = vmatprep.mubr.bf16.mxu1 %v569_v53 }
 0x134   : > { %v512_v59 = vadd.f32 %v511_v58, %v1696_v62  ;;  %v513_v60 = vpop.f32.mrb[27].mxu0  ;;  %782 = vmatmul.mubr.bf16.gmra.mrb[20].mxu1 %v568_v52  ;;  %v550_v0 = vmax.f32 %v508_v55, 0.0 }
 0x135   : > { %v514_v61 = vadd.f32 %v513_v60, %v1698_v63  ;;  %v551_v2 = vmax.f32 %v510_v57, 0.0 }
 0x136   : > { %v552_v1 = vmax.f32 %v512_v59, 0.0 }
 0x137   : > { %v553_v3 = vmax.f32 %v514_v61, 0.0 }
 0x138   : > { %v570_v4 = vpack.c.bf16 %v552_v1, %v550_v0 }
 0x139   : > { %v571_v5 = vpack.c.bf16 %v553_v3, %v551_v2  ;;  %v517_v6 = vpop.f32.mrb[28].mxu0 }
 0x13a   : > { %v518_v7 = vadd.f32 %v517_v6, %v1696_v62  ;;  %v519_v8 = vpop.f32.mrb[29].mxu0 }
 0x13b   : > { %v520_v9 = vadd.f32 %v519_v8, %v1698_v63  ;;  %v521_v10 = vpop.f32.mrb[30].mxu0  ;;  %789 = vmatprep.mubr.bf16.mxu1 %v571_v5 }
 0x13c   : > { %v522_v11 = vadd.f32 %v521_v10, %v1696_v62  ;;  %v523_v12 = vpop.f32.mrb[31].mxu0  ;;  %790 = vmatmul.mubr.bf16.gmra.mrb[24].mxu1 %v570_v4  ;;  %v554_v14 = vmax.f32 %v518_v7, 0.0 }
 0x13d   : > { %v524_v13 = vadd.f32 %v523_v12, %v1698_v63  ;;  %v555_v16 = vmax.f32 %v520_v9, 0.0 }
 0x13e   : > { %v556_v15 = vmax.f32 %v522_v11, 0.0 }
 0x13f   : > { %v557_v17 = vmax.f32 %v524_v13, 0.0 }
 0x140   : > { %v572_v18 = vpack.c.bf16 %v556_v15, %v554_v14 }
 0x141   : > { %v573_v19 = vpack.c.bf16 %v557_v17, %v555_v16 }
 0x143   : > { %797 = vmatprep.mubr.bf16.mxu1 %v573_v19 }
 0x144   : > { %798 = vmatmul.mubr.bf16.gmra.mrb[28].mxu1 %v572_v18 }
 0x1df   : > { %v1201_v20 = vpop.f32.mrb[0].mxu1 }
 0x1e0   : > { %v1202_v22 = vpop.f32.mrb[1].mxu1 }
 0x1e1   : > { %v1203_v62 = vadd.f32 %v1202_v22, %v1201_v20  ;;  %v1204_v23 = vpop.f32.mrb[2].mxu1 }
 0x1e2   : > { %v1205_v26 = vpop.f32.mrb[3].mxu1 }
 0x1e3   : > { %v744_v63 = vadd.f32 %v1203_v62, %v1735_v21  ;;  %v1206_v27 = vadd.f32 %v1205_v26, %v1204_v23 }
 0x1e5   : > { %v747_v28 = vadd.f32 %v1206_v27, %v1735_v21  ;;  %v1740_v29 = vadd.f32 %v744_v63, %v1596_v24 }
 0x1e7   : > { %v1207_v30 = vpop.f32.mrb[4].mxu1  ;;  %822 = vadd.xlane.f32.xlu0 %v1740_v29  ;;  %v1744_v42 = vadd.f32 %v747_v28, %v1599_v25 }
 0x1e8   : > { %v1208_v33 = vpop.f32.mrb[5].mxu1 }
 0x1e9   : > { %v1209_v36 = vadd.f32 %v1208_v33, %v1207_v30  ;;  %v1210_v39 = vpop.f32.mrb[6].mxu1 }
 0x1ea   : > { %v1211_v45 = vpop.f32.mrb[7].mxu1 }
 0x1eb   : > { %v752_v48 = vadd.f32 %v1209_v36, %v1735_v21  ;;  %v1212_v51 = vadd.f32 %v1211_v45, %v1210_v39  ;;  %824 = vadd.xlane.f32.xlu0 %v1744_v42 }
 0x1ed   : > { %v755_v52 = vadd.f32 %v1212_v51, %v1735_v21  ;;  %v1750_v24 = vadd.f32 %v752_v48, %v1617_v31 }
 0x1ef   : > { %v1213_v53 = vpop.f32.mrb[8].mxu1  ;;  %826 = vadd.xlane.f32.xlu1 %v1750_v24  ;;  %v1754_v25 = vadd.f32 %v755_v52, %v1620_v32 }
 0x1f0   : > { %v1214_v54 = vpop.f32.mrb[9].mxu1 }
 0x1f1   : > { %v1215_v55 = vadd.f32 %v1214_v54, %v1213_v53  ;;  %v1216_v56 = vpop.f32.mrb[10].mxu1 }
 0x1f2   : > { %v1217_v57 = vpop.f32.mrb[11].mxu1 }
 0x1f3   : > { %v760_v58 = vadd.f32 %v1215_v55, %v1735_v21  ;;  %v1218_v59 = vadd.f32 %v1217_v57, %v1216_v56  ;;  %828 = vadd.xlane.f32.xlu1 %v1754_v25 }
 0x1f5   : > { %v763_v60 = vadd.f32 %v1218_v59, %v1735_v21  ;;  %v1760_v31 = vadd.f32 %v760_v58, %v1626_v34 }
 0x1f7   : > { %v1219_v61 = vpop.f32.mrb[12].mxu1  ;;  %830 = vadd.xlane.f32.xlu0 %v1760_v31  ;;  %v1764_v0 = vadd.f32 %v763_v60, %v1629_v35 }
 0x1f8   : > { %v1220_v1 = vpop.f32.mrb[13].mxu1 }
 0x1f9   : > { %v1221_v32 = vadd.f32 %v1220_v1, %v1219_v61  ;;  %v1222_v2 = vpop.f32.mrb[14].mxu1  ;;  %832 = vadd.xlane.f32.xlu1 %v1764_v0 }
 0x1fa   : > { %v1223_v3 = vpop.f32.mrb[15].mxu1 }
 0x1fb   : > { %v768_v4 = vadd.f32 %v1221_v32, %v1735_v21  ;;  %v1224_v5 = vadd.f32 %v1223_v3, %v1222_v2 }
 0x1fd   : > { %v771_v6 = vadd.f32 %v1224_v5, %v1735_v21  ;;  %v1770_v34 = vadd.f32 %v768_v4, %v1635_v37 }
 0x1ff   : > { %v1225_v7 = vpop.f32.mrb[16].mxu1  ;;  %834 = vadd.xlane.f32.xlu0 %v1770_v34  ;;  %v1774_v35 = vadd.f32 %v771_v6, %v1638_v38 }
 0x200   : > { %v1226_v8 = vpop.f32.mrb[17].mxu1 }
 0x201   : > { %v1227_v9 = vadd.f32 %v1226_v8, %v1225_v7  ;;  %v1228_v10 = vpop.f32.mrb[18].mxu1  ;;  %836 = vadd.xlane.f32.xlu1 %v1774_v35 }
 0x202   : > { %v1229_v11 = vpop.f32.mrb[19].mxu1 }
 0x203   : > { %v776_v12 = vadd.f32 %v1227_v9, %v1735_v21  ;;  %v1230_v13 = vadd.f32 %v1229_v11, %v1228_v10 }
 0x205   : > { %v779_v14 = vadd.f32 %v1230_v13, %v1735_v21  ;;  %v1780_v37 = vadd.f32 %v776_v12, %v1644_v40 }
 0x207   : > { %v1231_v15 = vpop.f32.mrb[20].mxu1  ;;  %838 = vadd.xlane.f32.xlu0 %v1780_v37  ;;  %v1784_v38 = vadd.f32 %v779_v14, %v1647_v41 }
 0x208   : > { %v1232_v16 = vpop.f32.mrb[21].mxu1 }
 0x209   : > { %v1233_v17 = vadd.f32 %v1232_v16, %v1231_v15  ;;  %v1234_v18 = vpop.f32.mrb[22].mxu1  ;;  %840 = vadd.xlane.f32.xlu1 %v1784_v38 }
 0x20a   : > { %v1235_v19 = vpop.f32.mrb[23].mxu1 }
 0x20b   : > { %v784_v20 = vadd.f32 %v1233_v17, %v1735_v21  ;;  %v1236_v22 = vadd.f32 %v1235_v19, %v1234_v18 }
 0x20d   : > { %v787_v62 = vadd.f32 %v1236_v22, %v1735_v21  ;;  %v1790_v40 = vadd.f32 %v784_v20, %v1653_v43 }
 0x20f   : > { %v1237_v23 = vpop.f32.mrb[24].mxu1  ;;  %842 = vadd.xlane.f32.xlu0 %v1790_v40  ;;  %v1794_v41 = vadd.f32 %v787_v62, %v1656_v44 }
 0x210   : > { %v1238_v26 = vpop.f32.mrb[25].mxu1 }
 0x211   : > { %v1239_v63 = vadd.f32 %v1238_v26, %v1237_v23  ;;  %v1240_v27 = vpop.f32.mrb[26].mxu1  ;;  %844 = vadd.xlane.f32.xlu1 %v1794_v41 }
 0x212   : > { %v1241_v28 = vpop.f32.mrb[27].mxu1 }
 0x213   : > { %v792_v30 = vadd.f32 %v1239_v63, %v1735_v21  ;;  %v1242_v33 = vadd.f32 %v1241_v28, %v1240_v27 }
 0x215   : > { %v795_v36 = vadd.f32 %v1242_v33, %v1735_v21  ;;  %v1800_v43 = vadd.f32 %v792_v30, %v1662_v46 }
 0x217   : > { %v1243_v39 = vpop.f32.mrb[28].mxu1  ;;  %846 = vadd.xlane.f32.xlu0 %v1800_v43  ;;  %v1804_v44 = vadd.f32 %v795_v36, %v1665_v47 }
 0x218   : > { %v1244_v45 = vpop.f32.mrb[29].mxu1 }
 0x219   : > { %v1245_v48 = vadd.f32 %v1244_v45, %v1243_v39  ;;  %v1246_v51 = vpop.f32.mrb[30].mxu1  ;;  %848 = vadd.xlane.f32.xlu1 %v1804_v44 }
 0x21a   : > { %v1247_v52 = vpop.f32.mrb[31].mxu1 }
 0x21b   : > { %v800_v53 = vadd.f32 %v1245_v48, %v1735_v21  ;;  %v1248_v54 = vadd.f32 %v1247_v52, %v1246_v51 }
 0x21d   : > { %v803_v55 = vadd.f32 %v1248_v54, %v1735_v21  ;;  %v1810_v46 = vadd.f32 %v800_v53, %v1671_v49 }
 0x21f   : > { %850 = vadd.xlane.f32.xlu0 %v1810_v46  ;;  %v1814_v56 = vadd.f32 %v803_v55, %v1674_v50 }
 0x221   : > { %852 = vadd.xlane.f32.xlu1 %v1814_v56 }
 0x274   : > { %v823_v47 = vpop.xlane.xlu0 %822 }
 0x275   : > { %v855_v57 = vmul.f32 0.0078125, %v823_v47 }
 0x277   : > { %v1818_v58 = vsub.f32 %v1740_v29, %v855_v57 }
 0x278   : > { %v825_v59 = vpop.xlane.xlu0 %824 }
 0x279   : > { %v856_v60 = vmul.f32 0.0078125, %v825_v59  ;;  %v887_v21 = vmul.f32 %v1818_v58, %v1818_v58 }
 0x27b   : > { %v1823_v49 = vsub.f32 %v1744_v42, %v856_v60  ;;  %903 = vadd.xlane.f32.xlu0 %v887_v21 }
 0x27c   : > { %v827_v61 = vpop.xlane.xlu1 %826 }
 0x27d   : > { %v857_v1 = vmul.f32 0.0078125, %v827_v61  ;;  %v888_v50 = vmul.f32 %v1823_v49, %v1823_v49 }
 0x27f   : > { %v1828_v32 = vsub.f32 %v1750_v24, %v857_v1  ;;  %905 = vadd.xlane.f32.xlu1 %v888_v50 }
 0x280   : > { %v829_v29 = vpop.xlane.xlu1 %828 }
 0x281   : > { %v858_v2 = vmul.f32 0.0078125, %v829_v29  ;;  %v889_v3 = vmul.f32 %v1828_v32, %v1828_v32 }
 0x283   : > { %v1833_v4 = vsub.f32 %v1754_v25, %v858_v2  ;;  %907 = vadd.xlane.f32.xlu0 %v889_v3 }
 0x284   : > { %v831_v42 = vpop.xlane.xlu0 %830 }
 0x285   : > { %v859_v5 = vmul.f32 0.0078125, %v831_v42  ;;  %v890_v6 = vmul.f32 %v1833_v4, %v1833_v4 }
 0x286   : > { %v833_v7 = vpop.xlane.xlu1 %832 }
 0x287   : > { %v1838_v8 = vsub.f32 %v1760_v31, %v859_v5  ;;  %v860_v24 = vmul.f32 0.0078125, %v833_v7  ;;  %909 = vadd.xlane.f32.xlu1 %v890_v6  ;;  %v1901_v5 = vld [vmem:[%s2033_s5] ss:$0 sm:$0xff] }
 0x289   : > { %v1841_v9 = vsub.f32 %v1764_v0, %v860_v24  ;;  %v891_v10 = vmul.f32 %v1838_v8, %v1838_v8 }
 0x28b   : > { %911 = vadd.xlane.f32.xlu0 %v891_v10  ;;  %v892_v25 = vmul.f32 %v1841_v9, %v1841_v9  ;;  %v1909_v10 = vld [vmem:[%s2034_s6] ss:$0 sm:$0xff] }
 0x28c   : > { %v835_v11 = vpop.xlane.xlu0 %834 }
 0x28d   : > { %v861_v12 = vmul.f32 0.0078125, %v835_v11  ;;  %913 = vadd.xlane.f32.xlu1 %v892_v25 }
 0x28e   : > { %v837_v13 = vpop.xlane.xlu1 %836 }
 0x28f   : > { %v1848_v14 = vsub.f32 %v1770_v34, %v861_v12  ;;  %v862_v31 = vmul.f32 0.0078125, %v837_v13 }
 0x291   : > { %v1851_v15 = vsub.f32 %v1774_v35, %v862_v31  ;;  %v893_v0 = vmul.f32 %v1848_v14, %v1848_v14 }
 0x293   : > { %915 = vadd.xlane.f32.xlu0 %v893_v0  ;;  %v894_v16 = vmul.f32 %v1851_v15, %v1851_v15 }
 0x294   : > { %v839_v17 = vpop.xlane.xlu0 %838 }
 0x295   : > { %v863_v18 = vmul.f32 0.0078125, %v839_v17  ;;  %917 = vadd.xlane.f32.xlu1 %v894_v16 }
 0x296   : > { %v841_v19 = vpop.xlane.xlu1 %840 }
 0x297   : > { %v1858_v20 = vsub.f32 %v1780_v37, %v863_v18  ;;  %v864_v34 = vmul.f32 0.0078125, %v841_v19 }
 0x299   : > { %v1861_v22 = vsub.f32 %v1784_v38, %v864_v34  ;;  %v895_v35 = vmul.f32 %v1858_v20, %v1858_v20 }
 0x29b   : > { %919 = vadd.xlane.f32.xlu0 %v895_v35  ;;  %v896_v62 = vmul.f32 %v1861_v22, %v1861_v22 }
 0x29c   : > { %v843_v23 = vpop.xlane.xlu0 %842 }
 0x29d   : > { %v865_v26 = vmul.f32 0.0078125, %v843_v23  ;;  %921 = vadd.xlane.f32.xlu1 %v896_v62 }
 0x29e   : > { %v845_v63 = vpop.xlane.xlu1 %844 }
 0x29f   : > { %v1868_v27 = vsub.f32 %v1790_v40, %v865_v26  ;;  %v866_v37 = vmul.f32 0.0078125, %v845_v63 }
 0x2a1   : > { %v1871_v28 = vsub.f32 %v1794_v41, %v866_v37  ;;  %v897_v38 = vmul.f32 %v1868_v27, %v1868_v27 }
 0x2a3   : > { %923 = vadd.xlane.f32.xlu0 %v897_v38  ;;  %v898_v30 = vmul.f32 %v1871_v28, %v1871_v28 }
 0x2a4   : > { %v847_v33 = vpop.xlane.xlu0 %846 }
 0x2a5   : > { %v867_v36 = vmul.f32 0.0078125, %v847_v33  ;;  %925 = vadd.xlane.f32.xlu1 %v898_v30 }
 0x2a6   : > { %v849_v39 = vpop.xlane.xlu1 %848 }
 0x2a7   : > { %v1878_v45 = vsub.f32 %v1800_v43, %v867_v36  ;;  %v868_v40 = vmul.f32 0.0078125, %v849_v39 }
 0x2a9   : > { %v1881_v48 = vsub.f32 %v1804_v44, %v868_v40  ;;  %v899_v41 = vmul.f32 %v1878_v45, %v1878_v45 }
 0x2ab   : > { %927 = vadd.xlane.f32.xlu0 %v899_v41  ;;  %v900_v51 = vmul.f32 %v1881_v48, %v1881_v48 }
 0x2ac   : > { %v851_v52 = vpop.xlane.xlu0 %850 }
 0x2ad   : > { %v869_v53 = vmul.f32 0.0078125, %v851_v52  ;;  %929 = vadd.xlane.f32.xlu1 %v900_v51 }
 0x2ae   : > { %v853_v54 = vpop.xlane.xlu1 %852 }
 0x2af   : > { %v1888_v55 = vsub.f32 %v1810_v46, %v869_v53  ;;  %v870_v43 = vmul.f32 0.0078125, %v853_v54 }
 0x2b1   : > { %v1891_v47 = vsub.f32 %v1814_v56, %v870_v43  ;;  %v901_v44 = vmul.f32 %v1888_v55, %v1888_v55 }
 0x2b3   : > { %931 = vadd.xlane.f32.xlu0 %v901_v44  ;;  %v902_v57 = vmul.f32 %v1891_v47, %v1891_v47 }
 0x2b5   : > { %933 = vadd.xlane.f32.xlu1 %v902_v57 }
 0x308   : > { %v904_v59 = vpop.xlane.xlu0 %903 }
 0x309   : > { %v935_v60 = vmul.f32 0.0078125, %v904_v59 }
 0x30b   : > { %v951_v21 = vadd.f32 1e-05, %v935_v60 }
 0x30c   : > { %v906_v61 = vpop.xlane.xlu1 %905 }
 0x30d   : > { %1331 = vrsqrt.f32 %v951_v21  ;;  %v936_v46 = vmul.f32 0.0078125, %v906_v61 }
 0x30f   : > { %v952_v1 = vadd.f32 1e-05, %v936_v46 }
 0x310   : > { %v908_v50 = vpop.xlane.xlu0 %907 }
 0x311   : > { %1333 = vrsqrt.f32 %v952_v1  ;;  %v937_v56 = vmul.f32 0.0078125, %v908_v50 }
 0x313   : > { %v953_v29 = vadd.f32 1e-05, %v937_v56 }
 0x314   : > { %v910_v2 = vpop.xlane.xlu1 %909 }
 0x315   : > { %1335 = vrsqrt.f32 %v953_v29  ;;  %v938_v3 = vmul.f32 0.0078125, %v910_v2 }
 0x317   : > { %v1332_v42 = vpop.eup %1331  ;;  %v954_v6 = vadd.f32 1e-05, %v938_v3 }
 0x318   : > { %v983_v7 = vmul.f32 %v1332_v42, %v1818_v58  ;;  %v912_v24 = vpop.xlane.xlu0 %911 }
 0x319   : > { %1337 = vrsqrt.f32 %v954_v6  ;;  %v939_v25 = vmul.f32 0.0078125, %v912_v24 }
 0x31a   : > { %v1006_v11 = vmul.f32 %v1901_v5, %v983_v7  ;;  %v914_v12 = vpop.xlane.xlu1 %913 }
 0x31b   : > { %v1334_v13 = vpop.eup %1333  ;;  %v955_v31 = vadd.f32 1e-05, %v939_v25  ;;  %v940_v0 = vmul.f32 0.0078125, %v914_v12 }
 0x31c   : > { %v1029_v16 = vadd.f32 %v1909_v10, %v1006_v11  ;;  %v984_v17 = vmul.f32 %v1334_v13, %v1823_v49 }
 0x31d   : > { %1339 = vrsqrt.f32 %v955_v31  ;;  %v956_v58 = vadd.f32 1e-05, %v940_v0 }
 0x31e   : > { %1045 = vst [vmem:[%s1914_s16] sm:$0xff] %v1029_v16  ;;  %v1007_v18 = vmul.f32 %v1901_v5, %v984_v17 }
 0x31f   : > { %v1336_v19 = vpop.eup %1335  ;;  %1341 = vrsqrt.f32 %v956_v58 }
 0x320   : > { %v1030_v34 = vadd.f32 %v1909_v10, %v1007_v18  ;;  %v985_v35 = vmul.f32 %v1336_v19, %v1828_v32  ;;  %v916_v62 = vpop.xlane.xlu0 %915 }
 0x321   : > { %v941_v23 = vmul.f32 0.0078125, %v916_v62 }
 0x322   : > { %1046 = vst [vmem:[%s1914_s16 + $0x8] sm:$0xff] %v1030_v34  ;;  %v1008_v49 = vmul.f32 %v1901_v5, %v985_v35  ;;  %v918_v26 = vpop.xlane.xlu1 %917 }
 0x323   : > { %v1338_v63 = vpop.eup %1337  ;;  %v957_v37 = vadd.f32 1e-05, %v941_v23  ;;  %v942_v38 = vmul.f32 0.0078125, %v918_v26 }
 0x324   : > { %v1031_v30 = vadd.f32 %v1909_v10, %v1008_v49  ;;  %v986_v33 = vmul.f32 %v1338_v63, %v1833_v4 }
 0x325   : > { %1343 = vrsqrt.f32 %v957_v37  ;;  %v958_v36 = vadd.f32 1e-05, %v942_v38 }
 0x326   : > { %1047 = vst [vmem:[%s1914_s16 + $0x10] sm:$0xff] %v1031_v30  ;;  %v1009_v39 = vmul.f32 %v1901_v5, %v986_v33 }
 0x327   : > { %v1340_v32 = vpop.eup %1339  ;;  %1345 = vrsqrt.f32 %v958_v36 }
 0x328   : > { %v1032_v40 = vadd.f32 %v1909_v10, %v1009_v39  ;;  %v987_v41 = vmul.f32 %v1340_v32, %v1838_v8  ;;  %v920_v51 = vpop.xlane.xlu0 %919 }
 0x329   : > { %v1342_v52 = vpop.eup %1341  ;;  %v943_v53 = vmul.f32 0.0078125, %v920_v51 }
 0x32a   : > { %1048 = vst [vmem:[%s1914_s16 + $0x18] sm:$0xff] %v1032_v40  ;;  %v1010_v54 = vmul.f32 %v1901_v5, %v987_v41  ;;  %v988_v4 = vmul.f32 %v1342_v52, %v1841_v9  ;;  %v922_v43 = vpop.xlane.xlu1 %921 }
 0x32b   : > { %v959_v44 = vadd.f32 1e-05, %v943_v53  ;;  %v944_v57 = vmul.f32 0.0078125, %v922_v43 }
 0x32c   : > { %v1033_v59 = vadd.f32 %v1909_v10, %v1010_v54  ;;  %v1011_v60 = vmul.f32 %v1901_v5, %v988_v4 }
 0x32d   : > { %1347 = vrsqrt.f32 %v959_v44  ;;  %v960_v21 = vadd.f32 1e-05, %v944_v57 }
 0x32e   : > { %1049 = vst [vmem:[%s1914_s16 + $0x20] sm:$0xff] %v1033_v59  ;;  %v1034_v8 = vadd.f32 %v1909_v10, %v1011_v60 }
 0x32f   : > { %v1344_v61 = vpop.eup %1343  ;;  %1349 = vrsqrt.f32 %v960_v21 }
 0x330   : > { %1050 = vst [vmem:[%s1914_s16 + $0x28] sm:$0xff] %v1034_v8  ;;  %v989_v46 = vmul.f32 %v1344_v61, %v1848_v14  ;;  %v924_v1 = vpop.xlane.xlu0 %923 }
 0x331   : > { %v1346_v9 = vpop.eup %1345  ;;  %v945_v50 = vmul.f32 0.0078125, %v924_v1 }
 0x332   : > { %v1012_v56 = vmul.f32 %v1901_v5, %v989_v46  ;;  %v990_v29 = vmul.f32 %v1346_v9, %v1851_v15  ;;  %v926_v2 = vpop.xlane.xlu1 %925 }
 0x333   : > { %v961_v3 = vadd.f32 1e-05, %v945_v50  ;;  %v946_v42 = vmul.f32 0.0078125, %v926_v2 }
 0x334   : > { %v1035_v6 = vadd.f32 %v1909_v10, %v1012_v56  ;;  %v1013_v7 = vmul.f32 %v1901_v5, %v990_v29 }
 0x335   : > { %1351 = vrsqrt.f32 %v961_v3  ;;  %v962_v24 = vadd.f32 1e-05, %v946_v42 }
 0x336   : > { %1051 = vst [vmem:[%s1914_s16 + $0x30] sm:$0xff] %v1035_v6  ;;  %v1036_v14 = vadd.f32 %v1909_v10, %v1013_v7 }
 0x337   : > { %v1348_v25 = vpop.eup %1347  ;;  %1353 = vrsqrt.f32 %v962_v24 }
 0x338   : > { %1052 = vst [vmem:[%s1914_s16 + $0x38] sm:$0xff] %v1036_v14  ;;  %v991_v11 = vmul.f32 %v1348_v25, %v1858_v20  ;;  %v928_v12 = vpop.xlane.xlu0 %927 }
 0x339   : > { %v1350_v15 = vpop.eup %1349  ;;  %v947_v13 = vmul.f32 0.0078125, %v928_v12 }
 0x33a   : > { %v1014_v31 = vmul.f32 %v1901_v5, %v991_v11  ;;  %v992_v0 = vmul.f32 %v1350_v15, %v1861_v22  ;;  %v930_v16 = vpop.xlane.xlu1 %929 }
 0x33b   : > { %v963_v17 = vadd.f32 1e-05, %v947_v13  ;;  %v948_v58 = vmul.f32 0.0078125, %v930_v16 }
 0x33c   : > { %v1037_v18 = vadd.f32 %v1909_v10, %v1014_v31  ;;  %v1015_v19 = vmul.f32 %v1901_v5, %v992_v0 }
 0x33d   : > { %1355 = vrsqrt.f32 %v963_v17  ;;  %v964_v34 = vadd.f32 1e-05, %v948_v58 }
 0x33e   : > { %1053 = vst [vmem:[%s1914_s16 + $0x40] sm:$0xff] %v1037_v18  ;;  %v1038_v20 = vadd.f32 %v1909_v10, %v1015_v19 }
 0x33f   : > { %v1352_v35 = vpop.eup %1351  ;;  %1357 = vrsqrt.f32 %v964_v34 }
 0x340   : > { %1054 = vst [vmem:[%s1914_s16 + $0x48] sm:$0xff] %v1038_v20  ;;  %v993_v62 = vmul.f32 %v1352_v35, %v1868_v27  ;;  %v932_v23 = vpop.xlane.xlu0 %931 }
 0x341   : > { %v1354_v22 = vpop.eup %1353  ;;  %v949_v49 = vmul.f32 0.0078125, %v932_v23 }
 0x342   : > { %v1016_v26 = vmul.f32 %v1901_v5, %v993_v62  ;;  %v994_v63 = vmul.f32 %v1354_v22, %v1871_v28  ;;  %v934_v37 = vpop.xlane.xlu1 %933 }
 0x343   : > { %v965_v38 = vadd.f32 1e-05, %v949_v49  ;;  %v950_v30 = vmul.f32 0.0078125, %v934_v37 }
 0x344   : > { %v1039_v33 = vadd.f32 %v1909_v10, %v1016_v26  ;;  %v1017_v36 = vmul.f32 %v1901_v5, %v994_v63 }
 0x345   : > { %1359 = vrsqrt.f32 %v965_v38  ;;  %v966_v39 = vadd.f32 1e-05, %v950_v30 }
 0x346   : > { %1055 = vst [vmem:[%s1914_s16 + $0x50] sm:$0xff] %v1039_v33  ;;  %v1040_v27 = vadd.f32 %v1909_v10, %v1017_v36 }
 0x347   : > { %v1356_v32 = vpop.eup %1355  ;;  %1361 = vrsqrt.f32 %v966_v39 }
 0x348   : > { %1056 = vst [vmem:[%s1914_s16 + $0x58] sm:$0xff] %v1040_v27  ;;  %v995_v28 = vmul.f32 %v1356_v32, %v1878_v45 }
 0x349   : > { %v1358_v40 = vpop.eup %1357 }
 0x34a   : > { %v1018_v41 = vmul.f32 %v1901_v5, %v995_v28  ;;  %v996_v51 = vmul.f32 %v1358_v40, %v1881_v48 }
 0x34c   : > { %v1041_v52 = vadd.f32 %v1909_v10, %v1018_v41  ;;  %v1019_v53 = vmul.f32 %v1901_v5, %v996_v51 }
 0x34e   : > { %1057 = vst [vmem:[%s1914_s16 + $0x60] sm:$0xff] %v1041_v52  ;;  %v1042_v54 = vadd.f32 %v1909_v10, %v1019_v53 }
 0x34f   : > { %v1360_v4 = vpop.eup %1359 }
 0x350   : > { %1058 = vst [vmem:[%s1914_s16 + $0x68] sm:$0xff] %v1042_v54  ;;  %v997_v43 = vmul.f32 %v1360_v4, %v1888_v55 }
 0x351   : > { %v1362_v45 = vpop.eup %1361 }
 0x352   : > { %v1020_v44 = vmul.f32 %v1901_v5, %v997_v43  ;;  %v998_v48 = vmul.f32 %v1362_v45, %v1891_v47 }
 0x354   : > { %v1043_v57 = vadd.f32 %v1909_v10, %v1020_v44  ;;  %v1021_v59 = vmul.f32 %v1901_v5, %v998_v48 }
 0x356   : > { %1059 = vst [vmem:[%s1914_s16 + $0x70] sm:$0xff] %v1043_v57  ;;  %v1044_v55 = vadd.f32 %v1909_v10, %v1021_v59 }
 0x358   : > { %1060 = vst [vmem:[%s1914_s16 + $0x78] sm:$0xff] %v1044_v55 }
 0x359   : > { %1376 = shalt.err (!%p1373_p3)
}
 0x35a   : > { %s1377_s18 = scalar_lea.hbm %s1978_s13, 2048  ;;  %s1381_s19 = scalar_lea.hbm %s2035_s7, 4096 }
 0x35b   : > { %p1378_p4 = scmp.ne.s32.totalorder %s1978_s13, %s1377_s18  ;;  %p1382_p9 = scmp.lt.u32.totalorder %s1978_s13, %s2035_s7 }
 0x35c   : > { %p1383_p10 = scmp.lt.u32.totalorder %s1381_s19, %s1377_s18  ;;  %p1385_p12 = scmp.lt.u32.totalorder %s1377_s18, %s1978_s13 }
 0x35d   : > { %p1379_p7 = pnand %p1378_p4, %p1509_p5 }
 0x35e   : > { %p1384_p11 = por %p1383_p10, %p1382_p9 }
 0x35f   : > { %p1380_p8 = pneg %p1379_p7 }
 0x360   : > { %p1386_p13 = por %p1385_p12, %p1384_p11 }
 0x362   : > { %p1387_p0 = pnand %p1386_p13, %p1380_p8 }
 0x364   : > { %1390 = shalt.err (!%p1387_p0)
}
 0x365   : > { %s1429_s9 = smov 128   ;;  %s1430_s14 = smov 8  }
 0x366   : > { %1249 = dma.vmem_to_hbm [thread:$0]  (%p1509_p5), %s1980_s8, 2048, %s1978_s13, %s1987_s28, %s1429_s9, %s1429_s9, %s1430_s14  }
 0x367 PF: > { %p1255_p1 = scmp.ge.s32.totalorder %s1425_s27, 2  ;;  %s1090_s15 = sand.u32 1, %s1413_s24  }
 0x368   : > { %s1091_s17 = scalar_lea.sflag [#allocation3], %s1090_s15 }
 0x369   : > { %p1252_p2 = pnand %p1255_p1, %p1513_p6 }
 0x36b   : > { %1408 = dma.done.wait (!%p1252_p2), %s1091_s17, 2048  }
 0x36c   : > { %1410 = vsyncadd (!%p1252_p2), %s1091_s17, 4294965248  ;;  %p17_p3 = scmp.ge.s32.totalorder %s1496_s30, 4   ;;  %s2038_s24 = smov %s1417_s25 }
 0x36d   : > { %s2039_s25 = smov %s1421_s26  ;;  %s2040_s26 = smov %s1507_s10 }
 0x36e   : > { %s2041_s27 = smov %s1496_s30  ;;  %19 = sbr.rel (!%p17_p3) target bundleno = 3 (0x3), region = 83 }
 0x375   :  { %1096 = vsyncpa [#allocation3], 1 }
 0x376   :  { %1098 = vsyncpa [#allocation3 + $0x1], 1 }

// kernel: decoder_layer.4
= control target key start
LH: loop header
LB: loop body
LE: loop exit
PB: predicated region body
PF: predicated region fallthrough
CT: control target
= control target key end

     0   :  { %s5689_s21 = smov 0   ;;  %s7994_s0 = inlined_call_operand.vmem [shape: f32[2,128,128], index: 0, kind: input, shape index: {}]   ;;  %s7995_s1 = inlined_call_operand.vmem [shape: f32[2,128,128], index: 1, kind: input, shape index: {}]   ;;  %s7996_s2 = inlined_call_operand.vmem [shape: bf16[128,128], index: 2, kind: input, shape index: {}]   ;;  %s7997_s3 = inlined_call_operand.vmem [shape: f32[1,128], index: 3, kind: input, shape index: {}]   ;;  %s7998_s4 = inlined_call_operand.vmem [shape: bf16[128,256], index: 4, kind: input, shape index: {}]   ;;  %s7999_s5 = inlined_call_operand.vmem [shape: f32[1,256], index: 5, kind: input, shape index: {}]   ;;  %s8000_s6 = inlined_call_operand.vmem [shape: bf16[128,32], index: 6, kind: input, shape index: {}]   ;;  %s8001_s7 = inlined_call_operand.vmem [shape: f32[128,128], index: 7, kind: input, shape index: {}]   ;;  %s8002_s8 = inlined_call_operand.vmem [shape: bf16[128,128], index: 8, kind: input, shape index: {}]   ;;  %s8003_s9 = inlined_call_operand.vmem [shape: f32[1,128], index: 9, kind: input, shape index: {}]   ;;  %s8004_s10 = inlined_call_operand.vmem [shape: f32[1,128], index: 10, kind: input, shape index: {}]   ;;  %s8005_s11 = inlined_call_operand.vmem [shape: f32[1,128], index: 11, kind: input, shape index: {}]   ;;  %s8006_s12 = inlined_call_operand.vmem [shape: f32[2,128,128], index: 12, kind: output, shape index: {}]  }
   0x1   :  { %8171 = sst [smem:[#allocation58_spill]] %s7994_s0 }
   0x2   :  { %8172 = sst [smem:[#allocation59_spill]] %s7995_s1 }
   0x3 LB: > { %s4325_s22 = sadd.s32 4294967295, %s5602_s21   ;;  %p4329_p0 = scmp.ge.s32.totalorder %s5602_s21, 1  ;;  %s5602_s21 = sphi %s5689_s21, %s22_s21  }
   0x4   : > { %p372_p1 = scmp.lt.s32.totalorder %s5602_s21, 3 }
   0x6   : > { %p373_p2 = pnand %p4329_p0, %p372_p1 }
   0x8   : > { %376 = sbr.rel (%p373_p2) target bundleno = 4104 (0x1008), region = 68 }
   0xf   : > { %v5229_v0 = vld [vmem:[%s7996_s2] sm:$0xff]   ;;  %v5604_v3 = vmov 0   ;;  %v5233_v4 = vld [vmem:[%s7996_s2 + $0x8] sm:$0xff]   ;;  %p419_p3 = scmp.lt.s32.totalorder %s4325_s22, 1  ;;  %v5234_v5 = vld [vmem:[%s7998_s4 + $0x14] ss:$8 sps:$4 sm:$0xff]  }
  0x10   : > { %v5230_v1 = vld [vmem:[%s7998_s4 + $0x4] ss:$8 sps:$4 sm:$0xff]   ;;  %4673 = vmatprep.subr.bf16.mxu0 %v5229_v0  ;;  %v5232_v2 = vld [vmem:[%s7998_s4] ss:$8 sps:$4 sm:$0xff]   ;;  %799 = vmatprep.mubr.bf16.mxu1 %v5604_v3  ;;  %v5236_v6 = vld [vmem:[%s7998_s4 + $0x10] ss:$8 sps:$4 sm:$0xff]  }
  0x11   : > { %767 = vmatprep.subr.bf16.mxu1 %v5230_v1  ;;  %4674 = vmatpush3.bf16.msra.mxu0 %v5229_v0  ;;  %v5237_v7 = vld [vmem:[%s7996_s2 + $0x10] sm:$0xff]   ;;  %v5238_v8 = vld [vmem:[%s7998_s4 + $0x24] ss:$8 sps:$4 sm:$0xff]   ;;  %v5240_v9 = vld [vmem:[%s7998_s4 + $0x20] ss:$8 sps:$4 sm:$0xff]   ;;  %s8591_s22 = smov (!%p419_p3, %s4325_s22), 1 }
  0x12   : > { %768 = vmatpush1.bf16.msra.mxu1 %v5232_v2  ;;  %4675 = vmatprep.subr.bf16.mxu0 %v5233_v4  ;;  %v5241_v10 = vld [vmem:[%s7996_s2 + $0x18] sm:$0xff]   ;;  %v5245_v13 = vld [vmem:[%s7996_s2 + $0x20] sm:$0xff]   ;;  %s5737_s15 = sshll.u32 %s8591_s22, 7  ;;  %s8173_s0 = sld [smem:[#allocation58_spill]]  ;;  %v5249_v16 = vld [vmem:[%s7996_s2 + $0x28] sm:$0xff]   ;;  %vm8007_vm0 = vcmask 261120  }
  0x13   : > { %769 = vmatprep.subr.bf16.mxu1 %v5234_v5  ;;  %v5242_v11 = vld [vmem:[%s7998_s4 + $0x34] ss:$8 sps:$4 sm:$0xff]   ;;  %v5244_v12 = vld [vmem:[%s7998_s4 + $0x30] ss:$8 sps:$4 sm:$0xff]   ;;  %v5246_v14 = vld [vmem:[%s7998_s4 + $0x44] ss:$8 sps:$4 sm:$0xff]  }
  0x14   : > { %v5248_v15 = vld [vmem:[%s7998_s4 + $0x40] ss:$8 sps:$4 sm:$0xff]   ;;  %v5250_v17 = vld [vmem:[%s7998_s4 + $0x54] ss:$8 sps:$4 sm:$0xff]   ;;  %v5252_v20 = vld [vmem:[%s7998_s4 + $0x50] ss:$8 sps:$4 sm:$0xff]  }
  0x15   : > { %4676 = vmatpush3.bf16.msra.mxu0 %v5233_v4  ;;  %v5253_v21 = vld [vmem:[%s7996_s2 + $0x30] sm:$0xff]   ;;  %v5254_v23 = vld [vmem:[%s7998_s4 + $0x64] ss:$8 sps:$4 sm:$0xff]   ;;  %v5256_v24 = vld [vmem:[%s7998_s4 + $0x60] ss:$8 sps:$4 sm:$0xff]   ;;  %s8174_s1 = sld [smem:[#allocation59_spill]] }
  0x16   : > { %770 = vmatpush1.bf16.msra.mxu1 %v5236_v6  ;;  %4677 = vmatprep.subr.bf16.mxu0 %v5237_v7  ;;  %v5257_v25 = vld [vmem:[%s7996_s2 + $0x38] sm:$0xff]   ;;  %v5795_v35 = vld [vmem:[%s8000_s6] sm:$0xff]   ;;  %v5262_v46 = vld [vmem:[%s8000_s6 + $0x8] sm:$0xff]   ;;  %s8169_s18 = smov 273   ;;  %s8167_s19 = smov 257  }
  0x17   : > { %771 = vmatprep.subr.bf16.mxu1 %v5238_v8  ;;  %v5258_v26 = vld [vmem:[%s7998_s4 + $0x74] ss:$8 sps:$4 sm:$0xff]   ;;  %v5260_v27 = vld [vmem:[%s7998_s4 + $0x70] ss:$8 sps:$4 sm:$0xff]   ;;  %v5808_v45 = vsel %vm8007_vm0, %v5795_v35, 0  ;;  %v5823_v56 = vsel %vm8007_vm0, %v5262_v46, 0 }
  0x18   : > { %s5749_s24 = scalar_lea.vmem %s8173_s0, %s5737_s15  ;;  %v5263_v57 = vld [vmem:[%s8000_s6 + $0x10] sm:$0xff]   ;;  %v5264_v2 = vld [vmem:[%s8000_s6 + $0x18] sm:$0xff]   ;;  %v5265_v8 = vld [vmem:[%s8000_s6 + $0x20] sm:$0xff]   ;;  %s8164_s20 = smov 281  }
  0x19   : > { %4678 = vmatpush3.bf16.msra.mxu0 %v5237_v7  ;;  %v435_v18 = vld [vmem:[%s5749_s24] sm:$0xff]  ;;  %v436_v19 = vld [vmem:[%s5749_s24 + $0x8] sm:$0xff]  ;;  %v437_v28 = vld [vmem:[%s5749_s24 + $0x10] sm:$0xff]  ;;  %v5836_v1 = vsel %vm8007_vm0, %v5263_v57, 0  ;;  %v5847_v7 = vsel %vm8007_vm0, %v5264_v2, 0  ;;  %s8168_s23 = smov 265  }
  0x1a   : > { %772 = vmatpush1.bf16.msra.mxu1 %v5240_v9  ;;  %4679 = vmatprep.subr.bf16.mxu0 %v5241_v10  ;;  %v451_v22 = vpack.c.bf16 %v436_v19, %v435_v18  ;;  %v438_v29 = vld [vmem:[%s5749_s24 + $0x18] sm:$0xff]  ;;  %v439_v32 = vld [vmem:[%s5749_s24 + $0x20] sm:$0xff]  ;;  %v440_v33 = vld [vmem:[%s5749_s24 + $0x28] sm:$0xff]  ;;  %s8146_s22 = smov 305   ;;  %s8163_s26 = smov 313  }
  0x1b   : > { %773 = vmatprep.subr.bf16.mxu1 %v5242_v11  ;;  %s5778_s25 = scalar_lea.vmem %s8174_s1, %s5737_s15  ;;  %v452_v34 = vpack.c.bf16 %v438_v29, %v437_v28  ;;  %v453_v37 = vpack.c.bf16 %v440_v33, %v439_v32  ;;  %v441_v38 = vld [vmem:[%s5749_s24 + $0x30] sm:$0xff]  ;;  %v442_v39 = vld [vmem:[%s5749_s24 + $0x38] sm:$0xff]  ;;  %v443_v42 = vld [vmem:[%s5749_s24 + $0x40] sm:$0xff]  ;;  %s8144_s27 = smov 289  }
  0x1c   : > { %4689 = vmatprep.mubr.bf16.mxu0 %v451_v22  ;;  %v459_v30 = vld [vmem:[%s5778_s25] sm:$0xff]  ;;  %v460_v31 = vld [vmem:[%s5778_s25 + $0x8] sm:$0xff]  ;;  %v461_v40 = vld [vmem:[%s5778_s25 + $0x10] sm:$0xff]  ;;  %v454_v44 = vpack.c.bf16 %v442_v39, %v441_v38  ;;  %s8122_s28 = smov 297   ;;  %s8120_s29 = smov 337  }
  0x1d   : > { %4680 = vmatpush3.bf16.msra.mxu0 %v5241_v10  ;;  %v475_v36 = vpack.c.bf16 %v460_v31, %v459_v30  ;;  %v462_v41 = vld [vmem:[%s5778_s25 + $0x18] sm:$0xff]  ;;  %v444_v43 = vld [vmem:[%s5749_s24 + $0x48] sm:$0xff]  ;;  %v445_v49 = vld [vmem:[%s5749_s24 + $0x50] sm:$0xff]  ;;  %s8026_s30 = smov 345   ;;  %s8024_s13 = smov 321  }
  0x1e   : > { %774 = vmatpush1.bf16.msra.mxu1 %v5244_v12  ;;  %4681 = vmatprep.subr.bf16.mxu0 %v5245_v13  ;;  %v476_v47 = vpack.c.bf16 %v462_v41, %v461_v40  ;;  %v455_v48 = vpack.c.bf16 %v444_v43, %v443_v42  ;;  %v446_v50 = vld [vmem:[%s5749_s24 + $0x58] sm:$0xff]  ;;  %v463_v51 = vld [vmem:[%s5778_s25 + $0x20] sm:$0xff]  ;;  %v464_v52 = vld [vmem:[%s5778_s25 + $0x28] sm:$0xff]  ;;  %v5858_v12 = vsel %vm8007_vm0, %v5265_v8, 0  ;;  %s8020_s14 = smov 369   ;;  %s8018_s16 = smov 377  }
  0x1f   : > { %775 = vmatprep.subr.bf16.mxu1 %v5246_v14  ;;  %v447_v53 = vld [vmem:[%s5749_s24 + $0x60] sm:$0xff]  ;;  %v448_v54 = vld [vmem:[%s5749_s24 + $0x68] sm:$0xff]  ;;  %v456_v55 = vpack.c.bf16 %v446_v50, %v445_v49  ;;  %v477_v58 = vpack.c.bf16 %v464_v52, %v463_v51  ;;  %v449_v60 = vld [vmem:[%s5749_s24 + $0x70] sm:$0xff]  ;;  %s8012_s17 = smov 353   ;;  %s8500_s0 = smov 273  }
  0x20   : > { %v457_v59 = vpack.c.bf16 %v448_v54, %v447_v53  ;;  %v450_v61 = vld [vmem:[%s5749_s24 + $0x78] sm:$0xff]  ;;  %v465_v62 = vld [vmem:[%s5778_s25 + $0x30] sm:$0xff]  ;;  %v467_v5 = vld [vmem:[%s5778_s25 + $0x40] sm:$0xff]  ;;  %s8501_s1 = smov 265  }
  0x21   : > { %4682 = vmatpush3.bf16.msra.mxu0 %v5245_v13  ;;  %v466_v63 = vld [vmem:[%s5778_s25 + $0x38] sm:$0xff]  ;;  %v458_v0 = vpack.c.bf16 %v450_v61, %v449_v60  ;;  %v468_v6 = vld [vmem:[%s5778_s25 + $0x48] sm:$0xff]  ;;  %v469_v10 = vld [vmem:[%s5778_s25 + $0x50] sm:$0xff] }
  0x22   : > { %776 = vmatpush1.bf16.msra.mxu1 %v5248_v15  ;;  %4683 = vmatprep.subr.bf16.mxu0 %v5249_v16  ;;  %v478_v4 = vpack.c.bf16 %v466_v63, %v465_v62  ;;  %v479_v9 = vpack.c.bf16 %v468_v6, %v467_v5  ;;  %v470_v11 = vld [vmem:[%s5778_s25 + $0x58] sm:$0xff]  ;;  %v5266_v13 = vld [vmem:[%s8000_s6 + $0x28] sm:$0xff]   ;;  %v471_v15 = vld [vmem:[%s5778_s25 + $0x60] sm:$0xff] }
  0x23   : > { %777 = vmatprep.subr.bf16.mxu1 %v5250_v17  ;;  %v480_v14 = vpack.c.bf16 %v470_v11, %v469_v10  ;;  %v5869_v17 = vsel %vm8007_vm0, %v5266_v13, 0  ;;  %v5267_v18 = vld [vmem:[%s8000_s6 + $0x30] sm:$0xff]   ;;  %v675_v28 = vld [vmem:[%s7999_s5] sm:$0x3] }
  0x24   : > { %v5880_v22 = vsel %vm8007_vm0, %v5267_v18, 0  ;;  %v5906_v33 = vld [vmem:[%s7997_s3] ss:$0 sm:$0xff] }
  0x25   : > { %4684 = vmatpush3.bf16.msra.mxu0 %v5249_v16  ;;  %v472_v16 = vld [vmem:[%s5778_s25 + $0x68] sm:$0xff] }
  0x26   : > { %778 = vmatpush1.bf16.msra.mxu1 %v5252_v20  ;;  %4685 = vmatprep.subr.bf16.mxu0 %v5253_v21  ;;  %v481_v19 = vpack.c.bf16 %v472_v16, %v471_v15  ;;  %v473_v20 = vld [vmem:[%s5778_s25 + $0x70] sm:$0xff] }
  0x27   : > { %779 = vmatprep.subr.bf16.mxu1 %v5254_v23 }
  0x29   : > { %4686 = vmatpush3.bf16.msra.mxu0 %v5253_v21  ;;  %v474_v21 = vld [vmem:[%s5778_s25 + $0x78] sm:$0xff]  ;;  %s8008_s25 = smov 329  }
  0x2a   : > { %780 = vmatpush1.bf16.msra.mxu1 %v5256_v24  ;;  %4687 = vmatprep.subr.bf16.mxu0 %v5257_v25  ;;  %v482_v23 = vpack.c.bf16 %v474_v21, %v473_v20  ;;  %v5268_v24 = vld [vmem:[%s8000_s6 + $0x38] sm:$0xff]  }
  0x2b   : > { %781 = vmatprep.subr.bf16.mxu1 %v5258_v26 }
  0x2d   : > { %4688 = vmatpush3.bf16.msra.mxu0 %v5257_v25  ;;  %v5888_v25 = vsel %vm8007_vm0, %v5268_v24, 0 }
  0x2e   : > { %782 = vmatpush1.bf16.msra.mxu1 %v5260_v27 }
  0x2f   : > { %5145 = vmatprep.subr.msk.bf16.mxu1 %vm8007_vm0, %v5795_v35 }
  0x30   : > { %4690 = vmatmul.mubr.bf16.vlgmr.msra.gmra.mrb[0].mxu0 %v452_v34 }
  0x31   : > { %800 = vmatmul.mubr.bf16.vlgmr.msra.gmra.mrb[0].mxu1 %v475_v36  ;;  %4693 = vmatprep.mubr.bf16.mxu0 %v453_v37 }
  0x32   : > { %809 = vmatprep.mubr.bf16.mxu1 %v5604_v3 }
  0x37   : > { %4738 = vmatpush3.bf16.xpose.msra.mxu1 %v5808_v45 }
  0x38   : > { %4694 = vmatmul.mubr.bf16.gmra.mrb[4].mxu0 %v454_v44  ;;  %5146 = vmatprep.subr.msk.bf16.mxu1 %vm8007_vm0, %v5262_v46 }
  0x39   : > { %810 = vmatmul.mubr.bf16.gmra.mrb[4].mxu1 %v476_v47  ;;  %4697 = vmatprep.mubr.bf16.mxu0 %v455_v48 }
  0x3a   : > { %819 = vmatprep.mubr.bf16.mxu1 %v5604_v3 }
  0x3f   : > { %4740 = vmatpush3.bf16.xpose.msra.mxu1 %v5823_v56 }
  0x40   : > { %4698 = vmatmul.mubr.bf16.gmra.mrb[8].mxu0 %v456_v55  ;;  %5147 = vmatprep.subr.msk.bf16.mxu1 %vm8007_vm0, %v5263_v57 }
  0x41   : > { %820 = vmatmul.mubr.bf16.gmra.mrb[8].mxu1 %v477_v58  ;;  %4701 = vmatprep.mubr.bf16.mxu0 %v457_v59 }
  0x42   : > { %829 = vmatprep.mubr.bf16.mxu1 %v5604_v3 }
  0x47   : > { %4742 = vmatpush3.bf16.xpose.msra.mxu1 %v5836_v1 }
  0x48   : > { %4702 = vmatmul.mubr.bf16.gmra.mrb[12].mxu0 %v458_v0  ;;  %5148 = vmatprep.subr.msk.bf16.mxu1 %vm8007_vm0, %v5264_v2 }
  0x49   : > { %830 = vmatmul.mubr.bf16.gmra.mrb[12].mxu1 %v478_v4 }
  0x4a   : > { %839 = vmatprep.mubr.bf16.mxu1 %v5604_v3 }
  0x4f   : > { %4744 = vmatpush3.bf16.xpose.msra.mxu1 %v5847_v7 }
  0x50   : > { %5149 = vmatprep.subr.msk.bf16.mxu1 %vm8007_vm0, %v5265_v8 }
  0x51   : > { %840 = vmatmul.mubr.bf16.gmra.mrb[16].mxu1 %v479_v9 }
  0x52   : > { %849 = vmatprep.mubr.bf16.mxu1 %v5604_v3 }
  0x57   : > { %4746 = vmatpush3.bf16.xpose.msra.mxu1 %v5858_v12 }
  0x58   : > { %5150 = vmatprep.subr.msk.bf16.mxu1 %vm8007_vm0, %v5266_v13 }
  0x59   : > { %850 = vmatmul.mubr.bf16.gmra.mrb[20].mxu1 %v480_v14 }
  0x5a   : > { %859 = vmatprep.mubr.bf16.mxu1 %v5604_v3 }
  0x5f   : > { %4748 = vmatpush3.bf16.xpose.msra.mxu1 %v5869_v17 }
  0x60   : > { %5151 = vmatprep.subr.msk.bf16.mxu1 %vm8007_vm0, %v5267_v18 }
  0x61   : > { %860 = vmatmul.mubr.bf16.gmra.mrb[24].mxu1 %v481_v19 }
  0x62   : > { %869 = vmatprep.mubr.bf16.mxu1 %v5604_v3  ;;  %v677_v3 = vlaneseq }
  0x64   : > { %v5892_v26 = vshrl.u32 %v677_v3, 7 }
  0x66   : > { %v679_v27 = vsub.s32 0, %v5892_v26  ;;  %v683_v29 = vsub.s32 1, %v5892_v26 }
  0x67   : > { %4750 = vmatpush3.bf16.xpose.msra.mxu1 %v5880_v22 }
  0x68   : > { %5152 = vmatprep.subr.msk.bf16.mxu1 %vm8007_vm0, %v5268_v24  ;;  %v5899_v30 = vrot.slane %v675_v28, %v679_v27  ;;  %v5901_v31 = vrot.slane %v675_v28, %v683_v29 }
  0x69   : > { %870 = vmatmul.mubr.bf16.gmra.mrb[28].mxu1 %v482_v23 }
  0x6f   : > { %4752 = vmatpush3.bf16.xpose.msra.mxu1 %v5888_v25 }
 0x103   : > { %v4691_v32 = vpop.f32.mrb[0].mxu0 }
 0x104   : > { %v801_v34 = vpop.f32.mrb[0].mxu1  ;;  %v588_v36 = vpop.f32.mrb[1].mxu0  ;;  %v597_v40 = vadd.f32 %v4691_v32, %v5906_v33 }
 0x105   : > { %v802_v37 = vadd.f32 %v801_v34, %v5899_v30  ;;  %v803_v38 = vpop.f32.mrb[1].mxu1  ;;  %v4692_v39 = vpop.f32.mrb[2].mxu0  ;;  %v589_v46 = vadd.f32 %v5906_v33, %v588_v36 }
 0x106   : > { %v804_v41 = vadd.f32 %v803_v38, %v5901_v31  ;;  %v600_v42 = vadd.f32 %v4692_v39, %v5906_v33  ;;  %v805_v43 = vpop.f32.mrb[2].mxu1  ;;  %v591_v44 = vpop.f32.mrb[3].mxu0 }
 0x107   : > { %v806_v47 = vadd.f32 %v805_v43, %v5899_v30  ;;  %v592_v48 = vadd.f32 %v5906_v33, %v591_v44  ;;  %v807_v49 = vpop.f32.mrb[3].mxu1 }
 0x108   : > { %v5915_v50 = vpack.c.bf16 %v600_v42, %v597_v40  ;;  %v808_v51 = vadd.f32 %v807_v49, %v5901_v31 }
 0x109   : > { %v5918_v52 = vpack.c.bf16 %v806_v47, %v802_v37  ;;  %v5920_v53 = vpack.c.bf16 %v592_v48, %v589_v46 }
 0x10a   : > { %v5922_v54 = vpack.c.bf16 %v808_v51, %v804_v41 }
 0x10b   : > { %5137 = vmatprep.subr.msk.bf16.mxu0 %vm8007_vm0, %v5918_v52  ;;  %v4695_v55 = vpop.f32.mrb[4].mxu0  ;;  %v1021_v57 = vsel %vm8007_vm0, %v5918_v52, 0  ;;  %4721 = vmatprep.mubr.msk.bf16.mxu0 %vm8007_vm0, %v5920_v53 }
 0x10c   : > { %8175 = vst [vmem:[#allocation3_spill] sm:$0xff] %v5922_v54  ;;  %v613_v58 = vadd.f32 %v4695_v55, %v5906_v33  ;;  %v811_v59 = vpop.f32.mrb[4].mxu1  ;;  %4706 = vmatpush3.bf16.xpose.msra.mxu0 %v1021_v57  ;;  %4753 = vmatprep.mubr.msk.bf16.mxu1 %vm8007_vm0, %v5920_v53  ;;  %v604_v60 = vpop.f32.mrb[5].mxu0 }
 0x10d   : > { %v812_v61 = vadd.f32 %v811_v59, %v5899_v30  ;;  %v605_v62 = vadd.f32 %v5906_v33, %v604_v60  ;;  %v813_v63 = vpop.f32.mrb[5].mxu1  ;;  %4754 = vmatmul.mubr.msk.bf16.vlgmr.msra.gmra.mrb[32].mxu1 %vm8007_vm0, %v5915_v50  ;;  %v4696_v0 = vpop.f32.mrb[6].mxu0 }
 0x10e   : > { %v814_v2 = vadd.f32 %v813_v63, %v5901_v31  ;;  %v616_v4 = vadd.f32 %v4696_v0, %v5906_v33  ;;  %v815_v5 = vpop.f32.mrb[6].mxu1  ;;  %v607_v6 = vpop.f32.mrb[7].mxu0 }
 0x10f   : > { %v816_v8 = vadd.f32 %v815_v5, %v5899_v30  ;;  %v608_v9 = vadd.f32 %v5906_v33, %v607_v6  ;;  %v817_v10 = vpop.f32.mrb[7].mxu1 }
 0x110   : > { %v5941_v11 = vpack.c.bf16 %v616_v4, %v613_v58  ;;  %v818_v13 = vadd.f32 %v817_v10, %v5901_v31 }
 0x111   : > { %v5944_v14 = vpack.c.bf16 %v816_v8, %v812_v61  ;;  %v5946_v15 = vpack.c.bf16 %v608_v9, %v605_v62 }
 0x112   : > { %v5948_v16 = vpack.c.bf16 %v818_v13, %v814_v2 }
 0x113   : > { %5138 = vmatprep.subr.msk.bf16.mxu0 %vm8007_vm0, %v5944_v14  ;;  %v4699_v18 = vpop.f32.mrb[8].mxu0  ;;  %v1024_v19 = vsel %vm8007_vm0, %v5944_v14, 0  ;;  %4757 = vmatprep.mubr.msk.bf16.mxu1 %vm8007_vm0, %v5946_v15 }
 0x114   : > { %8176 = vst [vmem:[#allocation4_spill] sm:$0xff] %v5948_v16  ;;  %v629_v20 = vadd.f32 %v4699_v18, %v5906_v33  ;;  %v821_v21 = vpop.f32.mrb[8].mxu1  ;;  %4708 = vmatpush3.bf16.xpose.msra.mxu0 %v1024_v19  ;;  %v620_v23 = vpop.f32.mrb[9].mxu0 }
 0x115   : > { %v822_v24 = vadd.f32 %v821_v21, %v5899_v30  ;;  %v621_v27 = vadd.f32 %v5906_v33, %v620_v23  ;;  %v823_v28 = vpop.f32.mrb[9].mxu1  ;;  %4758 = vmatmul.mubr.msk.bf16.gmra.mrb[36].mxu1 %vm8007_vm0, %v5941_v11  ;;  %v4700_v29 = vpop.f32.mrb[10].mxu0 }
 0x116   : > { %v824_v32 = vadd.f32 %v823_v28, %v5901_v31  ;;  %v632_v34 = vadd.f32 %v4700_v29, %v5906_v33  ;;  %v825_v36 = vpop.f32.mrb[10].mxu1  ;;  %v623_v37 = vpop.f32.mrb[11].mxu0 }
 0x117   : > { %v826_v38 = vadd.f32 %v825_v36, %v5899_v30  ;;  %v624_v39 = vadd.f32 %v5906_v33, %v623_v37  ;;  %v827_v40 = vpop.f32.mrb[11].mxu1 }
 0x118   : > { %v5965_v41 = vpack.c.bf16 %v632_v34, %v629_v20  ;;  %v828_v42 = vadd.f32 %v827_v40, %v5901_v31 }
 0x119   : > { %v5968_v43 = vpack.c.bf16 %v826_v38, %v822_v24  ;;  %v5970_v44 = vpack.c.bf16 %v624_v39, %v621_v27 }
 0x11a   : > { %v5972_v46 = vpack.c.bf16 %v828_v42, %v824_v32 }
 0x11b   : > { %5139 = vmatprep.subr.msk.bf16.mxu0 %vm8007_vm0, %v5968_v43  ;;  %v4703_v47 = vpop.f32.mrb[12].mxu0  ;;  %v1027_v48 = vsel %vm8007_vm0, %v5968_v43, 0  ;;  %4761 = vmatprep.mubr.msk.bf16.mxu1 %vm8007_vm0, %v5970_v44 }
 0x11c   : > { %8177 = vst [vmem:[#allocation5_spill] sm:$0xff] %v5972_v46  ;;  %v645_v49 = vadd.f32 %v4703_v47, %v5906_v33  ;;  %v831_v51 = vpop.f32.mrb[12].mxu1  ;;  %4710 = vmatpush3.bf16.xpose.msra.mxu0 %v1027_v48  ;;  %v636_v55 = vpop.f32.mrb[13].mxu0 }
 0x11d   : > { %v832_v57 = vadd.f32 %v831_v51, %v5899_v30  ;;  %v637_v58 = vadd.f32 %v5906_v33, %v636_v55  ;;  %v833_v59 = vpop.f32.mrb[13].mxu1  ;;  %4762 = vmatmul.mubr.msk.bf16.gmra.mrb[40].mxu1 %vm8007_vm0, %v5965_v41  ;;  %v4704_v60 = vpop.f32.mrb[14].mxu0 }
 0x11e   : > { %v834_v61 = vadd.f32 %v833_v59, %v5901_v31  ;;  %v648_v62 = vadd.f32 %v4704_v60, %v5906_v33  ;;  %v835_v63 = vpop.f32.mrb[14].mxu1  ;;  %v639_v0 = vpop.f32.mrb[15].mxu0 }
 0x11f   : > { %v836_v2 = vadd.f32 %v835_v63, %v5899_v30  ;;  %v640_v4 = vadd.f32 %v5906_v33, %v639_v0  ;;  %v837_v5 = vpop.f32.mrb[15].mxu1 }
 0x120   : > { %v5989_v6 = vpack.c.bf16 %v648_v62, %v645_v49  ;;  %v838_v8 = vadd.f32 %v837_v5, %v5901_v31 }
 0x121   : > { %v5992_v9 = vpack.c.bf16 %v836_v2, %v832_v57  ;;  %v5994_v10 = vpack.c.bf16 %v640_v4, %v637_v58 }
 0x122   : > { %v5996_v13 = vpack.c.bf16 %v838_v8, %v834_v61 }
 0x123   : > { %5140 = vmatprep.subr.msk.bf16.mxu0 %vm8007_vm0, %v5992_v9  ;;  %v1030_v18 = vsel %vm8007_vm0, %v5992_v9, 0  ;;  %4765 = vmatprep.mubr.msk.bf16.mxu1 %vm8007_vm0, %v5994_v10 }
 0x124   : > { %8178 = vst [vmem:[#allocation6_spill] sm:$0xff] %v5996_v13  ;;  %v841_v33 = vpop.f32.mrb[16].mxu1  ;;  %4712 = vmatpush3.bf16.xpose.msra.mxu0 %v1030_v18 }
 0x125   : > { %v842_v19 = vadd.f32 %v841_v33, %v5899_v30  ;;  %v843_v20 = vpop.f32.mrb[17].mxu1  ;;  %4766 = vmatmul.mubr.msk.bf16.gmra.mrb[44].mxu1 %vm8007_vm0, %v5989_v6 }
 0x126   : > { %v844_v21 = vadd.f32 %v843_v20, %v5901_v31  ;;  %v845_v23 = vpop.f32.mrb[18].mxu1 }
 0x127   : > { %v846_v24 = vadd.f32 %v845_v23, %v5899_v30  ;;  %v847_v27 = vpop.f32.mrb[19].mxu1 }
 0x128   : > { %v848_v28 = vadd.f32 %v847_v27, %v5901_v31 }
 0x129   : > { %v6010_v29 = vpack.c.bf16 %v846_v24, %v842_v19 }
 0x12a   : > { %v6012_v32 = vpack.c.bf16 %v848_v28, %v844_v21 }
 0x12b   : > { %5141 = vmatprep.subr.msk.bf16.mxu0 %vm8007_vm0, %v6010_v29  ;;  %v1033_v34 = vsel %vm8007_vm0, %v6010_v29, 0 }
 0x12c   : > { %8179 = vst [vmem:[#allocation7_spill] sm:$0xff] %v6012_v32  ;;  %v851_v36 = vpop.f32.mrb[20].mxu1  ;;  %4714 = vmatpush3.bf16.xpose.msra.mxu0 %v1033_v34 }
 0x12d   : > { %v852_v37 = vadd.f32 %v851_v36, %v5899_v30  ;;  %v853_v38 = vpop.f32.mrb[21].mxu1 }
 0x12e   : > { %v854_v39 = vadd.f32 %v853_v38, %v5901_v31  ;;  %v855_v40 = vpop.f32.mrb[22].mxu1  ;;  %v963_v38 = vsub.s32 127, %v5892_v26 }
 0x12f   : > { %v856_v42 = vadd.f32 %v855_v40, %v5899_v30  ;;  %v857_v47 = vpop.f32.mrb[23].mxu1 }
 0x130   : > { %v858_v48 = vadd.f32 %v857_v47, %v5901_v31  ;;  %v8185_v47 = vmov 0 }
 0x131   : > { %v6022_v49 = vpack.c.bf16 %v856_v42, %v852_v37  ;;  %v948_v37 = vadd.s32 24, %v5892_v26 }
 0x132   : > { %v6024_v51 = vpack.c.bf16 %v858_v48, %v854_v39  ;;  %v946_v39 = vadd.s32 8, %v5892_v26 }
 0x133   : > { %5142 = vmatprep.subr.msk.bf16.mxu0 %vm8007_vm0, %v6022_v49  ;;  %v1036_v55 = vsel %vm8007_vm0, %v6022_v49, 0  ;;  %v966_v42 = vsub.s32 127, %v948_v37 }
 0x134   : > { %8180 = vst [vmem:[#allocation8_spill] sm:$0xff] %v6024_v51  ;;  %v861_v57 = vpop.f32.mrb[24].mxu1  ;;  %4716 = vmatpush3.bf16.xpose.msra.mxu0 %v1036_v55  ;;  %v952_v55 = vadd.s32 56, %v5892_v26 }
 0x135   : > { %v862_v58 = vadd.f32 %v861_v57, %v5899_v30  ;;  %v863_v59 = vpop.f32.mrb[25].mxu1 }
 0x136   : > { %v864_v60 = vadd.f32 %v863_v59, %v5901_v31  ;;  %v865_v61 = vpop.f32.mrb[26].mxu1  ;;  %v949_v59 = vadd.s32 32, %v5892_v26 }
 0x137   : > { %v866_v62 = vadd.f32 %v865_v61, %v5899_v30  ;;  %v867_v63 = vpop.f32.mrb[27].mxu1 }
 0x138   : > { %v868_v0 = vadd.f32 %v867_v63, %v5901_v31 }
 0x139   : > { %v6034_v2 = vpack.c.bf16 %v866_v62, %v862_v58 }
 0x13a   : > { %v6036_v4 = vpack.c.bf16 %v868_v0, %v864_v60  ;;  %v8188_v60 = vmov 0  ;;  %v950_v0 = vadd.s32 40, %v5892_v26 }
 0x13b   : > { %5143 = vmatprep.subr.msk.bf16.mxu0 %vm8007_vm0, %v6034_v2  ;;  %v1039_v5 = vsel %vm8007_vm0, %v6034_v2, 0 }
 0x13c   : > { %8181 = vst [vmem:[#allocation9_spill] sm:$0xff] %v6036_v4  ;;  %v871_v8 = vpop.f32.mrb[28].mxu1  ;;  %4718 = vmatpush3.bf16.xpose.msra.mxu0 %v1039_v5  ;;  %v8191_v5 = vmov 0 }
 0x13d   : > { %v872_v18 = vadd.f32 %v871_v8, %v5899_v30  ;;  %v873_v33 = vpop.f32.mrb[29].mxu1 }
 0x13e   : > { %v874_v19 = vadd.f32 %v873_v33, %v5901_v31  ;;  %v875_v20 = vpop.f32.mrb[30].mxu1 }
 0x13f   : > { %v876_v21 = vadd.f32 %v875_v20, %v5899_v30  ;;  %v877_v23 = vpop.f32.mrb[31].mxu1  ;;  %v947_v30 = vadd.s32 16, %v5892_v26 }
 0x140   : > { %v878_v24 = vadd.f32 %v877_v23, %v5901_v31  ;;  %v6088_v31 = vand.u32 127, %v677_v3  ;;  %v964_v3 = vsub.s32 127, %v946_v39  ;;  %v968_v23 = vsub.s32 127, %v950_v0 }
 0x141   : > { %v6046_v27 = vpack.c.bf16 %v876_v21, %v872_v18  ;;  %v965_v36 = vsub.s32 127, %v947_v30  ;;  %v970_v18 = vsub.s32 127, %v952_v55  ;;  %v8194_v21 = vmov 0 }
 0x142   : > { %v6048_v28 = vpack.c.bf16 %v878_v24, %v874_v19  ;;  %vm6100_vm2 = vcmp.ge.s32.totalorder %v6088_v31, %v963_v38  ;;  %vm6110_vm3 = vcmp.ge.s32.totalorder %v6088_v31, %v966_v42  ;;  %vm6119_vm4 = vcmp.ge.s32.totalorder %v6088_v31, %v964_v3 }
 0x143   : > { %5144 = vmatprep.subr.msk.bf16.mxu0 %vm8007_vm0, %v6046_v27  ;;  %v1042_v34 = vsel %vm8007_vm0, %v6046_v27, 0  ;;  %vm6094_vm1 = vcmp.ge.s32.totalorder %v6088_v31, %v965_v36  ;;  %v8186_v47 = vsel %vm6100_vm2, 4294967295, %v8185_v47  ;;  %v8189_v60 = vsel %vm6110_vm3, 4294967295, %v8188_v60 }
 0x144   : > { %8182 = vst [vmem:[#allocation10_spill] sm:$0xff] %v6048_v28  ;;  %4720 = vmatpush3.bf16.xpose.msra.mxu0 %v1042_v34  ;;  %8187 = vst [vmem:[#allocation11_spill] sm:$0xff] %v8186_v47  ;;  %v8192_v5 = vsel %vm6119_vm4, 4294967295, %v8191_v5  ;;  %v967_v19 = vsub.s32 127, %v949_v59  ;;  %v955_v24 = vadd.s32 80, %v5892_v26  ;;  %vm6136_vm6 = vcmp.ge.s32.totalorder %v6088_v31, %v970_v18 }
 0x145   : > { %4769 = vmatprep.subr.bf16.mxu0 %v5922_v54  ;;  %8190 = vst [vmem:[#allocation12_spill] sm:$0xff] %v8189_v60  ;;  %8193 = vst [vmem:[#allocation13_spill] sm:$0xff] %v8192_v5  ;;  %v8197_v30 = vmov 0  ;;  %v956_v36 = vadd.s32 88, %v5892_v26  ;;  %v8200_v38 = vmov 0  ;;  %v953_v42 = vadd.s32 64, %v5892_v26 }
 0x146   : > { %v8198_v30 = vsel %vm6136_vm6, 4294967295, %v8197_v30  ;;  %vm6144_vm7 = vcmp.ge.s32.totalorder %v6088_v31, %v967_v19  ;;  %vm6150_vm8 = vcmp.ge.s32.totalorder %v6088_v31, %v968_v23  ;;  %v8203_v3 = vmov 0 }
 0x147   : > { %8199 = vst [vmem:[#allocation15_spill] sm:$0xff] %v8198_v30  ;;  %v8201_v38 = vsel %vm6144_vm7, 4294967295, %v8200_v38  ;;  %v8204_v3 = vsel %vm6150_vm8, 4294967295, %v8203_v3  ;;  %v954_v55 = vadd.s32 72, %v5892_v26  ;;  %v8206_v0 = vmov 0 }
 0x148   : > { %8202 = vst [vmem:[#allocation16_spill] sm:$0xff] %v8201_v38  ;;  %8205 = vst [vmem:[#allocation17_spill] sm:$0xff] %v8204_v3  ;;  %v959_v18 = vadd.s32 112, %v5892_v26  ;;  %v8209_v19 = vmov 0 }
 0x14b   : > { %4722 = vmatmul.mubr.msk.bf16.vlgmr.msra.gmra.mrb[16].mxu0 %vm8007_vm0, %v5915_v50 }
 0x14c   : > { %4725 = vmatprep.mubr.msk.bf16.mxu0 %vm8007_vm0, %v5946_v15  ;;  %4770 = vmatpush3.bf16.msra.mxu0 %v5922_v54 }
 0x14d   : > { %4771 = vmatprep.subr.bf16.mxu0 %v5948_v16 }
 0x150   : > { %4772 = vmatpush3.bf16.msra.mxu0 %v5948_v16 }
 0x151   : > { %4773 = vmatprep.subr.bf16.mxu0 %v5972_v46 }
 0x153   : > { %4726 = vmatmul.mubr.msk.bf16.gmra.mrb[20].mxu0 %vm8007_vm0, %v5941_v11 }
 0x154   : > { %4729 = vmatprep.mubr.msk.bf16.mxu0 %vm8007_vm0, %v5970_v44  ;;  %4774 = vmatpush3.bf16.msra.mxu0 %v5972_v46 }
 0x155   : > { %4775 = vmatprep.subr.bf16.mxu0 %v5996_v13 }
 0x158   : > { %4776 = vmatpush3.bf16.msra.mxu0 %v5996_v13  ;;  %v6250_v13 = vld [vmem:[%s8001_s7] sm:$0xff] }
 0x159   : > { %4777 = vmatprep.subr.bf16.mxu0 %v6012_v32  ;;  %8230 = vst [vmem:[#allocation26_spill] sm:$0xff] %v6250_v13 }
 0x15b   : > { %4730 = vmatmul.mubr.msk.bf16.gmra.mrb[24].mxu0 %vm8007_vm0, %v5965_v41 }
 0x15c   : > { %4733 = vmatprep.mubr.msk.bf16.mxu0 %vm8007_vm0, %v5994_v10  ;;  %4778 = vmatpush3.bf16.msra.mxu0 %v6012_v32 }
 0x15d   : > { %4779 = vmatprep.subr.bf16.mxu0 %v6024_v51 }
 0x160   : > { %4780 = vmatpush3.bf16.msra.mxu0 %v6024_v51 }
 0x161   : > { %4781 = vmatprep.subr.bf16.mxu0 %v6036_v4 }
 0x163   : > { %4734 = vmatmul.mubr.msk.bf16.gmra.mrb[28].mxu0 %vm8007_vm0, %v5989_v6 }
 0x164   : > { %4782 = vmatpush3.bf16.msra.mxu0 %v6036_v4  ;;  %v6261_v4 = vld [vmem:[%s8001_s7 + $0x8] sm:$0xff] }
 0x165   : > { %4783 = vmatprep.subr.bf16.mxu0 %v6048_v28  ;;  %8232 = vst [vmem:[#allocation28_spill] sm:$0xff] %v6261_v4 }
 0x168   : > { %4784 = vmatpush3.bf16.msra.mxu0 %v6048_v28  ;;  %v6256_v28 = vld [vmem:[%s8001_s7 + $0x10] sm:$0xff] }
 0x169   : > { %5161 = vmatprep.subr.msk.bf16.mxu0 %vm8007_vm0, %v5795_v35  ;;  %v951_v35 = vadd.s32 48, %v5892_v26  ;;  %8231 = vst [vmem:[#allocation27_spill] sm:$0xff] %v6256_v28 }
 0x16b   : > { %v969_v63 = vsub.s32 127, %v951_v35 }
 0x16d   : > { %vm6129_vm5 = vcmp.ge.s32.totalorder %v6088_v31, %v969_v63  ;;  %v971_v63 = vsub.s32 127, %v953_v42  ;;  %v977_v42 = vsub.s32 127, %v959_v18 }
 0x16e   : > { %v8195_v21 = vsel %vm6129_vm5, 4294967295, %v8194_v21 }
 0x16f   : > { %8196 = vst [vmem:[#allocation14_spill] sm:$0xff] %v8195_v21  ;;  %vm6180_vm11 = vcmp.ge.s32.totalorder %v6088_v31, %v971_v63  ;;  %vm6200_vm13 = vcmp.ge.s32.totalorder %v6088_v31, %v977_v42 }
 0x1e0   : > { %v4755_v48 = vpop.f32.mrb[32].mxu1 }
 0x1e1   : > { %v1255_v57 = vpop.f32.mrb[33].mxu1  ;;  %v1320_v58 = vsel %vm6094_vm1, %v4755_v48, 0.0  ;;  %v973_v48 = vsub.s32 127, %v955_v24  ;;  %v8212_v24 = vmov 0 }
 0x1e2   : > { %1344 = vrot.lane.b32.xlu1 %v1320_v58, %s8169_s18  ;;  %v4756_v61 = vpop.f32.mrb[34].mxu1  ;;  %v1318_v62 = vsel %vm6100_vm2, %v1255_v57, 0.0  ;;  %v8213_v24 = vsel %vm6180_vm11, 4294967295, %v8212_v24 }
 0x1e3   : > { %1336 = vrot.lane.b32.xlu0 %v1318_v62, %s8167_s19  ;;  %v1258_v8 = vpop.f32.mrb[35].mxu1  ;;  %v1321_v33 = vsel %vm6110_vm3, %v4756_v61, 0.0  ;;  %v974_v61 = vsub.s32 127, %v956_v36  ;;  %vm6164_vm9 = vcmp.ge.s32.totalorder %v6088_v31, %v973_v48  ;;  %8214 = vst [vmem:[#allocation20_spill] sm:$0xff] %v8213_v24  ;;  %v957_v36 = vadd.s32 96, %v5892_v26 }
 0x1e4   : > { %v1319_v20 = vsel %vm6119_vm4, %v1258_v8, 0.0  ;;  %v8207_v0 = vsel %vm6164_vm9, 4294967295, %v8206_v0  ;;  %v972_v8 = vsub.s32 127, %v954_v55 }
 0x1e5   : > { %8208 = vst [vmem:[#allocation18_spill] sm:$0xff] %v8207_v0  ;;  %vm6172_vm10 = vcmp.ge.s32.totalorder %v6088_v31, %v974_v61  ;;  %v975_v61 = vsub.s32 127, %v957_v36 }
 0x1e6   : > { %1348 = vrot.lane.b32.xlu1 %v1321_v33, %s8164_s20  ;;  %v8210_v19 = vsel %vm6172_vm10, 4294967295, %v8209_v19  ;;  %vm6186_vm12 = vcmp.ge.s32.totalorder %v6088_v31, %v972_v8  ;;  %v8221_v8 = vmov 0 }
 0x1e7   : > { %1340 = vrot.lane.b32.xlu0 %v1319_v20, %s8168_s23  ;;  %8211 = vst [vmem:[#allocation19_spill] sm:$0xff] %v8210_v19  ;;  %v960_v20 = vadd.s32 120, %v5892_v26  ;;  %vm6214_vm15 = vcmp.ge.s32.totalorder %v6088_v31, %v975_v61 }
 0x1e8   : > { %v4759_v34 = vpop.f32.mrb[36].mxu1 }
 0x1e9   : > { %v1324_v37 = vsel %vm6129_vm5, %v4759_v34, 0.0  ;;  %v1271_v39 = vpop.f32.mrb[37].mxu1 }
 0x1ea   : > { %v4760_v35 = vpop.f32.mrb[38].mxu1  ;;  %v1322_v59 = vsel %vm6144_vm7, %v1271_v39, 0.0  ;;  %v8215_v39 = vmov 0 }
 0x1eb   : > { %v1325_v57 = vsel %vm6136_vm6, %v4760_v35, 0.0  ;;  %1360 = vrot.lane.b32.xlu0 %v1324_v37, %s8146_s22  ;;  %v1274_v58 = vpop.f32.mrb[39].mxu1  ;;  %v8216_v39 = vsel %vm6186_vm12, 4294967295, %v8215_v39  ;;  %v958_v35 = vadd.s32 104, %v5892_v26  ;;  %v8218_v26 = vmov 0 }
 0x1ec   : > { %1364 = vrot.lane.b32.xlu1 %v1325_v57, %s8163_s26  ;;  %v1323_v62 = vsel %vm6150_vm8, %v1274_v58, 0.0  ;;  %8217 = vst [vmem:[#allocation21_spill] sm:$0xff] %v8216_v39  ;;  %v978_v58 = vsub.s32 127, %v960_v20  ;;  %v8219_v26 = vsel %vm6200_vm13, 4294967295, %v8218_v26  ;;  %v6324_v39 = vld [vmem:[%s8001_s7 + $0x40] sm:$0xff] }
 0x1ed   : > { %8220 = vst [vmem:[#allocation22_spill] sm:$0xff] %v8219_v26  ;;  %8238 = vst [vmem:[#allocation34_spill] sm:$0xff] %v6324_v39 }
 0x1ee   : > { %vm6207_vm14 = vcmp.ge.s32.totalorder %v6088_v31, %v978_v58 }
 0x1ef   : > { %1352 = vrot.lane.b32.xlu0 %v1322_v59, %s8144_s27  ;;  %v8222_v8 = vsel %vm6207_vm14, 4294967295, %v8221_v8 }
 0x1f0   : > { %1356 = vrot.lane.b32.xlu1 %v1323_v62, %s8122_s28  ;;  %v4763_v33 = vpop.f32.mrb[40].mxu1  ;;  %v976_v62 = vsub.s32 127, %v958_v35  ;;  %8223 = vst [vmem:[#allocation23_spill] sm:$0xff] %v8222_v8 }
 0x1f1   : > { %v1328_v23 = vsel %vm6164_vm9, %v4763_v33, 0.0  ;;  %v1287_v34 = vpop.f32.mrb[41].mxu1  ;;  %v8224_v33 = vmov 0 }
 0x1f2   : > { %v4764_v37 = vpop.f32.mrb[42].mxu1  ;;  %v1326_v57 = vsel %vm6180_vm11, %v1287_v34, 0.0  ;;  %v8225_v33 = vsel %vm6214_vm15, 4294967295, %v8224_v33  ;;  %vm6219_vm0 = vcmp.ge.s32.totalorder %v6088_v31, %v976_v62  ;;  %v8227_v34 = vmov 0 }
 0x1f3   : > { %v1329_v48 = vsel %vm6172_vm10, %v4764_v37, 0.0  ;;  %1376 = vrot.lane.b32.xlu0 %v1328_v23, %s8120_s29  ;;  %v1290_v55 = vpop.f32.mrb[43].mxu1  ;;  %8226 = vst [vmem:[#allocation24_spill] sm:$0xff] %v8225_v33  ;;  %v8228_v34 = vsel %vm6219_vm0, 4294967295, %v8227_v34 }
 0x1f4   : > { %1380 = vrot.lane.b32.xlu1 %v1329_v48, %s8026_s30  ;;  %v1327_v59 = vsel %vm6186_vm12, %v1290_v55, 0.0  ;;  %8229 = vst [vmem:[#allocation25_spill] sm:$0xff] %v8228_v34  ;;  %v6272_v34 = vld [vmem:[%s8001_s7 + $0x18] sm:$0xff]  ;;  %s8140_s30 = smov 96  }
 0x1f5   : > { %8233 = vst [vmem:[#allocation29_spill] sm:$0xff] %v6272_v34 }
 0x1f7   : > { %1368 = vrot.lane.b32.xlu0 %v1326_v57, %s8024_s13  ;;  %s8294_s13 = smov 321  }
 0x1f8   : > { %1372 = vrot.lane.b32.xlu1 %v1327_v59, %s8008_s25  ;;  %v4767_v63 = vpop.f32.mrb[44].mxu1  ;;  %s8010_s25 = smov 361  }
 0x1f9   : > { %v1332_v18 = vsel %vm6200_vm13, %v4767_v63, 0.0  ;;  %v1303_v20 = vpop.f32.mrb[45].mxu1 }
 0x1fa   : > { %v4768_v23 = vpop.f32.mrb[46].mxu1  ;;  %v1330_v42 = vsel %vm6214_vm15, %v1303_v20, 0.0  ;;  %vm8054_vm15 = vcmp.eq.f32.partialorder %v6256_v28, 0.0 }
 0x1fb   : > { %v1333_v36 = vsel %vm6207_vm14, %v4768_v23, 0.0  ;;  %1392 = vrot.lane.b32.xlu0 %v1332_v18, %s8020_s14  ;;  %v1306_v37 = vpop.f32.mrb[47].mxu1  ;;  %vm8053_vm14 = vcmp.eq.f32.partialorder %v6261_v4, 0.0  ;;  %v6310_v4 = vld [vmem:[%s8001_s7 + $0x38] sm:$0xff]  ;;  %s8291_s14 = smov 345  }
 0x1fc   : > { %1396 = vrot.lane.b32.xlu1 %v1333_v36, %s8018_s16  ;;  %v1331_v35 = vsel %vm6219_vm0, %v1306_v37, 0.0  ;;  %vm8048_vm0 = vcmp.eq.f32.partialorder %v6250_v13, 0.0  ;;  %8237 = vst [vmem:[#allocation33_spill] sm:$0xff] %v6310_v4  ;;  %vm8074_vm13 = vcmp.eq.f32.partialorder %v6310_v4, 0.0  ;;  %v6369_v4 = vld [vmem:[%s8001_s7 + $0x60] sm:$0xff]  ;;  %s8297_s16 = smov 329  }
 0x1fd   : > { %8242 = vst [vmem:[#allocation38_spill] sm:$0xff] %v6369_v4 }
 0x1ff   : > { %1384 = vrot.lane.b32.xlu0 %v1330_v42, %s8012_s17  ;;  %s8300_s17 = smov 369  }
 0x200   : > { %1388 = vrot.lane.b32.xlu1 %v1331_v35, %s8010_s25  ;;  %s8303_s25 = smov 377  }
 0x21e   : > { %v4723_v31 = vpop.f32.mrb[16].mxu0 }
 0x21f   : > { %v1078_v48 = vpop.f32.mrb[17].mxu0  ;;  %v1143_v33 = vsel %vm8054_vm15, -1e+09, %v4723_v31  ;;  %v6292_v31 = vld [vmem:[%s8001_s7 + $0x28] sm:$0xff] }
 0x220   : > { %v4724_v55 = vpop.f32.mrb[18].mxu0  ;;  %v1141_v32 = vsel %vm8048_vm0, -1e+09, %v1078_v48  ;;  %vm8059_vm0 = vcmp.eq.f32.partialorder %v6272_v34, 0.0  ;;  %8235 = vst [vmem:[#allocation31_spill] sm:$0xff] %v6292_v31  ;;  %vm8068_vm15 = vcmp.eq.f32.partialorder %v6292_v31, 0.0 }
 0x221   : > { %v1081_v57 = vpop.f32.mrb[19].mxu0  ;;  %v6345_v31 = vld [vmem:[%s8001_s7 + $0x50] sm:$0xff] }
 0x222   : > { %v1142_v48 = vsel %vm8053_vm14, -1e+09, %v1081_v57  ;;  %8240 = vst [vmem:[#allocation36_spill] sm:$0xff] %v6345_v31 }
 0x226   : > { %v4727_v58 = vpop.f32.mrb[20].mxu0 }
 0x227   : > { %v1094_v59 = vpop.f32.mrb[21].mxu0 }
 0x228   : > { %v4728_v61 = vpop.f32.mrb[22].mxu0 }
 0x229   : > { %v1097_v62 = vpop.f32.mrb[23].mxu0 }
 0x22e   : > { %v6233_v63 = vpop.f32.mrb[24].mxu0 }
 0x22f   : > { %v1110_v18 = vpop.f32.mrb[25].mxu0 }
 0x230   : > { %v6235_v20 = vpop.f32.mrb[26].mxu0 }
 0x231   : > { %v6237_v23 = vpop.f32.mrb[27].mxu0 }
 0x236   : > { %v6239_v36 = vpop.f32.mrb[28].mxu0 }
 0x237   : > { %v6241_v37 = vpop.f32.mrb[29].mxu0 }
 0x238   : > { %v6243_v42 = vpop.f32.mrb[30].mxu0 }
 0x239   : > { %v6245_v35 = vpop.f32.mrb[31].mxu0 }
 0x254   : > { %v1345_v51 = vpop.permute.xlu1 %1344 }
 0x255   : > { %v1337_v16 = vpop.permute.xlu0 %1336  ;;  %v6280_v26 = vadd.f32 %v1345_v51, %v1143_v33  ;;  %v1144_v51 = vsel %vm8059_vm0, -1e+09, %v4724_v55 }
 0x256   : > { %v6267_v46 = vadd.f32 %v1337_v16, %v1141_v32  ;;  %v6287_v32 = vld [vmem:[%s8001_s7 + $0x20] sm:$0xff] }
 0x257   : > { %8234 = vst [vmem:[#allocation30_spill] sm:$0xff] %v6287_v32  ;;  %vm8071_vm14 = vcmp.eq.f32.partialorder %v6287_v32, 0.0 }
 0x258   : > { %1414 = vmax.xlane.f32.xlu0 %v6267_v46  ;;  %v1349_v8 = vpop.permute.xlu1 %1348  ;;  %v1145_v55 = vsel %vm8071_vm14, -1e+09, %v1094_v59  ;;  %v6331_v59 = vld [vmem:[%s8001_s7 + $0x48] sm:$0xff] }
 0x259   : > { %v1341_v13 = vpop.permute.xlu0 %1340  ;;  %v6299_v57 = vadd.f32 %v1349_v8, %v1144_v51  ;;  %v1146_v8 = vsel %vm8068_vm15, -1e+09, %v1097_v62  ;;  %8239 = vst [vmem:[#allocation35_spill] sm:$0xff] %v6331_v59  ;;  %vm8083_vm15 = vcmp.eq.f32.partialorder %v6324_v39, 0.0  ;;  %vm8080_vm14 = vcmp.eq.f32.partialorder %v6331_v59, 0.0  ;;  %v6376_v39 = vld [vmem:[%s8001_s7 + $0x68] sm:$0xff] }
 0x25a   : > { %v6282_v16 = vadd.f32 %v1341_v13, %v1142_v48  ;;  %v6304_v48 = vld [vmem:[%s8001_s7 + $0x30] sm:$0xff]  ;;  %8243 = vst [vmem:[#allocation39_spill] sm:$0xff] %v6376_v39 }
 0x25b   : > { %8236 = vst [vmem:[#allocation32_spill] sm:$0xff] %v6304_v48  ;;  %vm8075_vm0 = vcmp.eq.f32.partialorder %v6304_v48, 0.0  ;;  %v6392_v59 = vld [vmem:[%s8001_s7 + $0x70] sm:$0xff] }
 0x25c   : > { %1418 = vmax.xlane.f32.xlu0 %v6280_v26  ;;  %1416 = vmax.xlane.f32.xlu1 %v6282_v16  ;;  %8244 = vst [vmem:[#allocation40_spill] sm:$0xff] %v6392_v59 }
 0x25d   : > { %v1361_v33 = vpop.permute.xlu0 %1360 }
 0x25e   : > { %v1365_v13 = vpop.permute.xlu1 %1364  ;;  %v8324_v5 = vld [vmem:[#allocation30_spill] sm:$0xff] }
 0x260   : > { %1420 = vmax.xlane.f32.xlu0 %v6299_v57 }
 0x261   : > { %v1353_v34 = vpop.permute.xlu0 %1352 }
 0x262   : > { %v1357_v51 = vpop.permute.xlu1 %1356  ;;  %v6318_v28 = vadd.f32 %v1353_v34, %v1145_v55  ;;  %v1147_v34 = vsel %vm8075_vm0, -1e+09, %v4727_v58  ;;  %v1148_v55 = vsel %vm8074_vm13, -1e+09, %v4728_v61  ;;  %v6353_v58 = vld [vmem:[%s8001_s7 + $0x58] sm:$0xff]  ;;  %vm8087_vm13 = vcmp.eq.f32.partialorder %v6345_v31, 0.0 }
 0x263   : > { %v6326_v24 = vadd.f32 %v1357_v51, %v1146_v8  ;;  %v6340_v51 = vadd.f32 %v1361_v33, %v1147_v34  ;;  %v6348_v32 = vadd.f32 %v1365_v13, %v1148_v55  ;;  %8241 = vst [vmem:[#allocation37_spill] sm:$0xff] %v6353_v58  ;;  %v1149_v61 = vsel %vm8083_vm15, -1e+09, %v1110_v18  ;;  %v6400_v31 = vld [vmem:[%s8001_s7 + $0x78] sm:$0xff] }
 0x264   : > { %1422 = vmax.xlane.f32.xlu1 %v6318_v28  ;;  %v1150_v13 = vsel %vm8080_vm14, -1e+09, %v6237_v23  ;;  %vm8086_vm0 = vcmp.eq.f32.partialorder %v6353_v58, 0.0  ;;  %v1151_v23 = vsel %vm8087_vm13, -1e+09, %v6233_v63  ;;  %vm8105_vm14 = vcmp.eq.f32.partialorder %v6369_v4, 0.0 }
 0x265   : > { %v1377_v62 = vpop.permute.xlu0 %1376  ;;  %1424 = vmax.xlane.f32.xlu0 %v6326_v24  ;;  %vm8104_vm15 = vcmp.eq.f32.partialorder %v6376_v39, 0.0  ;;  %8245 = vst [vmem:[#allocation41_spill] sm:$0xff] %v6400_v31  ;;  %vm8106_vm13 = vcmp.eq.f32.partialorder %v6400_v31, 0.0 }
 0x266   : > { %v1381_v8 = vpop.permute.xlu1 %1380  ;;  %v1156_v39 = vsel %vm8106_vm13, -1e+09, %v6243_v42 }
 0x268   : > { %1426 = vmax.xlane.f32.xlu1 %v6340_v51 }
 0x269   : > { %v1369_v33 = vpop.permute.xlu0 %1368  ;;  %1428 = vmax.xlane.f32.xlu0 %v6348_v32 }
 0x26a   : > { %v1373_v34 = vpop.permute.xlu1 %1372  ;;  %v6363_v55 = vadd.f32 %v1369_v33, %v1149_v61  ;;  %v1152_v33 = vsel %vm8086_vm0, -1e+09, %v6235_v20  ;;  %v1153_v20 = vsel %vm8105_vm14, -1e+09, %v6241_v37  ;;  %vm8107_vm0 = vcmp.eq.f32.partialorder %v6392_v59, 0.0 }
 0x26b   : > { %v6371_v18 = vadd.f32 %v1373_v34, %v1150_v13  ;;  %v6387_v34 = vadd.f32 %v1377_v62, %v1151_v23  ;;  %v6395_v63 = vadd.f32 %v1381_v8, %v1152_v33  ;;  %v1154_v8 = vsel %vm8104_vm15, -1e+09, %v6245_v35 }
 0x26c   : > { %1430 = vmax.xlane.f32.xlu1 %v6363_v55  ;;  %v1155_v37 = vsel %vm8107_vm0, -1e+09, %v6239_v36  ;;  %vm8246_vm15 = vcmask 261120  }
 0x26d   : > { %v1393_v61 = vpop.permute.xlu0 %1392  ;;  %1432 = vmax.xlane.f32.xlu0 %v6371_v18  ;;  %vm8247_vm14 = vmmov %vm8246_vm15 }
 0x26e   : > { %v1397_v13 = vpop.permute.xlu1 %1396  ;;  %v6424_v35 = vadd.f32 %v1393_v61, %v1155_v37  ;;  %vm8249_vm13 = vmmov %vm8247_vm14 }
 0x26f   : > { %vm8253_vm0 = vmmov %vm8249_vm13 }
 0x270   : > { %1434 = vmax.xlane.f32.xlu1 %v6387_v34  ;;  %vm8257_vm12 = vmmov %vm8253_vm0 }
 0x271   : > { %v1385_v62 = vpop.permute.xlu0 %1384  ;;  %1436 = vmax.xlane.f32.xlu0 %v6395_v63  ;;  %vm8266_vm11 = vmmov %vm8253_vm0 }
 0x272   : > { %v1389_v23 = vpop.permute.xlu1 %1388  ;;  %v6411_v33 = vadd.f32 %v1385_v62, %v1153_v20  ;;  %v6426_v20 = vadd.f32 %v1397_v13, %v1156_v39  ;;  %vm8267_vm10 = vmmov %vm8253_vm0 }
 0x273   : > { %v6414_v58 = vadd.f32 %v1389_v23, %v1154_v8  ;;  %vm8269_vm9 = vmmov %vm8253_vm0 }
 0x274   : > { %1438 = vmax.xlane.f32.xlu1 %v6411_v33  ;;  %vm8277_vm8 = vmmov %vm8253_vm0 }
 0x275   : > { %1440 = vmax.xlane.f32.xlu0 %v6414_v58  ;;  %vm8278_vm7 = vmmov %vm8253_vm0 }
 0x278   : > { %1442 = vmax.xlane.f32.xlu1 %v6424_v35 }
 0x279   : > { %1444 = vmax.xlane.f32.xlu0 %v6426_v20 }
 0x2e5   : > { %v1415_v62 = vpop.xlane.xlu0 %1414 }
 0x2e6   : > { %v1446_v8 = vsub.f32 %v6267_v46, %v1415_v62 }
 0x2e8   : > { %v1462_v23 = vmul.f32 1.442695, %v1446_v8 }
 0x2e9   : > { %v1419_v4 = vpop.xlane.xlu0 %1418  ;;  %v1417_v36 = vpop.xlane.xlu1 %1416 }
 0x2ea   : > { %5277 = vpow2.f32 %v1462_v23  ;;  %v1448_v59 = vsub.f32 %v6280_v26, %v1419_v4  ;;  %v1447_v31 = vsub.f32 %v6282_v16, %v1417_v36 }
 0x2ec   : > { %v1466_v42 = vmul.f32 1.442695, %v1448_v59  ;;  %v1464_v61 = vmul.f32 1.442695, %v1447_v31 }
 0x2ed   : > { %v1421_v37 = vpop.xlane.xlu0 %1420 }
 0x2ee   : > { %5279 = vpow2.f32 %v1466_v42  ;;  %v1449_v39 = vsub.f32 %v6299_v57, %v1421_v37 }
 0x2ef   : > { %5281 = vpow2.f32 %v1464_v61 }
 0x2f0   : > { %v1468_v13 = vmul.f32 1.442695, %v1449_v39 }
 0x2f1   : > { %v1423_v48 = vpop.xlane.xlu1 %1422 }
 0x2f2   : > { %5283 = vpow2.f32 %v1468_v13  ;;  %v1425_v19 = vpop.xlane.xlu0 %1424  ;;  %v1450_v4 = vsub.f32 %v6318_v28, %v1423_v48 }
 0x2f3   : > { %v1451_v46 = vsub.f32 %v6326_v24, %v1425_v19 }
 0x2f4   : > { %v6435_v62 = vpop.eup %5277  ;;  %v1470_v42 = vmul.f32 1.442695, %v1450_v4 }
 0x2f5   : > { %v1472_v8 = vmul.f32 1.442695, %v1451_v46  ;;  %v1427_v23 = vpop.xlane.xlu1 %1426  ;;  %1494 = vadd.xlane.f32.xlu1 %v6435_v62 }
 0x2f6   : > { %v1452_v26 = vsub.f32 %v6340_v51, %v1427_v23  ;;  %v1429_v16 = vpop.xlane.xlu0 %1428 }
 0x2f7   : > { %5285 = vpow2.f32 %v1472_v8  ;;  %v1453_v31 = vsub.f32 %v6348_v32, %v1429_v16 }
 0x2f8   : > { %v6441_v57 = vpop.eup %5279  ;;  %v1474_v59 = vmul.f32 1.442695, %v1452_v26 }
 0x2f9   : > { %v6443_v36 = vpop.eup %5281  ;;  %v1476_v19 = vmul.f32 1.442695, %v1453_v31  ;;  %v1431_v24 = vpop.xlane.xlu1 %1430  ;;  %1498 = vadd.xlane.f32.xlu1 %v6441_v57 }
 0x2fa   : > { %5287 = vpow2.f32 %v1474_v59  ;;  %1496 = vadd.xlane.f32.xlu0 %v6443_v36  ;;  %v1433_v28 = vpop.xlane.xlu0 %1432  ;;  %v1454_v37 = vsub.f32 %v6363_v55, %v1431_v24 }
 0x2fb   : > { %5289 = vpow2.f32 %v1476_v19  ;;  %v1455_v48 = vsub.f32 %v6371_v18, %v1433_v28 }
 0x2fc   : > { %v6448_v51 = vpop.eup %5283  ;;  %5291 = vpow2.f32 %v1470_v42  ;;  %v1478_v26 = vmul.f32 1.442695, %v1454_v37 }
 0x2fd   : > { %v1480_v32 = vmul.f32 1.442695, %v1455_v48  ;;  %v1435_v61 = vpop.xlane.xlu1 %1434 }
 0x2fe   : > { %v1456_v39 = vsub.f32 %v6387_v34, %v1435_v61  ;;  %1500 = vadd.xlane.f32.xlu0 %v6448_v51  ;;  %v1437_v13 = vpop.xlane.xlu0 %1436 }
 0x2ff   : > { %5293 = vpow2.f32 %v1480_v32  ;;  %v1457_v46 = vsub.f32 %v6395_v63, %v1437_v13 }
 0x300   : > { %v1482_v8 = vmul.f32 1.442695, %v1456_v39 }
 0x301   : > { %v6454_v23 = vpop.eup %5285  ;;  %v1484_v4 = vmul.f32 1.442695, %v1457_v46  ;;  %v1439_v18 = vpop.xlane.xlu1 %1438 }
 0x302   : > { %5295 = vpow2.f32 %v1482_v8  ;;  %1504 = vadd.xlane.f32.xlu0 %v6454_v23  ;;  %v1441_v16 = vpop.xlane.xlu0 %1440  ;;  %v1458_v19 = vsub.f32 %v6411_v33, %v1439_v18 }
 0x303   : > { %5297 = vpow2.f32 %v1484_v4  ;;  %v1459_v55 = vsub.f32 %v6414_v58, %v1441_v16 }
 0x304   : > { %v6458_v34 = vpop.eup %5287  ;;  %5299 = vpow2.f32 %v1478_v26  ;;  %v1486_v37 = vmul.f32 1.442695, %v1458_v19 }
 0x305   : > { %v6460_v31 = vpop.eup %5289  ;;  %v1488_v59 = vmul.f32 1.442695, %v1459_v55  ;;  %1506 = vadd.xlane.f32.xlu1 %v6458_v34  ;;  %v1443_v63 = vpop.xlane.xlu1 %1442 }
 0x306   : > { %v1460_v24 = vsub.f32 %v6424_v35, %v1443_v63  ;;  %1508 = vadd.xlane.f32.xlu0 %v6460_v31  ;;  %v1445_v42 = vpop.xlane.xlu0 %1444  ;;  %v6467_v58 = vpop.eup %5291 }
 0x307   : > { %5301 = vpow2.f32 %v1488_v59  ;;  %v1461_v28 = vsub.f32 %v6426_v20, %v1445_v42 }
 0x308   : > { %v1490_v48 = vmul.f32 1.442695, %v1460_v24 }
 0x309   : > { %v6469_v32 = vpop.eup %5293  ;;  %v1492_v61 = vmul.f32 1.442695, %v1461_v28  ;;  %1502 = vadd.xlane.f32.xlu1 %v6467_v58 }
 0x30a   : > { %5303 = vpow2.f32 %v1490_v48  ;;  %1512 = vadd.xlane.f32.xlu0 %v6469_v32 }
 0x30b   : > { %5305 = vpow2.f32 %v1492_v61 }
 0x30c   : > { %v6473_v33 = vpop.eup %5295  ;;  %5307 = vpow2.f32 %v1486_v37 }
 0x30d   : > { %v6475_v35 = vpop.eup %5297  ;;  %1514 = vadd.xlane.f32.xlu1 %v6473_v33 }
 0x30e   : > { %1516 = vadd.xlane.f32.xlu0 %v6475_v35  ;;  %v6479_v20 = vpop.eup %5299 }
 0x311   : > { %v6481_v39 = vpop.eup %5301  ;;  %1510 = vadd.xlane.f32.xlu1 %v6479_v20 }
 0x312   : > { %1520 = vadd.xlane.f32.xlu0 %v6481_v39 }
 0x314   : > { %v6485_v13 = vpop.eup %5303 }
 0x315   : > { %v6487_v46 = vpop.eup %5305  ;;  %1522 = vadd.xlane.f32.xlu1 %v6485_v13 }
 0x316   : > { %1524 = vadd.xlane.f32.xlu0 %v6487_v46  ;;  %v6491_v8 = vpop.eup %5307 }
 0x319   : > { %1518 = vadd.xlane.f32.xlu1 %v6491_v8 }
 0x32a   : > { %1711 = vrot.lane.b32.xlu1 %v5918_v52, %s8140_s30 }
 0x32c   : > { %1687 = vrot.lane.b32.xlu0 %v5920_v53, %s8140_s30 }
 0x32e   : > { %1689 = vrot.lane.b32.xlu1 %v5915_v50, %s8140_s30 }
 0x330   : > { %1715 = vrot.lane.b32.xlu0 %v5968_v43, %s8140_s30 }
 0x332   : > { %1713 = vrot.lane.b32.xlu1 %v5944_v14, %s8140_s30 }
 0x334   : > { %1719 = vrot.lane.b32.xlu0 %v6010_v29, %s8140_s30 }
 0x336   : > { %1717 = vrot.lane.b32.xlu1 %v5992_v9, %s8140_s30 }
 0x338   : > { %1691 = vrot.lane.b32.xlu0 %v5946_v15, %s8140_s30 }
 0x33a   : > { %1721 = vrot.lane.b32.xlu1 %v6022_v49, %s8140_s30 }
 0x33c   : > { %1723 = vrot.lane.b32.xlu0 %v6034_v2, %s8140_s30 }
 0x33e   : > { %1693 = vrot.lane.b32.xlu1 %v5941_v11, %s8140_s30 }
 0x340   : > { %1697 = vrot.lane.b32.xlu0 %v5965_v41, %s8140_s30 }
 0x342   : > { %1695 = vrot.lane.b32.xlu1 %v5970_v44, %s8140_s30 }
 0x344   : > { %1699 = vrot.lane.b32.xlu0 %v5994_v10, %s8140_s30 }
 0x346   : > { %1725 = vrot.lane.b32.xlu1 %v6046_v27, %s8140_s30 }
 0x34a   : > { %1701 = vrot.lane.b32.xlu1 %v5989_v6, %s8140_s30 }
 0x34e   : > { %2241 = vrot.lane.b32.xlu1 %v5922_v54, %s8140_s30 }
 0x382   : > { %v1495_v4 = vpop.xlane.xlu1 %1494 }
 0x383   : > { %5309 = vrcp.f32 %v1495_v4 }
 0x386   : > { %v1499_v18 = vpop.xlane.xlu1 %1498 }
 0x387   : > { %v1497_v26 = vpop.xlane.xlu0 %1496 }
 0x388   : > { %5311 = vrcp.f32 %v1497_v26 }
 0x389   : > { %5313 = vrcp.f32 %v1499_v18 }
 0x38b   : > { %v1501_v16 = vpop.xlane.xlu0 %1500 }
 0x38c   : > { %5315 = vrcp.f32 %v1501_v16 }
 0x38d   : > { %v5310_v59 = vpop.eup %5309 }
 0x38e   : > { %v1542_v42 = vmul.f32 %v5310_v59, %v6435_v62 }
 0x38f   : > { %v1505_v55 = vpop.xlane.xlu0 %1504 }
 0x392   : > { %v5312_v63 = vpop.eup %5311  ;;  %v1507_v19 = vpop.xlane.xlu1 %1506 }
 0x393   : > { %5317 = vrcp.f32 %v1507_v19  ;;  %v1509_v24 = vpop.xlane.xlu0 %1508  ;;  %v1543_v28 = vmul.f32 %v5312_v63, %v6443_v36  ;;  %v5314_v48 = vpop.eup %5313 }
 0x394   : > { %5319 = vrcp.f32 %v1509_v24  ;;  %v1544_v18 = vmul.f32 %v5314_v48, %v6441_v57 }
 0x395   : > { %5321 = vrcp.f32 %v1505_v55  ;;  %v1558_v61 = vpack.c.bf16 %v1543_v28, %v1542_v42  ;;  %v6536_v55 = vld [vmem:[%s8000_s6 + $0x8] sm:$0xff]  }
 0x396   : > { %v5316_v37 = vpop.eup %5315  ;;  %v1503_v4 = vpop.xlane.xlu1 %1502 }
 0x397   : > { %v1545_v26 = vmul.f32 %v5316_v37, %v6448_v51  ;;  %5323 = vrcp.f32 %v1503_v4  ;;  %4785 = vmatprep.mubr.bf16.mxu0 %v1558_v61  ;;  %v1513_v16 = vpop.xlane.xlu0 %1512 }
 0x399   : > { %v1559_v54 = vpack.c.bf16 %v1545_v26, %v1544_v18 }
 0x39a   : > { %v1515_v19 = vpop.xlane.xlu1 %1514 }
 0x39b   : > { %5325 = vrcp.f32 %v1515_v19  ;;  %4786 = vmatmul.mubr.bf16.vlgmr.msra.gmra.mrb[32].mxu0 %v1559_v54  ;;  %v1517_v62 = vpop.xlane.xlu0 %1516 }
 0x39c   : > { %4834 = vmatpush3.bf16.xpose.msra.mxu0 %v5808_v45  ;;  %5327 = vrcp.f32 %v1517_v62 }
 0x39d   : > { %v5318_v36 = vpop.eup %5317  ;;  %5329 = vrcp.f32 %v1513_v16  ;;  %5162 = vmatprep.subr.msk.bf16.mxu0 %vm8246_vm15, %v6536_v55 }
 0x39e   : > { %v5320_v57 = vpop.eup %5319  ;;  %v1511_v51 = vpop.xlane.xlu1 %1510  ;;  %v1548_v24 = vmul.f32 %v5318_v36, %v6458_v34  ;;  %v6548_v34 = vld [vmem:[%s8000_s6 + $0x10] sm:$0xff]  }
 0x39f   : > { %v5322_v59 = vpop.eup %5321  ;;  %5331 = vrcp.f32 %v1511_v51  ;;  %v1521_v63 = vpop.xlane.xlu0 %1520  ;;  %v1549_v42 = vmul.f32 %v5320_v57, %v6460_v31 }
 0x3a0   : > { %v1547_v61 = vmul.f32 %v5322_v59, %v6454_v23 }
 0x3a1   : > { %v5324_v54 = vpop.eup %5323  ;;  %v1561_v26 = vpack.c.bf16 %v1549_v42, %v1548_v24 }
 0x3a2   : > { %v1523_v28 = vpop.xlane.xlu1 %1522  ;;  %v1546_v48 = vmul.f32 %v5324_v54, %v6467_v58 }
 0x3a3   : > { %5333 = vrcp.f32 %v1523_v28  ;;  %v1525_v37 = vpop.xlane.xlu0 %1524 }
 0x3a4   : > { %4836 = vmatpush3.bf16.xpose.msra.mxu0 %v5823_v56  ;;  %5335 = vrcp.f32 %v1525_v37  ;;  %v1560_v4 = vpack.c.bf16 %v1547_v61, %v1546_v48 }
 0x3a5   : > { %v5326_v18 = vpop.eup %5325  ;;  %5337 = vrcp.f32 %v1521_v63  ;;  %5163 = vmatprep.subr.msk.bf16.mxu0 %vm8246_vm15, %v6548_v34  ;;  %vm8248_vm15 = vmmov %vm8247_vm14 }
 0x3a6   : > { %v5328_v31 = vpop.eup %5327  ;;  %v1519_v58 = vpop.xlane.xlu1 %1518  ;;  %4789 = vmatprep.mubr.bf16.mxu0 %v1560_v4  ;;  %v1552_v62 = vmul.f32 %v5326_v18, %v6473_v33  ;;  %v6563_v33 = vld [vmem:[%s8000_s6 + $0x18] sm:$0xff]  }
 0x3a7   : > { %v5330_v23 = vpop.eup %5329  ;;  %5339 = vrcp.f32 %v1519_v58  ;;  %4790 = vmatmul.mubr.bf16.gmra.mrb[36].mxu0 %v1561_v26  ;;  %v1688_v16 = vpop.permute.xlu0 %1687  ;;  %v1553_v36 = vmul.f32 %v5328_v31, %v6475_v35 }
 0x3a8   : > { %4817 = vmatprep.mubr.msk.bf16.mxu1 %vm8247_vm14, %v1688_v16  ;;  %v1551_v59 = vmul.f32 %v5330_v23, %v6469_v32  ;;  %vm8250_vm14 = vmmov %vm8249_vm13 }
 0x3a9   : > { %v5332_v19 = vpop.eup %5331  ;;  %v1563_v42 = vpack.c.bf16 %v1553_v36, %v1552_v62 }
 0x3aa   : > { %v1712_v57 = vpop.permute.xlu1 %1711  ;;  %v1550_v51 = vmul.f32 %v5332_v19, %v6479_v20 }
 0x3ab   : > { %5153 = vmatprep.subr.msk.bf16.mxu1 %vm8248_vm15, %v1712_v57  ;;  %v1752_v63 = vsel %vm8249_vm13, %v1712_v57, 0  ;;  %vm8251_vm15 = vmmov %vm8249_vm13  ;;  %v1716_v31 = vpop.permute.xlu0 %1715 }
 0x3ac   : > { %4838 = vmatpush3.bf16.xpose.msra.mxu0 %v5836_v1  ;;  %4802 = vmatpush3.bf16.xpose.msra.mxu1 %v1752_v63  ;;  %v1562_v54 = vpack.c.bf16 %v1551_v59, %v1550_v51  ;;  %v6611_v59 = vld [vmem:[%s8000_s6 + $0x38] sm:$0xff]  }
 0x3ad   : > { %v5334_v24 = vpop.eup %5333  ;;  %5164 = vmatprep.subr.msk.bf16.mxu0 %vm8250_vm14, %v6563_v33  ;;  %vm8252_vm14 = vmmov %vm8249_vm13 }
 0x3ae   : > { %v5336_v35 = vpop.eup %5335  ;;  %v6567_v32 = vpop.permute.xlu1 %1689  ;;  %4793 = vmatprep.mubr.bf16.mxu0 %v1562_v54  ;;  %v1556_v48 = vmul.f32 %v5334_v24, %v6485_v13  ;;  %v6580_v13 = vld [vmem:[%s8000_s6 + $0x20] sm:$0xff]  }
 0x3af   : > { %v5338_v20 = vpop.eup %5337  ;;  %4794 = vmatmul.mubr.bf16.gmra.mrb[40].mxu0 %v1563_v42  ;;  %v1557_v61 = vmul.f32 %v5336_v35, %v6487_v46  ;;  %v1720_v62 = vpop.permute.xlu0 %1719 }
 0x3b0   : > { %v1555_v18 = vmul.f32 %v5338_v20, %v6481_v39 }
 0x3b1   : > { %v5340_v28 = vpop.eup %5339  ;;  %v1565_v23 = vpack.c.bf16 %v1557_v61, %v1556_v48 }
 0x3b2   : > { %v1714_v37 = vpop.permute.xlu1 %1713  ;;  %v1554_v4 = vmul.f32 %v5340_v28, %v6491_v8  ;;  %v6591_v8 = vld [vmem:[%s8000_s6 + $0x28] sm:$0xff]  }
 0x3b3   : > { %5154 = vmatprep.subr.msk.bf16.mxu1 %vm8249_vm13, %v1714_v37  ;;  %v1755_v26 = vsel %vm8251_vm15, %v1714_v37, 0  ;;  %vm8254_vm13 = vmmov %vm8253_vm0  ;;  %v1692_v63 = vpop.permute.xlu0 %1691 }
 0x3b4   : > { %4840 = vmatpush3.bf16.xpose.msra.mxu0 %v5847_v7  ;;  %4804 = vmatpush3.bf16.xpose.msra.mxu1 %v1755_v26  ;;  %v1564_v58 = vpack.c.bf16 %v1555_v18, %v1554_v4  ;;  %vm8255_vm15 = vmmov %vm8253_vm0 }
 0x3b5   : > { %5155 = vmatprep.subr.msk.bf16.mxu1 %vm8252_vm14, %v1716_v31  ;;  %5165 = vmatprep.subr.msk.bf16.mxu0 %vm8253_vm0, %v6580_v13  ;;  %v1758_v39 = vsel %vm8255_vm15, %v1716_v31, 0  ;;  %vm8256_vm14 = vmmov %vm8253_vm0 }
 0x3b6   : > { %4797 = vmatprep.mubr.bf16.mxu0 %v1564_v58  ;;  %v1718_v46 = vpop.permute.xlu1 %1717  ;;  %vm8259_vm15 = vmmov %vm8253_vm0 }
 0x3b7   : > { %4798 = vmatmul.mubr.bf16.gmra.mrb[44].mxu0 %v1565_v23  ;;  %v1761_v19 = vsel %vm8253_vm0, %v1718_v46, 0  ;;  %v1724_v42 = vpop.permute.xlu0 %1723 }
 0x3b8   : > { %4849 = vmatprep.mubr.msk.bf16.mxu0 %vm8254_vm13, %v1688_v16  ;;  %vm8258_vm13 = vmmov %vm8253_vm0  ;;  %v6601_v16 = vld [vmem:[%s8000_s6 + $0x30] sm:$0xff]  }
 0x3ba   : > { %v1722_v36 = vpop.permute.xlu1 %1721 }
 0x3bb   : > { %v1698_v37 = vpop.permute.xlu0 %1697 }
 0x3bc   : > { %4842 = vmatpush3.bf16.xpose.msra.mxu0 %v5858_v12  ;;  %4806 = vmatpush3.bf16.xpose.msra.mxu1 %v1758_v39 }
 0x3bd   : > { %5156 = vmatprep.subr.msk.bf16.mxu1 %vm8256_vm14, %v1718_v46  ;;  %5166 = vmatprep.subr.msk.bf16.mxu0 %vm8257_vm12, %v6591_v8  ;;  %vm8260_vm14 = vmmov %vm8253_vm0 }
 0x3be   : > { %v1764_v57 = vsel %vm8260_vm14, %v1720_v62, 0  ;;  %v1694_v51 = vpop.permute.xlu1 %1693  ;;  %vm8261_vm12 = vmmov %vm8253_vm0 }
 0x3bf   : > { %vm8264_vm14 = vmmov %vm8253_vm0  ;;  %v1700_v4 = vpop.permute.xlu0 %1699 }
 0x3c2   : > { %v1696_v54 = vpop.permute.xlu1 %1695 }
 0x3c4   : > { %4844 = vmatpush3.bf16.xpose.msra.mxu0 %v5869_v17  ;;  %4808 = vmatpush3.bf16.xpose.msra.mxu1 %v1761_v19 }
 0x3c5   : > { %5157 = vmatprep.subr.msk.bf16.mxu1 %vm8258_vm13, %v1720_v62  ;;  %5167 = vmatprep.subr.msk.bf16.mxu0 %vm8259_vm15, %v6601_v16  ;;  %vm8262_vm13 = vmmov %vm8253_vm0 }
 0x3c6   : > { %v1767_v24 = vsel %vm8262_vm13, %v1722_v36, 0  ;;  %vm8263_vm15 = vmmov %vm8253_vm0  ;;  %v1726_v35 = vpop.permute.xlu1 %1725 }
 0x3c7   : > { %vm8268_vm13 = vmmov %vm8253_vm0 }
 0x3c8   : > { %v1773_v48 = vsel %vm8268_vm13, %v1726_v35, 0  ;;  %vm8275_vm13 = vmmov %vm8253_vm0 }
 0x3ca   : > { %v1702_v28 = vpop.permute.xlu1 %1701 }
 0x3cc   : > { %4846 = vmatpush3.bf16.xpose.msra.mxu0 %v5880_v22  ;;  %4810 = vmatpush3.bf16.xpose.msra.mxu1 %v1764_v57 }
 0x3cd   : > { %5158 = vmatprep.subr.msk.bf16.mxu1 %vm8261_vm12, %v1722_v36  ;;  %5168 = vmatprep.subr.msk.bf16.mxu0 %vm8253_vm0, %v6611_v59  ;;  %vm8265_vm12 = vmmov %vm8253_vm0 }
 0x3ce   : > { %v1770_v20 = vsel %vm8265_vm12, %v1724_v42, 0  ;;  %v2242_v61 = vpop.permute.xlu1 %2241  ;;  %vm8273_vm12 = vmmov %vm8253_vm0 }
 0x3d4   : > { %4848 = vmatpush3.bf16.xpose.msra.mxu0 %v5888_v25  ;;  %4812 = vmatpush3.bf16.xpose.msra.mxu1 %v1767_v24 }
 0x3d5   : > { %5159 = vmatprep.subr.msk.bf16.mxu1 %vm8263_vm15, %v1724_v42  ;;  %vm8270_vm15 = vmmov %vm8253_vm0 }
 0x3db   : > { %4850 = vmatmul.mubr.msk.bf16.vlgmr.msra.gmra.mrb[48].mxu0 %vm8264_vm14, %v6567_v32  ;;  %vm8271_vm14 = vmmov %vm8253_vm0 }
 0x3dc   : > { %4853 = vmatprep.mubr.msk.bf16.mxu0 %vm8266_vm11, %v1692_v63  ;;  %4814 = vmatpush3.bf16.xpose.msra.mxu1 %v1770_v20  ;;  %vm8272_vm11 = vmmov %vm8253_vm0 }
 0x3dd   : > { %5160 = vmatprep.subr.msk.bf16.mxu1 %vm8253_vm0, %v1726_v35 }
 0x3e3   : > { %4854 = vmatmul.mubr.msk.bf16.gmra.mrb[52].mxu0 %vm8267_vm10, %v1694_v51  ;;  %vm8274_vm10 = vmmov %vm8253_vm0 }
 0x3e4   : > { %4857 = vmatprep.mubr.msk.bf16.mxu0 %vm8269_vm9, %v1696_v54  ;;  %4816 = vmatpush3.bf16.xpose.msra.mxu1 %v1773_v48  ;;  %vm8276_vm9 = vmmov %vm8253_vm0 }
 0x3e5   : > { %4865 = vmatprep.subr.bf16.mxu1 %v2242_v61 }
 0x3eb   : > { %4858 = vmatmul.mubr.msk.bf16.gmra.mrb[56].mxu0 %vm8270_vm15, %v1698_v37  ;;  %4818 = vmatmul.mubr.msk.bf16.vlgmr.msra.gmra.mrb[48].mxu1 %vm8271_vm14, %v6567_v32  ;;  %vm8279_vm15 = vmmov %vm8253_vm0 }
 0x3ec   : > { %4861 = vmatprep.mubr.msk.bf16.mxu0 %vm8272_vm11, %v1700_v4  ;;  %4821 = vmatprep.mubr.msk.bf16.mxu1 %vm8273_vm12, %v1692_v63  ;;  %vm8280_vm14 = vmmov %vm8253_vm0 }
 0x3ed   : > { %4866 = vmatpush3.bf16.msra.mxu1 %v2242_v61  ;;  %vm8281_vm11 = vmmov %vm8253_vm0 }
 0x3ee   : > { %vm8284_vm12 = vmmov %vm8253_vm0 }
 0x3f3   : > { %4862 = vmatmul.mubr.msk.bf16.gmra.mrb[60].mxu0 %vm8274_vm10, %v1702_v28  ;;  %4822 = vmatmul.mubr.msk.bf16.gmra.mrb[52].mxu1 %vm8253_vm0, %v1694_v51  ;;  %vm8285_vm10 = vmmov %vm8253_vm0 }
 0x3f4   : > { %4825 = vmatprep.mubr.msk.bf16.mxu1 %vm8275_vm13, %v1696_v54  ;;  %vm8286_vm13 = vnez %v8201_v38 }
 0x3fb   : > { %4826 = vmatmul.mubr.msk.bf16.gmra.mrb[56].mxu1 %vm8276_vm9, %v1698_v37  ;;  %vm8287_vm9 = vnez %v8204_v3  ;;  %v8314_v3 = vld [vmem:[#allocation28_spill] sm:$0xff] }
 0x3fc   : > { %4829 = vmatprep.mubr.msk.bf16.mxu1 %vm8277_vm8, %v1700_v4  ;;  %vm8282_vm8 = vmmov %vm8253_vm0 }
 0x403   : > { %4830 = vmatmul.mubr.msk.bf16.gmra.mrb[60].mxu1 %vm8278_vm7, %v1702_v28  ;;  %vm8283_vm7 = vmmov %vm8253_vm0 }
 0x46e   : > { %v4787_v18 = vpop.f32.mrb[32].mxu0 }
 0x46f   : > { %v1600_v26 = vpop.f32.mrb[33].mxu0 }
 0x470   : > { %v4788_v32 = vpop.f32.mrb[34].mxu0 }
 0x471   : > { %v1664_v31 = vpack.c.bf16 %v4788_v32, %v4787_v18  ;;  %v1603_v58 = vpop.f32.mrb[35].mxu0 }
 0x472   : > { %v1663_v23 = vpack.c.bf16 %v1603_v58, %v1600_v26 }
 0x473   : > { %1672 = vst.msk [vmem:[#allocation2 + $0x8] sm:$0xff] %vm8279_vm15, %v1664_v31  ;;  %vm8288_vm15 = vnez %v8207_v0 }
 0x474   : > { %1671 = vst.msk [vmem:[#allocation2] sm:$0xff] %vm8280_vm14, %v1663_v23 }
 0x47a   : > { %v4791_v39 = vpop.f32.mrb[36].mxu0 }
 0x47b   : > { %v1616_v46 = vpop.f32.mrb[37].mxu0 }
 0x47c   : > { %v4792_v19 = vpop.f32.mrb[38].mxu0 }
 0x47d   : > { %v1666_v62 = vpack.c.bf16 %v4792_v19, %v4791_v39  ;;  %v1619_v36 = vpop.f32.mrb[39].mxu0 }
 0x47e   : > { %v1665_v57 = vpack.c.bf16 %v1619_v36, %v1616_v46 }
 0x47f   : > { %1674 = vst.msk [vmem:[#allocation2 + $0x18] sm:$0xff] %vm8281_vm11, %v1666_v62 }
 0x480   : > { %1673 = vst.msk [vmem:[#allocation2 + $0x10] sm:$0xff] %vm8282_vm8, %v1665_v57 }
 0x482   : > { %v4795_v51 = vpop.f32.mrb[40].mxu0 }
 0x483   : > { %v1632_v63 = vpop.f32.mrb[41].mxu0 }
 0x484   : > { %v4796_v54 = vpop.f32.mrb[42].mxu0 }
 0x485   : > { %v1668_v24 = vpack.c.bf16 %v4796_v54, %v4795_v51  ;;  %v1635_v42 = vpop.f32.mrb[43].mxu0 }
 0x486   : > { %v1667_v35 = vpack.c.bf16 %v1635_v42, %v1632_v63 }
 0x487   : > { %1676 = vst.msk [vmem:[#allocation2 + $0x28] sm:$0xff] %vm8283_vm7, %v1668_v24 }
 0x488   : > { %1675 = vst.msk [vmem:[#allocation2 + $0x20] sm:$0xff] %vm8284_vm12, %v1667_v35 }
 0x48a   : > { %v4799_v20 = vpop.f32.mrb[44].mxu0 }
 0x48b   : > { %v1648_v28 = vpop.f32.mrb[45].mxu0 }
 0x48c   : > { %v4800_v48 = vpop.f32.mrb[46].mxu0 }
 0x48d   : > { %v1670_v61 = vpack.c.bf16 %v4800_v48, %v4799_v20  ;;  %v1651_v37 = vpop.f32.mrb[47].mxu0 }
 0x48e   : > { %v1669_v4 = vpack.c.bf16 %v1651_v37, %v1648_v28 }
 0x48f   : > { %1678 = vst.msk [vmem:[#allocation2 + $0x38] sm:$0xff] %vm8285_vm10, %v1670_v61 }
 0x490   : > { %1677 = vst.msk [vmem:[#allocation2 + $0x30] sm:$0xff] %vm8253_vm0, %v1669_v4  ;;  %v8289_v4 = vld [vmem:[#allocation19_spill] sm:$0xff] }
 0x491   : > { %vm8290_vm14 = vnez %v8289_v4 }
 0x4ae   : > { %v4851_v18 = vpop.f32.mrb[48].mxu0 }
 0x4af   : > { %v1987_v26 = vsel %vm6094_vm1, %v4851_v18, 0.0  ;;  %v1922_v32 = vpop.f32.mrb[49].mxu0 }
 0x4b0   : > { %2011 = vrot.lane.b32.xlu0 %v1987_v26, %s8169_s18  ;;  %v4852_v31 = vpop.f32.mrb[50].mxu0  ;;  %v1985_v39 = vsel %vm6100_vm2, %v1922_v32, 0.0 }
 0x4b1   : > { %v1988_v58 = vsel %vm6110_vm3, %v4852_v31, 0.0  ;;  %v1925_v23 = vpop.f32.mrb[51].mxu0  ;;  %v8292_v31 = vld [vmem:[#allocation20_spill] sm:$0xff] }
 0x4b2   : > { %2015 = vrot.lane.b32.xlu1 %v1988_v58, %s8164_s20  ;;  %v1986_v46 = vsel %vm6119_vm4, %v1925_v23, 0.0  ;;  %vm8293_vm11 = vnez %v8292_v31  ;;  %v8295_v23 = vld [vmem:[#allocation21_spill] sm:$0xff] }
 0x4b3   : > { %vm8296_vm8 = vnez %v8295_v23 }
 0x4b4   : > { %2003 = vrot.lane.b32.xlu0 %v1985_v39, %s8167_s19 }
 0x4b6   : > { %2007 = vrot.lane.b32.xlu1 %v1986_v46, %s8168_s23  ;;  %v4855_v19 = vpop.f32.mrb[52].mxu0 }
 0x4b7   : > { %v1991_v62 = vsel %vm6129_vm5, %v4855_v19, 0.0  ;;  %v1938_v36 = vpop.f32.mrb[53].mxu0 }
 0x4b8   : > { %2027 = vrot.lane.b32.xlu0 %v1991_v62, %s8146_s22  ;;  %v4856_v57 = vpop.f32.mrb[54].mxu0  ;;  %v1989_v54 = vsel %vm8286_vm13, %v1938_v36, 0.0  ;;  %v8298_v62 = vld [vmem:[#allocation22_spill] sm:$0xff] }
 0x4b9   : > { %v1992_v51 = vsel %vm6136_vm6, %v4856_v57, 0.0  ;;  %v1941_v63 = vpop.f32.mrb[55].mxu0  ;;  %vm8299_vm7 = vnez %v8298_v62 }
 0x4ba   : > { %2031 = vrot.lane.b32.xlu1 %v1992_v51, %s8163_s26  ;;  %v1990_v24 = vsel %vm8287_vm9, %v1941_v63, 0.0 }
 0x4bc   : > { %2019 = vrot.lane.b32.xlu0 %v1989_v54, %s8144_s27  ;;  %s8406_s27 = smov 289  }
 0x4be   : > { %2023 = vrot.lane.b32.xlu1 %v1990_v24, %s8122_s28  ;;  %v4859_v42 = vpop.f32.mrb[56].mxu0  ;;  %v4819_v35 = vpop.f32.mrb[48].mxu1  ;;  %v8301_v24 = vld [vmem:[#allocation23_spill] sm:$0xff]  ;;  %s8309_s28 = smov 361  }
 0x4bf   : > { %v1995_v20 = vsel %vm8288_vm15, %v4859_v42, 0.0  ;;  %v1954_v28 = vpop.f32.mrb[57].mxu0  ;;  %v1809_v48 = vpop.f32.mrb[49].mxu1  ;;  %vm8302_vm12 = vnez %v8301_v24 }
 0x4c0   : > { %2043 = vrot.lane.b32.xlu0 %v1995_v20, %s8120_s29  ;;  %v4860_v61 = vpop.f32.mrb[58].mxu0  ;;  %v4820_v37 = vpop.f32.mrb[50].mxu1  ;;  %v1993_v58 = vsel %vm8293_vm11, %v1954_v28, 0.0  ;;  %s8306_s29 = smov 353  }
 0x4c1   : > { %v1996_v18 = vsel %vm8290_vm14, %v4860_v61, 0.0  ;;  %v1957_v26 = vpop.f32.mrb[59].mxu0  ;;  %v1812_v32 = vpop.f32.mrb[51].mxu1  ;;  %v8304_v61 = vld [vmem:[#allocation24_spill] sm:$0xff] }
 0x4c2   : > { %2047 = vrot.lane.b32.xlu1 %v1996_v18, %s8291_s14  ;;  %v1994_v39 = vsel %vm8296_vm8, %v1957_v26, 0.0  ;;  %vm8305_vm10 = vnez %v8304_v61  ;;  %v8307_v26 = vld [vmem:[#allocation25_spill] sm:$0xff] }
 0x4c3   : > { %vm8308_vm0 = vnez %v8307_v26 }
 0x4c4   : > { %2035 = vrot.lane.b32.xlu0 %v1993_v58, %s8294_s13 }
 0x4c6   : > { %2039 = vrot.lane.b32.xlu1 %v1994_v39, %s8297_s16  ;;  %v4863_v46 = vpop.f32.mrb[60].mxu0  ;;  %v4823_v19 = vpop.f32.mrb[52].mxu1 }
 0x4c7   : > { %v1999_v36 = vsel %vm8299_vm7, %v4863_v46, 0.0  ;;  %v1970_v57 = vpop.f32.mrb[61].mxu0  ;;  %v1825_v51 = vpop.f32.mrb[53].mxu1 }
 0x4c8   : > { %2059 = vrot.lane.b32.xlu0 %v1999_v36, %s8300_s17  ;;  %v4864_v63 = vpop.f32.mrb[62].mxu0  ;;  %v4824_v54 = vpop.f32.mrb[54].mxu1  ;;  %v1997_v18 = vsel %vm8305_vm10, %v1970_v57, 0.0  ;;  %vm8315_vm10 = vcmp.eq.f32.partialorder %v8314_v3, 0.0 }
 0x4c9   : > { %v2000_v42 = vsel %vm8302_vm12, %v4864_v63, 0.0  ;;  %v1973_v20 = vpop.f32.mrb[63].mxu0  ;;  %v1828_v28 = vpop.f32.mrb[55].mxu1  ;;  %v1873_v38 = vsel %vm8315_vm10, -1e+09, %v1812_v32 }
 0x4ca   : > { %2063 = vrot.lane.b32.xlu1 %v2000_v42, %s8303_s25  ;;  %v1998_v58 = vsel %vm8308_vm0, %v1973_v20, 0.0  ;;  %v8310_v42 = vld [vmem:[#allocation27_spill] sm:$0xff]  ;;  %v8312_v20 = vld [vmem:[#allocation26_spill] sm:$0xff] }
 0x4cb   : > { %vm8311_vm12 = vcmp.eq.f32.partialorder %v8310_v42, 0.0  ;;  %vm8313_vm0 = vcmp.eq.f32.partialorder %v8312_v20, 0.0 }
 0x4cc   : > { %2051 = vrot.lane.b32.xlu0 %v1997_v18, %s8306_s29  ;;  %v1874_v61 = vsel %vm8311_vm12, -1e+09, %v4819_v35  ;;  %v8316_v35 = vld [vmem:[#allocation29_spill] sm:$0xff] }
 0x4cd   : > { %vm8317_vm12 = vcmp.eq.f32.partialorder %v8316_v35, 0.0 }
 0x4ce   : > { %2055 = vrot.lane.b32.xlu1 %v1998_v58, %s8309_s28  ;;  %v4827_v39 = vpop.f32.mrb[56].mxu1  ;;  %v1872_v58 = vsel %vm8313_vm0, -1e+09, %v1809_v48  ;;  %v8318_v48 = vld [vmem:[#allocation5_spill] sm:$0xff] }
 0x4cf   : > { %v1841_v46 = vpop.f32.mrb[57].mxu1 }
 0x4d0   : > { %v4828_v36 = vpop.f32.mrb[58].mxu1 }
 0x4d1   : > { %v1844_v62 = vpop.f32.mrb[59].mxu1 }
 0x4d6   : > { %v4831_v24 = vpop.f32.mrb[60].mxu1 }
 0x4d7   : > { %v1857_v63 = vpop.f32.mrb[61].mxu1 }
 0x4d8   : > { %v4832_v23 = vpop.f32.mrb[62].mxu1 }
 0x4d9   : > { %v6693_v31 = vpop.f32.mrb[63].mxu1 }
 0x522   : > { %v2012_v57 = vpop.permute.xlu0 %2011 }
 0x523   : > { %v6697_v4 = vadd.f32 %v2012_v57, %v1874_v61  ;;  %v1875_v61 = vsel %vm8317_vm12, -1e+09, %v4820_v37  ;;  %vm8325_vm12 = vcmp.eq.f32.partialorder %v8324_v5, 0.0 }
 0x524   : > { %v2016_v18 = vpop.permute.xlu1 %2015 }
 0x525   : > { %2085 = vmax.xlane.f32.xlu0 %v6697_v4  ;;  %v6712_v57 = vadd.f32 %v2016_v18, %v1875_v61  ;;  %v8322_v18 = vld [vmem:[#allocation33_spill] sm:$0xff] }
 0x526   : > { %v2004_v26 = vpop.permute.xlu0 %2003  ;;  %vm8323_vm0 = vcmp.eq.f32.partialorder %v8322_v18, 0.0 }
 0x527   : > { %v6702_v0 = vadd.f32 %v2004_v26, %v1872_v58  ;;  %v8319_v26 = vld [vmem:[#allocation4_spill] sm:$0xff]  ;;  %v1879_v61 = vsel %vm8323_vm0, -1e+09, %v4824_v54 }
 0x528   : > { %v2008_v30 = vpop.permute.xlu1 %2007  ;;  %v8328_v54 = vld [vmem:[#allocation36_spill] sm:$0xff] }
 0x529   : > { %2081 = vmax.xlane.f32.xlu0 %v6702_v0  ;;  %v6707_v42 = vadd.f32 %v2008_v30, %v1873_v38  ;;  %v8320_v38 = vld [vmem:[#allocation32_spill] sm:$0xff]  ;;  %vm8329_vm0 = vcmp.eq.f32.partialorder %v8328_v54, 0.0 }
 0x52a   : > { %v2028_v32 = vpop.permute.xlu0 %2027  ;;  %vm8321_vm10 = vcmp.eq.f32.partialorder %v8320_v38, 0.0  ;;  %v8326_v38 = vld [vmem:[#allocation31_spill] sm:$0xff]  ;;  %v1882_v18 = vsel %vm8329_vm0, -1e+09, %v4827_v39 }
 0x52b   : > { %2083 = vmax.xlane.f32.xlu1 %v6707_v42  ;;  %v1878_v35 = vsel %vm8321_vm10, -1e+09, %v4823_v19  ;;  %vm8327_vm10 = vcmp.eq.f32.partialorder %v8326_v38, 0.0  ;;  %v8334_v39 = vld [vmem:[#allocation35_spill] sm:$0xff] }
 0x52c   : > { %v2032_v58 = vpop.permute.xlu1 %2031  ;;  %v6721_v20 = vadd.f32 %v2028_v32, %v1878_v35  ;;  %v1877_v19 = vsel %vm8327_vm10, -1e+09, %v1828_v28  ;;  %v8332_v28 = vld [vmem:[#allocation34_spill] sm:$0xff]  ;;  %vm8335_vm0 = vcmp.eq.f32.partialorder %v8334_v39, 0.0 }
 0x52d   : > { %2087 = vmax.xlane.f32.xlu0 %v6712_v57  ;;  %vm8333_vm10 = vcmp.eq.f32.partialorder %v8332_v28, 0.0  ;;  %v1881_v54 = vsel %vm8335_vm0, -1e+09, %v1844_v62  ;;  %v8340_v62 = vld [vmem:[#allocation38_spill] sm:$0xff] }
 0x52e   : > { %v2020_v3 = vpop.permute.xlu0 %2019  ;;  %v1880_v38 = vsel %vm8333_vm10, -1e+09, %v1841_v46  ;;  %v8338_v46 = vld [vmem:[#allocation41_spill] sm:$0xff]  ;;  %vm8341_vm0 = vcmp.eq.f32.partialorder %v8340_v62, 0.0 }
 0x52f   : > { %vm8339_vm10 = vcmp.eq.f32.partialorder %v8338_v46, 0.0  ;;  %v1884_v39 = vsel %vm8341_vm0, -1e+09, %v1857_v63 }
 0x530   : > { %v2024_v30 = vpop.permute.xlu1 %2023  ;;  %v1887_v28 = vsel %vm8339_vm10, -1e+09, %v4832_v23  ;;  %vm8350_vm10 = vcmask 261120  }
 0x531   : > { %v6736_v32 = vadd.f32 %v2024_v30, %v1877_v19  ;;  %vm8351_vm0 = vmmov %vm8350_vm10 }
 0x532   : > { %v2044_v37 = vpop.permute.xlu0 %2043  ;;  %vm8353_vm7 = vmmov %vm8351_vm0 }
 0x533   : > { %vm8364_vm8 = vmmov %vm8351_vm0 }
 0x534   : > { %v2048_v21 = vpop.permute.xlu1 %2047  ;;  %vm8365_vm11 = vmmov %vm8351_vm0 }
 0x535   : > { %vm8366_vm14 = vmmov %vm8351_vm0 }
 0x536   : > { %v2036_v35 = vpop.permute.xlu0 %2035  ;;  %vm8370_vm15 = vmmov %vm8351_vm0 }
 0x537   : > { %v6751_v19 = vadd.f32 %v2036_v35, %v1880_v38 }
 0x53a   : > { %v2060_v30 = vpop.permute.xlu0 %2059 }
 0x53c   : > { %2245 = vrot.lane.b32.xlu1 %v8318_v48, %s8140_s30  ;;  %v6726_v48 = vadd.f32 %v2032_v58, %v1879_v61  ;;  %v2040_v58 = vpop.permute.xlu1 %2039  ;;  %v6741_v61 = vadd.f32 %v2044_v37, %v1882_v18 }
 0x53d   : > { %v6756_v18 = vadd.f32 %v2040_v58, %v1881_v54 }
 0x53e   : > { %v2052_v38 = vpop.permute.xlu0 %2051 }
 0x53f   : > { %v6771_v58 = vadd.f32 %v2052_v38, %v1884_v39 }
 0x540   : > { %v2064_v37 = vpop.permute.xlu1 %2063 }
 0x541   : > { %v6766_v35 = vadd.f32 %v2064_v37, %v1887_v28 }
 0x543   : > { %2243 = vrot.lane.b32.xlu0 %v8319_v26, %s8140_s30  ;;  %v1876_v26 = vsel %vm8325_vm12, -1e+09, %v1825_v51  ;;  %v8330_v51 = vld [vmem:[#allocation37_spill] sm:$0xff] }
 0x544   : > { %v6731_v47 = vadd.f32 %v2020_v3, %v1876_v26  ;;  %vm8331_vm12 = vcmp.eq.f32.partialorder %v8330_v51, 0.0  ;;  %v2056_v54 = vpop.permute.xlu1 %2055 }
 0x545   : > { %v1883_v3 = vsel %vm8331_vm12, -1e+09, %v4828_v36  ;;  %v8336_v36 = vld [vmem:[#allocation40_spill] sm:$0xff] }
 0x546   : > { %v6746_v26 = vadd.f32 %v2048_v21, %v1883_v3  ;;  %vm8337_vm12 = vcmp.eq.f32.partialorder %v8336_v36, 0.0 }
 0x547   : > { %v1886_v21 = vsel %vm8337_vm12, -1e+09, %v4831_v24  ;;  %v8342_v24 = vld [vmem:[#allocation39_spill] sm:$0xff] }
 0x548   : > { %v6761_v3 = vadd.f32 %v2060_v30, %v1886_v21  ;;  %vm8343_vm12 = vcmp.eq.f32.partialorder %v8342_v24, 0.0 }
 0x549   : > { %v1885_v30 = vsel %vm8343_vm12, -1e+09, %v6693_v31  ;;  %vm8352_vm12 = vmmov %vm8351_vm0 }
 0x54a   : > { %v6776_v21 = vadd.f32 %v2056_v54, %v1885_v30 }
 0x560   : > { %2093 = vmax.xlane.f32.xlu1 %v6721_v20 }
 0x562   : > { %2095 = vmax.xlane.f32.xlu0 %v6726_v48 }
 0x564   : > { %2089 = vmax.xlane.f32.xlu1 %v6731_v47 }
 0x566   : > { %2091 = vmax.xlane.f32.xlu0 %v6736_v32 }
 0x568   : > { %2101 = vmax.xlane.f32.xlu1 %v6741_v61 }
 0x56a   : > { %2103 = vmax.xlane.f32.xlu0 %v6746_v26 }
 0x56c   : > { %2097 = vmax.xlane.f32.xlu1 %v6751_v19 }
 0x56e   : > { %2099 = vmax.xlane.f32.xlu0 %v6756_v18 }
 0x570   : > { %2109 = vmax.xlane.f32.xlu1 %v6761_v3 }
 0x572   : > { %2111 = vmax.xlane.f32.xlu0 %v6766_v35 }
 0x574   : > { %2105 = vmax.xlane.f32.xlu1 %v6771_v58 }
 0x576   : > { %2107 = vmax.xlane.f32.xlu0 %v6776_v21 }
 0x5b2   : > { %v2086_v23 = vpop.xlane.xlu0 %2085 }
 0x5b3   : > { %v2115_v28 = vsub.f32 %v6697_v4, %v2086_v23 }
 0x5b5   : > { %v2133_v37 = vmul.f32 1.442695, %v2115_v28 }
 0x5b6   : > { %v2082_v63 = vpop.xlane.xlu0 %2081 }
 0x5b7   : > { %5341 = vpow2.f32 %v2133_v37  ;;  %v2113_v62 = vsub.f32 %v6702_v0, %v2082_v63 }
 0x5b8   : > { %v2084_v39 = vpop.xlane.xlu1 %2083 }
 0x5b9   : > { %v2129_v38 = vmul.f32 1.442695, %v2113_v62  ;;  %v2114_v31 = vsub.f32 %v6707_v42, %v2084_v39  ;;  %v8345_v62 = vld [vmem:[#allocation8_spill] sm:$0xff] }
 0x5ba   : > { %v2088_v46 = vpop.xlane.xlu0 %2087 }
 0x5bb   : > { %5343 = vpow2.f32 %v2129_v38  ;;  %v2116_v54 = vsub.f32 %v6712_v57, %v2088_v46  ;;  %v2131_v36 = vmul.f32 1.442695, %v2114_v31  ;;  %v8344_v46 = vld [vmem:[#allocation7_spill] sm:$0xff] }
 0x5bc   : > { %v2246_v51 = vpop.permute.xlu1 %2245 }
 0x5bd   : > { %v2135_v30 = vmul.f32 1.442695, %v2116_v54 }
 0x5be   : > { %v2244_v24 = vpop.permute.xlu0 %2243 }
 0x5bf   : > { %5345 = vpow2.f32 %v2135_v30  ;;  %4867 = vmatprep.subr.bf16.mxu1 %v2244_v24 }
 0x5c0   : > { %4868 = vmatpush3.bf16.msra.mxu1 %v2244_v24  ;;  %5347 = vpow2.f32 %v2131_v36  ;;  %v8347_v36 = vld [vmem:[#allocation10_spill] sm:$0xff] }
 0x5c1   : > { %v6784_v4 = vpop.eup %5341  ;;  %4869 = vmatprep.subr.bf16.mxu1 %v2246_v51  ;;  %v8348_v24 = vld [vmem:[#allocation6_spill] sm:$0xff] }
 0x5c2   : > { %2165 = vadd.xlane.f32.xlu0 %v6784_v4 }
 0x5c4   : > { %4870 = vmatpush3.bf16.msra.mxu1 %v2246_v51  ;;  %v8346_v51 = vld [vmem:[#allocation9_spill] sm:$0xff] }
 0x5c5   : > { %v6787_v0 = vpop.eup %5343 }
 0x5c6   : > { %2161 = vadd.xlane.f32.xlu1 %v6787_v0 }
 0x5c9   : > { %v6790_v42 = vpop.eup %5345 }
 0x5ca   : > { %2167 = vadd.xlane.f32.xlu0 %v6790_v42  ;;  %v6793_v57 = vpop.eup %5347 }
 0x5ce   : > { %2163 = vadd.xlane.f32.xlu0 %v6793_v57 }
 0x5d7   : > { %2249 = vrot.lane.b32.xlu1 %v8344_v46, %s8140_s30 }
 0x5db   : > { %2251 = vrot.lane.b32.xlu1 %v8345_v62, %s8140_s30 }
 0x5df   : > { %2253 = vrot.lane.b32.xlu1 %v8346_v51, %s8140_s30 }
 0x5e3   : > { %2255 = vrot.lane.b32.xlu1 %v8347_v36, %s8140_s30 }
 0x5e4   : > { %2247 = vrot.lane.b32.xlu0 %v8348_v24, %s8140_s30  ;;  %s8142_s30 = smov 64  }
 0x5ed   : > { %v2094_v23 = vpop.xlane.xlu1 %2093 }
 0x5ee   : > { %v2119_v37 = vsub.f32 %v6721_v20, %v2094_v23 }
 0x5ef   : > { %v2096_v28 = vpop.xlane.xlu0 %2095 }
 0x5f0   : > { %v2141_v31 = vmul.f32 1.442695, %v2119_v37  ;;  %v2120_v51 = vsub.f32 %v6726_v48, %v2096_v28 }
 0x5f1   : > { %v2090_v63 = vpop.xlane.xlu1 %2089 }
 0x5f2   : > { %v2117_v39 = vsub.f32 %v6731_v47, %v2090_v63  ;;  %5349 = vpow2.f32 %v2141_v31  ;;  %v2143_v60 = vmul.f32 1.442695, %v2120_v51 }
 0x5f3   : > { %v2092_v38 = vpop.xlane.xlu0 %2091 }
 0x5f4   : > { %v2118_v54 = vsub.f32 %v6736_v32, %v2092_v38  ;;  %v2137_v62 = vmul.f32 1.442695, %v2117_v39 }
 0x5f5   : > { %v2102_v30 = vpop.xlane.xlu1 %2101 }
 0x5f6   : > { %v2139_v36 = vmul.f32 1.442695, %v2118_v54  ;;  %v2123_v24 = vsub.f32 %v6741_v61, %v2102_v30  ;;  %5351 = vpow2.f32 %v2137_v62 }
 0x5f7   : > { %v2104_v46 = vpop.xlane.xlu0 %2103 }
 0x5f8   : > { %5353 = vpow2.f32 %v2139_v36  ;;  %v2149_v47 = vmul.f32 1.442695, %v2123_v24  ;;  %v2124_v48 = vsub.f32 %v6746_v26, %v2104_v46 }
 0x5f9   : > { %v2098_v5 = vpop.xlane.xlu1 %2097  ;;  %5355 = vpow2.f32 %v2143_v60 }
 0x5fa   : > { %v2121_v20 = vsub.f32 %v6751_v19, %v2098_v5  ;;  %5357 = vpow2.f32 %v2149_v47  ;;  %v2151_v62 = vmul.f32 1.442695, %v2124_v48 }
 0x5fb   : > { %v2100_v23 = vpop.xlane.xlu0 %2099 }
 0x5fc   : > { %v2122_v37 = vsub.f32 %v6756_v18, %v2100_v23  ;;  %v2145_v28 = vmul.f32 1.442695, %v2121_v20  ;;  %v6815_v51 = vpop.eup %5349 }
 0x5fd   : > { %v2110_v32 = vpop.xlane.xlu1 %2109 }
 0x5fe   : > { %v2147_v39 = vmul.f32 1.442695, %v2122_v37  ;;  %v2127_v61 = vsub.f32 %v6761_v3, %v2110_v32  ;;  %5359 = vpow2.f32 %v2145_v28  ;;  %v8349_v32 = vld [vmem:[#allocation3_spill] sm:$0xff] }
 0x5ff   : > { %v2112_v63 = vpop.xlane.xlu0 %2111 }
 0x600   : > { %5361 = vpow2.f32 %v2147_v39  ;;  %v2157_v60 = vmul.f32 1.442695, %v2127_v61  ;;  %v6820_v18 = vpop.eup %5351 }
 0x601   : > { %v2106_v38 = vpop.xlane.xlu1 %2105  ;;  %5363 = vpow2.f32 %v2151_v62 }
 0x602   : > { %v2125_v5 = vsub.f32 %v6771_v58, %v2106_v38  ;;  %v6822_v46 = vpop.eup %5353  ;;  %5365 = vpow2.f32 %v2157_v60  ;;  %v2128_v58 = vsub.f32 %v6766_v35, %v2112_v63 }
 0x603   : > { %2173 = vadd.xlane.f32.xlu0 %v6815_v51  ;;  %v2108_v19 = vpop.xlane.xlu0 %2107  ;;  %v6827_v24 = vpop.eup %5355 }
 0x604   : > { %v2126_v26 = vsub.f32 %v6776_v21, %v2108_v19  ;;  %v2153_v3 = vmul.f32 1.442695, %v2125_v5  ;;  %v6829_v31 = vpop.eup %5357  ;;  %v2159_v21 = vmul.f32 1.442695, %v2128_v58 }
 0x606   : > { %v2155_v36 = vmul.f32 1.442695, %v2126_v26  ;;  %5367 = vpow2.f32 %v2153_v3 }
 0x607   : > { %2169 = vadd.xlane.f32.xlu0 %v6820_v18  ;;  %2171 = vadd.xlane.f32.xlu1 %v6822_v46 }
 0x608   : > { %5369 = vpow2.f32 %v2155_v36  ;;  %v6833_v54 = vpop.eup %5359 }
 0x609   : > { %5371 = vpow2.f32 %v2159_v21 }
 0x60a   : > { %v6835_v30 = vpop.eup %5361 }
 0x60b   : > { %2175 = vadd.xlane.f32.xlu0 %v6827_v24  ;;  %2181 = vadd.xlane.f32.xlu1 %v6829_v31  ;;  %v6839_v35 = vpop.eup %5363 }
 0x60c   : > { %v6841_v20 = vpop.eup %5365 }
 0x60f   : > { %2177 = vadd.xlane.f32.xlu1 %v6833_v54  ;;  %2179 = vadd.xlane.f32.xlu0 %v6835_v30 }
 0x610   : > { %v6845_v23 = vpop.eup %5367 }
 0x612   : > { %v6847_v47 = vpop.eup %5369 }
 0x613   : > { %2189 = vadd.xlane.f32.xlu1 %v6841_v20  ;;  %2183 = vadd.xlane.f32.xlu0 %v6839_v35  ;;  %v6851_v37 = vpop.eup %5371 }
 0x617   : > { %2185 = vadd.xlane.f32.xlu1 %v6845_v23  ;;  %2187 = vadd.xlane.f32.xlu0 %v6847_v47 }
 0x61b   : > { %2191 = vadd.xlane.f32.xlu0 %v6851_v37 }
 0x628   : > { %2427 = vrot.lane.b32.xlu1 %v5918_v52, %s8142_s30 }
 0x62c   : > { %2413 = vrot.lane.b32.xlu1 %v5915_v50, %s8142_s30 }
 0x630   : > { %2429 = vrot.lane.b32.xlu1 %v5944_v14, %s8142_s30 }
 0x631   : > { %2411 = vrot.lane.b32.xlu0 %v5920_v53, %s8142_s30 }
 0x634   : > { %2433 = vrot.lane.b32.xlu1 %v5992_v9, %s8142_s30 }
 0x635   : > { %2431 = vrot.lane.b32.xlu0 %v5968_v43, %s8142_s30 }
 0x638   : > { %2437 = vrot.lane.b32.xlu1 %v6022_v49, %s8142_s30 }
 0x639   : > { %2435 = vrot.lane.b32.xlu0 %v6010_v29, %s8142_s30 }
 0x63c   : > { %2417 = vrot.lane.b32.xlu1 %v5941_v11, %s8142_s30 }
 0x63d   : > { %2415 = vrot.lane.b32.xlu0 %v5946_v15, %s8142_s30 }
 0x640   : > { %2419 = vrot.lane.b32.xlu1 %v5970_v44, %s8142_s30 }
 0x641   : > { %2439 = vrot.lane.b32.xlu0 %v6034_v2, %s8142_s30 }
 0x644   : > { %2441 = vrot.lane.b32.xlu1 %v6046_v27, %s8142_s30 }
 0x645   : > { %2421 = vrot.lane.b32.xlu0 %v5965_v41, %s8142_s30 }
 0x648   : > { %2425 = vrot.lane.b32.xlu1 %v5989_v6, %s8142_s30 }
 0x649   : > { %2423 = vrot.lane.b32.xlu0 %v5994_v10, %s8142_s30 }
 0x64c   : > { %2949 = vrot.lane.b32.xlu1 %v8349_v32, %s8142_s30  ;;  %s8408_s30 = smov 297  }
 0x64f   : > { %v2166_v48 = vpop.xlane.xlu0 %2165 }
 0x653   : > { %v2162_v28 = vpop.xlane.xlu1 %2161 }
 0x654   : > { %5373 = vrcp.f32 %v2162_v28 }
 0x657   : > { %v2168_v63 = vpop.xlane.xlu0 %2167  ;;  %v2250_v39 = vpop.permute.xlu1 %2249 }
 0x65b   : > { %v2164_v61 = vpop.xlane.xlu0 %2163  ;;  %v2252_v62 = vpop.permute.xlu1 %2251 }
 0x65c   : > { %5375 = vrcp.f32 %v2164_v61 }
 0x65d   : > { %5377 = vrcp.f32 %v2168_v63 }
 0x65e   : > { %5379 = vrcp.f32 %v2166_v48  ;;  %v5374_v5 = vpop.eup %5373 }
 0x65f   : > { %v2248_v38 = vpop.permute.xlu0 %2247  ;;  %v2254_v60 = vpop.permute.xlu1 %2253  ;;  %v2209_v26 = vmul.f32 %v5374_v5, %v6787_v0  ;;  %v6895_v0 = vld [vmem:[%s8000_s6] sm:$0xff]  }
 0x660   : > { %4871 = vmatprep.subr.bf16.mxu1 %v2248_v38 }
 0x661   : > { %4872 = vmatpush3.bf16.msra.mxu1 %v2248_v38 }
 0x662   : > { %4873 = vmatprep.subr.bf16.mxu1 %v2250_v39 }
 0x663   : > { %v2256_v28 = vpop.permute.xlu1 %2255 }
 0x665   : > { %4874 = vmatpush3.bf16.msra.mxu1 %v2250_v39 }
 0x666   : > { %v5376_v19 = vpop.eup %5375  ;;  %4875 = vmatprep.subr.bf16.mxu1 %v2252_v62 }
 0x667   : > { %v2210_v3 = vmul.f32 %v5376_v19, %v6793_v57  ;;  %v5378_v36 = vpop.eup %5377 }
 0x668   : > { %v5380_v21 = vpop.eup %5379  ;;  %v2212_v63 = vmul.f32 %v5378_v36, %v6790_v42 }
 0x669   : > { %4876 = vmatpush3.bf16.msra.mxu1 %v2252_v62  ;;  %v2225_v58 = vpack.c.bf16 %v2210_v3, %v2209_v26  ;;  %v2211_v48 = vmul.f32 %v5380_v21, %v6784_v4 }
 0x66a   : > { %4877 = vmatprep.subr.bf16.mxu1 %v2254_v60 }
 0x66b   : > { %4881 = vmatprep.mubr.bf16.mxu1 %v2225_v58  ;;  %v2226_v39 = vpack.c.bf16 %v2212_v63, %v2211_v48 }
 0x66d   : > { %4878 = vmatpush3.bf16.msra.mxu1 %v2254_v60 }
 0x66e   : > { %4879 = vmatprep.subr.bf16.mxu1 %v2256_v28 }
 0x671   : > { %4880 = vmatpush3.bf16.msra.mxu1 %v2256_v28 }
 0x672   : > { %5177 = vmatprep.subr.msk.bf16.mxu1 %vm8350_vm10, %v6895_v0  ;;  %vm8354_vm10 = vmmov %vm8351_vm0 }
 0x674   : > { %4882 = vmatmul.mubr.bf16.vlgmr.msra.gmra.mrb[64].mxu1 %v2226_v39 }
 0x67a   : > { %4930 = vmatpush3.bf16.xpose.msra.mxu1 %v5808_v45 }
 0x67b   : > { %5178 = vmatprep.subr.msk.bf16.mxu1 %vm8351_vm0, %v6536_v55 }
 0x682   : > { %4932 = vmatpush3.bf16.xpose.msra.mxu1 %v5823_v56 }
 0x683   : > { %5179 = vmatprep.subr.msk.bf16.mxu1 %vm8352_vm12, %v6548_v34  ;;  %vm8356_vm12 = vmmov %vm8351_vm0 }
 0x68a   : > { %4934 = vmatpush3.bf16.xpose.msra.mxu1 %v5836_v1 }
 0x68b   : > { %5180 = vmatprep.subr.msk.bf16.mxu1 %vm8353_vm7, %v6563_v33  ;;  %vm8355_vm7 = vmmov %vm8351_vm0 }
 0x690   : > { %v2174_v4 = vpop.xlane.xlu0 %2173 }
 0x692   : > { %4936 = vmatpush3.bf16.xpose.msra.mxu1 %v5847_v7 }
 0x693   : > { %5181 = vmatprep.subr.msk.bf16.mxu1 %vm8354_vm10, %v6580_v13  ;;  %vm8357_vm10 = vmmov %vm8351_vm0 }
 0x694   : > { %v2172_v42 = vpop.xlane.xlu1 %2171  ;;  %v2170_v57 = vpop.xlane.xlu0 %2169 }
 0x695   : > { %5381 = vrcp.f32 %v2172_v42 }
 0x696   : > { %5383 = vrcp.f32 %v2170_v57 }
 0x697   : > { %5385 = vrcp.f32 %v2174_v4 }
 0x698   : > { %v2182_v55 = vpop.xlane.xlu1 %2181  ;;  %v2176_v61 = vpop.xlane.xlu0 %2175 }
 0x699   : > { %5387 = vrcp.f32 %v2176_v61 }
 0x69a   : > { %4938 = vmatpush3.bf16.xpose.msra.mxu1 %v5858_v12 }
 0x69b   : > { %5182 = vmatprep.subr.msk.bf16.mxu1 %vm8351_vm0, %v6591_v8 }
 0x69c   : > { %v2178_v34 = vpop.xlane.xlu1 %2177  ;;  %v2180_v33 = vpop.xlane.xlu0 %2179 }
 0x69d   : > { %5389 = vrcp.f32 %v2178_v34 }
 0x69e   : > { %5391 = vrcp.f32 %v2180_v33 }
 0x69f   : > { %v5382_v38 = vpop.eup %5381  ;;  %5393 = vrcp.f32 %v2182_v55 }
 0x6a0   : > { %v5384_v62 = vpop.eup %5383  ;;  %v2190_v13 = vpop.xlane.xlu1 %2189  ;;  %v2214_v19 = vmul.f32 %v5382_v38, %v6822_v46 }
 0x6a1   : > { %v2184_v5 = vpop.xlane.xlu0 %2183  ;;  %v2213_v60 = vmul.f32 %v5384_v62, %v6820_v18  ;;  %v5386_v26 = vpop.eup %5385 }
 0x6a2   : > { %5395 = vrcp.f32 %v2184_v5  ;;  %4940 = vmatpush3.bf16.xpose.msra.mxu1 %v5869_v17  ;;  %v2215_v21 = vmul.f32 %v5386_v26, %v6815_v51 }
 0x6a3   : > { %v2227_v3 = vpack.c.bf16 %v2214_v19, %v2213_v60  ;;  %5183 = vmatprep.subr.msk.bf16.mxu1 %vm8355_vm7, %v6601_v16  ;;  %v5388_v8 = vpop.eup %5387  ;;  %vm8358_vm7 = vmmov %vm8351_vm0 }
 0x6a4   : > { %v2186_v58 = vpop.xlane.xlu1 %2185  ;;  %v2216_v28 = vmul.f32 %v5388_v8, %v6827_v24 }
 0x6a5   : > { %v2188_v36 = vpop.xlane.xlu0 %2187  ;;  %5397 = vrcp.f32 %v2186_v58  ;;  %4885 = vmatprep.mubr.bf16.mxu1 %v2227_v3 }
 0x6a6   : > { %5399 = vrcp.f32 %v2188_v36  ;;  %v2228_v18 = vpack.c.bf16 %v2216_v28, %v2215_v21 }
 0x6a7   : > { %v5390_v46 = vpop.eup %5389  ;;  %5401 = vrcp.f32 %v2190_v13 }
 0x6a8   : > { %v5392_v63 = vpop.eup %5391  ;;  %v2428_v48 = vpop.permute.xlu1 %2427  ;;  %v2217_v4 = vmul.f32 %v5390_v46, %v6833_v54  ;;  %4886 = vmatmul.mubr.bf16.gmra.mrb[68].mxu1 %v2228_v18 }
 0x6a9   : > { %v2192_v39 = vpop.xlane.xlu0 %2191  ;;  %5169 = vmatprep.subr.msk.bf16.mxu0 %vm8356_vm12, %v2428_v48  ;;  %v2468_v16 = vsel %vm8357_vm10, %v2428_v48, 0  ;;  %v2218_v42 = vmul.f32 %v5392_v63, %v6835_v30  ;;  %v5394_v51 = vpop.eup %5393  ;;  %vm8359_vm12 = vmmov %vm8351_vm0 }
 0x6aa   : > { %5403 = vrcp.f32 %v2192_v39  ;;  %4898 = vmatpush3.bf16.xpose.msra.mxu0 %v2468_v16  ;;  %4942 = vmatpush3.bf16.xpose.msra.mxu1 %v5880_v22  ;;  %v2219_v61 = vmul.f32 %v5394_v51, %v6829_v31  ;;  %vm8360_vm10 = vmmov %vm8351_vm0 }
 0x6ab   : > { %v2229_v24 = vpack.c.bf16 %v2218_v42, %v2217_v4  ;;  %5184 = vmatprep.subr.msk.bf16.mxu1 %vm8351_vm0, %v6611_v59 }
 0x6ac   : > { %v5396_v57 = vpop.eup %5395  ;;  %v6928_v55 = vpop.permute.xlu1 %2413 }
 0x6ad   : > { %v2412_v54 = vpop.permute.xlu0 %2411  ;;  %4889 = vmatprep.mubr.bf16.mxu1 %v2229_v24  ;;  %v2220_v34 = vmul.f32 %v5396_v57, %v6839_v35 }
 0x6ae   : > { %4913 = vmatprep.mubr.msk.bf16.mxu0 %vm8358_vm7, %v2412_v54  ;;  %vm8361_vm7 = vmmov %vm8351_vm0 }
 0x6af   : > { %v5398_v30 = vpop.eup %5397  ;;  %v2230_v33 = vpack.c.bf16 %v2220_v34, %v2219_v61 }
 0x6b0   : > { %v5400_v38 = vpop.eup %5399  ;;  %v2430_v62 = vpop.permute.xlu1 %2429  ;;  %v2221_v13 = vmul.f32 %v5398_v30, %v6845_v23 }
 0x6b1   : > { %v5402_v5 = vpop.eup %5401  ;;  %4890 = vmatmul.mubr.bf16.gmra.mrb[72].mxu1 %v2230_v33  ;;  %5170 = vmatprep.subr.msk.bf16.mxu0 %vm8359_vm12, %v2430_v62  ;;  %v2471_v59 = vsel %vm8360_vm10, %v2430_v62, 0  ;;  %v2222_v19 = vmul.f32 %v5400_v38, %v6847_v47  ;;  %v2432_v60 = vpop.permute.xlu0 %2431  ;;  %vm8362_vm12 = vmmov %vm8351_vm0 }
 0x6b2   : > { %4900 = vmatpush3.bf16.xpose.msra.mxu0 %v2471_v59  ;;  %4944 = vmatpush3.bf16.xpose.msra.mxu1 %v5888_v25  ;;  %v2223_v26 = vmul.f32 %v5402_v5, %v6841_v20  ;;  %v2474_v36 = vsel %vm8361_vm7, %v2432_v60, 0  ;;  %vm8363_vm10 = vmmov %vm8351_vm0 }
 0x6b3   : > { %5171 = vmatprep.subr.msk.bf16.mxu0 %vm8351_vm0, %v2432_v60  ;;  %v2231_v35 = vpack.c.bf16 %v2222_v19, %v2221_v13  ;;  %vm8367_vm7 = vmmov %vm8351_vm0 }
 0x6b4   : > { %v5404_v31 = vpop.eup %5403  ;;  %v2434_v8 = vpop.permute.xlu1 %2433 }
 0x6b5   : > { %v2224_v23 = vmul.f32 %v5404_v31, %v6851_v37  ;;  %4893 = vmatprep.mubr.bf16.mxu1 %v2231_v35  ;;  %v2436_v58 = vpop.permute.xlu0 %2435  ;;  %v2477_v20 = vsel %vm8364_vm8, %v2434_v8, 0  ;;  %vm8371_vm8 = vmmov %vm8351_vm0 }
 0x6b7   : > { %v2232_v3 = vpack.c.bf16 %v2224_v23, %v2223_v26  ;;  %v8418_v23 = vld [vmem:[#allocation22_spill] sm:$0xff] }
 0x6b8   : > { %v2438_v47 = vpop.permute.xlu1 %2437 }
 0x6b9   : > { %4894 = vmatmul.mubr.bf16.gmra.mrb[76].mxu1 %v2232_v3  ;;  %v2416_v21 = vpop.permute.xlu0 %2415 }
 0x6ba   : > { %4945 = vmatprep.mubr.msk.bf16.mxu1 %vm8362_vm12, %v2412_v54  ;;  %4902 = vmatpush3.bf16.xpose.msra.mxu0 %v2474_v36  ;;  %vm8368_vm12 = vmmov %vm8351_vm0  ;;  %v8409_v36 = vld [vmem:[#allocation18_spill] sm:$0xff] }
 0x6bb   : > { %5172 = vmatprep.subr.msk.bf16.mxu0 %vm8363_vm10, %v2434_v8  ;;  %v2480_v18 = vsel %vm8368_vm12, %v2436_v58, 0  ;;  %vm8369_vm10 = vmmov %vm8351_vm0 }
 0x6bc   : > { %v2418_v37 = vpop.permute.xlu1 %2417  ;;  %vm8375_vm12 = vmmov %vm8351_vm0 }
 0x6bd   : > { %v2440_v28 = vpop.permute.xlu0 %2439 }
 0x6be   : > { %v2486_v42 = vsel %vm8375_vm12, %v2440_v28, 0  ;;  %vm8382_vm12 = vmmov %vm8351_vm0 }
 0x6c0   : > { %v2420_v46 = vpop.permute.xlu1 %2419 }
 0x6c1   : > { %4946 = vmatmul.mubr.msk.bf16.vlgmr.msra.gmra.mrb[80].mxu1 %vm8351_vm0, %v6928_v55  ;;  %v2422_v63 = vpop.permute.xlu0 %2421 }
 0x6c2   : > { %4949 = vmatprep.mubr.msk.bf16.mxu1 %vm8365_vm11, %v2416_v21  ;;  %4904 = vmatpush3.bf16.xpose.msra.mxu0 %v2477_v20  ;;  %vm8372_vm11 = vmmov %vm8351_vm0 }
 0x6c3   : > { %5173 = vmatprep.subr.msk.bf16.mxu0 %vm8366_vm14, %v2436_v58  ;;  %v2483_v39 = vsel %vm8372_vm11, %v2438_v47, 0  ;;  %vm8373_vm14 = vmmov %vm8351_vm0 }
 0x6c4   : > { %v2442_v4 = vpop.permute.xlu1 %2441  ;;  %vm8379_vm11 = vmmov %vm8351_vm0 }
 0x6c5   : > { %v2424_v48 = vpop.permute.xlu0 %2423 }
 0x6c8   : > { %v2426_v16 = vpop.permute.xlu1 %2425 }
 0x6c9   : > { %4950 = vmatmul.mubr.msk.bf16.gmra.mrb[84].mxu1 %vm8367_vm7, %v2418_v37  ;;  %vm8374_vm7 = vmmov %vm8351_vm0 }
 0x6ca   : > { %4953 = vmatprep.mubr.msk.bf16.mxu1 %vm8369_vm10, %v2420_v46  ;;  %4906 = vmatpush3.bf16.xpose.msra.mxu0 %v2480_v18  ;;  %vm8376_vm10 = vmmov %vm8351_vm0  ;;  %v8505_v18 = vld [vmem:[#allocation15_spill] sm:$0xff] }
 0x6cb   : > { %5174 = vmatprep.subr.msk.bf16.mxu0 %vm8370_vm15, %v2438_v47  ;;  %vm8377_vm15 = vmmov %vm8351_vm0 }
 0x6cc   : > { %v2489_v51 = vsel %vm8377_vm15, %v2442_v4, 0  ;;  %v2950_v24 = vpop.permute.xlu1 %2949  ;;  %vm8410_vm15 = vnez %v8409_v36 }
 0x6d1   : > { %4954 = vmatmul.mubr.msk.bf16.gmra.mrb[88].mxu1 %vm8371_vm8, %v2422_v63  ;;  %vm8378_vm8 = vmmov %vm8351_vm0 }
 0x6d2   : > { %4957 = vmatprep.mubr.msk.bf16.mxu1 %vm8351_vm0, %v2424_v48  ;;  %4908 = vmatpush3.bf16.xpose.msra.mxu0 %v2483_v39 }
 0x6d3   : > { %5175 = vmatprep.subr.msk.bf16.mxu0 %vm8373_vm14, %v2440_v28  ;;  %vm8380_vm14 = vmmov %vm8351_vm0 }
 0x6d9   : > { %4958 = vmatmul.mubr.msk.bf16.gmra.mrb[92].mxu1 %vm8374_vm7, %v2426_v16  ;;  %vm8381_vm7 = vmmov %vm8351_vm0 }
 0x6da   : > { %4910 = vmatpush3.bf16.xpose.msra.mxu0 %v2486_v42 }
 0x6db   : > { %5176 = vmatprep.subr.msk.bf16.mxu0 %vm8376_vm10, %v2442_v4  ;;  %vm8383_vm10 = vmmov %vm8351_vm0 }
 0x6e2   : > { %4912 = vmatpush3.bf16.xpose.msra.mxu0 %v2489_v51 }
 0x6e3   : > { %4961 = vmatprep.subr.bf16.mxu0 %v2950_v24 }
 0x6e9   : > { %4914 = vmatmul.mubr.msk.bf16.vlgmr.msra.gmra.mrb[64].mxu0 %vm8378_vm8, %v6928_v55  ;;  %v8412_v55 = vld [vmem:[#allocation19_spill] sm:$0xff] }
 0x6ea   : > { %4917 = vmatprep.mubr.msk.bf16.mxu0 %vm8379_vm11, %v2416_v21  ;;  %4962 = vmatpush3.bf16.msra.mxu0 %v2950_v24  ;;  %vm8413_vm8 = vnez %v8412_v55 }
 0x6f1   : > { %4918 = vmatmul.mubr.msk.bf16.gmra.mrb[68].mxu0 %vm8351_vm0, %v2418_v37 }
 0x6f2   : > { %4921 = vmatprep.mubr.msk.bf16.mxu0 %vm8380_vm14, %v2420_v46  ;;  %vm8419_vm14 = vnez %v8418_v23 }
 0x6f9   : > { %4922 = vmatmul.mubr.msk.bf16.gmra.mrb[72].mxu0 %vm8381_vm7, %v2422_v63 }
 0x6fa   : > { %4925 = vmatprep.mubr.msk.bf16.mxu0 %vm8382_vm12, %v2424_v48 }
 0x701   : > { %4926 = vmatmul.mubr.msk.bf16.gmra.mrb[76].mxu0 %vm8383_vm10, %v2426_v16 }
 0x747   : > { %v6969_v57 = vpop.f32.mrb[64].mxu1 }
 0x748   : > { %8384 = vst [vmem:[#allocation42_spill] sm:$0xff] %v6969_v57  ;;  %v6971_v54 = vpop.f32.mrb[65].mxu1 }
 0x749   : > { %8385 = vst [vmem:[#allocation43_spill] sm:$0xff] %v6971_v54  ;;  %v6973_v61 = vpop.f32.mrb[66].mxu1 }
 0x74a   : > { %8386 = vst [vmem:[#allocation44_spill] sm:$0xff] %v6973_v61  ;;  %v6977_v34 = vpop.f32.mrb[67].mxu1 }
 0x74b   : > { %8387 = vst [vmem:[#allocation45_spill] sm:$0xff] %v6977_v34  ;;  %v8428_v34 = vld [vmem:[#allocation26_spill] sm:$0xff] }
 0x77b   : > { %v6981_v33 = vpop.f32.mrb[68].mxu1 }
 0x77c   : > { %8388 = vst [vmem:[#allocation46_spill] sm:$0xff] %v6981_v33  ;;  %v6983_v38 = vpop.f32.mrb[69].mxu1  ;;  %v8420_v33 = vld [vmem:[#allocation23_spill] sm:$0xff] }
 0x77d   : > { %8389 = vst [vmem:[#allocation47_spill] sm:$0xff] %v6983_v38  ;;  %v6985_v62 = vpop.f32.mrb[70].mxu1  ;;  %vm8421_vm7 = vnez %v8420_v33 }
 0x77e   : > { %8390 = vst [vmem:[#allocation48_spill] sm:$0xff] %v6985_v62  ;;  %v6989_v5 = vpop.f32.mrb[71].mxu1 }
 0x77f   : > { %8391 = vst [vmem:[#allocation49_spill] sm:$0xff] %v6989_v5 }
 0x784   : > { %v6993_v19 = vpop.f32.mrb[72].mxu1 }
 0x785   : > { %8392 = vst [vmem:[#allocation50_spill] sm:$0xff] %v6993_v19  ;;  %v6995_v60 = vpop.f32.mrb[73].mxu1 }
 0x786   : > { %8393 = vst [vmem:[#allocation51_spill] sm:$0xff] %v6995_v60  ;;  %v6997_v31 = vpop.f32.mrb[74].mxu1 }
 0x787   : > { %8394 = vst [vmem:[#allocation52_spill] sm:$0xff] %v6997_v31  ;;  %v7001_v26 = vpop.f32.mrb[75].mxu1 }
 0x788   : > { %8395 = vst [vmem:[#allocation53_spill] sm:$0xff] %v7001_v26 }
 0x78c   : > { %v7005_v3 = vpop.f32.mrb[76].mxu1 }
 0x78d   : > { %8396 = vst [vmem:[#allocation54_spill] sm:$0xff] %v7005_v3  ;;  %v7007_v8 = vpop.f32.mrb[77].mxu1 }
 0x78e   : > { %8397 = vst [vmem:[#allocation55_spill] sm:$0xff] %v7007_v8  ;;  %v7009_v58 = vpop.f32.mrb[78].mxu1 }
 0x78f   : > { %8398 = vst [vmem:[#allocation56_spill] sm:$0xff] %v7009_v58  ;;  %v7013_v47 = vpop.f32.mrb[79].mxu1 }
 0x790   : > { %8399 = vst [vmem:[#allocation57_spill] sm:$0xff] %v7013_v47 }
 0x794   : > { %v4947_v20 = vpop.f32.mrb[80].mxu1 }
 0x795   : > { %v2703_v37 = vsel %vm6094_vm1, %v4947_v20, 0.0  ;;  %v2638_v28 = vpop.f32.mrb[81].mxu1 }
 0x796   : > { %2727 = vrot.lane.b32.xlu0 %v2703_v37, %s8169_s18  ;;  %v4948_v46 = vpop.f32.mrb[82].mxu1  ;;  %v2701_v4 = vsel %vm6100_vm2, %v2638_v28, 0.0  ;;  %s8502_s18 = smov 257   ;;  %v8510_v28 = vld [vmem:[#allocation21_spill] sm:$0xff] }
 0x797   : > { %v2704_v63 = vsel %vm6110_vm3, %v4948_v46, 0.0  ;;  %v2641_v48 = vpop.f32.mrb[83].mxu1 }
 0x798   : > { %2731 = vrot.lane.b32.xlu1 %v2704_v63, %s8164_s20  ;;  %v2702_v42 = vsel %vm6119_vm4, %v2641_v48, 0.0  ;;  %s8165_s20 = smov 32  }
 0x79a   : > { %2719 = vrot.lane.b32.xlu0 %v2701_v4, %s8167_s19  ;;  %s8504_s19 = smov 305  }
 0x79c   : > { %2723 = vrot.lane.b32.xlu1 %v2702_v42, %s8168_s23  ;;  %v4951_v51 = vpop.f32.mrb[84].mxu1  ;;  %s8503_s23 = smov 281  }
 0x79d   : > { %v2707_v20 = vsel %vm6129_vm5, %v4951_v51, 0.0  ;;  %v2654_v37 = vpop.f32.mrb[85].mxu1 }
 0x79e   : > { %2743 = vrot.lane.b32.xlu0 %v2707_v20, %s8146_s22  ;;  %v4952_v46 = vpop.f32.mrb[86].mxu1  ;;  %v2705_v4 = vsel %vm8286_vm13, %v2654_v37, 0.0  ;;  %s8411_s22 = smov 337   ;;  %v8414_v37 = vld [vmem:[#allocation20_spill] sm:$0xff] }
 0x79f   : > { %v2708_v63 = vsel %vm6136_vm6, %v4952_v46, 0.0  ;;  %v2657_v59 = vpop.f32.mrb[87].mxu1  ;;  %vm8415_vm11 = vnez %v8414_v37 }
 0x7a0   : > { %2747 = vrot.lane.b32.xlu1 %v2708_v63, %s8163_s26  ;;  %v2706_v42 = vsel %vm8287_vm9, %v2657_v59, 0.0  ;;  %v8416_v59 = vld [vmem:[#allocation21_spill] sm:$0xff]  ;;  %s8434_s26 = smov 64  }
 0x7a1   : > { %vm8417_vm0 = vnez %v8416_v59 }
 0x7a2   : > { %2735 = vrot.lane.b32.xlu0 %v2705_v4, %s8406_s27 }
 0x7a4   : > { %2739 = vrot.lane.b32.xlu1 %v2706_v42, %s8408_s30  ;;  %v4955_v51 = vpop.f32.mrb[88].mxu1 }
 0x7a5   : > { %v2711_v20 = vsel %vm8410_vm15, %v4955_v51, 0.0  ;;  %v2670_v21 = vpop.f32.mrb[89].mxu1 }
 0x7a6   : > { %2759 = vrot.lane.b32.xlu0 %v2711_v20, %s8411_s22  ;;  %v4956_v46 = vpop.f32.mrb[90].mxu1  ;;  %v2709_v4 = vsel %vm8415_vm11, %v2670_v21, 0.0  ;;  %v8422_v21 = vld [vmem:[#allocation24_spill] sm:$0xff] }
 0x7a7   : > { %v2712_v63 = vsel %vm8413_vm8, %v4956_v46, 0.0  ;;  %v2673_v35 = vpop.f32.mrb[91].mxu1  ;;  %vm8423_vm12 = vnez %v8422_v21 }
 0x7a8   : > { %2763 = vrot.lane.b32.xlu1 %v2712_v63, %s8291_s14  ;;  %v2710_v42 = vsel %vm8417_vm0, %v2673_v35, 0.0  ;;  %v8424_v35 = vld [vmem:[#allocation25_spill] sm:$0xff] }
 0x7a9   : > { %vm8425_vm10 = vnez %v8424_v35  ;;  %v8430_v35 = vld [vmem:[#allocation28_spill] sm:$0xff] }
 0x7aa   : > { %2751 = vrot.lane.b32.xlu0 %v2709_v4, %s8294_s13 }
 0x7ac   : > { %2755 = vrot.lane.b32.xlu1 %v2710_v42, %s8297_s16  ;;  %v4959_v51 = vpop.f32.mrb[92].mxu1 }
 0x7ad   : > { %v2715_v20 = vsel %vm8419_vm14, %v4959_v51, 0.0  ;;  %v2686_v30 = vpop.f32.mrb[93].mxu1 }
 0x7ae   : > { %2775 = vrot.lane.b32.xlu0 %v2715_v20, %s8300_s17  ;;  %v4960_v46 = vpop.f32.mrb[94].mxu1  ;;  %v2713_v4 = vsel %vm8423_vm12, %v2686_v30, 0.0  ;;  %vm8429_vm12 = vcmp.eq.f32.partialorder %v8428_v34, 0.0  ;;  %v8437_v34 = vld [vmem:[#allocation32_spill] sm:$0xff] }
 0x7af   : > { %v2716_v63 = vsel %vm8421_vm7, %v4960_v46, 0.0  ;;  %v2689_v62 = vpop.f32.mrb[95].mxu1 }
 0x7b0   : > { %2779 = vrot.lane.b32.xlu1 %v2716_v63, %s8303_s25  ;;  %v2714_v42 = vsel %vm8425_vm10, %v2689_v62, 0.0  ;;  %v8426_v62 = vld [vmem:[#allocation27_spill] sm:$0xff]  ;;  %vm8431_vm10 = vcmp.eq.f32.partialorder %v8430_v35, 0.0 }
 0x7b1   : > { %vm8427_vm7 = vcmp.eq.f32.partialorder %v8426_v62, 0.0 }
 0x7b2   : > { %2767 = vrot.lane.b32.xlu0 %v2713_v4, %s8306_s29 }
 0x7b4   : > { %2771 = vrot.lane.b32.xlu1 %v2714_v42, %s8309_s28 }
 0x7bc   : > { %v4915_v51 = vpop.f32.mrb[64].mxu0 }
 0x7bd   : > { %v2525_v38 = vpop.f32.mrb[65].mxu0  ;;  %v2590_v42 = vsel %vm8427_vm7, -1e+09, %v4915_v51  ;;  %v8432_v51 = vld [vmem:[#allocation29_spill] sm:$0xff] }
 0x7be   : > { %v4916_v20 = vpop.f32.mrb[66].mxu0  ;;  %v2588_v32 = vsel %vm8429_vm12, -1e+09, %v2525_v38  ;;  %vm8433_vm7 = vcmp.eq.f32.partialorder %v8432_v51, 0.0  ;;  %vm8438_vm12 = vcmp.eq.f32.partialorder %v8437_v34, 0.0  ;;  %v8443_v34 = vld [vmem:[#allocation31_spill] sm:$0xff] }
 0x7bf   : > { %v2528_v5 = vpop.f32.mrb[67].mxu0 }
 0x7c0   : > { %v2589_v23 = vsel %vm8431_vm10, -1e+09, %v2528_v5 }
 0x7c4   : > { %v4919_v3 = vpop.f32.mrb[68].mxu0 }
 0x7c5   : > { %v2541_v58 = vpop.f32.mrb[69].mxu0  ;;  %v2594_v51 = vsel %vm8438_vm12, -1e+09, %v4919_v3  ;;  %vm8444_vm12 = vcmp.eq.f32.partialorder %v8443_v34, 0.0 }
 0x7c6   : > { %v4920_v46 = vpop.f32.mrb[70].mxu0 }
 0x7c7   : > { %v2544_v8 = vpop.f32.mrb[71].mxu0 }
 0x7c8   : > { %v2593_v3 = vsel %vm8444_vm12, -1e+09, %v2544_v8  ;;  %v8449_v8 = vld [vmem:[#allocation34_spill] sm:$0xff] }
 0x7c9   : > { %vm8450_vm12 = vcmp.eq.f32.partialorder %v8449_v8, 0.0 }
 0x7cc   : > { %v4923_v47 = vpop.f32.mrb[72].mxu0 }
 0x7cd   : > { %v2557_v63 = vpop.f32.mrb[73].mxu0 }
 0x7ce   : > { %v4924_v57 = vpop.f32.mrb[74].mxu0 }
 0x7cf   : > { %v2560_v61 = vpop.f32.mrb[75].mxu0 }
 0x7d4   : > { %v4927_v30 = vpop.f32.mrb[76].mxu0 }
 0x7d5   : > { %v2573_v19 = vpop.f32.mrb[77].mxu0 }
 0x7d6   : > { %v4928_v4 = vpop.f32.mrb[78].mxu0 }
 0x7d7   : > { %v7065_v31 = vpop.f32.mrb[79].mxu0 }
 0x808   : > { %v2728_v60 = vpop.permute.xlu0 %2727 }
 0x809   : > { %v7069_v26 = vadd.f32 %v2728_v60, %v2590_v42  ;;  %v2591_v60 = vsel %vm8433_vm7, -1e+09, %v4916_v20 }
 0x80a   : > { %v2732_v54 = vpop.permute.xlu1 %2731 }
 0x80b   : > { %2801 = vmax.xlane.f32.xlu0 %v7069_v26  ;;  %v7083_v42 = vadd.f32 %v2732_v54, %v2591_v60  ;;  %v8439_v60 = vld [vmem:[#allocation33_spill] sm:$0xff] }
 0x80c   : > { %v2720_v33 = vpop.permute.xlu0 %2719  ;;  %vm8440_vm10 = vcmp.eq.f32.partialorder %v8439_v60, 0.0 }
 0x80d   : > { %v7074_v21 = vadd.f32 %v2720_v33, %v2588_v32  ;;  %v8435_v32 = vld [vmem:[#allocation5_spill] sm:$0xff]  ;;  %v8436_v33 = vld [vmem:[#allocation4_spill] sm:$0xff]  ;;  %v2595_v35 = vsel %vm8440_vm10, -1e+09, %v4920_v46 }
 0x80e   : > { %v2724_v55 = vpop.permute.xlu1 %2723  ;;  %v8445_v46 = vld [vmem:[#allocation36_spill] sm:$0xff] }
 0x80f   : > { %v7078_v37 = vadd.f32 %v2724_v55, %v2589_v23  ;;  %2797 = vmax.xlane.f32.xlu0 %v7074_v21  ;;  %vm8446_vm10 = vcmp.eq.f32.partialorder %v8445_v46, 0.0 }
 0x810   : > { %v2744_v38 = vpop.permute.xlu0 %2743 }
 0x811   : > { %2799 = vmax.xlane.f32.xlu1 %v7078_v37  ;;  %v7093_v54 = vadd.f32 %v2744_v38, %v2594_v51 }
 0x812   : > { %v2748_v55 = vpop.permute.xlu1 %2747 }
 0x813   : > { %2803 = vmax.xlane.f32.xlu0 %v7083_v42  ;;  %v7097_v59 = vadd.f32 %v2748_v55, %v2595_v35  ;;  %v2598_v35 = vsel %vm8446_vm10, -1e+09, %v4923_v47  ;;  %v8451_v47 = vld [vmem:[#allocation35_spill] sm:$0xff] }
 0x814   : > { %v2736_v5 = vpop.permute.xlu0 %2735  ;;  %vm8452_vm10 = vcmp.eq.f32.partialorder %v8451_v47, 0.0 }
 0x816   : > { %v2740_v23 = vpop.permute.xlu1 %2739 }
 0x817   : > { %v7107_v38 = vadd.f32 %v2740_v23, %v2593_v3  ;;  %v2596_v23 = vsel %vm8450_vm12, -1e+09, %v2557_v63  ;;  %v8455_v63 = vld [vmem:[#allocation41_spill] sm:$0xff] }
 0x818   : > { %v2760_v20 = vpop.permute.xlu0 %2759  ;;  %vm8456_vm12 = vcmp.eq.f32.partialorder %v8455_v63, 0.0 }
 0x819   : > { %v7112_v60 = vadd.f32 %v2760_v20, %v2598_v35  ;;  %v2597_v20 = vsel %vm8452_vm10, -1e+09, %v2560_v61  ;;  %v8457_v61 = vld [vmem:[#allocation38_spill] sm:$0xff] }
 0x81a   : > { %v2764_v62 = vpop.permute.xlu1 %2763  ;;  %vm8458_vm10 = vcmp.eq.f32.partialorder %v8457_v61, 0.0 }
 0x81c   : > { %v2752_v51 = vpop.permute.xlu0 %2751 }
 0x81d   : > { %v7122_v34 = vadd.f32 %v2752_v51, %v2596_v23  ;;  %v2603_v51 = vsel %vm8456_vm12, -1e+09, %v4928_v4  ;;  %vm8466_vm12 = vcmask 261120  }
 0x81e   : > { %v2756_v55 = vpop.permute.xlu1 %2755 }
 0x81f   : > { %v7127_v46 = vadd.f32 %v2756_v55, %v2597_v20  ;;  %v2600_v55 = vsel %vm8458_vm10, -1e+09, %v2573_v19  ;;  %vm8467_vm10 = vmmov %vm8466_vm12 }
 0x820   : > { %v2776_v3 = vpop.permute.xlu0 %2775 }
 0x822   : > { %2953 = vrot.lane.b32.xlu1 %v8435_v32, %s8434_s26  ;;  %v8441_v32 = vld [vmem:[#allocation30_spill] sm:$0xff]  ;;  %v2780_v35 = vpop.permute.xlu1 %2779 }
 0x823   : > { %vm8442_vm7 = vcmp.eq.f32.partialorder %v8441_v32, 0.0 }
 0x824   : > { %v2768_v23 = vpop.permute.xlu0 %2767 }
 0x825   : > { %v7142_v47 = vadd.f32 %v2768_v23, %v2600_v55 }
 0x826   : > { %v2772_v20 = vpop.permute.xlu1 %2771 }
 0x829   : > { %2951 = vrot.lane.b32.xlu0 %v8436_v33, %s8434_s26  ;;  %v2592_v33 = vsel %vm8442_vm7, -1e+09, %v2541_v58  ;;  %v8447_v58 = vld [vmem:[#allocation37_spill] sm:$0xff] }
 0x82a   : > { %v7102_v36 = vadd.f32 %v2736_v5, %v2592_v33  ;;  %vm8448_vm7 = vcmp.eq.f32.partialorder %v8447_v58, 0.0  ;;  %v7137_v58 = vadd.f32 %v2780_v35, %v2603_v51 }
 0x82b   : > { %v2599_v33 = vsel %vm8448_vm7, -1e+09, %v4924_v57  ;;  %v8453_v57 = vld [vmem:[#allocation40_spill] sm:$0xff] }
 0x82c   : > { %v7117_v5 = vadd.f32 %v2764_v62, %v2599_v33  ;;  %vm8454_vm7 = vcmp.eq.f32.partialorder %v8453_v57, 0.0 }
 0x82d   : > { %v2602_v62 = vsel %vm8454_vm7, -1e+09, %v4927_v30  ;;  %v8459_v30 = vld [vmem:[#allocation39_spill] sm:$0xff] }
 0x82e   : > { %v7132_v33 = vadd.f32 %v2776_v3, %v2602_v62  ;;  %vm8460_vm7 = vcmp.eq.f32.partialorder %v8459_v30, 0.0 }
 0x82f   : > { %v2601_v3 = vsel %vm8460_vm7, -1e+09, %v7065_v31  ;;  %vm8468_vm7 = vmmov %vm8467_vm10 }
 0x830   : > { %v7148_v62 = vadd.f32 %v2772_v20, %v2601_v3  ;;  %vm8478_vm14 = vmmov %vm8468_vm7 }
 0x831   : > { %vm8479_vm8 = vmmov %vm8468_vm7 }
 0x832   : > { %vm8480_vm11 = vmmov %vm8468_vm7 }
 0x833   : > { %vm8482_vm0 = vmmov %vm8468_vm7 }
 0x834   : > { %vm8485_vm15 = vmmov %vm8482_vm0 }
 0x835   : > { %vm8490_vm6 = vmmov %vm8482_vm0 }
 0x846   : > { %2809 = vmax.xlane.f32.xlu1 %v7093_v54 }
 0x848   : > { %2811 = vmax.xlane.f32.xlu0 %v7097_v59 }
 0x84a   : > { %2805 = vmax.xlane.f32.xlu1 %v7102_v36 }
 0x84c   : > { %2807 = vmax.xlane.f32.xlu0 %v7107_v38 }
 0x84e   : > { %2817 = vmax.xlane.f32.xlu1 %v7112_v60 }
 0x850   : > { %2819 = vmax.xlane.f32.xlu0 %v7117_v5 }
 0x852   : > { %2813 = vmax.xlane.f32.xlu1 %v7122_v34 }
 0x854   : > { %2815 = vmax.xlane.f32.xlu0 %v7127_v46 }
 0x856   : > { %2825 = vmax.xlane.f32.xlu1 %v7132_v33 }
 0x858   : > { %2827 = vmax.xlane.f32.xlu0 %v7137_v58 }
 0x85a   : > { %2821 = vmax.xlane.f32.xlu1 %v7142_v47 }
 0x85c   : > { %2823 = vmax.xlane.f32.xlu0 %v7148_v62 }
 0x898   : > { %v2802_v4 = vpop.xlane.xlu0 %2801 }
 0x899   : > { %v2831_v35 = vsub.f32 %v7069_v26, %v2802_v4 }
 0x89b   : > { %v2849_v51 = vmul.f32 1.442695, %v2831_v35 }
 0x89c   : > { %v2798_v19 = vpop.xlane.xlu0 %2797 }
 0x89d   : > { %5405 = vpow2.f32 %v2849_v51  ;;  %v2829_v23 = vsub.f32 %v7074_v21, %v2798_v19 }
 0x89e   : > { %v2800_v55 = vpop.xlane.xlu1 %2799 }
 0x89f   : > { %v2845_v63 = vmul.f32 1.442695, %v2829_v23  ;;  %v2830_v31 = vsub.f32 %v7078_v37, %v2800_v55 }
 0x8a0   : > { %v2804_v61 = vpop.xlane.xlu0 %2803 }
 0x8a1   : > { %5407 = vpow2.f32 %v2845_v63  ;;  %v2832_v20 = vsub.f32 %v7083_v42, %v2804_v61  ;;  %v2847_v57 = vmul.f32 1.442695, %v2830_v31  ;;  %v8461_v63 = vld [vmem:[#allocation7_spill] sm:$0xff]  ;;  %v8462_v61 = vld [vmem:[#allocation8_spill] sm:$0xff] }
 0x8a2   : > { %v2954_v8 = vpop.permute.xlu1 %2953 }
 0x8a3   : > { %v2851_v3 = vmul.f32 1.442695, %v2832_v20 }
 0x8a4   : > { %v2952_v30 = vpop.permute.xlu0 %2951 }
 0x8a5   : > { %5409 = vpow2.f32 %v2851_v3  ;;  %4963 = vmatprep.subr.bf16.mxu0 %v2952_v30 }
 0x8a6   : > { %4964 = vmatpush3.bf16.msra.mxu0 %v2952_v30  ;;  %5411 = vpow2.f32 %v2847_v57  ;;  %v8464_v57 = vld [vmem:[#allocation10_spill] sm:$0xff] }
 0x8a7   : > { %v7156_v26 = vpop.eup %5405  ;;  %4965 = vmatprep.subr.bf16.mxu0 %v2954_v8  ;;  %v8465_v30 = vld [vmem:[#allocation6_spill] sm:$0xff] }
 0x8a8   : > { %2881 = vadd.xlane.f32.xlu0 %v7156_v26 }
 0x8aa   : > { %4966 = vmatpush3.bf16.msra.mxu0 %v2954_v8  ;;  %v8463_v8 = vld [vmem:[#allocation9_spill] sm:$0xff] }
 0x8ab   : > { %v7159_v21 = vpop.eup %5407 }
 0x8ac   : > { %2877 = vadd.xlane.f32.xlu1 %v7159_v21 }
 0x8af   : > { %v7162_v37 = vpop.eup %5409 }
 0x8b0   : > { %2883 = vadd.xlane.f32.xlu0 %v7162_v37  ;;  %v7165_v42 = vpop.eup %5411 }
 0x8b4   : > { %2879 = vadd.xlane.f32.xlu0 %v7165_v42 }
 0x8bd   : > { %2957 = vrot.lane.b32.xlu1 %v8461_v63, %s8434_s26 }
 0x8c1   : > { %2959 = vrot.lane.b32.xlu1 %v8462_v61, %s8434_s26 }
 0x8c5   : > { %2961 = vrot.lane.b32.xlu1 %v8463_v8, %s8434_s26 }
 0x8c9   : > { %2963 = vrot.lane.b32.xlu1 %v8464_v57, %s8434_s26 }
 0x8ca   : > { %2955 = vrot.lane.b32.xlu0 %v8465_v30, %s8434_s26 }
 0x8d3   : > { %v2810_v4 = vpop.xlane.xlu1 %2809 }
 0x8d4   : > { %v2835_v51 = vsub.f32 %v7093_v54, %v2810_v4 }
 0x8d5   : > { %v2812_v35 = vpop.xlane.xlu0 %2811 }
 0x8d6   : > { %v2857_v31 = vmul.f32 1.442695, %v2835_v51  ;;  %v2836_v61 = vsub.f32 %v7097_v59, %v2812_v35 }
 0x8d7   : > { %v2806_v19 = vpop.xlane.xlu1 %2805 }
 0x8d8   : > { %v2833_v23 = vsub.f32 %v7102_v36, %v2806_v19  ;;  %5413 = vpow2.f32 %v2857_v31  ;;  %v2859_v13 = vmul.f32 1.442695, %v2836_v61 }
 0x8d9   : > { %v2808_v55 = vpop.xlane.xlu0 %2807 }
 0x8da   : > { %v2834_v20 = vsub.f32 %v7107_v38, %v2808_v55  ;;  %v2853_v8 = vmul.f32 1.442695, %v2833_v23 }
 0x8db   : > { %v2818_v3 = vpop.xlane.xlu1 %2817 }
 0x8dc   : > { %v2855_v57 = vmul.f32 1.442695, %v2834_v20  ;;  %v2839_v30 = vsub.f32 %v7112_v60, %v2818_v3  ;;  %5415 = vpow2.f32 %v2853_v8 }
 0x8dd   : > { %v2820_v63 = vpop.xlane.xlu0 %2819 }
 0x8de   : > { %5417 = vpow2.f32 %v2855_v57  ;;  %v2865_v36 = vmul.f32 1.442695, %v2839_v30  ;;  %v2840_v59 = vsub.f32 %v7117_v5, %v2820_v63 }
 0x8df   : > { %v2814_v32 = vpop.xlane.xlu1 %2813  ;;  %5419 = vpow2.f32 %v2859_v13 }
 0x8e0   : > { %v2837_v54 = vsub.f32 %v7122_v34, %v2814_v32  ;;  %5421 = vpow2.f32 %v2865_v36  ;;  %v2867_v8 = vmul.f32 1.442695, %v2840_v59 }
 0x8e1   : > { %v2816_v4 = vpop.xlane.xlu0 %2815 }
 0x8e2   : > { %v2838_v51 = vsub.f32 %v7127_v46, %v2816_v4  ;;  %v2861_v35 = vmul.f32 1.442695, %v2837_v54  ;;  %v7187_v61 = vpop.eup %5413 }
 0x8e3   : > { %v2826_v38 = vpop.xlane.xlu1 %2825 }
 0x8e4   : > { %v2863_v23 = vmul.f32 1.442695, %v2838_v51  ;;  %v2843_v60 = vsub.f32 %v7132_v33, %v2826_v38  ;;  %5423 = vpow2.f32 %v2861_v35 }
 0x8e5   : > { %v2828_v19 = vpop.xlane.xlu0 %2827 }
 0x8e6   : > { %5425 = vpow2.f32 %v2863_v23  ;;  %v2873_v13 = vmul.f32 1.442695, %v2843_v60  ;;  %v7192_v5 = vpop.eup %5415 }
 0x8e7   : > { %v2822_v55 = vpop.xlane.xlu1 %2821  ;;  %5427 = vpow2.f32 %v2867_v8 }
 0x8e8   : > { %v2841_v34 = vsub.f32 %v7142_v47, %v2822_v55  ;;  %v7194_v63 = vpop.eup %5417  ;;  %5429 = vpow2.f32 %v2873_v13  ;;  %v2844_v47 = vsub.f32 %v7137_v58, %v2828_v19 }
 0x8e9   : > { %2889 = vadd.xlane.f32.xlu0 %v7187_v61  ;;  %v2824_v32 = vpop.xlane.xlu0 %2823  ;;  %v7199_v30 = vpop.eup %5419 }
 0x8ea   : > { %v2842_v46 = vsub.f32 %v7148_v62, %v2824_v32  ;;  %v2869_v33 = vmul.f32 1.442695, %v2841_v34  ;;  %v7201_v31 = vpop.eup %5421  ;;  %v2875_v62 = vmul.f32 1.442695, %v2844_v47  ;;  %v5578_v47 = vld [vmem:[%s8000_s6 + $0x30] sm:$0xff]  }
 0x8ec   : > { %v2871_v57 = vmul.f32 1.442695, %v2842_v46  ;;  %5431 = vpow2.f32 %v2869_v33 }
 0x8ed   : > { %2885 = vadd.xlane.f32.xlu0 %v7192_v5  ;;  %2887 = vadd.xlane.f32.xlu1 %v7194_v63 }
 0x8ee   : > { %5433 = vpow2.f32 %v2871_v57  ;;  %v7205_v20 = vpop.eup %5423 }
 0x8ef   : > { %5435 = vpow2.f32 %v2875_v62 }
 0x8f0   : > { %v7207_v3 = vpop.eup %5425 }
 0x8f1   : > { %2891 = vadd.xlane.f32.xlu0 %v7199_v30  ;;  %2897 = vadd.xlane.f32.xlu1 %v7201_v31  ;;  %v7211_v58 = vpop.eup %5427 }
 0x8f2   : > { %v7213_v54 = vpop.eup %5429 }
 0x8f5   : > { %2893 = vadd.xlane.f32.xlu1 %v7205_v20  ;;  %2895 = vadd.xlane.f32.xlu0 %v7207_v3 }
 0x8f6   : > { %v7217_v4 = vpop.eup %5431 }
 0x8f8   : > { %v7219_v36 = vpop.eup %5433 }
 0x8f9   : > { %2905 = vadd.xlane.f32.xlu1 %v7213_v54  ;;  %2899 = vadd.xlane.f32.xlu0 %v7211_v58  ;;  %v7223_v51 = vpop.eup %5435 }
 0x8fd   : > { %2901 = vadd.xlane.f32.xlu1 %v7217_v4  ;;  %2903 = vadd.xlane.f32.xlu0 %v7219_v36 }
 0x901   : > { %2907 = vadd.xlane.f32.xlu0 %v7223_v51 }
 0x90e   : > { %3135 = vrot.lane.b32.xlu1 %v5918_v52, %s8165_s20 }
 0x912   : > { %3121 = vrot.lane.b32.xlu1 %v5915_v50, %s8165_s20 }
 0x916   : > { %3137 = vrot.lane.b32.xlu1 %v5944_v14, %s8165_s20 }
 0x917   : > { %3119 = vrot.lane.b32.xlu0 %v5920_v53, %s8165_s20 }
 0x91a   : > { %3125 = vrot.lane.b32.xlu1 %v5941_v11, %s8165_s20 }
 0x91b   : > { %3123 = vrot.lane.b32.xlu0 %v5946_v15, %s8165_s20 }
 0x91e   : > { %3127 = vrot.lane.b32.xlu1 %v5970_v44, %s8165_s20 }
 0x91f   : > { %3139 = vrot.lane.b32.xlu0 %v5968_v43, %s8165_s20 }
 0x922   : > { %3141 = vrot.lane.b32.xlu1 %v5992_v9, %s8165_s20 }
 0x923   : > { %3129 = vrot.lane.b32.xlu0 %v5965_v41, %s8165_s20 }
 0x926   : > { %3133 = vrot.lane.b32.xlu1 %v5989_v6, %s8165_s20 }
 0x927   : > { %3131 = vrot.lane.b32.xlu0 %v5994_v10, %s8165_s20 }
 0x92a   : > { %3145 = vrot.lane.b32.xlu1 %v6022_v49, %s8165_s20 }
 0x92b   : > { %3143 = vrot.lane.b32.xlu0 %v6010_v29, %s8165_s20 }
 0x92e   : > { %3149 = vrot.lane.b32.xlu1 %v6046_v27, %s8165_s20 }
 0x92f   : > { %3147 = vrot.lane.b32.xlu0 %v6034_v2, %s8165_s20  ;;  %s8509_s20 = smov 313  }
 0x935   : > { %v2882_v50 = vpop.xlane.xlu0 %2881 }
 0x939   : > { %v2878_v52 = vpop.xlane.xlu1 %2877 }
 0x93a   : > { %5437 = vrcp.f32 %v2878_v52 }
 0x93d   : > { %v2884_v53 = vpop.xlane.xlu0 %2883  ;;  %v2958_v11 = vpop.permute.xlu1 %2957 }
 0x941   : > { %v2880_v14 = vpop.xlane.xlu0 %2879  ;;  %v2960_v41 = vpop.permute.xlu1 %2959 }
 0x942   : > { %5439 = vrcp.f32 %v2880_v14 }
 0x943   : > { %5441 = vrcp.f32 %v2884_v53 }
 0x944   : > { %5443 = vrcp.f32 %v2882_v50  ;;  %v5438_v43 = vpop.eup %5437 }
 0x945   : > { %v2956_v15 = vpop.permute.xlu0 %2955  ;;  %v2962_v6 = vpop.permute.xlu1 %2961  ;;  %v2925_v9 = vmul.f32 %v5438_v43, %v7159_v21  ;;  %v5573_v21 = vld [vmem:[%s8000_s6 + $0x8] sm:$0xff]  }
 0x946   : > { %4967 = vmatprep.subr.bf16.mxu0 %v2956_v15 }
 0x947   : > { %4968 = vmatpush3.bf16.msra.mxu0 %v2956_v15 }
 0x948   : > { %4969 = vmatprep.subr.bf16.mxu0 %v2958_v11 }
 0x949   : > { %v2964_v27 = vpop.permute.xlu1 %2963 }
 0x94b   : > { %4970 = vmatpush3.bf16.msra.mxu0 %v2958_v11 }
 0x94c   : > { %v5440_v44 = vpop.eup %5439  ;;  %4971 = vmatprep.subr.bf16.mxu0 %v2960_v41 }
 0x94d   : > { %v2926_v10 = vmul.f32 %v5440_v44, %v7165_v42  ;;  %v5442_v49 = vpop.eup %5441  ;;  %v5579_v44 = vld [vmem:[%s8000_s6 + $0x38] sm:$0xff]  }
 0x94e   : > { %v5444_v2 = vpop.eup %5443  ;;  %v2928_v38 = vmul.f32 %v5442_v49, %v7162_v37 }
 0x94f   : > { %4972 = vmatpush3.bf16.msra.mxu0 %v2960_v41  ;;  %v2941_v29 = vpack.c.bf16 %v2926_v10, %v2925_v9  ;;  %v2927_v59 = vmul.f32 %v5444_v2, %v7156_v26  ;;  %v5574_v26 = vld [vmem:[%s8000_s6 + $0x10] sm:$0xff]  }
 0x950   : > { %4973 = vmatprep.subr.bf16.mxu0 %v2962_v6 }
 0x951   : > { %4977 = vmatprep.mubr.bf16.mxu0 %v2941_v29  ;;  %v2942_v35 = vpack.c.bf16 %v2928_v38, %v2927_v59 }
 0x953   : > { %4974 = vmatpush3.bf16.msra.mxu0 %v2962_v6 }
 0x954   : > { %4975 = vmatprep.subr.bf16.mxu0 %v2964_v27 }
 0x957   : > { %4976 = vmatpush3.bf16.msra.mxu0 %v2964_v27 }
 0x958   : > { %5193 = vmatprep.subr.msk.bf16.mxu0 %vm8466_vm12, %v6895_v0  ;;  %vm8469_vm12 = vmmov %vm8468_vm7 }
 0x95a   : > { %4978 = vmatmul.mubr.bf16.vlgmr.msra.gmra.mrb[80].mxu0 %v2942_v35 }
 0x960   : > { %5026 = vmatpush3.bf16.xpose.msra.mxu0 %v5808_v45  ;;  %v5575_v45 = vld [vmem:[%s8000_s6 + $0x18] sm:$0xff]  }
 0x961   : > { %5194 = vmatprep.subr.msk.bf16.mxu0 %vm8467_vm10, %v5573_v21  ;;  %vm8470_vm10 = vmmov %vm8468_vm7 }
 0x968   : > { %5028 = vmatpush3.bf16.xpose.msra.mxu0 %v5823_v56  ;;  %v5576_v56 = vld [vmem:[%s8000_s6 + $0x20] sm:$0xff]  }
 0x969   : > { %5195 = vmatprep.subr.msk.bf16.mxu0 %vm8468_vm7, %v5574_v26 }
 0x970   : > { %5030 = vmatpush3.bf16.xpose.msra.mxu0 %v5836_v1 }
 0x971   : > { %5196 = vmatprep.subr.msk.bf16.mxu0 %vm8469_vm12, %v5575_v45  ;;  %vm8471_vm12 = vmmov %vm8468_vm7 }
 0x976   : > { %v2890_v0 = vpop.xlane.xlu0 %2889 }
 0x978   : > { %5032 = vmatpush3.bf16.xpose.msra.mxu0 %v5847_v7  ;;  %v5577_v7 = vld [vmem:[%s8000_s6 + $0x28] sm:$0xff]  }
 0x979   : > { %5197 = vmatprep.subr.msk.bf16.mxu0 %vm8470_vm10, %v5576_v56  ;;  %vm8472_vm10 = vmmov %vm8468_vm7 }
 0x97a   : > { %v2888_v37 = vpop.xlane.xlu1 %2887  ;;  %v2886_v42 = vpop.xlane.xlu0 %2885 }
 0x97b   : > { %5445 = vrcp.f32 %v2888_v37 }
 0x97c   : > { %5447 = vrcp.f32 %v2886_v42 }
 0x97d   : > { %5449 = vrcp.f32 %v2890_v0 }
 0x97e   : > { %v2898_v1 = vpop.xlane.xlu1 %2897  ;;  %v2892_v19 = vpop.xlane.xlu0 %2891 }
 0x97f   : > { %5451 = vrcp.f32 %v2892_v19 }
 0x980   : > { %5034 = vmatpush3.bf16.xpose.msra.mxu0 %v5858_v12 }
 0x981   : > { %5198 = vmatprep.subr.msk.bf16.mxu0 %vm8468_vm7, %v5577_v7 }
 0x982   : > { %v2894_v23 = vpop.xlane.xlu1 %2893  ;;  %v2896_v60 = vpop.xlane.xlu0 %2895 }
 0x983   : > { %5453 = vrcp.f32 %v2894_v23 }
 0x984   : > { %5455 = vrcp.f32 %v2896_v60 }
 0x985   : > { %v5446_v55 = vpop.eup %5445  ;;  %5457 = vrcp.f32 %v2898_v1 }
 0x986   : > { %v5448_v8 = vpop.eup %5447  ;;  %v2906_v34 = vpop.xlane.xlu1 %2905  ;;  %v2930_v13 = vmul.f32 %v5446_v55, %v7194_v63 }
 0x987   : > { %v2900_v32 = vpop.xlane.xlu0 %2899  ;;  %v2929_v46 = vmul.f32 %v5448_v8, %v7192_v5  ;;  %v5450_v12 = vpop.eup %5449 }
 0x988   : > { %5459 = vrcp.f32 %v2900_v32  ;;  %5036 = vmatpush3.bf16.xpose.msra.mxu0 %v5869_v17  ;;  %v2931_v63 = vmul.f32 %v5450_v12, %v7187_v61 }
 0x989   : > { %v2943_v33 = vpack.c.bf16 %v2930_v13, %v2929_v46  ;;  %5199 = vmatprep.subr.msk.bf16.mxu0 %vm8471_vm12, %v5578_v47  ;;  %v5452_v57 = vpop.eup %5451  ;;  %vm8473_vm12 = vmmov %vm8468_vm7 }
 0x98a   : > { %v2902_v62 = vpop.xlane.xlu1 %2901  ;;  %v2932_v5 = vmul.f32 %v5452_v57, %v7199_v30 }
 0x98b   : > { %v2904_v50 = vpop.xlane.xlu0 %2903  ;;  %5461 = vrcp.f32 %v2902_v62  ;;  %4981 = vmatprep.mubr.bf16.mxu0 %v2943_v33 }
 0x98c   : > { %5463 = vrcp.f32 %v2904_v50  ;;  %v2944_v17 = vpack.c.bf16 %v2932_v5, %v2931_v63 }
 0x98d   : > { %v5454_v52 = vpop.eup %5453  ;;  %5465 = vrcp.f32 %v2906_v34 }
 0x98e   : > { %v5456_v53 = vpop.eup %5455  ;;  %v3136_v11 = vpop.permute.xlu1 %3135  ;;  %v2933_v15 = vmul.f32 %v5454_v52, %v7205_v20  ;;  %4982 = vmatmul.mubr.bf16.gmra.mrb[84].mxu0 %v2944_v17 }
 0x98f   : > { %v2908_v14 = vpop.xlane.xlu0 %2907  ;;  %5185 = vmatprep.subr.msk.bf16.mxu1 %vm8472_vm10, %v3136_v11  ;;  %v3176_v41 = vsel %vm8468_vm7, %v3136_v11, 0  ;;  %v2934_v43 = vmul.f32 %v5456_v53, %v7207_v3  ;;  %v5458_v61 = vpop.eup %5457  ;;  %vm8474_vm10 = vmmov %vm8468_vm7 }
 0x990   : > { %5467 = vrcp.f32 %v2908_v14  ;;  %4994 = vmatpush3.bf16.xpose.msra.mxu1 %v3176_v41  ;;  %5038 = vmatpush3.bf16.xpose.msra.mxu0 %v5880_v22  ;;  %v2935_v3 = vmul.f32 %v5458_v61, %v7201_v31 }
 0x991   : > { %v2945_v30 = vpack.c.bf16 %v2934_v43, %v2933_v15  ;;  %5200 = vmatprep.subr.msk.bf16.mxu0 %vm8473_vm12, %v5579_v44  ;;  %vm8475_vm12 = vmmov %vm8468_vm7 }
 0x992   : > { %v5460_v20 = vpop.eup %5459  ;;  %v7307_v6 = vpop.permute.xlu1 %3121 }
 0x993   : > { %v3120_v9 = vpop.permute.xlu0 %3119  ;;  %4985 = vmatprep.mubr.bf16.mxu0 %v2945_v30  ;;  %v2936_v10 = vmul.f32 %v5460_v20, %v7211_v58 }
 0x994   : > { %5009 = vmatprep.mubr.msk.bf16.mxu1 %vm8474_vm10, %v3120_v9  ;;  %vm8476_vm10 = vmmov %vm8468_vm7 }
 0x995   : > { %v5462_v29 = vpop.eup %5461  ;;  %v2946_v22 = vpack.c.bf16 %v2936_v10, %v2935_v3 }
 0x996   : > { %v5464_v49 = vpop.eup %5463  ;;  %v3138_v2 = vpop.permute.xlu1 %3137  ;;  %v2937_v38 = vmul.f32 %v5462_v29, %v7217_v4 }
 0x997   : > { %v3124_v27 = vpop.permute.xlu0 %3123  ;;  %v5466_v59 = vpop.eup %5465  ;;  %4986 = vmatmul.mubr.bf16.gmra.mrb[88].mxu0 %v2946_v22  ;;  %5186 = vmatprep.subr.msk.bf16.mxu1 %vm8468_vm7, %v3138_v2  ;;  %v3179_v35 = vsel %vm8475_vm12, %v3138_v2, 0  ;;  %v2938_v21 = vmul.f32 %v5464_v49, %v7219_v36  ;;  %vm8477_vm12 = vmmov %vm8468_vm7 }
 0x998   : > { %4996 = vmatpush3.bf16.xpose.msra.mxu1 %v3179_v35  ;;  %5040 = vmatpush3.bf16.xpose.msra.mxu0 %v5888_v25  ;;  %v2939_v0 = vmul.f32 %v5466_v59, %v7213_v54 }
 0x999   : > { %v2947_v58 = vpack.c.bf16 %v2938_v21, %v2937_v38 }
 0x99a   : > { %v5468_v31 = vpop.eup %5467  ;;  %v3126_v26 = vpop.permute.xlu1 %3125 }
 0x99b   : > { %v3140_v45 = vpop.permute.xlu0 %3139  ;;  %v2940_v56 = vmul.f32 %v5468_v31, %v7223_v51  ;;  %4989 = vmatprep.mubr.bf16.mxu0 %v2947_v58 }
 0x99c   : > { %5187 = vmatprep.subr.msk.bf16.mxu1 %vm8476_vm10, %v3140_v45  ;;  %v3182_v36 = vsel %vm8468_vm7, %v3140_v45, 0  ;;  %vm8481_vm10 = vmmov %vm8468_vm7 }
 0x99d   : > { %v2948_v4 = vpack.c.bf16 %v2940_v56, %v2939_v0  ;;  %vm8483_vm7 = vmmov %vm8482_vm0 }
 0x99e   : > { %v3128_v37 = vpop.permute.xlu1 %3127 }
 0x99f   : > { %v3130_v42 = vpop.permute.xlu0 %3129  ;;  %4990 = vmatmul.mubr.bf16.gmra.mrb[92].mxu0 %v2948_v4 }
 0x9a0   : > { %5041 = vmatprep.mubr.msk.bf16.mxu0 %vm8477_vm12, %v3120_v9  ;;  %4998 = vmatpush3.bf16.xpose.msra.mxu1 %v3182_v36  ;;  %vm8484_vm12 = vmmov %vm8482_vm0  ;;  %v8514_v36 = vld [vmem:[#allocation19_spill] sm:$0xff] }
 0x9a2   : > { %v3142_v25 = vpop.permute.xlu1 %3141 }
 0x9a3   : > { %v3132_v1 = vpop.permute.xlu0 %3131  ;;  %5188 = vmatprep.subr.msk.bf16.mxu1 %vm8478_vm14, %v3142_v25  ;;  %v3185_v54 = vsel %vm8480_vm11, %v3142_v25, 0  ;;  %vm8486_vm14 = vmmov %vm8482_vm0 }
 0x9a4   : > { %vm8488_vm11 = vmmov %vm8482_vm0 }
 0x9a6   : > { %v3134_v19 = vpop.permute.xlu1 %3133 }
 0x9a7   : > { %5042 = vmatmul.mubr.msk.bf16.vlgmr.msra.gmra.mrb[96].mxu0 %vm8479_vm8, %v7307_v6  ;;  %v3144_v51 = vpop.permute.xlu0 %3143  ;;  %vm8487_vm8 = vmmov %vm8482_vm0 }
 0x9a8   : > { %5045 = vmatprep.mubr.msk.bf16.mxu0 %vm8481_vm10, %v3124_v27  ;;  %5000 = vmatpush3.bf16.xpose.msra.mxu1 %v3185_v54  ;;  %v3188_v7 = vsel %vm8484_vm12, %v3144_v51, 0  ;;  %vm8489_vm10 = vmmov %vm8482_vm0  ;;  %v8516_v54 = vld [vmem:[#allocation22_spill] sm:$0xff] }
 0x9a9   : > { %5189 = vmatprep.subr.msk.bf16.mxu1 %vm8482_vm0, %v3144_v51  ;;  %vm8493_vm12 = vmmov %vm8482_vm0 }
 0x9aa   : > { %v3146_v23 = vpop.permute.xlu1 %3145 }
 0x9ab   : > { %v3191_v60 = vsel %vm8488_vm11, %v3146_v23, 0  ;;  %v3148_v55 = vpop.permute.xlu0 %3147  ;;  %vm8496_vm11 = vmmov %vm8482_vm0 }
 0x9ae   : > { %v3150_v34 = vpop.permute.xlu1 %3149 }
 0x9af   : > { %5046 = vmatmul.mubr.msk.bf16.gmra.mrb[100].mxu0 %vm8483_vm7, %v3126_v26  ;;  %vm8491_vm7 = vmmov %vm8482_vm0  ;;  %v3197_v32 = vsel %vm8493_vm12, %v3150_v34, 0 }
 0x9b0   : > { %5049 = vmatprep.mubr.msk.bf16.mxu0 %vm8485_vm15, %v3128_v37  ;;  %5002 = vmatpush3.bf16.xpose.msra.mxu1 %v3188_v7  ;;  %v3194_v8 = vsel %vm8491_vm7, %v3148_v55, 0  ;;  %vm8492_vm15 = vmmov %vm8482_vm0 }
 0x9b1   : > { %5190 = vmatprep.subr.msk.bf16.mxu1 %vm8486_vm14, %v3146_v23  ;;  %vm8494_vm14 = vmmov %vm8482_vm0 }
 0x9b2   : > { %vm8499_vm7 = vmmov %vm8482_vm0 }
 0x9b7   : > { %5050 = vmatmul.mubr.msk.bf16.gmra.mrb[104].mxu0 %vm8487_vm8, %v3130_v42  ;;  %vm8495_vm8 = vmmov %vm8482_vm0 }
 0x9b8   : > { %5053 = vmatprep.mubr.msk.bf16.mxu0 %vm8489_vm10, %v3132_v1  ;;  %5004 = vmatpush3.bf16.xpose.msra.mxu1 %v3191_v60  ;;  %vm8497_vm10 = vmmov %vm8482_vm0  ;;  %v8518_v60 = vld [vmem:[#allocation25_spill] sm:$0xff] }
 0x9b9   : > { %5191 = vmatprep.subr.msk.bf16.mxu1 %vm8482_vm0, %v3148_v55 }
 0x9bf   : > { %5054 = vmatmul.mubr.msk.bf16.gmra.mrb[108].mxu0 %vm8490_vm6, %v3134_v19  ;;  %vm8498_vm6 = vmmov %vm8482_vm0 }
 0x9c0   : > { %5006 = vmatpush3.bf16.xpose.msra.mxu1 %v3194_v8  ;;  %v8520_v8 = vld [vmem:[#allocation24_spill] sm:$0xff] }
 0x9c1   : > { %5192 = vmatprep.subr.msk.bf16.mxu1 %vm8492_vm15, %v3150_v34  ;;  %vm8521_vm15 = vnez %v8520_v8 }
 0x9c8   : > { %5008 = vmatpush3.bf16.xpose.msra.mxu1 %v3197_v32  ;;  %v8522_v32 = vld [vmem:[#allocation23_spill] sm:$0xff] }
 0x9c9   : > { %vm8523_vm12 = vnez %v8522_v32  ;;  %v8536_v32 = vld [vmem:[#allocation30_spill] sm:$0xff] }
 0x9cf   : > { %5010 = vmatmul.mubr.msk.bf16.vlgmr.msra.gmra.mrb[96].mxu1 %vm8494_vm14, %v7307_v6 }
 0x9d0   : > { %5013 = vmatprep.mubr.msk.bf16.mxu1 %vm8495_vm8, %v3124_v27 }
 0x9d7   : > { %5014 = vmatmul.mubr.msk.bf16.gmra.mrb[100].mxu1 %vm8496_vm11, %v3126_v26  ;;  %v8507_v26 = vld [vmem:[#allocation18_spill] sm:$0xff] }
 0x9d8   : > { %5017 = vmatprep.mubr.msk.bf16.mxu1 %vm8497_vm10, %v3128_v37  ;;  %v8512_v37 = vld [vmem:[#allocation20_spill] sm:$0xff] }
 0x9df   : > { %5018 = vmatmul.mubr.msk.bf16.gmra.mrb[104].mxu1 %vm8482_vm0, %v3130_v42 }
 0x9e0   : > { %5021 = vmatprep.mubr.msk.bf16.mxu1 %vm8498_vm6, %v3132_v1  ;;  %vm8537_vm6 = vcmp.eq.f32.partialorder %v8536_v32, 0.0 }
 0x9e7   : > { %5022 = vmatmul.mubr.msk.bf16.gmra.mrb[108].mxu1 %vm8499_vm7, %v3134_v19 }
 0xa2d   : > { %v7348_v13 = vpop.f32.mrb[80].mxu0 }
 0xa2e   : > { %v7350_v46 = vpop.f32.mrb[81].mxu0 }
 0xa2f   : > { %v7352_v12 = vpop.f32.mrb[82].mxu0 }
 0xa30   : > { %v3071_v33 = vpack.c.bf16 %v7352_v12, %v7348_v13  ;;  %v7356_v47 = vpop.f32.mrb[83].mxu0 }
 0xa31   : > { %v3070_v57 = vpack.c.bf16 %v7356_v47, %v7350_v46  ;;  %v8586_v47 = vld [vmem:[#allocation48_spill] sm:$0xff] }
 0xa61   : > { %v7360_v62 = vpop.f32.mrb[84].mxu0 }
 0xa62   : > { %v7362_v50 = vpop.f32.mrb[85].mxu0 }
 0xa63   : > { %v7364_v63 = vpop.f32.mrb[86].mxu0 }
 0xa64   : > { %v3073_v5 = vpack.c.bf16 %v7364_v63, %v7360_v62  ;;  %v7368_v52 = vpop.f32.mrb[87].mxu0 }
 0xa65   : > { %v3072_v17 = vpack.c.bf16 %v7368_v52, %v7362_v50 }
 0xa6a   : > { %v7372_v53 = vpop.f32.mrb[88].mxu0 }
 0xa6b   : > { %v7374_v11 = vpop.f32.mrb[89].mxu0 }
 0xa6c   : > { %v7376_v14 = vpop.f32.mrb[90].mxu0 }
 0xa6d   : > { %v3075_v15 = vpack.c.bf16 %v7376_v14, %v7372_v53  ;;  %v7380_v41 = vpop.f32.mrb[91].mxu0  ;;  %v8583_v14 = vld [vmem:[#allocation49_spill] sm:$0xff] }
 0xa6e   : > { %v3074_v43 = vpack.c.bf16 %v7380_v41, %v7374_v11  ;;  %v8580_v41 = vld [vmem:[#allocation56_spill] sm:$0xff] }
 0xa72   : > { %v7384_v61 = vpop.f32.mrb[92].mxu0 }
 0xa73   : > { %v7386_v30 = vpop.f32.mrb[93].mxu0 }
 0xa74   : > { %v7388_v44 = vpop.f32.mrb[94].mxu0 }
 0xa75   : > { %v3077_v20 = vpack.c.bf16 %v7388_v44, %v7384_v61  ;;  %v7392_v6 = vpop.f32.mrb[95].mxu0 }
 0xa76   : > { %v3076_v9 = vpack.c.bf16 %v7392_v6, %v7386_v30 }
 0xa7a   : > { %v5043_v3 = vpop.f32.mrb[96].mxu0 }
 0xa7b   : > { %v3411_v10 = vsel %vm6094_vm1, %v5043_v3, 0.0  ;;  %v3346_v29 = vpop.f32.mrb[97].mxu0  ;;  %vm8506_vm1 = vnez %v8505_v18 }
 0xa7c   : > { %3435 = vrot.lane.b32.xlu0 %v3411_v10, %s8500_s0  ;;  %v5044_v22 = vpop.f32.mrb[98].mxu0  ;;  %v3409_v27 = vsel %vm6100_vm2, %v3346_v29, 0.0  ;;  %vm8508_vm2 = vnez %v8507_v26  ;;  %v8525_v10 = vld [vmem:[#allocation3_spill] sm:$0xff] }
 0xa7d   : > { %v3349_v49 = vpop.f32.mrb[99].mxu0  ;;  %v3412_v38 = vsel %vm6110_vm3, %v5044_v22, 0.0  ;;  %vm8511_vm3 = vnez %v8510_v28  ;;  %v8526_v26 = vld [vmem:[#allocation27_spill] sm:$0xff] }
 0xa7e   : > { %v3410_v2 = vsel %vm6119_vm4, %v3349_v49, 0.0  ;;  %vm8513_vm4 = vnez %v8512_v37  ;;  %vm8527_vm14 = vcmp.eq.f32.partialorder %v8526_v26, 0.0  ;;  %v8530_v37 = vld [vmem:[#allocation26_spill] sm:$0xff] }
 0xa7f   : > { %3431 = vrot.lane.b32.xlu1 %v3410_v2, %s8501_s1  ;;  %vm8531_vm11 = vcmp.eq.f32.partialorder %v8530_v37, 0.0 }
 0xa80   : > { %3427 = vrot.lane.b32.xlu0 %v3409_v27, %s8502_s18 }
 0xa82   : > { %v5047_v40 = vpop.f32.mrb[100].mxu0 }
 0xa83   : > { %v3415_v59 = vsel %vm6129_vm5, %v5047_v40, 0.0  ;;  %3439 = vrot.lane.b32.xlu1 %v3412_v38, %s8503_s23  ;;  %v3362_v35 = vpop.f32.mrb[101].mxu0  ;;  %vm8515_vm5 = vnez %v8514_v36 }
 0xa84   : > { %3451 = vrot.lane.b32.xlu0 %v3415_v59, %s8504_s19  ;;  %v5048_v16 = vpop.f32.mrb[102].mxu0  ;;  %v3413_v31 = vsel %vm8286_vm13, %v3362_v35, 0.0  ;;  %vm8517_vm13 = vnez %v8516_v54  ;;  %v8532_v54 = vld [vmem:[#allocation29_spill] sm:$0xff] }
 0xa85   : > { %v3365_v21 = vpop.f32.mrb[103].mxu0  ;;  %v3416_v24 = vsel %vm8506_vm1, %v5048_v16, 0.0  ;;  %vm8533_vm10 = vcmp.eq.f32.partialorder %v8532_v54, 0.0  ;;  %v8546_v54 = vld [vmem:[#allocation37_spill] sm:$0xff] }
 0xa86   : > { %v3414_v39 = vsel %vm8287_vm9, %v3365_v21, 0.0  ;;  %vm8519_vm9 = vnez %v8518_v60 }
 0xa87   : > { %3447 = vrot.lane.b32.xlu1 %v3414_v39, %s8408_s30 }
 0xa88   : > { %3443 = vrot.lane.b32.xlu0 %v3413_v31, %s8406_s27  ;;  %s7927_s27 = scalar_lea.vmem %s8006_s12, %s5737_s15 }
 0xa8a   : > { %v5051_v58 = vpop.f32.mrb[104].mxu0 }
 0xa8b   : > { %v3419_v45 = vsel %vm8508_vm2, %v5051_v58, 0.0  ;;  %3455 = vrot.lane.b32.xlu1 %v3416_v24, %s8509_s20  ;;  %v3378_v0 = vpop.f32.mrb[105].mxu0 }
 0xa8c   : > { %3467 = vrot.lane.b32.xlu0 %v3419_v45, %s8411_s22  ;;  %v5052_v48 = vpop.f32.mrb[106].mxu0  ;;  %v3417_v42 = vsel %vm8513_vm4, %v3378_v0, 0.0  ;;  %s8524_s22 = smov 32   ;;  %vm8547_vm4 = vcmp.eq.f32.partialorder %v8546_v54, 0.0 }
 0xa8d   : > { %v3381_v56 = vpop.f32.mrb[107].mxu0  ;;  %v3420_v25 = vsel %vm8515_vm5, %v5052_v48, 0.0 }
 0xa8e   : > { %v3418_v4 = vsel %vm8511_vm3, %v3381_v56, 0.0  ;;  %v8528_v56 = vld [vmem:[#allocation28_spill] sm:$0xff] }
 0xa8f   : > { %3463 = vrot.lane.b32.xlu1 %v3418_v4, %s8297_s16  ;;  %vm8529_vm8 = vcmp.eq.f32.partialorder %v8528_v56, 0.0 }
 0xa90   : > { %3459 = vrot.lane.b32.xlu0 %v3417_v42, %s8294_s13 }
 0xa92   : > { %v5055_v1 = vpop.f32.mrb[108].mxu0 }
 0xa93   : > { %v3423_v51 = vsel %vm8517_vm13, %v5055_v1, 0.0  ;;  %3471 = vrot.lane.b32.xlu1 %v3420_v25, %s8291_s14  ;;  %v3394_v19 = vpop.f32.mrb[109].mxu0 }
 0xa94   : > { %3483 = vrot.lane.b32.xlu0 %v3423_v51, %s8300_s17  ;;  %v5056_v7 = vpop.f32.mrb[110].mxu0  ;;  %v3421_v34 = vsel %vm8521_vm15, %v3394_v19, 0.0 }
 0xa95   : > { %v3397_v23 = vpop.f32.mrb[111].mxu0  ;;  %v3424_v3 = vsel %vm8523_vm12, %v5056_v7, 0.0  ;;  %v8534_v7 = vld [vmem:[#allocation32_spill] sm:$0xff] }
 0xa96   : > { %v3422_v55 = vsel %vm8519_vm9, %v3397_v23, 0.0  ;;  %vm8535_vm0 = vcmp.eq.f32.partialorder %v8534_v7, 0.0 }
 0xa97   : > { %3479 = vrot.lane.b32.xlu1 %v3422_v55, %s8309_s28  ;;  %s8589_s28 = smov 96  }
 0xa98   : > { %3475 = vrot.lane.b32.xlu0 %v3421_v34, %s8306_s29 }
 0xa9b   : > { %3487 = vrot.lane.b32.xlu1 %v3424_v3, %s8303_s25 }
 0xa9f   : > { %3657 = vrot.lane.b32.xlu1 %v8525_v10, %s8524_s22 }
 0xaa2   : > { %v5011_v29 = vpop.f32.mrb[96].mxu1 }
 0xaa3   : > { %v3233_v22 = vpop.f32.mrb[97].mxu1  ;;  %v3298_v45 = vsel %vm8527_vm14, -1e+09, %v5011_v29  ;;  %vm2402_vm14 = vcmask 523520  }
 0xaa4   : > { %v5012_v49 = vpop.f32.mrb[98].mxu1  ;;  %v3296_v42 = vsel %vm8531_vm11, -1e+09, %v3233_v22  ;;  %v8538_v22 = vld [vmem:[#allocation33_spill] sm:$0xff]  ;;  %vm3818_vm11 = vcmask 1048320  }
 0xaa5   : > { %v3236_v2 = vpop.f32.mrb[99].mxu1  ;;  %v3299_v51 = vsel %vm8533_vm10, -1e+09, %v5012_v49  ;;  %vm8539_vm7 = vcmp.eq.f32.partialorder %v8538_v22, 0.0 }
 0xaa6   : > { %v3297_v28 = vsel %vm8529_vm8, -1e+09, %v3236_v2  ;;  %vm3110_vm8 = vcmask 785920  }
 0xaaa   : > { %v5015_v27 = vpop.f32.mrb[100].mxu1 }
 0xaab   : > { %v3249_v38 = vpop.f32.mrb[101].mxu1  ;;  %v3302_v23 = vsel %vm8535_vm0, -1e+09, %v5015_v27  ;;  %v8540_v27 = vld [vmem:[#allocation36_spill] sm:$0xff] }
 0xaac   : > { %v5016_v40 = vpop.f32.mrb[102].mxu1  ;;  %v3300_v3 = vsel %vm8537_vm6, -1e+09, %v3249_v38  ;;  %vm8541_vm1 = vcmp.eq.f32.partialorder %v8540_v27, 0.0  ;;  %v8542_v38 = vld [vmem:[#allocation31_spill] sm:$0xff] }
 0xaad   : > { %v3252_v59 = vpop.f32.mrb[103].mxu1  ;;  %v3303_v49 = vsel %vm8539_vm7, -1e+09, %v5016_v40  ;;  %vm8543_vm2 = vcmp.eq.f32.partialorder %v8542_v38, 0.0  ;;  %v8544_v40 = vld [vmem:[#allocation34_spill] sm:$0xff]  ;;  %v8558_v38 = vld [vmem:[#allocation9_spill] sm:$0xff] }
 0xaae   : > { %vm8545_vm3 = vcmp.eq.f32.partialorder %v8544_v40, 0.0 }
 0xab2   : > { %v5019_v35 = vpop.f32.mrb[104].mxu1 }
 0xab3   : > { %v3265_v16 = vpop.f32.mrb[105].mxu1  ;;  %v3306_v26 = vsel %vm8541_vm1, -1e+09, %v5019_v35 }
 0xab4   : > { %v5020_v21 = vpop.f32.mrb[106].mxu1  ;;  %v3304_v37 = vsel %vm8545_vm3, -1e+09, %v3265_v16 }
 0xab5   : > { %v3268_v39 = vpop.f32.mrb[107].mxu1 }
 0xaba   : > { %v5023_v31 = vpop.f32.mrb[108].mxu1 }
 0xabb   : > { %v3281_v18 = vpop.f32.mrb[109].mxu1 }
 0xabc   : > { %v7446_v24 = vpop.f32.mrb[110].mxu1 }
 0xabd   : > { %v7448_v58 = vpop.f32.mrb[111].mxu1 }
 0xaee   : > { %v3436_v0 = vpop.permute.xlu0 %3435 }
 0xaef   : > { %v7452_v48 = vadd.f32 %v3436_v0, %v3298_v45 }
 0xaf1   : > { %v3432_v4 = vpop.permute.xlu1 %3431  ;;  %3509 = vmax.xlane.f32.xlu0 %v7452_v48 }
 0xaf2   : > { %v7459_v36 = vadd.f32 %v3432_v4, %v3297_v28  ;;  %v3428_v25 = vpop.permute.xlu0 %3427  ;;  %v3301_v28 = vsel %vm8543_vm2, -1e+09, %v3252_v59  ;;  %v8548_v59 = vld [vmem:[#allocation40_spill] sm:$0xff] }
 0xaf3   : > { %v7461_v1 = vadd.f32 %v3428_v25, %v3296_v42  ;;  %vm8549_vm5 = vcmp.eq.f32.partialorder %v8548_v59, 0.0 }
 0xaf4   : > { %3507 = vmax.xlane.f32.xlu1 %v7459_v36  ;;  %v3310_v7 = vsel %vm8549_vm5, -1e+09, %v5023_v31 }
 0xaf5   : > { %v3440_v19 = vpop.permute.xlu1 %3439  ;;  %3505 = vmax.xlane.f32.xlu0 %v7461_v1 }
 0xaf6   : > { %v7469_v60 = vadd.f32 %v3440_v19, %v3299_v51  ;;  %v3452_v55 = vpop.permute.xlu0 %3451  ;;  %v3307_v51 = vsel %vm8547_vm4, -1e+09, %v5020_v21  ;;  %v8552_v21 = vld [vmem:[#allocation38_spill] sm:$0xff] }
 0xaf7   : > { %v7471_v8 = vadd.f32 %v3452_v55, %v3302_v23  ;;  %vm8553_vm9 = vcmp.eq.f32.partialorder %v8552_v21, 0.0 }
 0xaf9   : > { %v3448_v34 = vpop.permute.xlu1 %3447  ;;  %3511 = vmax.xlane.f32.xlu0 %v7469_v60  ;;  %3517 = vmax.xlane.f32.xlu1 %v7471_v8 }
 0xafa   : > { %v3444_v10 = vpop.permute.xlu0 %3443  ;;  %v7494_v42 = vadd.f32 %v3448_v34, %v3301_v28  ;;  %v8550_v34 = vld [vmem:[#allocation35_spill] sm:$0xff]  ;;  %v8559_v28 = vld [vmem:[#allocation41_spill] sm:$0xff] }
 0xafb   : > { %v7477_v29 = vadd.f32 %v3444_v10, %v3300_v3  ;;  %vm8551_vm13 = vcmp.eq.f32.partialorder %v8550_v34, 0.0  ;;  %v3308_v10 = vsel %vm8553_vm9, -1e+09, %v3281_v18  ;;  %v8556_v18 = vld [vmem:[#allocation6_spill] sm:$0xff]  ;;  %vm8560_vm15 = vcmp.eq.f32.partialorder %v8559_v28, 0.0 }
 0xafc   : > { %v3305_v32 = vsel %vm8551_vm13, -1e+09, %v3268_v39  ;;  %v8554_v39 = vld [vmem:[#allocation4_spill] sm:$0xff] }
 0xafd   : > { %v3456_v2 = vpop.permute.xlu1 %3455  ;;  %3513 = vmax.xlane.f32.xlu1 %v7477_v29 }
 0xafe   : > { %v7484_v45 = vadd.f32 %v3456_v2, %v3303_v49  ;;  %v3468_v0 = vpop.permute.xlu0 %3467 }
 0xaff   : > { %v7486_v56 = vadd.f32 %v3468_v0, %v3306_v26  ;;  %v8555_v26 = vld [vmem:[#allocation5_spill] sm:$0xff]  ;;  %v8557_v0 = vld [vmem:[#allocation7_spill] sm:$0xff] }
 0xb00   : > { %3519 = vmax.xlane.f32.xlu0 %v7484_v45 }
 0xb01   : > { %v3464_v4 = vpop.permute.xlu1 %3463  ;;  %3525 = vmax.xlane.f32.xlu1 %v7486_v56 }
 0xb02   : > { %v3460_v25 = vpop.permute.xlu0 %3459  ;;  %v7514_v22 = vadd.f32 %v3464_v4, %v3305_v32  ;;  %v3311_v4 = vsel %vm8560_vm15, -1e+09, %v7446_v24 }
 0xb03   : > { %v7496_v35 = vadd.f32 %v3460_v25, %v3304_v37  ;;  %v8561_v37 = vld [vmem:[#allocation39_spill] sm:$0xff] }
 0xb04   : > { %3515 = vmax.xlane.f32.xlu0 %v7494_v42  ;;  %vm8562_vm12 = vcmp.eq.f32.partialorder %v8561_v37, 0.0 }
 0xb05   : > { %v3472_v19 = vpop.permute.xlu1 %3471  ;;  %3521 = vmax.xlane.f32.xlu1 %v7496_v35  ;;  %v3309_v25 = vsel %vm8562_vm12, -1e+09, %v7448_v58 }
 0xb06   : > { %v7504_v23 = vadd.f32 %v3472_v19, %v3307_v51  ;;  %v3484_v55 = vpop.permute.xlu0 %3483  ;;  %v8563_v51 = vld [vmem:[#allocation8_spill] sm:$0xff] }
 0xb07   : > { %v7506_v16 = vadd.f32 %v3484_v55, %v3310_v7 }
 0xb08   : > { %3527 = vmax.xlane.f32.xlu0 %v7504_v23 }
 0xb09   : > { %v3480_v3 = vpop.permute.xlu1 %3479  ;;  %3533 = vmax.xlane.f32.xlu1 %v7506_v16 }
 0xb0a   : > { %v3476_v49 = vpop.permute.xlu0 %3475  ;;  %v7539_v54 = vadd.f32 %v3480_v3, %v3309_v25 }
 0xb0b   : > { %v7516_v31 = vadd.f32 %v3476_v49, %v3308_v10 }
 0xb0c   : > { %3523 = vmax.xlane.f32.xlu0 %v7514_v22 }
 0xb0d   : > { %v3488_v2 = vpop.permute.xlu1 %3487  ;;  %3529 = vmax.xlane.f32.xlu1 %v7516_v31 }
 0xb0e   : > { %v7533_v40 = vadd.f32 %v3488_v2, %v3311_v4 }
 0xb11   : > { %v3658_v27 = vpop.permute.xlu1 %3657 }
 0xb12   : > { %5057 = vmatprep.subr.bf16.mxu1 %v3658_v27 }
 0xb13   : > { %5058 = vmatpush3.bf16.msra.mxu1 %v3658_v27 }
 0xb1e   : > { %3659 = vrot.lane.b32.xlu1 %v8554_v39, %s8524_s22 }
 0xb22   : > { %3661 = vrot.lane.b32.xlu0 %v8555_v26, %s8524_s22  ;;  %3663 = vrot.lane.b32.xlu1 %v8556_v18, %s8524_s22 }
 0xb26   : > { %3665 = vrot.lane.b32.xlu0 %v8557_v0, %s8524_s22  ;;  %3669 = vrot.lane.b32.xlu1 %v8558_v38, %s8524_s22 }
 0xb45   : > { %3535 = vmax.xlane.f32.xlu0 %v7533_v40 }
 0xb49   : > { %3531 = vmax.xlane.f32.xlu0 %v7539_v54 }
 0xb5f   : > { %3667 = vrot.lane.b32.xlu0 %v8563_v51, %s8524_s22 }
 0xb7e   : > { %v3510_v19 = vpop.xlane.xlu0 %3509 }
 0xb7f   : > { %v3539_v59 = vsub.f32 %v7452_v48, %v3510_v19 }
 0xb81   : > { %v3557_v7 = vmul.f32 1.442695, %v3539_v59  ;;  %v3508_v24 = vpop.xlane.xlu1 %3507 }
 0xb82   : > { %v3506_v55 = vpop.xlane.xlu0 %3505  ;;  %v3538_v49 = vsub.f32 %v7459_v36, %v3508_v24 }
 0xb83   : > { %5469 = vpow2.f32 %v3557_v7  ;;  %v3537_v34 = vsub.f32 %v7461_v1, %v3506_v55 }
 0xb84   : > { %v3555_v26 = vmul.f32 1.442695, %v3538_v49 }
 0xb85   : > { %v3553_v32 = vmul.f32 1.442695, %v3537_v34 }
 0xb86   : > { %v3518_v21 = vpop.xlane.xlu1 %3517  ;;  %v3512_v10 = vpop.xlane.xlu0 %3511 }
 0xb87   : > { %5471 = vpow2.f32 %v3553_v32  ;;  %v3543_v58 = vsub.f32 %v7471_v8, %v3518_v21  ;;  %v3540_v3 = vsub.f32 %v7469_v60, %v3512_v10 }
 0xb89   : > { %v3565_v2 = vmul.f32 1.442695, %v3543_v58  ;;  %v3559_v27 = vmul.f32 1.442695, %v3540_v3 }
 0xb8a   : > { %v3514_v39 = vpop.xlane.xlu1 %3513 }
 0xb8b   : > { %5473 = vpow2.f32 %v3565_v2  ;;  %v3541_v48 = vsub.f32 %v7477_v29, %v3514_v39 }
 0xb8c   : > { %5475 = vpow2.f32 %v3559_v27 }
 0xb8d   : > { %v7550_v18 = vpop.eup %5469  ;;  %v3561_v1 = vmul.f32 1.442695, %v3541_v48  ;;  %v3520_v0 = vpop.xlane.xlu0 %3519 }
 0xb8e   : > { %v3544_v38 = vsub.f32 %v7484_v45, %v3520_v0  ;;  %v3526_v28 = vpop.xlane.xlu1 %3525  ;;  %3589 = vadd.xlane.f32.xlu0 %v7550_v18 }
 0xb8f   : > { %5477 = vpow2.f32 %v3561_v1  ;;  %v3547_v36 = vsub.f32 %v7486_v56, %v3526_v28 }
 0xb90   : > { %5479 = vpow2.f32 %v3555_v26  ;;  %v3567_v60 = vmul.f32 1.442695, %v3544_v38 }
 0xb91   : > { %v7555_v8 = vpop.eup %5471  ;;  %v3516_v4 = vpop.xlane.xlu0 %3515  ;;  %v3573_v25 = vmul.f32 1.442695, %v3547_v36 }
 0xb92   : > { %5481 = vpow2.f32 %v3567_v60  ;;  %v3542_v29 = vsub.f32 %v7494_v42, %v3516_v4  ;;  %v3522_v37 = vpop.xlane.xlu1 %3521  ;;  %3585 = vadd.xlane.f32.xlu0 %v7555_v8 }
 0xb93   : > { %v3545_v45 = vsub.f32 %v7496_v35, %v3522_v37 }
 0xb94   : > { %v3563_v51 = vmul.f32 1.442695, %v3542_v29 }
 0xb95   : > { %v7560_v19 = vpop.eup %5473  ;;  %v3528_v59 = vpop.xlane.xlu0 %3527  ;;  %v3569_v24 = vmul.f32 1.442695, %v3545_v45 }
 0xb96   : > { %v7562_v7 = vpop.eup %5475  ;;  %5483 = vpow2.f32 %v3563_v51  ;;  %v3534_v56 = vpop.xlane.xlu1 %3533  ;;  %3597 = vadd.xlane.f32.xlu1 %v7560_v19  ;;  %v3548_v42 = vsub.f32 %v7504_v23, %v3528_v59 }
 0xb97   : > { %5485 = vpow2.f32 %v3573_v25  ;;  %3591 = vadd.xlane.f32.xlu0 %v7562_v7  ;;  %v3551_v32 = vsub.f32 %v7506_v16, %v3534_v56 }
 0xb98   : > { %5487 = vpow2.f32 %v3569_v24  ;;  %v3575_v58 = vmul.f32 1.442695, %v3548_v42  ;;  %v8565_v42 = vld [vmem:[#allocation43_spill] sm:$0xff] }
 0xb99   : > { %v7567_v55 = vpop.eup %5477  ;;  %v3524_v34 = vpop.xlane.xlu0 %3523  ;;  %v3581_v2 = vmul.f32 1.442695, %v3551_v32  ;;  %v8568_v32 = vld [vmem:[#allocation51_spill] sm:$0xff] }
 0xb9a   : > { %v7569_v35 = vpop.eup %5479  ;;  %v3546_v21 = vsub.f32 %v7514_v22, %v3524_v34  ;;  %3593 = vadd.xlane.f32.xlu1 %v7567_v55  ;;  %v3530_v10 = vpop.xlane.xlu1 %3529  ;;  %v8567_v34 = vld [vmem:[#allocation53_spill] sm:$0xff] }
 0xb9b   : > { %v3549_v3 = vsub.f32 %v7516_v31, %v3530_v10  ;;  %3587 = vadd.xlane.f32.xlu0 %v7569_v35  ;;  %v8570_v10 = vld [vmem:[#allocation52_spill] sm:$0xff] }
 0xb9c   : > { %v7576_v23 = vpop.eup %5481  ;;  %v3571_v49 = vmul.f32 1.442695, %v3546_v21  ;;  %v8569_v21 = vpack.c.bf16 %v8567_v34, %v8568_v32 }
 0xb9d   : > { %v3577_v16 = vmul.f32 1.442695, %v3549_v3  ;;  %v3662_v39 = vpop.permute.xlu0 %3661 }
 0xb9e   : > { %5489 = vpow2.f32 %v3571_v49  ;;  %v3660_v27 = vpop.permute.xlu1 %3659  ;;  %3599 = vadd.xlane.f32.xlu1 %v7576_v23  ;;  %v8573_v49 = vld [vmem:[#allocation10_spill] sm:$0xff] }
 0xb9f   : > { %5491 = vpow2.f32 %v3575_v58  ;;  %5059 = vmatprep.subr.bf16.mxu1 %v3660_v27  ;;  %v8571_v58 = vld [vmem:[#allocation50_spill] sm:$0xff] }
 0xba0   : > { %v7579_v22 = vpop.eup %5483  ;;  %5060 = vmatpush3.bf16.msra.mxu1 %v3660_v27  ;;  %5493 = vpow2.f32 %v3581_v2  ;;  %v8572_v3 = vpack.c.bf16 %v8570_v10, %v8571_v58  ;;  %v8574_v2 = vld [vmem:[#allocation44_spill] sm:$0xff]  ;;  %v8575_v27 = vld [vmem:[#allocation42_spill] sm:$0xff] }
 0xba1   : > { %v7581_v48 = vpop.eup %5485  ;;  %3595 = vadd.xlane.f32.xlu0 %v7579_v22  ;;  %5061 = vmatprep.subr.bf16.mxu1 %v3662_v39  ;;  %5495 = vpow2.f32 %v3577_v16  ;;  %v3666_v0 = vpop.permute.xlu0 %3665  ;;  %v8576_v16 = vpack.c.bf16 %v8574_v2, %v8575_v27 }
 0xba2   : > { %3605 = vadd.xlane.f32.xlu1 %v7581_v48  ;;  %v3664_v31 = vpop.permute.xlu1 %3663  ;;  %v7585_v26 = vpop.eup %5487 }
 0xba4   : > { %5062 = vmatpush3.bf16.msra.mxu1 %v3662_v39  ;;  %v8577_v39 = vld [vmem:[#allocation57_spill] sm:$0xff] }
 0xba5   : > { %5063 = vmatprep.subr.bf16.mxu1 %v3664_v31 }
 0xba6   : > { %3601 = vadd.xlane.f32.xlu1 %v7585_v26  ;;  %v3670_v59 = vpop.permute.xlu1 %3669 }
 0xba8   : > { %v7588_v1 = vpop.eup %5489  ;;  %5064 = vmatpush3.bf16.msra.mxu1 %v3664_v31  ;;  %v8578_v31 = vld [vmem:[#allocation55_spill] sm:$0xff] }
 0xba9   : > { %v7590_v38 = vpop.eup %5491  ;;  %3603 = vadd.xlane.f32.xlu0 %v7588_v1  ;;  %5065 = vmatprep.subr.bf16.mxu1 %v3666_v0  ;;  %v8579_v11 = vpack.c.bf16 %v8577_v39, %v8578_v31 }
 0xbaa   : > { %3607 = vadd.xlane.f32.xlu1 %v7590_v38  ;;  %v7594_v28 = vpop.eup %5493 }
 0xbab   : > { %v7596_v36 = vpop.eup %5495 }
 0xbac   : > { %5066 = vmatpush3.bf16.msra.mxu1 %v3666_v0 }
 0xbad   : > { %3613 = vadd.xlane.f32.xlu0 %v7594_v28 }
 0xbae   : > { %3609 = vadd.xlane.f32.xlu1 %v7596_v36 }
 0xbd2   : > { %v3536_v60 = vpop.xlane.xlu0 %3535 }
 0xbd3   : > { %v3552_v4 = vsub.f32 %v7533_v40, %v3536_v60  ;;  %v8564_v40 = vld [vmem:[#allocation45_spill] sm:$0xff] }
 0xbd5   : > { %v3583_v29 = vmul.f32 1.442695, %v3552_v4 }
 0xbd6   : > { %v3532_v37 = vpop.xlane.xlu0 %3531 }
 0xbd7   : > { %5497 = vpow2.f32 %v3583_v29  ;;  %v3550_v25 = vsub.f32 %v7539_v54, %v3532_v37  ;;  %v8566_v54 = vpack.c.bf16 %v8564_v40, %v8565_v42 }
 0xbd9   : > { %v3579_v45 = vmul.f32 1.442695, %v3550_v25 }
 0xbda   : > { %v3668_v51 = vpop.permute.xlu0 %3667 }
 0xbdb   : > { %5499 = vpow2.f32 %v3579_v45  ;;  %5067 = vmatprep.subr.bf16.mxu1 %v3668_v51 }
 0xbdc   : > { %5068 = vmatpush3.bf16.msra.mxu1 %v3668_v51 }
 0xbdd   : > { %5069 = vmatprep.subr.bf16.mxu1 %v3670_v59 }
 0xbe0   : > { %5070 = vmatpush3.bf16.msra.mxu1 %v3670_v59 }
 0xbe1   : > { %v7602_v56 = vpop.eup %5497 }
 0xbe2   : > { %3615 = vadd.xlane.f32.xlu1 %v7602_v56 }
 0xbe5   : > { %v7605_v24 = vpop.eup %5499 }
 0xbe6   : > { %3611 = vadd.xlane.f32.xlu0 %v7605_v24 }
 0xbf3   : > { %2378 = vrot.lane.b32.xlu1 %v8566_v54, %s8524_s22 }
 0xbf7   : > { %2386 = vrot.lane.b32.xlu1 %v8569_v21, %s8524_s22 }
 0xbfb   : > { %2388 = vrot.lane.b32.xlu1 %v8572_v3, %s8524_s22 }
 0xbfc   : > { %3671 = vrot.lane.b32.xlu0 %v8573_v49, %s8524_s22 }
 0xbff   : > { %3094 = vrot.lane.b32.xlu1 %v3074_v43, %s8434_s26  ;;  %v8581_v43 = vld [vmem:[#allocation54_spill] sm:$0xff] }
 0xc00   : > { %2380 = vrot.lane.b32.xlu0 %v8576_v16, %s8524_s22  ;;  %v8582_v53 = vpack.c.bf16 %v8580_v41, %v8581_v43 }
 0xc03   : > { %3096 = vrot.lane.b32.xlu1 %v3075_v15, %s8434_s26  ;;  %v8584_v15 = vld [vmem:[#allocation47_spill] sm:$0xff] }
 0xc04   : > { %3086 = vrot.lane.b32.xlu0 %v3070_v57, %s8434_s26  ;;  %v8585_v46 = vpack.c.bf16 %v8583_v14, %v8584_v15  ;;  %v8587_v57 = vld [vmem:[#allocation46_spill] sm:$0xff] }
 0xc05   : > { %v8588_v13 = vpack.c.bf16 %v8586_v47, %v8587_v57 }
 0xc07   : > { %2390 = vrot.lane.b32.xlu1 %v8579_v11, %s8524_s22 }
 0xc08   : > { %3088 = vrot.lane.b32.xlu0 %v3071_v33, %s8434_s26 }
 0xc0b   : > { %2392 = vrot.lane.b32.xlu1 %v8582_v53, %s8524_s22 }
 0xc0c   : > { %2382 = vrot.lane.b32.xlu0 %v8585_v46, %s8524_s22 }
 0xc0f   : > { %3098 = vrot.lane.b32.xlu1 %v3076_v9, %s8434_s26 }
 0xc10   : > { %2384 = vrot.lane.b32.xlu0 %v8588_v13, %s8524_s22 }
 0xc14   : > { %3090 = vrot.lane.b32.xlu0 %v3072_v17, %s8434_s26 }
 0xc1b   : > { %v3590_v12 = vpop.xlane.xlu0 %3589 }
 0xc1c   : > { %5501 = vrcp.f32 %v3590_v12 }
 0xc1f   : > { %v3586_v33 = vpop.xlane.xlu0 %3585 }
 0xc23   : > { %v3598_v45 = vpop.xlane.xlu1 %3597 }
 0xc24   : > { %v3592_v0 = vpop.xlane.xlu0 %3591 }
 0xc25   : > { %5503 = vrcp.f32 %v3592_v0 }
 0xc26   : > { %5505 = vrcp.f32 %v3586_v33  ;;  %v5502_v30 = vpop.eup %5501 }
 0xc27   : > { %v3635_v9 = vmul.f32 %v5502_v30, %v7550_v18  ;;  %v3594_v51 = vpop.xlane.xlu1 %3593 }
 0xc28   : > { %v3588_v60 = vpop.xlane.xlu0 %3587 }
 0xc29   : > { %5507 = vrcp.f32 %v3588_v60 }
 0xc2b   : > { %v3600_v59 = vpop.xlane.xlu1 %3599 }
 0xc2e   : > { %v3596_v54 = vpop.xlane.xlu0 %3595 }
 0xc2f   : > { %v5504_v6 = vpop.eup %5503  ;;  %v3606_v40 = vpop.xlane.xlu1 %3605  ;;  %5509 = vrcp.f32 %v3596_v54  ;;  %v5275_v54 = vld [vmem:[%s8002_s8 + $0x30] sm:$0xff]  }
 0xc30   : > { %v3636_v4 = vmul.f32 %v5504_v6, %v7562_v7  ;;  %v5506_v29 = vpop.eup %5505  ;;  %5511 = vrcp.f32 %v3594_v51  ;;  %v5269_v51 = vld [vmem:[%s8002_s8] sm:$0xff]  }
 0xc31   : > { %v3633_v50 = vmul.f32 %v5506_v29, %v7555_v8  ;;  %5513 = vrcp.f32 %v3600_v59  ;;  %v5270_v59 = vld [vmem:[%s8002_s8 + $0x8] sm:$0xff]   ;;  %5089 = vmatprep.subr.bf16.mxu0 %v5269_v51 }
 0xc32   : > { %v3650_v37 = vpack.c.bf16 %v3636_v4, %v3635_v9  ;;  %5090 = vmatpush3.bf16.msra.mxu0 %v5269_v51 }
 0xc33   : > { %v5508_v25 = vpop.eup %5507  ;;  %v3602_v42 = vpop.xlane.xlu1 %3601  ;;  %5091 = vmatprep.subr.bf16.mxu0 %v5270_v59 }
 0xc34   : > { %v3634_v52 = vmul.f32 %v5508_v25, %v7569_v35 }
 0xc36   : > { %v3649_v17 = vpack.c.bf16 %v3634_v52, %v3633_v50  ;;  %v3604_v32 = vpop.xlane.xlu0 %3603  ;;  %5092 = vmatpush3.bf16.msra.mxu0 %v5270_v59 }
 0xc37   : > { %v3608_v34 = vpop.xlane.xlu1 %3607  ;;  %5515 = vrcp.f32 %v3604_v32  ;;  %v5276_v32 = vld [vmem:[%s8002_s8 + $0x38] sm:$0xff]  }
 0xc38   : > { %5073 = vmatprep.mubr.bf16.mxu1 %v3649_v17  ;;  %5517 = vrcp.f32 %v3598_v45 }
 0xc39   : > { %v5510_v10 = vpop.eup %5509  ;;  %5519 = vrcp.f32 %v3602_v42  ;;  %v5274_v42 = vld [vmem:[%s8002_s8 + $0x28] sm:$0xff]  }
 0xc3a   : > { %v3614_v7 = vpop.xlane.xlu0 %3613  ;;  %v5512_v58 = vpop.eup %5511  ;;  %v3638_v2 = vmul.f32 %v5510_v10, %v7579_v22  ;;  %5521 = vrcp.f32 %v3608_v34 }
 0xc3b   : > { %v3610_v18 = vpop.xlane.xlu1 %3609  ;;  %v3637_v27 = vmul.f32 %v5512_v58, %v7567_v55  ;;  %v5514_v16 = vpop.eup %5513 }
 0xc3c   : > { %v3640_v53 = vmul.f32 %v5514_v16, %v7576_v23 }
 0xc3d   : > { %v3651_v11 = vpack.c.bf16 %v3638_v2, %v3637_v27 }
 0xc41   : > { %v5516_v41 = vpop.eup %5515 }
 0xc42   : > { %v5518_v22 = vpop.eup %5517  ;;  %v3642_v15 = vmul.f32 %v5516_v41, %v7588_v1 }
 0xc43   : > { %v5520_v43 = vpop.eup %5519  ;;  %v3639_v46 = vmul.f32 %v5518_v22, %v7560_v19 }
 0xc44   : > { %v3641_v47 = vmul.f32 %v5520_v43, %v7585_v26  ;;  %v5522_v13 = vpop.eup %5521 }
 0xc45   : > { %v3652_v57 = vpack.c.bf16 %v3640_v53, %v3639_v46  ;;  %v3644_v19 = vmul.f32 %v5522_v13, %v7590_v38 }
 0xc46   : > { %v3653_v0 = vpack.c.bf16 %v3642_v15, %v3641_v47 }
 0xc6f   : > { %v3616_v21 = vpop.xlane.xlu1 %3615 }
 0xc73   : > { %v2379_v8 = vpop.permute.xlu1 %2378  ;;  %v3612_v35 = vpop.xlane.xlu0 %3611 }
 0xc74   : > { %2403 = vst.msk [vmem:[#allocation2] sm:$0xff] %vm2402_vm14, %v2379_v8  ;;  %5523 = vrcp.f32 %v3612_v35 }
 0xc75   : > { %5525 = vrcp.f32 %v3606_v40  ;;  %v5273_v40 = vld [vmem:[%s8002_s8 + $0x20] sm:$0xff]  }
 0xc76   : > { %5527 = vrcp.f32 %v3610_v18 }
 0xc77   : > { %v2387_v3 = vpop.permute.xlu1 %2386  ;;  %v3672_v49 = vpop.permute.xlu0 %3671  ;;  %5529 = vrcp.f32 %v3616_v21 }
 0xc78   : > { %2407 = vst.msk [vmem:[#allocation2 + $0x20] sm:$0xff] %vm2402_vm14, %v2387_v3  ;;  %5071 = vmatprep.subr.bf16.mxu1 %v3672_v49  ;;  %5531 = vrcp.f32 %v3614_v7 }
 0xc79   : > { %5072 = vmatpush3.bf16.msra.mxu1 %v3672_v49 }
 0xc7a   : > { %5121 = vmatprep.subr.bf16.mxu1 %v5269_v51 }
 0xc7b   : > { %v2389_v39 = vpop.permute.xlu1 %2388  ;;  %v2381_v31 = vpop.permute.xlu0 %2380 }
 0xc7c   : > { %2408 = vst.msk [vmem:[#allocation2 + $0x28] sm:$0xff] %vm2402_vm14, %v2389_v39  ;;  %2404 = vst.msk [vmem:[#allocation2 + $0x8] sm:$0xff] %vm2402_vm14, %v2381_v31  ;;  %5074 = vmatmul.mubr.bf16.vlgmr.msra.gmra.mrb[112].mxu1 %v3650_v37 }
 0xc7d   : > { %5077 = vmatprep.mubr.bf16.mxu1 %v3651_v11  ;;  %5129 = vmatpush3.bf16.msra.mxu1 %v5269_v51 }
 0xc7e   : > { %v5524_v23 = vpop.eup %5523  ;;  %5122 = vmatprep.subr.bf16.mxu1 %v5270_v59 }
 0xc7f   : > { %v3095_v55 = vpop.permute.xlu1 %3094  ;;  %v3087_v14 = vpop.permute.xlu0 %3086  ;;  %v3646_v26 = vmul.f32 %v5524_v23, %v7605_v24 }
 0xc80   : > { %3115 = vst.msk [vmem:[#allocation2 + $0x20] sm:$0xff] %vm3110_vm8, %v3095_v55  ;;  %3111 = vst.msk [vmem:[#allocation2] sm:$0xff] %vm3110_vm8, %v3087_v14  ;;  %v5526_v1 = vpop.eup %5525 }
 0xc81   : > { %v5528_v60 = vpop.eup %5527  ;;  %v3643_v9 = vmul.f32 %v5526_v1, %v7581_v48  ;;  %5130 = vmatpush3.bf16.msra.mxu1 %v5270_v59  ;;  %v5583_v59 = vld [vmem:[%s5749_s24 + $0x18] sm:$0xff] }
 0xc82   : > { %v3645_v4 = vmul.f32 %v5528_v60, %v7596_v36  ;;  %v5530_v37 = vpop.eup %5529 }
 0xc83   : > { %v3097_v12 = vpop.permute.xlu1 %3096  ;;  %v3089_v33 = vpop.permute.xlu0 %3088  ;;  %v3654_v29 = vpack.c.bf16 %v3644_v19, %v3643_v9  ;;  %v3648_v24 = vmul.f32 %v5530_v37, %v7602_v56  ;;  %v5271_v56 = vld [vmem:[%s8002_s8 + $0x10] sm:$0xff]  }
 0xc84   : > { %3116 = vst.msk [vmem:[#allocation2 + $0x28] sm:$0xff] %vm3110_vm8, %v3097_v12  ;;  %3112 = vst.msk [vmem:[#allocation2 + $0x8] sm:$0xff] %vm3110_vm8, %v3089_v33  ;;  %5078 = vmatmul.mubr.bf16.gmra.mrb[116].mxu1 %v3652_v57  ;;  %v3655_v52 = vpack.c.bf16 %v3646_v26, %v3645_v4  ;;  %v5532_v38 = vpop.eup %5531  ;;  %5093 = vmatprep.subr.bf16.mxu0 %v5271_v56  ;;  %v7749_v26 = vld [vmem:[%s8003_s9] ss:$0 sm:$0xff] }
 0xc85   : > { %5081 = vmatprep.mubr.bf16.mxu1 %v3653_v0  ;;  %v3647_v48 = vmul.f32 %v5532_v38, %v7594_v28  ;;  %v5272_v28 = vld [vmem:[%s8002_s8 + $0x18] sm:$0xff]   ;;  %5123 = vmatprep.subr.bf16.mxu1 %v5271_v56 }
 0xc86   : > { %5094 = vmatpush3.bf16.msra.mxu0 %v5271_v56  ;;  %5131 = vmatpush3.bf16.msra.mxu1 %v5271_v56 }
 0xc87   : > { %v2391_v30 = vpop.permute.xlu1 %2390  ;;  %v2383_v6 = vpop.permute.xlu0 %2382  ;;  %v3656_v36 = vpack.c.bf16 %v3648_v24, %v3647_v48  ;;  %5095 = vmatprep.subr.bf16.mxu0 %v5272_v28  ;;  %5124 = vmatprep.subr.bf16.mxu1 %v5272_v28  ;;  %v5582_v48 = vld [vmem:[%s5749_s24] sm:$0xff] }
 0xc88   : > { %2409 = vst.msk [vmem:[#allocation2 + $0x30] sm:$0xff] %vm2402_vm14, %v2391_v30  ;;  %2405 = vst.msk [vmem:[#allocation2 + $0x10] sm:$0xff] %vm2402_vm14, %v2383_v6 }
 0xc8a   : > { %5096 = vmatpush3.bf16.msra.mxu0 %v5272_v28  ;;  %5132 = vmatpush3.bf16.msra.mxu1 %v5272_v28 }
 0xc8b   : > { %v2393_v25 = vpop.permute.xlu1 %2392  ;;  %v2385_v50 = vpop.permute.xlu0 %2384  ;;  %5097 = vmatprep.subr.bf16.mxu0 %v5273_v40  ;;  %5125 = vmatprep.subr.bf16.mxu1 %v5273_v40 }
 0xc8c   : > { %2410 = vst.msk [vmem:[#allocation2 + $0x38] sm:$0xff] %vm2402_vm14, %v2393_v25  ;;  %2406 = vst.msk [vmem:[#allocation2 + $0x18] sm:$0xff] %vm2402_vm14, %v2385_v50  ;;  %5082 = vmatmul.mubr.bf16.gmra.mrb[120].mxu1 %v3654_v29  ;;  %v5580_v25 = vld [vmem:[%s5749_s24 + $0x10] sm:$0xff] }
 0xc8d   : > { %5085 = vmatprep.mubr.bf16.mxu1 %v3655_v52 }
 0xc8e   : > { %5098 = vmatpush3.bf16.msra.mxu0 %v5273_v40  ;;  %5133 = vmatpush3.bf16.msra.mxu1 %v5273_v40 }
 0xc8f   : > { %v3099_v17 = vpop.permute.xlu1 %3098  ;;  %v3091_v45 = vpop.permute.xlu0 %3090  ;;  %5099 = vmatprep.subr.bf16.mxu0 %v5274_v42  ;;  %5126 = vmatprep.subr.bf16.mxu1 %v5274_v42 }
 0xc90   : > { %3117 = vst.msk [vmem:[#allocation2 + $0x30] sm:$0xff] %vm3110_vm8, %v3099_v17  ;;  %3113 = vst.msk [vmem:[#allocation2 + $0x10] sm:$0xff] %vm3110_vm8, %v3091_v45  ;;  %v5581_v17 = vld [vmem:[%s5749_s24 + $0x8] sm:$0xff] }
 0xc92   : > { %5100 = vmatpush3.bf16.msra.mxu0 %v5274_v42  ;;  %5134 = vmatpush3.bf16.msra.mxu1 %v5274_v42 }
 0xc93   : > { %5101 = vmatprep.subr.bf16.mxu0 %v5275_v54  ;;  %5127 = vmatprep.subr.bf16.mxu1 %v5275_v54 }
 0xc94   : > { %5086 = vmatmul.mubr.bf16.gmra.mrb[124].mxu1 %v3656_v36 }
 0xc96   : > { %5102 = vmatpush3.bf16.msra.mxu0 %v5275_v54  ;;  %5135 = vmatpush3.bf16.msra.mxu1 %v5275_v54 }
 0xc97   : > { %5103 = vmatprep.subr.bf16.mxu0 %v5276_v32  ;;  %5128 = vmatprep.subr.bf16.mxu1 %v5276_v32 }
 0xc9a   : > { %5104 = vmatpush3.bf16.msra.mxu0 %v5276_v32  ;;  %5136 = vmatpush3.bf16.msra.mxu1 %v5276_v32 }
 0xd4f   : > { %v5075_v34 = vpop.f32.mrb[112].mxu1 }
 0xd50   : > { %v3715_v18 = vpop.f32.mrb[113].mxu1 }
 0xd51   : > { %v5076_v7 = vpop.f32.mrb[114].mxu1 }
 0xd52   : > { %v3779_v21 = vpack.c.bf16 %v5076_v7, %v5075_v34  ;;  %v3718_v8 = vpop.f32.mrb[115].mxu1  ;;  %v5584_v34 = vld [vmem:[%s5749_s24 + $0x30] sm:$0xff] }
 0xd53   : > { %v3778_v35 = vpack.c.bf16 %v3718_v8, %v3715_v18  ;;  %v5585_v8 = vld [vmem:[%s5749_s24 + $0x38] sm:$0xff] }
 0xd54   : > { %3796 = vrot.lane.b32.xlu0 %v3779_v21, %s8589_s28 }
 0xd57   : > { %v5079_v10 = vpop.f32.mrb[116].mxu1 }
 0xd58   : > { %3794 = vrot.lane.b32.xlu0 %v3778_v35, %s8589_s28  ;;  %v3731_v58 = vpop.f32.mrb[117].mxu1 }
 0xd59   : > { %v5080_v3 = vpop.f32.mrb[118].mxu1 }
 0xd5a   : > { %v3781_v49 = vpack.c.bf16 %v5080_v3, %v5079_v10  ;;  %v3734_v2 = vpop.f32.mrb[119].mxu1 }
 0xd5b   : > { %v3780_v27 = vpack.c.bf16 %v3734_v2, %v3731_v58 }
 0xd5c   : > { %3092 = vrot.lane.b32.xlu0 %v3073_v5, %s8434_s26 }
 0xd5f   : > { %v5083_v16 = vpop.f32.mrb[120].mxu1 }
 0xd60   : > { %3798 = vrot.lane.b32.xlu0 %v3780_v27, %s8589_s28  ;;  %v3747_v39 = vpop.f32.mrb[121].mxu1 }
 0xd61   : > { %v5084_v31 = vpop.f32.mrb[122].mxu1 }
 0xd62   : > { %v3783_v11 = vpack.c.bf16 %v5084_v31, %v5083_v16  ;;  %v3750_v41 = vpop.f32.mrb[123].mxu1  ;;  %v5587_v31 = vld [vmem:[%s5749_s24 + $0x28] sm:$0xff] }
 0xd63   : > { %v3782_v22 = vpack.c.bf16 %v3750_v41, %v3747_v39 }
 0xd64   : > { %3800 = vrot.lane.b32.xlu0 %v3781_v49, %s8589_s28  ;;  %3804 = vrot.lane.b32.xlu1 %v3783_v11, %s8589_s28  ;;  %v5586_v49 = vld [vmem:[%s5749_s24 + $0x20] sm:$0xff] }
 0xd67   : > { %v5087_v43 = vpop.f32.mrb[124].mxu1 }
 0xd68   : > { %3802 = vrot.lane.b32.xlu1 %v3782_v22, %s8589_s28  ;;  %v3763_v53 = vpop.f32.mrb[125].mxu1  ;;  %v5588_v22 = vld [vmem:[%s5749_s24 + $0x50] sm:$0xff] }
 0xd69   : > { %v5088_v55 = vpop.f32.mrb[126].mxu1 }
 0xd6a   : > { %v3785_v14 = vpack.c.bf16 %v5088_v55, %v5087_v43  ;;  %v3766_v62 = vpop.f32.mrb[127].mxu1  ;;  %v5589_v55 = vld [vmem:[%s5749_s24 + $0x58] sm:$0xff] }
 0xd6b   : > { %v3784_v63 = vpack.c.bf16 %v3766_v62, %v3763_v53 }
 0xd6c   : > { %3100 = vrot.lane.b32.xlu1 %v3077_v20, %s8434_s26 }
 0xd70   : > { %3806 = vrot.lane.b32.xlu1 %v3784_v63, %s8589_s28  ;;  %v5590_v63 = vld [vmem:[%s5749_s24 + $0x40] sm:$0xff] }
 0xd74   : > { %3808 = vrot.lane.b32.xlu1 %v3785_v14, %s8589_s28 }
 0xdc6   : > { %v3797_v5 = vpop.permute.xlu0 %3796 }
 0xdc7   : > { %3820 = vst.msk [vmem:[#allocation2 + $0x8] sm:$0xff] %vm3818_vm11, %v3797_v5 }
 0xdca   : > { %v3795_v15 = vpop.permute.xlu0 %3794 }
 0xdcb   : > { %3819 = vst.msk [vmem:[#allocation2] sm:$0xff] %vm3818_vm11, %v3795_v15 }
 0xdce   : > { %v3093_v46 = vpop.permute.xlu0 %3092  ;;  %v3828_v61 = vld [vmem:[#allocation2 + $0x8] sm:$0xff] }
 0xdcf   : > { %3114 = vst.msk [vmem:[#allocation2 + $0x18] sm:$0xff] %vm3110_vm8, %v3093_v46  ;;  %v5591_v46 = vld [vmem:[%s5749_s24 + $0x48] sm:$0xff] }
 0xdd2   : > { %v3799_v47 = vpop.permute.xlu0 %3798  ;;  %v3827_v57 = vld [vmem:[#allocation2] sm:$0xff] }
 0xdd3   : > { %3821 = vst.msk [vmem:[#allocation2 + $0x10] sm:$0xff] %vm3818_vm11, %v3799_v47  ;;  %5105 = vmatprep.mubr.bf16.mxu0 %v3827_v57 }
 0xdd4   : > { %5106 = vmatmul.mubr.bf16.vlgmr.msra.gmra.mrb[112].mxu0 %v3828_v61 }
 0xdd6   : > { %v3805_v44 = vpop.permute.xlu1 %3804  ;;  %v3801_v20 = vpop.permute.xlu0 %3800 }
 0xdd7   : > { %3824 = vst.msk [vmem:[#allocation2 + $0x28] sm:$0xff] %vm3818_vm11, %v3805_v44  ;;  %3822 = vst.msk [vmem:[#allocation2 + $0x18] sm:$0xff] %vm3818_vm11, %v3801_v20 }
 0xdda   : > { %v3803_v13 = vpop.permute.xlu1 %3802  ;;  %v3829_v12 = vld [vmem:[#allocation2 + $0x10] sm:$0xff] }
 0xddb   : > { %3823 = vst.msk [vmem:[#allocation2 + $0x20] sm:$0xff] %vm3818_vm11, %v3803_v13  ;;  %5109 = vmatprep.mubr.bf16.mxu0 %v3829_v12  ;;  %v5592_v12 = vld [vmem:[%s5749_s24 + $0x60] sm:$0xff] }
 0xdde   : > { %v3101_v33 = vpop.permute.xlu1 %3100  ;;  %v3830_v0 = vld [vmem:[#allocation2 + $0x18] sm:$0xff]  ;;  %v3832_v60 = vld [vmem:[#allocation2 + $0x28] sm:$0xff] }
 0xddf   : > { %3118 = vst.msk [vmem:[#allocation2 + $0x38] sm:$0xff] %vm3110_vm8, %v3101_v33  ;;  %5110 = vmatmul.mubr.bf16.gmra.mrb[116].mxu0 %v3830_v0 }
 0xde2   : > { %v3807_v23 = vpop.permute.xlu1 %3806  ;;  %v3831_v1 = vld [vmem:[#allocation2 + $0x20] sm:$0xff] }
 0xde3   : > { %3825 = vst.msk [vmem:[#allocation2 + $0x30] sm:$0xff] %vm3818_vm11, %v3807_v23  ;;  %5113 = vmatprep.mubr.bf16.mxu1 %v3831_v1  ;;  %v5593_v1 = vld [vmem:[%s5749_s24 + $0x68] sm:$0xff] }
 0xde4   : > { %5114 = vmatmul.mubr.bf16.vlgmr.msra.gmra.mrb[128].mxu1 %v3832_v60 }
 0xde6   : > { %v3809_v19 = vpop.permute.xlu1 %3808 }
 0xde7   : > { %3826 = vst.msk [vmem:[#allocation2 + $0x38] sm:$0xff] %vm3818_vm11, %v3809_v19  ;;  %v5594_v19 = vld [vmem:[%s5749_s24 + $0x70] sm:$0xff] }
 0xdea   : > { %v3833_v30 = vld [vmem:[#allocation2 + $0x30] sm:$0xff] }
 0xdeb   : > { %5117 = vmatprep.mubr.bf16.mxu1 %v3833_v30 }
 0xdee   : > { %v3834_v6 = vld [vmem:[#allocation2 + $0x38] sm:$0xff] }
 0xdef   : > { %5118 = vmatmul.mubr.bf16.gmra.mrb[132].mxu1 %v3834_v6  ;;  %v5595_v6 = vld [vmem:[%s5749_s24 + $0x78] sm:$0xff] }
 0xea7   : > { %v5107_v9 = vpop.f32.mrb[112].mxu0 }
 0xea8   : > { %v3949_v4 = vadd.f32 %v5107_v9, %v7749_v26  ;;  %v3940_v29 = vpop.f32.mrb[113].mxu0 }
 0xea9   : > { %v5108_v37 = vpop.f32.mrb[114].mxu0  ;;  %v3941_v52 = vadd.f32 %v7749_v26, %v3940_v29 }
 0xeaa   : > { %v7753_v50 = vadd.f32 %v5580_v25, %v3949_v4  ;;  %v3943_v38 = vpop.f32.mrb[115].mxu0  ;;  %v3952_v51 = vadd.f32 %v5108_v37, %v7749_v26 }
 0xeab   : > { %v3944_v24 = vadd.f32 %v7749_v26, %v3943_v38  ;;  %v7762_v36 = vadd.f32 %v5582_v48, %v3941_v52 }
 0xeac   : > { %4023 = vadd.xlane.f32.xlu0 %v7753_v50  ;;  %v7768_v56 = vadd.f32 %v5583_v59, %v3952_v51 }
 0xead   : > { %v7759_v45 = vadd.f32 %v5581_v17, %v3944_v24 }
 0xeaf   : > { %4021 = vadd.xlane.f32.xlu1 %v7759_v45 }
 0xeb0   : > { %4019 = vadd.xlane.f32.xlu0 %v7762_v36 }
 0xeb2   : > { %v5111_v28 = vpop.f32.mrb[116].mxu0 }
 0xeb3   : > { %v3965_v40 = vadd.f32 %v5111_v28, %v7749_v26  ;;  %v3956_v42 = vpop.f32.mrb[117].mxu0 }
 0xeb4   : > { %4025 = vadd.xlane.f32.xlu0 %v7768_v56  ;;  %v5112_v54 = vpop.f32.mrb[118].mxu0  ;;  %v3957_v18 = vadd.f32 %v7749_v26, %v3956_v42 }
 0xeb5   : > { %v7773_v32 = vadd.f32 %v5584_v34, %v3965_v40  ;;  %v3968_v7 = vadd.f32 %v5112_v54, %v7749_v26  ;;  %v3959_v21 = vpop.f32.mrb[119].mxu0 }
 0xeb6   : > { %v3960_v10 = vadd.f32 %v7749_v26, %v3959_v21  ;;  %v7783_v2 = vadd.f32 %v5586_v49, %v3957_v18 }
 0xeb7   : > { %v7778_v35 = vadd.f32 %v5585_v8, %v3968_v7  ;;  %v5115_v58 = vpop.f32.mrb[128].mxu1  ;;  %4031 = vadd.xlane.f32.xlu1 %v7773_v32 }
 0xeb8   : > { %v3972_v3 = vpop.f32.mrb[129].mxu1  ;;  %v3981_v27 = vadd.f32 %v5115_v58, %v7749_v26  ;;  %v7788_v11 = vadd.f32 %v5587_v31, %v3960_v10 }
 0xeb9   : > { %v5116_v16 = vpop.f32.mrb[130].mxu1  ;;  %4033 = vadd.xlane.f32.xlu0 %v7778_v35  ;;  %v3973_v53 = vadd.f32 %v7749_v26, %v3972_v3 }
 0xeba   : > { %v3975_v39 = vpop.f32.mrb[131].mxu1  ;;  %v3984_v41 = vadd.f32 %v5116_v16, %v7749_v26  ;;  %v7793_v43 = vadd.f32 %v5588_v22, %v3981_v27 }
 0xebb   : > { %4027 = vadd.xlane.f32.xlu1 %v7783_v2  ;;  %v3976_v62 = vadd.f32 %v7749_v26, %v3975_v39  ;;  %v7803_v5 = vadd.f32 %v5590_v63, %v3973_v53 }
 0xebc   : > { %v7798_v14 = vadd.f32 %v5589_v55, %v3984_v41 }
 0xebd   : > { %4029 = vadd.xlane.f32.xlu0 %v7788_v11  ;;  %v7807_v47 = vadd.f32 %v5591_v46, %v3976_v62 }
 0xebf   : > { %4039 = vadd.xlane.f32.xlu1 %v7793_v43 }
 0xec1   : > { %4041 = vadd.xlane.f32.xlu0 %v7798_v14 }
 0xec2   : > { %v5119_v15 = vpop.f32.mrb[132].mxu1 }
 0xec3   : > { %v3988_v57 = vpop.f32.mrb[133].mxu1  ;;  %4035 = vadd.xlane.f32.xlu1 %v7803_v5  ;;  %v3997_v13 = vadd.f32 %v5119_v15, %v7749_v26 }
 0xec4   : > { %v3989_v61 = vadd.f32 %v7749_v26, %v3988_v57  ;;  %v5120_v44 = vpop.f32.mrb[134].mxu1 }
 0xec5   : > { %v3991_v20 = vpop.f32.mrb[135].mxu1  ;;  %4037 = vadd.xlane.f32.xlu0 %v7807_v47  ;;  %v4000_v23 = vadd.f32 %v5120_v44, %v7749_v26  ;;  %v7823_v30 = vadd.f32 %v5594_v19, %v3997_v13 }
 0xec6   : > { %v7814_v33 = vadd.f32 %v5592_v12, %v3989_v61  ;;  %v3992_v0 = vadd.f32 %v7749_v26, %v3991_v20 }
 0xec7   : > { %v7827_v9 = vadd.f32 %v5595_v6, %v4000_v23 }
 0xec8   : > { %v7819_v60 = vadd.f32 %v5593_v1, %v3992_v0  ;;  %4043 = vadd.xlane.f32.xlu1 %v7814_v33 }
 0xeca   : > { %4045 = vadd.xlane.f32.xlu0 %v7819_v60 }
 0xecc   : > { %4047 = vadd.xlane.f32.xlu1 %v7823_v30 }
 0xece   : > { %4049 = vadd.xlane.f32.xlu0 %v7827_v9 }
 0xf39   : > { %v4024_v4 = vpop.xlane.xlu0 %4023 }
 0xf3a   : > { %v4054_v29 = vmul.f32 0.0078125, %v4024_v4 }
 0xf3c   : > { %v7832_v26 = vsub.f32 %v7753_v50, %v4054_v29  ;;  %v4022_v38 = vpop.xlane.xlu1 %4021 }
 0xf3d   : > { %v4020_v37 = vpop.xlane.xlu0 %4019  ;;  %v4053_v48 = vmul.f32 0.0078125, %v4022_v38 }
 0xf3e   : > { %v4052_v25 = vmul.f32 0.0078125, %v4020_v37  ;;  %v4086_v52 = vmul.f32 %v7832_v26, %v7832_v26 }
 0xf3f   : > { %v7845_v42 = vsub.f32 %v7759_v45, %v4053_v48 }
 0xf40   : > { %v7837_v24 = vsub.f32 %v7762_v36, %v4052_v25  ;;  %4104 = vadd.xlane.f32.xlu1 %v4086_v52 }
 0xf41   : > { %v4026_v17 = vpop.xlane.xlu0 %4025  ;;  %v4085_v45 = vmul.f32 %v7845_v42, %v7845_v42 }
 0xf42   : > { %v4055_v51 = vmul.f32 0.0078125, %v4026_v17  ;;  %v4084_v59 = vmul.f32 %v7837_v24, %v7837_v24 }
 0xf44   : > { %v7842_v28 = vsub.f32 %v7768_v56, %v4055_v51  ;;  %v4032_v50 = vpop.xlane.xlu1 %4031  ;;  %4100 = vadd.xlane.f32.xlu1 %v4084_v59 }
 0xf45   : > { %v4058_v40 = vmul.f32 0.0078125, %v4032_v50 }
 0xf46   : > { %v4034_v54 = vpop.xlane.xlu0 %4033  ;;  %v4087_v36 = vmul.f32 %v7842_v28, %v7842_v28 }
 0xf47   : > { %v7850_v34 = vsub.f32 %v7773_v32, %v4058_v40  ;;  %v4059_v18 = vmul.f32 0.0078125, %v4034_v54 }
 0xf48   : > { %v4028_v7 = vpop.xlane.xlu1 %4027  ;;  %4106 = vadd.xlane.f32.xlu0 %v4087_v36 }
 0xf49   : > { %v4056_v21 = vmul.f32 0.0078125, %v4028_v7  ;;  %v4090_v56 = vmul.f32 %v7850_v34, %v7850_v34  ;;  %v7855_v8 = vsub.f32 %v7778_v35, %v4059_v18  ;;  %v7914_v7 = vld [vmem:[%s8004_s10] ss:$0 sm:$0xff] }
 0xf4a   : > { %v4030_v10 = vpop.xlane.xlu0 %4029 }
 0xf4b   : > { %v7860_v58 = vsub.f32 %v7783_v2, %v4056_v21  ;;  %v4057_v3 = vmul.f32 0.0078125, %v4030_v10  ;;  %4112 = vadd.xlane.f32.xlu1 %v4090_v56  ;;  %v4091_v39 = vmul.f32 %v7855_v8, %v7855_v8 }
 0xf4c   : > { %v4040_v32 = vpop.xlane.xlu1 %4039  ;;  %4102 = vadd.xlane.f32.xlu0 %v4085_v45 }
 0xf4d   : > { %v4062_v49 = vmul.f32 0.0078125, %v4040_v32  ;;  %v4088_v27 = vmul.f32 %v7860_v58, %v7860_v58  ;;  %v7865_v16 = vsub.f32 %v7788_v11, %v4057_v3  ;;  %v7920_v32 = vld [vmem:[%s8005_s11] ss:$0 sm:$0xff] }
 0xf4e   : > { %v4042_v35 = vpop.xlane.xlu0 %4041 }
 0xf4f   : > { %v7870_v31 = vsub.f32 %v7793_v43, %v4062_v49  ;;  %v4063_v2 = vmul.f32 0.0078125, %v4042_v35  ;;  %4108 = vadd.xlane.f32.xlu1 %v4088_v27  ;;  %v4089_v62 = vmul.f32 %v7865_v16, %v7865_v16 }
 0xf50   : > { %v4036_v41 = vpop.xlane.xlu1 %4035  ;;  %4114 = vadd.xlane.f32.xlu0 %v4091_v39 }
 0xf51   : > { %v4060_v22 = vmul.f32 0.0078125, %v4036_v41  ;;  %v4094_v53 = vmul.f32 %v7870_v31, %v7870_v31  ;;  %v7875_v55 = vsub.f32 %v7798_v14, %v4063_v2 }
 0xf52   : > { %v4038_v11 = vpop.xlane.xlu0 %4037 }
 0xf53   : > { %v7880_v63 = vsub.f32 %v7803_v5, %v4060_v22  ;;  %v4061_v43 = vmul.f32 0.0078125, %v4038_v11  ;;  %4120 = vadd.xlane.f32.xlu1 %v4094_v53  ;;  %v4095_v14 = vmul.f32 %v7875_v55, %v7875_v55 }
 0xf54   : > { %4110 = vadd.xlane.f32.xlu0 %v4089_v62 }
 0xf55   : > { %v4044_v15 = vpop.xlane.xlu1 %4043  ;;  %v4092_v46 = vmul.f32 %v7880_v63, %v7880_v63  ;;  %v7885_v57 = vsub.f32 %v7807_v47, %v4061_v43 }
 0xf56   : > { %v4064_v61 = vmul.f32 0.0078125, %v4044_v15 }
 0xf57   : > { %4116 = vadd.xlane.f32.xlu1 %v4092_v46  ;;  %v4046_v44 = vpop.xlane.xlu0 %4045  ;;  %v4093_v23 = vmul.f32 %v7885_v57, %v7885_v57 }
 0xf58   : > { %v7890_v20 = vsub.f32 %v7814_v33, %v4064_v61  ;;  %v4065_v5 = vmul.f32 0.0078125, %v4046_v44  ;;  %4122 = vadd.xlane.f32.xlu0 %v4095_v14 }
 0xf59   : > { %v4048_v13 = vpop.xlane.xlu1 %4047 }
 0xf5a   : > { %v7893_v12 = vsub.f32 %v7819_v60, %v4065_v5  ;;  %v4066_v0 = vmul.f32 0.0078125, %v4048_v13  ;;  %v4096_v47 = vmul.f32 %v7890_v20, %v7890_v20 }
 0xf5b   : > { %v4050_v1 = vpop.xlane.xlu0 %4049 }
 0xf5c   : > { %v7900_v19 = vsub.f32 %v7823_v30, %v4066_v0  ;;  %v4067_v6 = vmul.f32 0.0078125, %v4050_v1  ;;  %4124 = vadd.xlane.f32.xlu1 %v4096_v47  ;;  %4118 = vadd.xlane.f32.xlu0 %v4093_v23  ;;  %v4097_v4 = vmul.f32 %v7893_v12, %v7893_v12 }
 0xf5e   : > { %v7903_v33 = vsub.f32 %v7827_v9, %v4067_v6  ;;  %v4098_v60 = vmul.f32 %v7900_v19, %v7900_v19 }
 0xf60   : > { %4128 = vadd.xlane.f32.xlu1 %v4098_v60  ;;  %4126 = vadd.xlane.f32.xlu0 %v4097_v4  ;;  %v4099_v29 = vmul.f32 %v7903_v33, %v7903_v33 }
 0xf64   : > { %4130 = vadd.xlane.f32.xlu0 %v4099_v29 }
 0xfcd   : > { %v4105_v30 = vpop.xlane.xlu1 %4104 }
 0xfce   : > { %v4134_v37 = vmul.f32 0.0078125, %v4105_v30 }
 0xfd0   : > { %v4150_v25 = vadd.f32 1e-05, %v4134_v37 }
 0xfd1   : > { %v4101_v52 = vpop.xlane.xlu1 %4100 }
 0xfd2   : > { %5533 = vrsqrt.f32 %v4150_v25  ;;  %v4132_v38 = vmul.f32 0.0078125, %v4101_v52 }
 0xfd4   : > { %v4148_v9 = vadd.f32 1e-05, %v4132_v38 }
 0xfd5   : > { %v4107_v17 = vpop.xlane.xlu0 %4106 }
 0xfd6   : > { %5535 = vrsqrt.f32 %v4148_v9  ;;  %v4135_v48 = vmul.f32 0.0078125, %v4107_v17 }
 0xfd8   : > { %v4151_v51 = vadd.f32 1e-05, %v4135_v48  ;;  %v4113_v59 = vpop.xlane.xlu1 %4112 }
 0xfd9   : > { %v4138_v50 = vmul.f32 0.0078125, %v4113_v59  ;;  %v4103_v40 = vpop.xlane.xlu0 %4102 }
 0xfda   : > { %5537 = vrsqrt.f32 %v4151_v51  ;;  %v4133_v54 = vmul.f32 0.0078125, %v4103_v40 }
 0xfdb   : > { %v4154_v36 = vadd.f32 1e-05, %v4138_v50 }
 0xfdc   : > { %v5534_v18 = vpop.eup %5533  ;;  %v4149_v21 = vadd.f32 1e-05, %v4133_v54  ;;  %v4109_v56 = vpop.xlane.xlu1 %4108 }
 0xfdd   : > { %v4182_v10 = vmul.f32 %v5534_v18, %v7832_v26  ;;  %5539 = vrsqrt.f32 %v4154_v36  ;;  %v4136_v45 = vmul.f32 0.0078125, %v4109_v56  ;;  %v4115_v3 = vpop.xlane.xlu0 %4114 }
 0xfde   : > { %5541 = vrsqrt.f32 %v4149_v21  ;;  %v4139_v49 = vmul.f32 0.0078125, %v4115_v3 }
 0xfdf   : > { %v4205_v27 = vmul.f32 %v7914_v7, %v4182_v10  ;;  %v4152_v35 = vadd.f32 1e-05, %v4136_v45 }
 0xfe0   : > { %v5536_v39 = vpop.eup %5535  ;;  %v4155_v26 = vadd.f32 1e-05, %v4139_v49  ;;  %v4121_v2 = vpop.xlane.xlu1 %4120 }
 0xfe1   : > { %v4228_v41 = vadd.f32 %v7920_v32, %v4205_v27  ;;  %v4180_v22 = vmul.f32 %v5536_v39, %v7837_v24  ;;  %5543 = vrsqrt.f32 %v4152_v35  ;;  %v4142_v53 = vmul.f32 0.0078125, %v4121_v2  ;;  %v4111_v11 = vpop.xlane.xlu0 %4110 }
 0xfe2   : > { %5545 = vrsqrt.f32 %v4155_v26  ;;  %v4137_v62 = vmul.f32 0.0078125, %v4111_v11 }
 0xfe3   : > { %4244 = vst [vmem:[%s7927_s27 + $0x10] sm:$0xff] %v4228_v41  ;;  %v4203_v43 = vmul.f32 %v7914_v7, %v4180_v22  ;;  %v4158_v15 = vadd.f32 1e-05, %v4142_v53 }
 0xfe4   : > { %v5538_v46 = vpop.eup %5537  ;;  %v4153_v61 = vadd.f32 1e-05, %v4137_v62  ;;  %v4117_v14 = vpop.xlane.xlu1 %4116 }
 0xfe5   : > { %v4226_v44 = vadd.f32 %v7920_v32, %v4203_v43  ;;  %v4183_v5 = vmul.f32 %v5538_v46, %v7842_v28  ;;  %5547 = vrsqrt.f32 %v4158_v15  ;;  %v4140_v13 = vmul.f32 0.0078125, %v4117_v14  ;;  %v4123_v24 = vpop.xlane.xlu0 %4122 }
 0xfe6   : > { %5549 = vrsqrt.f32 %v4153_v61  ;;  %v4143_v0 = vmul.f32 0.0078125, %v4123_v24 }
 0xfe7   : > { %v5540_v47 = vpop.eup %5539  ;;  %4242 = vst [vmem:[%s7927_s27] sm:$0xff] %v4226_v44  ;;  %v4206_v23 = vmul.f32 %v7914_v7, %v4183_v5  ;;  %v4156_v1 = vadd.f32 1e-05, %v4140_v13 }
 0xfe8   : > { %v5542_v6 = vpop.eup %5541  ;;  %v4186_v60 = vmul.f32 %v5540_v47, %v7850_v34  ;;  %v4159_v4 = vadd.f32 1e-05, %v4143_v0 }
 0xfe9   : > { %v4229_v29 = vadd.f32 %v7920_v32, %v4206_v23  ;;  %v4181_v30 = vmul.f32 %v5542_v6, %v7845_v42  ;;  %5551 = vrsqrt.f32 %v4156_v1  ;;  %v4125_v28 = vpop.xlane.xlu1 %4124  ;;  %v4119_v37 = vpop.xlane.xlu0 %4118 }
 0xfea   : > { %v4209_v25 = vmul.f32 %v7914_v7, %v4186_v60  ;;  %5553 = vrsqrt.f32 %v4159_v4  ;;  %v4144_v52 = vmul.f32 0.0078125, %v4125_v28  ;;  %v4141_v38 = vmul.f32 0.0078125, %v4119_v37 }
 0xfeb   : > { %v5544_v9 = vpop.eup %5543  ;;  %4245 = vst [vmem:[%s7927_s27 + $0x18] sm:$0xff] %v4229_v29  ;;  %v4204_v17 = vmul.f32 %v7914_v7, %v4181_v30 }
 0xfec   : > { %v5546_v34 = vpop.eup %5545  ;;  %v4232_v48 = vadd.f32 %v7920_v32, %v4209_v25  ;;  %v4184_v51 = vmul.f32 %v5544_v9, %v7860_v58  ;;  %v4160_v42 = vadd.f32 1e-05, %v4144_v52  ;;  %v4157_v59 = vadd.f32 1e-05, %v4141_v38 }
 0xfed   : > { %v4227_v50 = vadd.f32 %v7920_v32, %v4204_v17  ;;  %v4187_v40 = vmul.f32 %v5546_v34, %v7855_v8  ;;  %v4129_v54 = vpop.xlane.xlu1 %4128  ;;  %v4127_v36 = vpop.xlane.xlu0 %4126 }
 0xfee   : > { %4248 = vst [vmem:[%s7927_s27 + $0x30] sm:$0xff] %v4232_v48  ;;  %v4207_v18 = vmul.f32 %v7914_v7, %v4184_v51  ;;  %5555 = vrsqrt.f32 %v4160_v42  ;;  %v4146_v21 = vmul.f32 0.0078125, %v4129_v54  ;;  %v4145_v56 = vmul.f32 0.0078125, %v4127_v36 }
 0xfef   : > { %v5548_v10 = vpop.eup %5547  ;;  %4243 = vst [vmem:[%s7927_s27 + $0x8] sm:$0xff] %v4227_v50  ;;  %v4210_v58 = vmul.f32 %v7914_v7, %v4187_v40  ;;  %5557 = vrsqrt.f32 %v4157_v59 }
 0xff0   : > { %v5550_v45 = vpop.eup %5549  ;;  %v4230_v3 = vadd.f32 %v7920_v32, %v4207_v18  ;;  %v4190_v8 = vmul.f32 %v5548_v10, %v7870_v31  ;;  %v4162_v49 = vadd.f32 1e-05, %v4146_v21  ;;  %v4161_v27 = vadd.f32 1e-05, %v4145_v56 }
 0xff1   : > { %v4233_v35 = vadd.f32 %v7920_v32, %v4210_v58  ;;  %v4185_v39 = vmul.f32 %v5550_v45, %v7865_v16  ;;  %v4131_v26 = vpop.xlane.xlu0 %4130 }
 0xff2   : > { %4246 = vst [vmem:[%s7927_s27 + $0x20] sm:$0xff] %v4230_v3  ;;  %v4213_v2 = vmul.f32 %v7914_v7, %v4190_v8  ;;  %5559 = vrsqrt.f32 %v4162_v49  ;;  %v4147_v41 = vmul.f32 0.0078125, %v4131_v26 }
 0xff3   : > { %v5552_v22 = vpop.eup %5551  ;;  %4249 = vst [vmem:[%s7927_s27 + $0x38] sm:$0xff] %v4233_v35  ;;  %v4208_v53 = vmul.f32 %v7914_v7, %v4185_v39  ;;  %5561 = vrsqrt.f32 %v4161_v27 }
 0xff4   : > { %v5554_v31 = vpop.eup %5553  ;;  %v4236_v11 = vadd.f32 %v7920_v32, %v4213_v2  ;;  %v4188_v62 = vmul.f32 %v5552_v22, %v7880_v63  ;;  %v4163_v16 = vadd.f32 1e-05, %v4147_v41 }
 0xff5   : > { %v4231_v43 = vadd.f32 %v7920_v32, %v4208_v53  ;;  %v4191_v15 = vmul.f32 %v5554_v31, %v7875_v55 }
 0xff6   : > { %4252 = vst [vmem:[%s7927_s27 + $0x50] sm:$0xff] %v4236_v11  ;;  %v4211_v46 = vmul.f32 %v7914_v7, %v4188_v62  ;;  %5563 = vrsqrt.f32 %v4163_v16 }
 0xff7   : > { %4247 = vst [vmem:[%s7927_s27 + $0x28] sm:$0xff] %v4231_v43  ;;  %v4214_v61 = vmul.f32 %v7914_v7, %v4191_v15 }
 0xff8   : > { %v5556_v14 = vpop.eup %5555  ;;  %v4234_v44 = vadd.f32 %v7920_v32, %v4211_v46 }
 0xff9   : > { %v5558_v5 = vpop.eup %5557  ;;  %v4237_v63 = vadd.f32 %v7920_v32, %v4214_v61  ;;  %v4192_v13 = vmul.f32 %v5556_v14, %v7890_v20 }
 0xffa   : > { %4250 = vst [vmem:[%s7927_s27 + $0x40] sm:$0xff] %v4234_v44  ;;  %v4189_v55 = vmul.f32 %v5558_v5, %v7885_v57 }
 0xffb   : > { %4253 = vst [vmem:[%s7927_s27 + $0x58] sm:$0xff] %v4237_v63  ;;  %v4215_v24 = vmul.f32 %v7914_v7, %v4192_v13 }
 0xffc   : > { %v5560_v0 = vpop.eup %5559  ;;  %v4212_v47 = vmul.f32 %v7914_v7, %v4189_v55 }
 0xffd   : > { %v5562_v23 = vpop.eup %5561  ;;  %v4238_v1 = vadd.f32 %v7920_v32, %v4215_v24  ;;  %v4194_v6 = vmul.f32 %v5560_v0, %v7900_v19 }
 0xffe   : > { %v4235_v60 = vadd.f32 %v7920_v32, %v4212_v47  ;;  %v4193_v20 = vmul.f32 %v5562_v23, %v7893_v12 }
 0xfff   : > { %4254 = vst [vmem:[%s7927_s27 + $0x60] sm:$0xff] %v4238_v1  ;;  %v4217_v57 = vmul.f32 %v7914_v7, %v4194_v6 }
0x1000   : > { %v5564_v4 = vpop.eup %5563  ;;  %4251 = vst [vmem:[%s7927_s27 + $0x48] sm:$0xff] %v4235_v60  ;;  %v4216_v29 = vmul.f32 %v7914_v7, %v4193_v20 }
0x1001   : > { %v4240_v30 = vadd.f32 %v7920_v32, %v4217_v57  ;;  %v4195_v28 = vmul.f32 %v5564_v4, %v7903_v33 }
0x1002   : > { %v4239_v37 = vadd.f32 %v7920_v32, %v4216_v29 }
0x1003   : > { %4256 = vst [vmem:[%s7927_s27 + $0x70] sm:$0xff] %v4240_v30  ;;  %v4218_v19 = vmul.f32 %v7914_v7, %v4195_v28 }
0x1004   : > { %4255 = vst [vmem:[%s7927_s27 + $0x68] sm:$0xff] %v4239_v37 }
0x1005   : > { %v4241_v25 = vadd.f32 %v7920_v32, %v4218_v19 }
0x1007   : > { %4257 = vst [vmem:[%s7927_s27 + $0x78] sm:$0xff] %v4241_v25 }
0x1008 PF: > { %s22_s21 = sadd.s32 1, %s5602_s21  }
0x1009   : > { %p19_p4 = scmp.ge.s32.totalorder %s22_s21, 4  }
0x100b   :  { %21 = sbr.rel (!%p19_p4) target bundleno = 3 (0x3), region = 101 }

// kernel: decoder_layer.3
= control target key start
LH: loop header
LB: loop body
LE: loop exit
PB: predicated region body
PF: predicated region fallthrough
CT: control target
= control target key end

     0   :  { %s8273_s0 = inlined_call_operand.vmem [shape: f32[2,128,128], index: 0, kind: input, shape index: {}, may-alias: {0,1}]   ;;  %s8274_s1 = inlined_call_operand.vmem [shape: f32[2,128,128], index: 1, kind: input, shape index: {}, may-alias: {0,1}]   ;;  %s8275_s2 = inlined_call_operand.hbm [shape: bf16[128,128], index: 2, kind: input, shape index: {}]   ;;  %s8276_s3 = inlined_call_operand.vmem [shape: f32[1,128], index: 3, kind: input, shape index: {}]   ;;  %s8277_s4 = inlined_call_operand.hbm [shape: bf16[128,256], index: 4, kind: input, shape index: {}]   ;;  %s8278_s5 = inlined_call_operand.vmem [shape: f32[1,256], index: 5, kind: input, shape index: {}]   ;;  %s8279_s6 = inlined_call_operand.vmem [shape: bf16[128,32], index: 6, kind: input, shape index: {}]   ;;  %s8280_s7 = inlined_call_operand.hbm [shape: f32[128,128], index: 7, kind: input, shape index: {}]   ;;  %s8281_s8 = inlined_call_operand.hbm [shape: bf16[128,128], index: 8, kind: input, shape index: {}]   ;;  %s8282_s9 = inlined_call_operand.vmem [shape: f32[1,128], index: 9, kind: input, shape index: {}]   ;;  %s8283_s10 = inlined_call_operand.vmem [shape: f32[1,128], index: 10, kind: input, shape index: {}]   ;;  %s8284_s11 = inlined_call_operand.vmem [shape: f32[1,128], index: 11, kind: input, shape index: {}]   ;;  %s8285_s12 = inlined_call_operand.vmem [shape: f32[2,128,128], index: 12, kind: output, shape index: {}]  }
   0x1   :  { %8446 = sst [smem:[#allocation69_spill]] %s8277_s4 }
   0x2   :  { %17 = vsyncpa [#allocation4], 0 }
   0x3   :  { %18 = vsyncpa [#allocation6], 0 }
   0x4   :  { %19 = vsyncpa [#allocation9], 0  ;;  %s5974_s21 = smov 0  }
   0x5 LB: > { %8447 = sst [smem:[#allocation13_spill]] %s5879_s21  ;;  %s5881_s22 = smov [#allocation5]   ;;  %s5879_s21 = sphi %s5974_s21, %s25_s21  }
   0x6   : > { %s346_s23 = sshll.u32 %s5881_s22, 4  ;;  %s5980_s24 = sadd.s32 4294967295, %s5879_s21   ;;  %s5985_s23 = int_to_ptr.vmem [resolvable:$true] %s346_s23 }
   0x7   : > { %p4427_p0 = scmp.ge.s32.totalorder %s5879_s21, 1  ;;  %p318_p1 = scmp.lt.s32.totalorder %s5879_s21, 3 }
   0x8   : > { %p8289_p2 = scmp.eq.s32.totalorder %s5980_s24, 0  ;;  %s5882_s26 = smov [#allocation3]  }
   0x9   : > { %p5987_p3 = pnand %p4427_p0, %p318_p1  ;;  %s330_s27 = sshll.u32 %s5882_s26, 4  ;;  %s5993_s27 = int_to_ptr.vmem [resolvable:$true] %s330_s27 }
   0xa   : > { %s5883_s29 = smov [#allocation7]   ;;  %s8450_s4 = sld [smem:[#allocation69_spill]] }
   0xb   : > { %s8448_s25 = scalar_select %p5987_p3, 1, 0 }
   0xc   : > { %p5325_p4 = pneg %p5987_p3  ;;  %s6001_s30 = sshll.u32 %s5883_s29, 4  ;;  %s366_s30 = int_to_ptr.vmem [resolvable:$true] %s6001_s30 }
   0xe   : > { %p5997_p5 = pnand %p8289_p2, %p5325_p4 }
  0x10   : > { %s5749_s15 = scalar_lea.hbm %s8450_s4, 2048  ;;  %p6011_p7 = pneg %p5997_p5 }
  0x11   : > { %p5750_p6 = scmp.ne.s32.totalorder %s8450_s4, %s5749_s15  ;;  %p5756_p10 = scmp.lt.u32.totalorder %s5749_s15, %s8450_s4 }
  0x13   : > { %p5752_p8 = pnand %p6011_p7, %p5750_p6 }
  0x15   : > { %p5753_p9 = pneg %p5752_p8 }
  0x17   : > { %p5758_p11 = pnand %p5756_p10, %p5753_p9 }
  0x19   : > { %5761 = shalt.err (!%p5758_p11)
}
  0x1a   : > { %s5762_s22 = scalar_lea.vmem %s5985_s23, 2048  ;;  %p5770_p1 = scmp.lt.s32.totalorder %s5985_s23, %s5985_s23 }
  0x1b   : > { %p5763_p12 = scmp.ne.s32.totalorder %s5985_s23, %s5762_s22  ;;  %p5771_p4 = scmp.lt.s32.totalorder %s5762_s22, %s5762_s22 }
  0x1d   : > { %p5765_p13 = pnand %p5763_p12, %p6011_p7  ;;  %p5772_p6 = por %p5771_p4, %p5770_p1 }
  0x1f   : > { %p5766_p0 = pneg %p5765_p13 }
  0x21   : > { %p5773_p8 = pnand %p5772_p6, %p5766_p0 }
  0x23   : > { %5776 = shalt.err (!%p5773_p8)
}
  0x24   : > { %s8287_s26 = smov 128   ;;  %s8288_s29 = smov 8  }
  0x25   : > { %5331 = dma.hbm_to_vmem [thread:$0]  (!%p5997_p5), %s8450_s4, 2048, %s5985_s23, [#allocation6], %s8287_s26, %s8287_s26, %s8288_s29  }
  0x26   : > { %s5777_s17 = scalar_lea.hbm %s8275_s2, 1024 }
  0x27   : > { %p5778_p9 = scmp.ne.s32.totalorder %s8275_s2, %s5777_s17  ;;  %p5784_p12 = scmp.lt.u32.totalorder %s5777_s17, %s8275_s2 }
  0x29   : > { %p5780_p10 = pnand %p5778_p9, %p6011_p7 }
  0x2b   : > { %p5781_p11 = pneg %p5780_p10 }
  0x2d   : > { %p5786_p13 = pnand %p5784_p12, %p5781_p11 }
  0x2f   : > { %5789 = shalt.err (!%p5786_p13)
}
  0x30   : > { %s5790_s23 = scalar_lea.vmem %s5993_s27, 1024  ;;  %p5798_p6 = scmp.lt.s32.totalorder %s5993_s27, %s5993_s27 }
  0x31   : > { %p5791_p0 = scmp.ne.s32.totalorder %s5993_s27, %s5790_s23  ;;  %p5799_p8 = scmp.lt.s32.totalorder %s5790_s23, %s5790_s23 }
  0x33   : > { %p5793_p1 = pnand %p5791_p0, %p6011_p7  ;;  %p5800_p9 = por %p5799_p8, %p5798_p6 }
  0x35   : > { %p5794_p4 = pneg %p5793_p1 }
  0x37   : > { %p5801_p10 = pnand %p5800_p9, %p5794_p4 }
  0x39   : > { %5804 = shalt.err (!%p5801_p10)
}
  0x3a   : > { %s5886_s13 = smov 64   ;;  %s5887_s21 = smov 4  }
  0x3b   : > { %5328 = dma.hbm_to_vmem [thread:$0]  (!%p5997_p5), %s8275_s2, 1024, %s5993_s27, [#allocation4], %s5886_s13, %s5886_s13, %s5887_s21  }
  0x3c   : > { %s5888_s16 = smov [#allocation8]   ;;  %s5805_s22 = scalar_lea.hbm %s8280_s7, 2048 }
  0x3d   : > { %s378_s17 = sshll.u32 %s5888_s16, 4  ;;  %p5806_p11 = scmp.ne.s32.totalorder %s8280_s7, %s5805_s22  ;;  %s379_s17 = int_to_ptr.vmem [resolvable:$true] %s378_s17 }
  0x3e   : > { %p5812_p0 = scmp.lt.u32.totalorder %s5805_s22, %s8280_s7 }
  0x3f   : > { %p5808_p12 = pnand %p5806_p11, %p6011_p7 }
  0x41   : > { %p5809_p13 = pneg %p5808_p12 }
  0x43   : > { %p5814_p1 = pnand %p5812_p0, %p5809_p13 }
  0x45   : > { %5817 = shalt.err (!%p5814_p1)
}
  0x46   : > { %s5818_s27 = scalar_lea.vmem %s366_s30, 2048  ;;  %p5826_p9 = scmp.lt.s32.totalorder %s366_s30, %s366_s30 }
  0x47   : > { %p5819_p4 = scmp.ne.s32.totalorder %s366_s30, %s5818_s27  ;;  %p5827_p10 = scmp.lt.s32.totalorder %s5818_s27, %s5818_s27 }
  0x49   : > { %p5821_p6 = pnand %p5819_p4, %p6011_p7  ;;  %p5828_p2 = por %p5827_p10, %p5826_p9 }
  0x4b   : > { %p5822_p8 = pneg %p5821_p6 }
  0x4d   : > { %p5829_p3 = pnand %p5828_p2, %p5822_p8 }
  0x4f   : > { %5832 = shalt.err (!%p5829_p3)
}
  0x50   : > { %s8452_s26 = smov 8   ;;  %s8453_s14 = smov 128  }
  0x51   : > { %5334 = dma.hbm_to_vmem [thread:$0]  (!%p5997_p5), %s8280_s7, 2048, %s366_s30, [#allocation6], %s8453_s14, %s8453_s14, %s8452_s26  }
  0x52   : > { %s5833_s19 = scalar_lea.hbm %s8281_s8, 1024 }
  0x53   : > { %p5834_p2 = scmp.ne.s32.totalorder %s8281_s8, %s5833_s19  ;;  %p5840_p12 = scmp.lt.u32.totalorder %s5833_s19, %s8281_s8 }
  0x55   : > { %p5836_p3 = pnand %p5834_p2, %p6011_p7 }
  0x57   : > { %p5837_p11 = pneg %p5836_p3 }
  0x59   : > { %p5842_p13 = pnand %p5840_p12, %p5837_p11 }
  0x5b   : > { %5845 = shalt.err (!%p5842_p13)
}
  0x5c   : > { %s5846_s4 = scalar_lea.vmem %s379_s17, 1024  ;;  %p5854_p6 = scmp.lt.s32.totalorder %s379_s17, %s379_s17 }
  0x5d   : > { %p5847_p0 = scmp.ne.s32.totalorder %s379_s17, %s5846_s4  ;;  %p5855_p8 = scmp.lt.s32.totalorder %s5846_s4, %s5846_s4 }
  0x5f   : > { %p5849_p1 = pnand %p5847_p0, %p6011_p7  ;;  %p5856_p9 = por %p5855_p8, %p5854_p6 }
  0x61   : > { %p5850_p4 = pneg %p5849_p1 }
  0x63   : > { %p5857_p10 = pnand %p5856_p9, %p5850_p4 }
  0x65   : > { %5860 = shalt.err (!%p5857_p10)
}
  0x66   : > { %5337 = dma.hbm_to_vmem [thread:$0]  (!%p5997_p5), %s8281_s8, 1024, %s379_s17, [#allocation9], %s5886_s13, %s5886_s13, %s5887_s21  }
  0x67   : > { %p8454_p2 = scmp.ne.s32.totalorder %s8448_s25, 0 }
  0x69   : > { %419 = sbr.rel (%p8454_p2) target bundleno = 4211 (0x1073), region = 68 }
  0x70   : > { %p8455_p7 = scmp.eq.s32.totalorder %s5980_s24, 0 }
  0x72   : > { %5866 = dma.done.wait (%p8455_p7), [#allocation4], 1024   ;;  %p8456_p3 = pmov %p8455_p7 }
  0x74   : > { %5868 = vsyncadd (%p8456_p3), [#allocation4], 4294966272  ;;  %p8457_p11 = pmov %p8456_p3 }
  0x75   : > { %p8458_p12 = pmov %p8456_p3 }
  0x76   : > { %5870 = dma.done.wait (%p8457_p11), [#allocation6], 4096  }
  0x77   : > { %5872 = vsyncadd (%p8458_p12), [#allocation6], 4294963200  ;;  %p8459_p13 = pmov %p8456_p3 }
  0x78   : > { %p8460_p5 = pmov %p8456_p3 }
  0x79   : > { %5874 = dma.done.wait (%p8459_p13), [#allocation9], 1024  }
  0x7a   : > { %5876 = vsyncadd (%p8460_p5), [#allocation9], 4294966272  ;;  %v5889_v0 = vmov 0   ;;  %v5382_v1 = vld [vmem:[#allocation3] sm:$0xff]   ;;  %v5386_v4 = vld [vmem:[#allocation3 + $0x8] sm:$0xff]   ;;  %p478_p0 = scmp.lt.s32.totalorder %s5980_s24, 1 }
  0x7b   : > { %858 = vmatprep.mubr.bf16.mxu1 %v5889_v0  ;;  %v5383_v2 = vld [vmem:[#allocation5 + $0x4] ss:$8 sps:$4 sm:$0xff]   ;;  %4781 = vmatprep.subr.bf16.mxu0 %v5382_v1  ;;  %v5385_v3 = vld [vmem:[#allocation5] ss:$8 sps:$4 sm:$0xff]   ;;  %v5387_v5 = vld [vmem:[#allocation5 + $0x14] ss:$8 sps:$4 sm:$0xff]  }
  0x7c   : > { %826 = vmatprep.subr.bf16.mxu1 %v5383_v2  ;;  %4782 = vmatpush3.bf16.msra.mxu0 %v5382_v1  ;;  %v5389_v6 = vld [vmem:[#allocation5 + $0x10] ss:$8 sps:$4 sm:$0xff]   ;;  %v5391_v8 = vld [vmem:[#allocation5 + $0x24] ss:$8 sps:$4 sm:$0xff]   ;;  %v5393_v9 = vld [vmem:[#allocation5 + $0x20] ss:$8 sps:$4 sm:$0xff]  }
  0x7d   : > { %827 = vmatpush1.bf16.msra.mxu1 %v5385_v3  ;;  %4783 = vmatprep.subr.bf16.mxu0 %v5386_v4  ;;  %v5390_v7 = vld [vmem:[#allocation3 + $0x10] sm:$0xff]   ;;  %v5394_v10 = vld [vmem:[#allocation3 + $0x18] sm:$0xff]   ;;  %s8874_s24 = smov (!%p478_p0, %s5980_s24), 1  ;;  %v5398_v13 = vld [vmem:[#allocation3 + $0x20] sm:$0xff]   ;;  %vm8291_vm0 = vcmask 261120   ;;  %s5890_s16 = smov 273  }
  0x7e   : > { %828 = vmatprep.subr.bf16.mxu1 %v5387_v5  ;;  %v5395_v11 = vld [vmem:[#allocation5 + $0x34] ss:$8 sps:$4 sm:$0xff]   ;;  %v5397_v12 = vld [vmem:[#allocation5 + $0x30] ss:$8 sps:$4 sm:$0xff]   ;;  %s6121_s25 = sshll.u32 %s8874_s24, 7  ;;  %v5402_v16 = vld [vmem:[#allocation3 + $0x28] sm:$0xff]  }
  0x7f   : > { %v5399_v14 = vld [vmem:[#allocation5 + $0x44] ss:$8 sps:$4 sm:$0xff]   ;;  %v5401_v15 = vld [vmem:[#allocation5 + $0x40] ss:$8 sps:$4 sm:$0xff]   ;;  %s6127_s13 = scalar_lea.vmem %s8273_s0, %s6121_s25  ;;  %v5403_v17 = vld [vmem:[#allocation5 + $0x54] ss:$8 sps:$4 sm:$0xff]   ;;  %s6135_s17 = scalar_lea.vmem %s8274_s1, %s6121_s25 }
  0x80   : > { %4784 = vmatpush3.bf16.msra.mxu0 %v5386_v4  ;;  %v494_v18 = vld [vmem:[%s6127_s13] sm:$0xff]  ;;  %v495_v19 = vld [vmem:[%s6127_s13 + $0x8] sm:$0xff]  ;;  %v5405_v20 = vld [vmem:[#allocation5 + $0x50] ss:$8 sps:$4 sm:$0xff]   ;;  %s5891_s19 = smov 257   ;;  %s5892_s20 = smov 281  }
  0x81   : > { %829 = vmatpush1.bf16.msra.mxu1 %v5389_v6  ;;  %4785 = vmatprep.subr.bf16.mxu0 %v5390_v7  ;;  %v5406_v21 = vld [vmem:[#allocation3 + $0x30] sm:$0xff]   ;;  %v510_v22 = vpack.c.bf16 %v495_v19, %v494_v18  ;;  %v5407_v23 = vld [vmem:[#allocation5 + $0x64] ss:$8 sps:$4 sm:$0xff]   ;;  %v5409_v24 = vld [vmem:[#allocation5 + $0x60] ss:$8 sps:$4 sm:$0xff]   ;;  %s5893_s22 = smov 265  }
  0x82   : > { %830 = vmatprep.subr.bf16.mxu1 %v5391_v8  ;;  %v5410_v25 = vld [vmem:[#allocation3 + $0x38] sm:$0xff]   ;;  %v496_v28 = vld [vmem:[%s6127_s13 + $0x10] sm:$0xff]  ;;  %v518_v30 = vld [vmem:[%s6135_s17] sm:$0xff]  ;;  %s8444_s23 = smov 305   ;;  %s8441_s27 = smov 313  }
  0x83   : > { %4797 = vmatprep.mubr.bf16.mxu0 %v510_v22  ;;  %v5411_v26 = vld [vmem:[#allocation5 + $0x74] ss:$8 sps:$4 sm:$0xff]   ;;  %v5413_v27 = vld [vmem:[#allocation5 + $0x70] ss:$8 sps:$4 sm:$0xff]   ;;  %v519_v31 = vld [vmem:[%s6135_s17 + $0x8] sm:$0xff]  ;;  %s8442_s4 = smov 289  }
  0x84   : > { %4786 = vmatpush3.bf16.msra.mxu0 %v5390_v7  ;;  %v497_v29 = vld [vmem:[%s6127_s13 + $0x18] sm:$0xff]  ;;  %v498_v32 = vld [vmem:[%s6127_s13 + $0x20] sm:$0xff]  ;;  %v499_v33 = vld [vmem:[%s6127_s13 + $0x28] sm:$0xff]  ;;  %v534_v36 = vpack.c.bf16 %v519_v31, %v518_v30  ;;  %s8443_s30 = smov 297   ;;  %s8440_s26 = smov 337  }
  0x85   : > { %831 = vmatpush1.bf16.msra.mxu1 %v5393_v9  ;;  %4787 = vmatprep.subr.bf16.mxu0 %v5394_v10  ;;  %v511_v34 = vpack.c.bf16 %v497_v29, %v496_v28  ;;  %v6146_v35 = vld [vmem:[%s8279_s6] sm:$0xff]   ;;  %v512_v37 = vpack.c.bf16 %v499_v33, %v498_v32  ;;  %v500_v38 = vld [vmem:[%s6127_s13 + $0x30] sm:$0xff]  ;;  %v501_v39 = vld [vmem:[%s6127_s13 + $0x38] sm:$0xff]  ;;  %s8436_s28 = smov 345   ;;  %s8437_s18 = smov 321  }
  0x86   : > { %832 = vmatprep.subr.bf16.mxu1 %v5395_v11  ;;  %v520_v40 = vld [vmem:[%s6135_s17 + $0x10] sm:$0xff]  ;;  %v521_v41 = vld [vmem:[%s6135_s17 + $0x18] sm:$0xff]  ;;  %v502_v42 = vld [vmem:[%s6127_s13 + $0x40] sm:$0xff]  ;;  %v513_v44 = vpack.c.bf16 %v501_v39, %v500_v38  ;;  %v6159_v45 = vsel %vm8291_vm0, %v6146_v35, 0  ;;  %s8418_s24 = smov 329   ;;  %s8414_s21 = smov 369  }
  0x87   : > { %v503_v43 = vld [vmem:[%s6127_s13 + $0x48] sm:$0xff]  ;;  %v535_v47 = vpack.c.bf16 %v521_v41, %v520_v40  ;;  %v504_v49 = vld [vmem:[%s6127_s13 + $0x50] sm:$0xff]  ;;  %v505_v50 = vld [vmem:[%s6127_s13 + $0x58] sm:$0xff]  ;;  %s8382_s14 = smov 353   ;;  %s8376_s29 = smov 361  }
  0x88   : > { %4788 = vmatpush3.bf16.msra.mxu0 %v5394_v10  ;;  %v5415_v46 = vld [vmem:[%s8279_s6 + $0x8] sm:$0xff]   ;;  %v514_v48 = vpack.c.bf16 %v503_v43, %v502_v42  ;;  %v522_v51 = vld [vmem:[%s6135_s17 + $0x20] sm:$0xff]  ;;  %v515_v55 = vpack.c.bf16 %v505_v50, %v504_v49  ;;  %v5416_v57 = vld [vmem:[%s8279_s6 + $0x10] sm:$0xff]   ;;  %s8374_s15 = smov 96  }
  0x89   : > { %833 = vmatpush1.bf16.msra.mxu1 %v5397_v12  ;;  %4789 = vmatprep.subr.bf16.mxu0 %v5398_v13  ;;  %v523_v52 = vld [vmem:[%s6135_s17 + $0x28] sm:$0xff]  ;;  %v506_v53 = vld [vmem:[%s6127_s13 + $0x60] sm:$0xff]  ;;  %v6174_v56 = vsel %vm8291_vm0, %v5415_v46, 0  ;;  %v508_v60 = vld [vmem:[%s6127_s13 + $0x70] sm:$0xff]  ;;  %v6187_v2 = vsel %vm8291_vm0, %v5416_v57, 0 }
  0x8a   : > { %834 = vmatprep.subr.bf16.mxu1 %v5399_v14  ;;  %v507_v54 = vld [vmem:[%s6127_s13 + $0x68] sm:$0xff]  ;;  %v536_v58 = vpack.c.bf16 %v523_v52, %v522_v51  ;;  %v509_v61 = vld [vmem:[%s6127_s13 + $0x78] sm:$0xff]  ;;  %v524_v62 = vld [vmem:[%s6135_s17 + $0x30] sm:$0xff] }
  0x8b   : > { %v516_v59 = vpack.c.bf16 %v507_v54, %v506_v53  ;;  %v525_v63 = vld [vmem:[%s6135_s17 + $0x38] sm:$0xff]  ;;  %v517_v1 = vpack.c.bf16 %v509_v61, %v508_v60  ;;  %v526_v5 = vld [vmem:[%s6135_s17 + $0x40] sm:$0xff]  ;;  %v527_v6 = vld [vmem:[%s6135_s17 + $0x48] sm:$0xff] }
  0x8c   : > { %4790 = vmatpush3.bf16.msra.mxu0 %v5398_v13  ;;  %v5417_v3 = vld [vmem:[%s8279_s6 + $0x18] sm:$0xff]   ;;  %v537_v4 = vpack.c.bf16 %v525_v63, %v524_v62  ;;  %v5418_v8 = vld [vmem:[%s8279_s6 + $0x20] sm:$0xff]   ;;  %v538_v9 = vpack.c.bf16 %v527_v6, %v526_v5  ;;  %v528_v10 = vld [vmem:[%s6135_s17 + $0x50] sm:$0xff] }
  0x8d   : > { %835 = vmatpush1.bf16.msra.mxu1 %v5401_v15  ;;  %4791 = vmatprep.subr.bf16.mxu0 %v5402_v16  ;;  %v6198_v7 = vsel %vm8291_vm0, %v5417_v3, 0  ;;  %v529_v11 = vld [vmem:[%s6135_s17 + $0x58] sm:$0xff]  ;;  %v6209_v12 = vsel %vm8291_vm0, %v5418_v8, 0  ;;  %v5419_v13 = vld [vmem:[%s8279_s6 + $0x28] sm:$0xff]   ;;  %v530_v15 = vld [vmem:[%s6135_s17 + $0x60] sm:$0xff] }
  0x8e   : > { %836 = vmatprep.subr.bf16.mxu1 %v5403_v17  ;;  %v539_v14 = vpack.c.bf16 %v529_v11, %v528_v10  ;;  %v6220_v17 = vsel %vm8291_vm0, %v5419_v13, 0  ;;  %v5420_v18 = vld [vmem:[%s8279_s6 + $0x30] sm:$0xff]   ;;  %v734_v28 = vld [vmem:[%s8278_s5] sm:$0x3] }
  0x8f   : > { %v6231_v22 = vsel %vm8291_vm0, %v5420_v18, 0  ;;  %v6257_v33 = vld [vmem:[%s8276_s3] ss:$0 sm:$0xff] }
  0x90   : > { %4792 = vmatpush3.bf16.msra.mxu0 %v5402_v16  ;;  %v531_v16 = vld [vmem:[%s6135_s17 + $0x68] sm:$0xff] }
  0x91   : > { %837 = vmatpush1.bf16.msra.mxu1 %v5405_v20  ;;  %4793 = vmatprep.subr.bf16.mxu0 %v5406_v21  ;;  %v540_v19 = vpack.c.bf16 %v531_v16, %v530_v15  ;;  %v532_v20 = vld [vmem:[%s6135_s17 + $0x70] sm:$0xff] }
  0x92   : > { %838 = vmatprep.subr.bf16.mxu1 %v5407_v23 }
  0x94   : > { %4794 = vmatpush3.bf16.msra.mxu0 %v5406_v21  ;;  %v533_v21 = vld [vmem:[%s6135_s17 + $0x78] sm:$0xff]  ;;  %s8384_s17 = smov 377  }
  0x95   : > { %839 = vmatpush1.bf16.msra.mxu1 %v5409_v24  ;;  %4795 = vmatprep.subr.bf16.mxu0 %v5410_v25  ;;  %v541_v23 = vpack.c.bf16 %v533_v21, %v532_v20  ;;  %v5421_v24 = vld [vmem:[%s8279_s6 + $0x38] sm:$0xff]  }
  0x96   : > { %840 = vmatprep.subr.bf16.mxu1 %v5411_v26 }
  0x98   : > { %4796 = vmatpush3.bf16.msra.mxu0 %v5410_v25  ;;  %v6239_v25 = vsel %vm8291_vm0, %v5421_v24, 0 }
  0x99   : > { %841 = vmatpush1.bf16.msra.mxu1 %v5413_v27 }
  0x9a   : > { %5253 = vmatprep.subr.msk.bf16.mxu1 %vm8291_vm0, %v6146_v35 }
  0x9b   : > { %4798 = vmatmul.mubr.bf16.vlgmr.msra.gmra.mrb[0].mxu0 %v511_v34 }
  0x9c   : > { %859 = vmatmul.mubr.bf16.vlgmr.msra.gmra.mrb[0].mxu1 %v534_v36  ;;  %4801 = vmatprep.mubr.bf16.mxu0 %v512_v37 }
  0x9d   : > { %868 = vmatprep.mubr.bf16.mxu1 %v5889_v0 }
  0xa2   : > { %4846 = vmatpush3.bf16.xpose.msra.mxu1 %v6159_v45 }
  0xa3   : > { %4802 = vmatmul.mubr.bf16.gmra.mrb[4].mxu0 %v513_v44  ;;  %5254 = vmatprep.subr.msk.bf16.mxu1 %vm8291_vm0, %v5415_v46 }
  0xa4   : > { %869 = vmatmul.mubr.bf16.gmra.mrb[4].mxu1 %v535_v47  ;;  %4805 = vmatprep.mubr.bf16.mxu0 %v514_v48 }
  0xa5   : > { %878 = vmatprep.mubr.bf16.mxu1 %v5889_v0 }
  0xaa   : > { %4848 = vmatpush3.bf16.xpose.msra.mxu1 %v6174_v56 }
  0xab   : > { %4806 = vmatmul.mubr.bf16.gmra.mrb[8].mxu0 %v515_v55  ;;  %5255 = vmatprep.subr.msk.bf16.mxu1 %vm8291_vm0, %v5416_v57 }
  0xac   : > { %879 = vmatmul.mubr.bf16.gmra.mrb[8].mxu1 %v536_v58  ;;  %4809 = vmatprep.mubr.bf16.mxu0 %v516_v59 }
  0xad   : > { %888 = vmatprep.mubr.bf16.mxu1 %v5889_v0 }
  0xb2   : > { %4850 = vmatpush3.bf16.xpose.msra.mxu1 %v6187_v2 }
  0xb3   : > { %4810 = vmatmul.mubr.bf16.gmra.mrb[12].mxu0 %v517_v1  ;;  %5256 = vmatprep.subr.msk.bf16.mxu1 %vm8291_vm0, %v5417_v3 }
  0xb4   : > { %889 = vmatmul.mubr.bf16.gmra.mrb[12].mxu1 %v537_v4 }
  0xb5   : > { %898 = vmatprep.mubr.bf16.mxu1 %v5889_v0 }
  0xba   : > { %4852 = vmatpush3.bf16.xpose.msra.mxu1 %v6198_v7 }
  0xbb   : > { %5257 = vmatprep.subr.msk.bf16.mxu1 %vm8291_vm0, %v5418_v8 }
  0xbc   : > { %899 = vmatmul.mubr.bf16.gmra.mrb[16].mxu1 %v538_v9 }
  0xbd   : > { %908 = vmatprep.mubr.bf16.mxu1 %v5889_v0 }
  0xc2   : > { %4854 = vmatpush3.bf16.xpose.msra.mxu1 %v6209_v12 }
  0xc3   : > { %5258 = vmatprep.subr.msk.bf16.mxu1 %vm8291_vm0, %v5419_v13 }
  0xc4   : > { %909 = vmatmul.mubr.bf16.gmra.mrb[20].mxu1 %v539_v14 }
  0xc5   : > { %918 = vmatprep.mubr.bf16.mxu1 %v5889_v0 }
  0xca   : > { %4856 = vmatpush3.bf16.xpose.msra.mxu1 %v6220_v17 }
  0xcb   : > { %5259 = vmatprep.subr.msk.bf16.mxu1 %vm8291_vm0, %v5420_v18 }
  0xcc   : > { %919 = vmatmul.mubr.bf16.gmra.mrb[24].mxu1 %v540_v19 }
  0xcd   : > { %928 = vmatprep.mubr.bf16.mxu1 %v5889_v0  ;;  %v736_v0 = vlaneseq }
  0xcf   : > { %v6243_v26 = vshrl.u32 %v736_v0, 7 }
  0xd1   : > { %v738_v27 = vsub.s32 0, %v6243_v26  ;;  %v742_v29 = vsub.s32 1, %v6243_v26 }
  0xd2   : > { %4858 = vmatpush3.bf16.xpose.msra.mxu1 %v6231_v22 }
  0xd3   : > { %5260 = vmatprep.subr.msk.bf16.mxu1 %vm8291_vm0, %v5421_v24  ;;  %v6250_v30 = vrot.slane %v734_v28, %v738_v27  ;;  %v6252_v31 = vrot.slane %v734_v28, %v742_v29 }
  0xd4   : > { %929 = vmatmul.mubr.bf16.gmra.mrb[28].mxu1 %v541_v23 }
  0xda   : > { %4860 = vmatpush3.bf16.xpose.msra.mxu1 %v6239_v25 }
 0x16e   : > { %v4799_v32 = vpop.f32.mrb[0].mxu0 }
 0x16f   : > { %v860_v34 = vpop.f32.mrb[0].mxu1  ;;  %v647_v36 = vpop.f32.mrb[1].mxu0  ;;  %v656_v40 = vadd.f32 %v4799_v32, %v6257_v33 }
 0x170   : > { %v861_v37 = vadd.f32 %v860_v34, %v6250_v30  ;;  %v862_v38 = vpop.f32.mrb[1].mxu1  ;;  %v4800_v39 = vpop.f32.mrb[2].mxu0  ;;  %v648_v46 = vadd.f32 %v6257_v33, %v647_v36 }
 0x171   : > { %v863_v41 = vadd.f32 %v862_v38, %v6252_v31  ;;  %v659_v42 = vadd.f32 %v4800_v39, %v6257_v33  ;;  %v864_v43 = vpop.f32.mrb[2].mxu1  ;;  %v650_v44 = vpop.f32.mrb[3].mxu0 }
 0x172   : > { %v865_v47 = vadd.f32 %v864_v43, %v6250_v30  ;;  %v651_v48 = vadd.f32 %v6257_v33, %v650_v44  ;;  %v866_v49 = vpop.f32.mrb[3].mxu1 }
 0x173   : > { %v6266_v50 = vpack.c.bf16 %v659_v42, %v656_v40  ;;  %v867_v51 = vadd.f32 %v866_v49, %v6252_v31 }
 0x174   : > { %v6269_v52 = vpack.c.bf16 %v865_v47, %v861_v37  ;;  %v6271_v53 = vpack.c.bf16 %v651_v48, %v648_v46 }
 0x175   : > { %v6273_v54 = vpack.c.bf16 %v867_v51, %v863_v41 }
 0x176   : > { %5245 = vmatprep.subr.msk.bf16.mxu0 %vm8291_vm0, %v6269_v52  ;;  %v4803_v55 = vpop.f32.mrb[4].mxu0  ;;  %v1080_v57 = vsel %vm8291_vm0, %v6269_v52, 0  ;;  %4829 = vmatprep.mubr.msk.bf16.mxu0 %vm8291_vm0, %v6271_v53 }
 0x177   : > { %8461 = vst [vmem:[#allocation14_spill] sm:$0xff] %v6273_v54  ;;  %v672_v58 = vadd.f32 %v4803_v55, %v6257_v33  ;;  %v870_v59 = vpop.f32.mrb[4].mxu1  ;;  %4814 = vmatpush3.bf16.xpose.msra.mxu0 %v1080_v57  ;;  %4861 = vmatprep.mubr.msk.bf16.mxu1 %vm8291_vm0, %v6271_v53  ;;  %v663_v60 = vpop.f32.mrb[5].mxu0 }
 0x178   : > { %v871_v61 = vadd.f32 %v870_v59, %v6250_v30  ;;  %v664_v62 = vadd.f32 %v6257_v33, %v663_v60  ;;  %v872_v63 = vpop.f32.mrb[5].mxu1  ;;  %4862 = vmatmul.mubr.msk.bf16.vlgmr.msra.gmra.mrb[32].mxu1 %vm8291_vm0, %v6266_v50  ;;  %v4804_v1 = vpop.f32.mrb[6].mxu0 }
 0x179   : > { %v873_v3 = vadd.f32 %v872_v63, %v6252_v31  ;;  %v675_v4 = vadd.f32 %v4804_v1, %v6257_v33  ;;  %v874_v5 = vpop.f32.mrb[6].mxu1  ;;  %v666_v6 = vpop.f32.mrb[7].mxu0 }
 0x17a   : > { %v875_v8 = vadd.f32 %v874_v5, %v6250_v30  ;;  %v667_v9 = vadd.f32 %v6257_v33, %v666_v6  ;;  %v876_v10 = vpop.f32.mrb[7].mxu1 }
 0x17b   : > { %v6292_v11 = vpack.c.bf16 %v675_v4, %v672_v58  ;;  %v877_v13 = vadd.f32 %v876_v10, %v6252_v31 }
 0x17c   : > { %v6295_v14 = vpack.c.bf16 %v875_v8, %v871_v61  ;;  %v6297_v15 = vpack.c.bf16 %v667_v9, %v664_v62 }
 0x17d   : > { %v6299_v16 = vpack.c.bf16 %v877_v13, %v873_v3 }
 0x17e   : > { %5246 = vmatprep.subr.msk.bf16.mxu0 %vm8291_vm0, %v6295_v14  ;;  %v4807_v18 = vpop.f32.mrb[8].mxu0  ;;  %v1083_v19 = vsel %vm8291_vm0, %v6295_v14, 0  ;;  %4865 = vmatprep.mubr.msk.bf16.mxu1 %vm8291_vm0, %v6297_v15 }
 0x17f   : > { %8462 = vst [vmem:[#allocation15_spill] sm:$0xff] %v6299_v16  ;;  %v688_v20 = vadd.f32 %v4807_v18, %v6257_v33  ;;  %v880_v21 = vpop.f32.mrb[8].mxu1  ;;  %4816 = vmatpush3.bf16.xpose.msra.mxu0 %v1083_v19  ;;  %v679_v23 = vpop.f32.mrb[9].mxu0 }
 0x180   : > { %v881_v24 = vadd.f32 %v880_v21, %v6250_v30  ;;  %v680_v27 = vadd.f32 %v6257_v33, %v679_v23  ;;  %v882_v28 = vpop.f32.mrb[9].mxu1  ;;  %4866 = vmatmul.mubr.msk.bf16.gmra.mrb[36].mxu1 %vm8291_vm0, %v6292_v11  ;;  %v4808_v29 = vpop.f32.mrb[10].mxu0 }
 0x181   : > { %v883_v32 = vadd.f32 %v882_v28, %v6252_v31  ;;  %v691_v34 = vadd.f32 %v4808_v29, %v6257_v33  ;;  %v884_v36 = vpop.f32.mrb[10].mxu1  ;;  %v682_v37 = vpop.f32.mrb[11].mxu0 }
 0x182   : > { %v885_v38 = vadd.f32 %v884_v36, %v6250_v30  ;;  %v683_v39 = vadd.f32 %v6257_v33, %v682_v37  ;;  %v886_v40 = vpop.f32.mrb[11].mxu1 }
 0x183   : > { %v6316_v41 = vpack.c.bf16 %v691_v34, %v688_v20  ;;  %v887_v42 = vadd.f32 %v886_v40, %v6252_v31 }
 0x184   : > { %v6319_v43 = vpack.c.bf16 %v885_v38, %v881_v24  ;;  %v6321_v44 = vpack.c.bf16 %v683_v39, %v680_v27 }
 0x185   : > { %v6323_v46 = vpack.c.bf16 %v887_v42, %v883_v32 }
 0x186   : > { %5247 = vmatprep.subr.msk.bf16.mxu0 %vm8291_vm0, %v6319_v43  ;;  %v4811_v47 = vpop.f32.mrb[12].mxu0  ;;  %v1086_v48 = vsel %vm8291_vm0, %v6319_v43, 0  ;;  %4869 = vmatprep.mubr.msk.bf16.mxu1 %vm8291_vm0, %v6321_v44 }
 0x187   : > { %8463 = vst [vmem:[#allocation16_spill] sm:$0xff] %v6323_v46  ;;  %v704_v49 = vadd.f32 %v4811_v47, %v6257_v33  ;;  %v890_v51 = vpop.f32.mrb[12].mxu1  ;;  %4818 = vmatpush3.bf16.xpose.msra.mxu0 %v1086_v48  ;;  %v695_v55 = vpop.f32.mrb[13].mxu0 }
 0x188   : > { %v891_v57 = vadd.f32 %v890_v51, %v6250_v30  ;;  %v696_v58 = vadd.f32 %v6257_v33, %v695_v55  ;;  %v892_v59 = vpop.f32.mrb[13].mxu1  ;;  %4870 = vmatmul.mubr.msk.bf16.gmra.mrb[40].mxu1 %vm8291_vm0, %v6316_v41  ;;  %v4812_v60 = vpop.f32.mrb[14].mxu0 }
 0x189   : > { %v893_v61 = vadd.f32 %v892_v59, %v6252_v31  ;;  %v707_v62 = vadd.f32 %v4812_v60, %v6257_v33  ;;  %v894_v63 = vpop.f32.mrb[14].mxu1  ;;  %v698_v1 = vpop.f32.mrb[15].mxu0 }
 0x18a   : > { %v895_v3 = vadd.f32 %v894_v63, %v6250_v30  ;;  %v699_v4 = vadd.f32 %v6257_v33, %v698_v1  ;;  %v896_v5 = vpop.f32.mrb[15].mxu1 }
 0x18b   : > { %v6340_v6 = vpack.c.bf16 %v707_v62, %v704_v49  ;;  %v897_v8 = vadd.f32 %v896_v5, %v6252_v31 }
 0x18c   : > { %v6343_v9 = vpack.c.bf16 %v895_v3, %v891_v57  ;;  %v6345_v10 = vpack.c.bf16 %v699_v4, %v696_v58 }
 0x18d   : > { %v6347_v13 = vpack.c.bf16 %v897_v8, %v893_v61 }
 0x18e   : > { %5248 = vmatprep.subr.msk.bf16.mxu0 %vm8291_vm0, %v6343_v9  ;;  %v1089_v18 = vsel %vm8291_vm0, %v6343_v9, 0  ;;  %4873 = vmatprep.mubr.msk.bf16.mxu1 %vm8291_vm0, %v6345_v10 }
 0x18f   : > { %8464 = vst [vmem:[#allocation17_spill] sm:$0xff] %v6347_v13  ;;  %v900_v33 = vpop.f32.mrb[16].mxu1  ;;  %4820 = vmatpush3.bf16.xpose.msra.mxu0 %v1089_v18 }
 0x190   : > { %v901_v19 = vadd.f32 %v900_v33, %v6250_v30  ;;  %v902_v20 = vpop.f32.mrb[17].mxu1  ;;  %4874 = vmatmul.mubr.msk.bf16.gmra.mrb[44].mxu1 %vm8291_vm0, %v6340_v6 }
 0x191   : > { %v903_v21 = vadd.f32 %v902_v20, %v6252_v31  ;;  %v904_v23 = vpop.f32.mrb[18].mxu1 }
 0x192   : > { %v905_v24 = vadd.f32 %v904_v23, %v6250_v30  ;;  %v906_v27 = vpop.f32.mrb[19].mxu1 }
 0x193   : > { %v907_v28 = vadd.f32 %v906_v27, %v6252_v31 }
 0x194   : > { %v6361_v29 = vpack.c.bf16 %v905_v24, %v901_v19 }
 0x195   : > { %v6363_v32 = vpack.c.bf16 %v907_v28, %v903_v21 }
 0x196   : > { %5249 = vmatprep.subr.msk.bf16.mxu0 %vm8291_vm0, %v6361_v29  ;;  %v1092_v34 = vsel %vm8291_vm0, %v6361_v29, 0 }
 0x197   : > { %8465 = vst [vmem:[#allocation18_spill] sm:$0xff] %v6363_v32  ;;  %v910_v36 = vpop.f32.mrb[20].mxu1  ;;  %4822 = vmatpush3.bf16.xpose.msra.mxu0 %v1092_v34 }
 0x198   : > { %v911_v37 = vadd.f32 %v910_v36, %v6250_v30  ;;  %v912_v38 = vpop.f32.mrb[21].mxu1 }
 0x199   : > { %v913_v39 = vadd.f32 %v912_v38, %v6252_v31  ;;  %v914_v40 = vpop.f32.mrb[22].mxu1  ;;  %v1022_v38 = vsub.s32 127, %v6243_v26 }
 0x19a   : > { %v915_v42 = vadd.f32 %v914_v40, %v6250_v30  ;;  %v916_v47 = vpop.f32.mrb[23].mxu1 }
 0x19b   : > { %v917_v48 = vadd.f32 %v916_v47, %v6252_v31  ;;  %v8471_v47 = vmov 0 }
 0x19c   : > { %v6373_v49 = vpack.c.bf16 %v915_v42, %v911_v37  ;;  %v1007_v37 = vadd.s32 24, %v6243_v26 }
 0x19d   : > { %v6375_v51 = vpack.c.bf16 %v917_v48, %v913_v39  ;;  %v1005_v39 = vadd.s32 8, %v6243_v26 }
 0x19e   : > { %5250 = vmatprep.subr.msk.bf16.mxu0 %vm8291_vm0, %v6373_v49  ;;  %v1095_v55 = vsel %vm8291_vm0, %v6373_v49, 0  ;;  %v1025_v42 = vsub.s32 127, %v1007_v37 }
 0x19f   : > { %8466 = vst [vmem:[#allocation19_spill] sm:$0xff] %v6375_v51  ;;  %v920_v57 = vpop.f32.mrb[24].mxu1  ;;  %4824 = vmatpush3.bf16.xpose.msra.mxu0 %v1095_v55  ;;  %v1011_v55 = vadd.s32 56, %v6243_v26 }
 0x1a0   : > { %v921_v58 = vadd.f32 %v920_v57, %v6250_v30  ;;  %v922_v59 = vpop.f32.mrb[25].mxu1 }
 0x1a1   : > { %v923_v60 = vadd.f32 %v922_v59, %v6252_v31  ;;  %v924_v61 = vpop.f32.mrb[26].mxu1  ;;  %v1008_v59 = vadd.s32 32, %v6243_v26 }
 0x1a2   : > { %v925_v62 = vadd.f32 %v924_v61, %v6250_v30  ;;  %v926_v63 = vpop.f32.mrb[27].mxu1 }
 0x1a3   : > { %v927_v1 = vadd.f32 %v926_v63, %v6252_v31 }
 0x1a4   : > { %v6385_v3 = vpack.c.bf16 %v925_v62, %v921_v58 }
 0x1a5   : > { %v6387_v4 = vpack.c.bf16 %v927_v1, %v923_v60  ;;  %v8474_v60 = vmov 0  ;;  %v1009_v1 = vadd.s32 40, %v6243_v26 }
 0x1a6   : > { %5251 = vmatprep.subr.msk.bf16.mxu0 %vm8291_vm0, %v6385_v3  ;;  %v1098_v5 = vsel %vm8291_vm0, %v6385_v3, 0 }
 0x1a7   : > { %8467 = vst [vmem:[#allocation20_spill] sm:$0xff] %v6387_v4  ;;  %v930_v8 = vpop.f32.mrb[28].mxu1  ;;  %4826 = vmatpush3.bf16.xpose.msra.mxu0 %v1098_v5  ;;  %v8477_v5 = vmov 0 }
 0x1a8   : > { %v931_v18 = vadd.f32 %v930_v8, %v6250_v30  ;;  %v932_v33 = vpop.f32.mrb[29].mxu1 }
 0x1a9   : > { %v933_v19 = vadd.f32 %v932_v33, %v6252_v31  ;;  %v934_v20 = vpop.f32.mrb[30].mxu1 }
 0x1aa   : > { %v935_v21 = vadd.f32 %v934_v20, %v6250_v30  ;;  %v936_v23 = vpop.f32.mrb[31].mxu1  ;;  %v1006_v30 = vadd.s32 16, %v6243_v26 }
 0x1ab   : > { %v937_v24 = vadd.f32 %v936_v23, %v6252_v31  ;;  %v6439_v31 = vand.u32 127, %v736_v0  ;;  %v1023_v0 = vsub.s32 127, %v1005_v39  ;;  %v1027_v23 = vsub.s32 127, %v1009_v1 }
 0x1ac   : > { %v6397_v27 = vpack.c.bf16 %v935_v21, %v931_v18  ;;  %v1024_v36 = vsub.s32 127, %v1006_v30  ;;  %v1029_v18 = vsub.s32 127, %v1011_v55  ;;  %v8480_v21 = vmov 0 }
 0x1ad   : > { %v6399_v28 = vpack.c.bf16 %v937_v24, %v933_v19  ;;  %vm6451_vm2 = vcmp.ge.s32.totalorder %v6439_v31, %v1022_v38  ;;  %vm6461_vm3 = vcmp.ge.s32.totalorder %v6439_v31, %v1025_v42  ;;  %vm6470_vm4 = vcmp.ge.s32.totalorder %v6439_v31, %v1023_v0 }
 0x1ae   : > { %5252 = vmatprep.subr.msk.bf16.mxu0 %vm8291_vm0, %v6397_v27  ;;  %v1101_v34 = vsel %vm8291_vm0, %v6397_v27, 0  ;;  %vm6445_vm1 = vcmp.ge.s32.totalorder %v6439_v31, %v1024_v36  ;;  %v8472_v47 = vsel %vm6451_vm2, 4294967295, %v8471_v47  ;;  %v8475_v60 = vsel %vm6461_vm3, 4294967295, %v8474_v60 }
 0x1af   : > { %8468 = vst [vmem:[#allocation21_spill] sm:$0xff] %v6399_v28  ;;  %4828 = vmatpush3.bf16.xpose.msra.mxu0 %v1101_v34  ;;  %8473 = vst [vmem:[#allocation22_spill] sm:$0xff] %v8472_v47  ;;  %v8478_v5 = vsel %vm6470_vm4, 4294967295, %v8477_v5  ;;  %v1026_v19 = vsub.s32 127, %v1008_v59  ;;  %v1014_v24 = vadd.s32 80, %v6243_v26  ;;  %vm6487_vm6 = vcmp.ge.s32.totalorder %v6439_v31, %v1029_v18 }
 0x1b0   : > { %4877 = vmatprep.subr.bf16.mxu0 %v6273_v54  ;;  %8476 = vst [vmem:[#allocation23_spill] sm:$0xff] %v8475_v60  ;;  %8479 = vst [vmem:[#allocation24_spill] sm:$0xff] %v8478_v5  ;;  %v8483_v30 = vmov 0  ;;  %v1015_v36 = vadd.s32 88, %v6243_v26  ;;  %v8486_v38 = vmov 0  ;;  %v1012_v42 = vadd.s32 64, %v6243_v26 }
 0x1b1   : > { %v8484_v30 = vsel %vm6487_vm6, 4294967295, %v8483_v30  ;;  %vm6495_vm7 = vcmp.ge.s32.totalorder %v6439_v31, %v1026_v19  ;;  %vm6501_vm8 = vcmp.ge.s32.totalorder %v6439_v31, %v1027_v23  ;;  %v8489_v0 = vmov 0 }
 0x1b2   : > { %8485 = vst [vmem:[#allocation26_spill] sm:$0xff] %v8484_v30  ;;  %v8487_v38 = vsel %vm6495_vm7, 4294967295, %v8486_v38  ;;  %v8490_v0 = vsel %vm6501_vm8, 4294967295, %v8489_v0  ;;  %v1013_v55 = vadd.s32 72, %v6243_v26  ;;  %v8492_v1 = vmov 0 }
 0x1b3   : > { %8488 = vst [vmem:[#allocation27_spill] sm:$0xff] %v8487_v38  ;;  %8491 = vst [vmem:[#allocation28_spill] sm:$0xff] %v8490_v0  ;;  %v1018_v18 = vadd.s32 112, %v6243_v26  ;;  %v8495_v19 = vmov 0 }
 0x1b6   : > { %4830 = vmatmul.mubr.msk.bf16.vlgmr.msra.gmra.mrb[16].mxu0 %vm8291_vm0, %v6266_v50 }
 0x1b7   : > { %4833 = vmatprep.mubr.msk.bf16.mxu0 %vm8291_vm0, %v6297_v15  ;;  %4878 = vmatpush3.bf16.msra.mxu0 %v6273_v54 }
 0x1b8   : > { %4879 = vmatprep.subr.bf16.mxu0 %v6299_v16 }
 0x1bb   : > { %4880 = vmatpush3.bf16.msra.mxu0 %v6299_v16 }
 0x1bc   : > { %4881 = vmatprep.subr.bf16.mxu0 %v6323_v46 }
 0x1be   : > { %4834 = vmatmul.mubr.msk.bf16.gmra.mrb[20].mxu0 %vm8291_vm0, %v6292_v11 }
 0x1bf   : > { %4837 = vmatprep.mubr.msk.bf16.mxu0 %vm8291_vm0, %v6321_v44  ;;  %4882 = vmatpush3.bf16.msra.mxu0 %v6323_v46 }
 0x1c0   : > { %4883 = vmatprep.subr.bf16.mxu0 %v6347_v13 }
 0x1c3   : > { %4884 = vmatpush3.bf16.msra.mxu0 %v6347_v13  ;;  %v6598_v13 = vld [vmem:[#allocation7] sm:$0xff] }
 0x1c4   : > { %4885 = vmatprep.subr.bf16.mxu0 %v6363_v32  ;;  %8516 = vst [vmem:[#allocation37_spill] sm:$0xff] %v6598_v13 }
 0x1c6   : > { %4838 = vmatmul.mubr.msk.bf16.gmra.mrb[24].mxu0 %vm8291_vm0, %v6316_v41 }
 0x1c7   : > { %4841 = vmatprep.mubr.msk.bf16.mxu0 %vm8291_vm0, %v6345_v10  ;;  %4886 = vmatpush3.bf16.msra.mxu0 %v6363_v32 }
 0x1c8   : > { %4887 = vmatprep.subr.bf16.mxu0 %v6375_v51 }
 0x1cb   : > { %4888 = vmatpush3.bf16.msra.mxu0 %v6375_v51 }
 0x1cc   : > { %4889 = vmatprep.subr.bf16.mxu0 %v6387_v4 }
 0x1ce   : > { %4842 = vmatmul.mubr.msk.bf16.gmra.mrb[28].mxu0 %vm8291_vm0, %v6340_v6 }
 0x1cf   : > { %4890 = vmatpush3.bf16.msra.mxu0 %v6387_v4  ;;  %v6603_v4 = vld [vmem:[#allocation7 + $0x8] sm:$0xff] }
 0x1d0   : > { %4891 = vmatprep.subr.bf16.mxu0 %v6399_v28  ;;  %8518 = vst [vmem:[#allocation39_spill] sm:$0xff] %v6603_v4 }
 0x1d3   : > { %4892 = vmatpush3.bf16.msra.mxu0 %v6399_v28  ;;  %v6601_v28 = vld [vmem:[#allocation7 + $0x10] sm:$0xff] }
 0x1d4   : > { %5269 = vmatprep.subr.msk.bf16.mxu0 %vm8291_vm0, %v6146_v35  ;;  %v1010_v35 = vadd.s32 48, %v6243_v26  ;;  %8517 = vst [vmem:[#allocation38_spill] sm:$0xff] %v6601_v28 }
 0x1d6   : > { %v1028_v63 = vsub.s32 127, %v1010_v35 }
 0x1d8   : > { %vm6480_vm5 = vcmp.ge.s32.totalorder %v6439_v31, %v1028_v63  ;;  %v1030_v63 = vsub.s32 127, %v1012_v42  ;;  %v1036_v42 = vsub.s32 127, %v1018_v18 }
 0x1d9   : > { %v8481_v21 = vsel %vm6480_vm5, 4294967295, %v8480_v21 }
 0x1da   : > { %8482 = vst [vmem:[#allocation25_spill] sm:$0xff] %v8481_v21  ;;  %vm6531_vm11 = vcmp.ge.s32.totalorder %v6439_v31, %v1030_v63  ;;  %vm6551_vm13 = vcmp.ge.s32.totalorder %v6439_v31, %v1036_v42 }
 0x24b   : > { %v4863_v48 = vpop.f32.mrb[32].mxu1 }
 0x24c   : > { %v1314_v57 = vpop.f32.mrb[33].mxu1  ;;  %v1379_v58 = vsel %vm6445_vm1, %v4863_v48, 0.0  ;;  %v1032_v48 = vsub.s32 127, %v1014_v24  ;;  %v8498_v24 = vmov 0 }
 0x24d   : > { %1403 = vrot.lane.b32.xlu1 %v1379_v58, %s5890_s16  ;;  %v4864_v61 = vpop.f32.mrb[34].mxu1  ;;  %v1377_v62 = vsel %vm6451_vm2, %v1314_v57, 0.0  ;;  %v8499_v24 = vsel %vm6531_vm11, 4294967295, %v8498_v24 }
 0x24e   : > { %1395 = vrot.lane.b32.xlu0 %v1377_v62, %s5891_s19  ;;  %v1317_v8 = vpop.f32.mrb[35].mxu1  ;;  %v1380_v33 = vsel %vm6461_vm3, %v4864_v61, 0.0  ;;  %v1033_v61 = vsub.s32 127, %v1015_v36  ;;  %vm6515_vm9 = vcmp.ge.s32.totalorder %v6439_v31, %v1032_v48  ;;  %8500 = vst [vmem:[#allocation31_spill] sm:$0xff] %v8499_v24  ;;  %v1016_v36 = vadd.s32 96, %v6243_v26 }
 0x24f   : > { %v1378_v20 = vsel %vm6470_vm4, %v1317_v8, 0.0  ;;  %v8493_v1 = vsel %vm6515_vm9, 4294967295, %v8492_v1  ;;  %v1031_v8 = vsub.s32 127, %v1013_v55 }
 0x250   : > { %8494 = vst [vmem:[#allocation29_spill] sm:$0xff] %v8493_v1  ;;  %vm6523_vm10 = vcmp.ge.s32.totalorder %v6439_v31, %v1033_v61  ;;  %v1034_v61 = vsub.s32 127, %v1016_v36 }
 0x251   : > { %1407 = vrot.lane.b32.xlu1 %v1380_v33, %s5892_s20  ;;  %v8496_v19 = vsel %vm6523_vm10, 4294967295, %v8495_v19  ;;  %vm6537_vm12 = vcmp.ge.s32.totalorder %v6439_v31, %v1031_v8  ;;  %v8507_v8 = vmov 0 }
 0x252   : > { %1399 = vrot.lane.b32.xlu0 %v1378_v20, %s5893_s22  ;;  %8497 = vst [vmem:[#allocation30_spill] sm:$0xff] %v8496_v19  ;;  %v1019_v20 = vadd.s32 120, %v6243_v26  ;;  %vm6565_vm15 = vcmp.ge.s32.totalorder %v6439_v31, %v1034_v61  ;;  %v6652_v19 = vld [vmem:[#allocation7 + $0x48] sm:$0xff] }
 0x253   : > { %v4867_v34 = vpop.f32.mrb[36].mxu1  ;;  %8525 = vst [vmem:[#allocation46_spill] sm:$0xff] %v6652_v19 }
 0x254   : > { %v1383_v37 = vsel %vm6480_vm5, %v4867_v34, 0.0  ;;  %v1330_v39 = vpop.f32.mrb[37].mxu1 }
 0x255   : > { %v4868_v35 = vpop.f32.mrb[38].mxu1  ;;  %v1381_v59 = vsel %vm6495_vm7, %v1330_v39, 0.0  ;;  %v8501_v39 = vmov 0 }
 0x256   : > { %v1384_v57 = vsel %vm6487_vm6, %v4868_v35, 0.0  ;;  %1419 = vrot.lane.b32.xlu0 %v1383_v37, %s8444_s23  ;;  %v1333_v58 = vpop.f32.mrb[39].mxu1  ;;  %v8502_v39 = vsel %vm6537_vm12, 4294967295, %v8501_v39  ;;  %v1017_v35 = vadd.s32 104, %v6243_v26  ;;  %v8504_v26 = vmov 0 }
 0x257   : > { %1423 = vrot.lane.b32.xlu1 %v1384_v57, %s8441_s27  ;;  %v1382_v62 = vsel %vm6501_vm8, %v1333_v58, 0.0  ;;  %8503 = vst [vmem:[#allocation32_spill] sm:$0xff] %v8502_v39  ;;  %v1037_v58 = vsub.s32 127, %v1019_v20  ;;  %v8505_v26 = vsel %vm6551_vm13, 4294967295, %v8504_v26 }
 0x258   : > { %8506 = vst [vmem:[#allocation33_spill] sm:$0xff] %v8505_v26 }
 0x259   : > { %vm6558_vm14 = vcmp.ge.s32.totalorder %v6439_v31, %v1037_v58 }
 0x25a   : > { %1411 = vrot.lane.b32.xlu0 %v1381_v59, %s8442_s4  ;;  %v8508_v8 = vsel %vm6558_vm14, 4294967295, %v8507_v8 }
 0x25b   : > { %1415 = vrot.lane.b32.xlu1 %v1382_v62, %s8443_s30  ;;  %v4871_v33 = vpop.f32.mrb[40].mxu1  ;;  %v1035_v62 = vsub.s32 127, %v1017_v35  ;;  %8509 = vst [vmem:[#allocation34_spill] sm:$0xff] %v8508_v8 }
 0x25c   : > { %v1387_v23 = vsel %vm6515_vm9, %v4871_v33, 0.0  ;;  %v1346_v34 = vpop.f32.mrb[41].mxu1  ;;  %v8510_v33 = vmov 0 }
 0x25d   : > { %v4872_v37 = vpop.f32.mrb[42].mxu1  ;;  %v1385_v57 = vsel %vm6531_vm11, %v1346_v34, 0.0  ;;  %v8511_v33 = vsel %vm6565_vm15, 4294967295, %v8510_v33  ;;  %vm6570_vm0 = vcmp.ge.s32.totalorder %v6439_v31, %v1035_v62  ;;  %v8513_v34 = vmov 0 }
 0x25e   : > { %v1388_v48 = vsel %vm6523_vm10, %v4872_v37, 0.0  ;;  %1435 = vrot.lane.b32.xlu0 %v1387_v23, %s8440_s26  ;;  %v1349_v55 = vpop.f32.mrb[43].mxu1  ;;  %8512 = vst [vmem:[#allocation35_spill] sm:$0xff] %v8511_v33  ;;  %v8514_v34 = vsel %vm6570_vm0, 4294967295, %v8513_v34 }
 0x25f   : > { %1439 = vrot.lane.b32.xlu1 %v1388_v48, %s8436_s28  ;;  %v1386_v59 = vsel %vm6537_vm12, %v1349_v55, 0.0  ;;  %8515 = vst [vmem:[#allocation36_spill] sm:$0xff] %v8514_v34  ;;  %v6611_v34 = vld [vmem:[#allocation7 + $0x18] sm:$0xff] }
 0x260   : > { %8519 = vst [vmem:[#allocation40_spill] sm:$0xff] %v6611_v34 }
 0x262   : > { %1427 = vrot.lane.b32.xlu0 %v1385_v57, %s8437_s18 }
 0x263   : > { %1431 = vrot.lane.b32.xlu1 %v1386_v59, %s8418_s24  ;;  %v4875_v63 = vpop.f32.mrb[44].mxu1 }
 0x264   : > { %v1391_v18 = vsel %vm6551_vm13, %v4875_v63, 0.0  ;;  %v1362_v20 = vpop.f32.mrb[45].mxu1 }
 0x265   : > { %v4876_v23 = vpop.f32.mrb[46].mxu1  ;;  %v1389_v42 = vsel %vm6565_vm15, %v1362_v20, 0.0  ;;  %vm8330_vm15 = vcmp.eq.f32.partialorder %v6601_v28, 0.0 }
 0x266   : > { %v1392_v36 = vsel %vm6558_vm14, %v4876_v23, 0.0  ;;  %1451 = vrot.lane.b32.xlu0 %v1391_v18, %s8414_s21  ;;  %v1365_v37 = vpop.f32.mrb[47].mxu1  ;;  %vm8325_vm14 = vcmp.eq.f32.partialorder %v6603_v4, 0.0 }
 0x267   : > { %1455 = vrot.lane.b32.xlu1 %v1392_v36, %s8384_s17  ;;  %v1390_v35 = vsel %vm6570_vm0, %v1365_v37, 0.0  ;;  %vm8320_vm0 = vcmp.eq.f32.partialorder %v6598_v13, 0.0  ;;  %s8591_s17 = smov 361  }
 0x26a   : > { %1443 = vrot.lane.b32.xlu0 %v1389_v42, %s8382_s14  ;;  %s8600_s14 = smov 96  }
 0x26b   : > { %1447 = vrot.lane.b32.xlu1 %v1390_v35, %s8376_s29  ;;  %s8585_s29 = smov 377  }
 0x289   : > { %v4831_v31 = vpop.f32.mrb[16].mxu0 }
 0x28a   : > { %v1137_v48 = vpop.f32.mrb[17].mxu0  ;;  %v1202_v33 = vsel %vm8330_vm15, -1e+09, %v4831_v31 }
 0x28b   : > { %v4832_v55 = vpop.f32.mrb[18].mxu0  ;;  %v1200_v32 = vsel %vm8320_vm0, -1e+09, %v1137_v48  ;;  %vm8331_vm0 = vcmp.eq.f32.partialorder %v6611_v34, 0.0 }
 0x28c   : > { %v1140_v57 = vpop.f32.mrb[19].mxu0  ;;  %v1203_v31 = vsel %vm8331_vm0, -1e+09, %v4832_v55 }
 0x28d   : > { %v1201_v8 = vsel %vm8325_vm14, -1e+09, %v1140_v57 }
 0x291   : > { %v4835_v58 = vpop.f32.mrb[20].mxu0 }
 0x292   : > { %v1153_v59 = vpop.f32.mrb[21].mxu0 }
 0x293   : > { %v4836_v61 = vpop.f32.mrb[22].mxu0 }
 0x294   : > { %v1156_v62 = vpop.f32.mrb[23].mxu0 }
 0x299   : > { %v6584_v63 = vpop.f32.mrb[24].mxu0 }
 0x29a   : > { %v1169_v18 = vpop.f32.mrb[25].mxu0 }
 0x29b   : > { %v6586_v20 = vpop.f32.mrb[26].mxu0 }
 0x29c   : > { %v6588_v23 = vpop.f32.mrb[27].mxu0 }
 0x2a1   : > { %v6590_v36 = vpop.f32.mrb[28].mxu0 }
 0x2a2   : > { %v6592_v37 = vpop.f32.mrb[29].mxu0 }
 0x2a3   : > { %v6594_v42 = vpop.f32.mrb[30].mxu0 }
 0x2a4   : > { %v6596_v35 = vpop.f32.mrb[31].mxu0 }
 0x2bf   : > { %v1404_v51 = vpop.permute.xlu1 %1403 }
 0x2c0   : > { %v1396_v16 = vpop.permute.xlu0 %1395  ;;  %v6619_v13 = vadd.f32 %v1404_v51, %v1202_v33  ;;  %v6634_v51 = vld [vmem:[#allocation7 + $0x30] sm:$0xff] }
 0x2c1   : > { %v6609_v46 = vadd.f32 %v1396_v16, %v1200_v32  ;;  %v6623_v16 = vld [vmem:[#allocation7 + $0x20] sm:$0xff]  ;;  %v6625_v32 = vld [vmem:[#allocation7 + $0x28] sm:$0xff]  ;;  %8522 = vst [vmem:[#allocation43_spill] sm:$0xff] %v6634_v51  ;;  %vm8349_vm0 = vcmp.eq.f32.partialorder %v6634_v51, 0.0 }
 0x2c2   : > { %8520 = vst [vmem:[#allocation41_spill] sm:$0xff] %v6623_v16  ;;  %8521 = vst [vmem:[#allocation42_spill] sm:$0xff] %v6625_v32  ;;  %vm8343_vm14 = vcmp.eq.f32.partialorder %v6623_v16, 0.0  ;;  %vm8342_vm15 = vcmp.eq.f32.partialorder %v6625_v32, 0.0  ;;  %v6668_v32 = vld [vmem:[#allocation7 + $0x58] sm:$0xff] }
 0x2c3   : > { %1473 = vmax.xlane.f32.xlu0 %v6609_v46  ;;  %v1408_v48 = vpop.permute.xlu1 %1407  ;;  %v1205_v55 = vsel %vm8342_vm15, -1e+09, %v1156_v62  ;;  %8527 = vst [vmem:[#allocation48_spill] sm:$0xff] %v6668_v32 }
 0x2c4   : > { %v1400_v26 = vpop.permute.xlu0 %1399  ;;  %v6632_v28 = vadd.f32 %v1408_v48, %v1203_v31  ;;  %v6648_v31 = vld [vmem:[#allocation7 + $0x40] sm:$0xff] }
 0x2c5   : > { %v6621_v39 = vadd.f32 %v1400_v26, %v1201_v8  ;;  %v6637_v26 = vld [vmem:[#allocation7 + $0x38] sm:$0xff]  ;;  %v1204_v8 = vsel %vm8343_vm14, -1e+09, %v1153_v59  ;;  %8524 = vst [vmem:[#allocation45_spill] sm:$0xff] %v6648_v31  ;;  %v1206_v59 = vsel %vm8349_vm0, -1e+09, %v4835_v58 }
 0x2c6   : > { %8523 = vst [vmem:[#allocation44_spill] sm:$0xff] %v6637_v26  ;;  %vm8348_vm13 = vcmp.eq.f32.partialorder %v6637_v26, 0.0  ;;  %vm8355_vm15 = vcmp.eq.f32.partialorder %v6648_v31, 0.0  ;;  %vm8354_vm14 = vcmp.eq.f32.partialorder %v6652_v19, 0.0  ;;  %vm8358_vm0 = vcmp.eq.f32.partialorder %v6668_v32, 0.0  ;;  %v6685_v31 = vld [vmem:[#allocation7 + $0x68] sm:$0xff] }
 0x2c7   : > { %1477 = vmax.xlane.f32.xlu0 %v6619_v13  ;;  %1475 = vmax.xlane.f32.xlu1 %v6621_v39  ;;  %v1207_v62 = vsel %vm8348_vm13, -1e+09, %v4836_v61  ;;  %v1208_v58 = vsel %vm8355_vm15, -1e+09, %v1169_v18  ;;  %v1209_v61 = vsel %vm8354_vm14, -1e+09, %v6588_v23 }
 0x2c8   : > { %v1420_v57 = vpop.permute.xlu0 %1419  ;;  %8529 = vst [vmem:[#allocation50_spill] sm:$0xff] %v6685_v31  ;;  %v1211_v23 = vsel %vm8358_vm0, -1e+09, %v6586_v20  ;;  %vm8378_vm15 = vcmp.eq.f32.partialorder %v6685_v31, 0.0  ;;  %v6703_v19 = vld [vmem:[#allocation7 + $0x78] sm:$0xff] }
 0x2c9   : > { %v1424_v4 = vpop.permute.xlu1 %1423  ;;  %8531 = vst [vmem:[#allocation52_spill] sm:$0xff] %v6703_v19  ;;  %v8607_v5 = vld [vmem:[#allocation41_spill] sm:$0xff] }
 0x2cb   : > { %1479 = vmax.xlane.f32.xlu0 %v6632_v28 }
 0x2cc   : > { %v1412_v33 = vpop.permute.xlu0 %1411 }
 0x2cd   : > { %v1416_v34 = vpop.permute.xlu1 %1415  ;;  %v6645_v48 = vadd.f32 %v1412_v33, %v1204_v8  ;;  %v6661_v33 = vadd.f32 %v1420_v57, %v1206_v59 }
 0x2ce   : > { %v6650_v24 = vadd.f32 %v1416_v34, %v1205_v55  ;;  %v6663_v34 = vld [vmem:[#allocation7 + $0x50] sm:$0xff]  ;;  %v6666_v55 = vadd.f32 %v1424_v4, %v1207_v62  ;;  %v6681_v4 = vld [vmem:[#allocation7 + $0x60] sm:$0xff] }
 0x2cf   : > { %1481 = vmax.xlane.f32.xlu1 %v6645_v48  ;;  %8526 = vst [vmem:[#allocation47_spill] sm:$0xff] %v6663_v34  ;;  %vm8359_vm13 = vcmp.eq.f32.partialorder %v6663_v34, 0.0  ;;  %8528 = vst [vmem:[#allocation49_spill] sm:$0xff] %v6681_v4  ;;  %vm8379_vm14 = vcmp.eq.f32.partialorder %v6681_v4, 0.0 }
 0x2d0   : > { %v1436_v16 = vpop.permute.xlu0 %1435  ;;  %1483 = vmax.xlane.f32.xlu0 %v6650_v24  ;;  %v1210_v18 = vsel %vm8359_vm13, -1e+09, %v6584_v63  ;;  %v1212_v63 = vsel %vm8379_vm14, -1e+09, %v6592_v37  ;;  %vm8380_vm13 = vcmp.eq.f32.partialorder %v6703_v19, 0.0 }
 0x2d1   : > { %v1440_v8 = vpop.permute.xlu1 %1439  ;;  %v1215_v31 = vsel %vm8380_vm13, -1e+09, %v6594_v42 }
 0x2d3   : > { %1485 = vmax.xlane.f32.xlu1 %v6661_v33 }
 0x2d4   : > { %v1428_v26 = vpop.permute.xlu0 %1427  ;;  %1487 = vmax.xlane.f32.xlu0 %v6666_v55 }
 0x2d5   : > { %v1432_v57 = vpop.permute.xlu1 %1431  ;;  %v6678_v59 = vadd.f32 %v1428_v26, %v1208_v58  ;;  %v6696_v58 = vadd.f32 %v1436_v16, %v1210_v18  ;;  %v1213_v16 = vsel %vm8378_vm15, -1e+09, %v6596_v35  ;;  %vm8532_vm15 = vcmask 261120  }
 0x2d6   : > { %v6683_v62 = vadd.f32 %v1432_v57, %v1209_v61  ;;  %v6698_v61 = vld [vmem:[#allocation7 + $0x70] sm:$0xff]  ;;  %v6701_v57 = vadd.f32 %v1440_v8, %v1211_v23  ;;  %vm8533_vm14 = vmmov %vm8532_vm15 }
 0x2d7   : > { %1489 = vmax.xlane.f32.xlu1 %v6678_v59  ;;  %8530 = vst [vmem:[#allocation51_spill] sm:$0xff] %v6698_v61  ;;  %vm8381_vm0 = vcmp.eq.f32.partialorder %v6698_v61, 0.0  ;;  %vm8535_vm13 = vmmov %vm8533_vm14 }
 0x2d8   : > { %v1452_v51 = vpop.permute.xlu0 %1451  ;;  %1491 = vmax.xlane.f32.xlu0 %v6683_v62  ;;  %v1214_v37 = vsel %vm8381_vm0, -1e+09, %v6590_v36  ;;  %vm8539_vm0 = vmmov %vm8535_vm13 }
 0x2d9   : > { %v1456_v26 = vpop.permute.xlu1 %1455  ;;  %v6727_v35 = vadd.f32 %v1452_v51, %v1214_v37  ;;  %vm8543_vm12 = vmmov %vm8539_vm0 }
 0x2da   : > { %vm8552_vm11 = vmmov %vm8539_vm0 }
 0x2db   : > { %1493 = vmax.xlane.f32.xlu1 %v6696_v58  ;;  %vm8553_vm10 = vmmov %vm8539_vm0 }
 0x2dc   : > { %v1444_v20 = vpop.permute.xlu0 %1443  ;;  %1495 = vmax.xlane.f32.xlu0 %v6701_v57  ;;  %vm8555_vm9 = vmmov %vm8539_vm0 }
 0x2dd   : > { %v1448_v18 = vpop.permute.xlu1 %1447  ;;  %v6714_v8 = vadd.f32 %v1444_v20, %v1212_v63  ;;  %v6729_v63 = vadd.f32 %v1456_v26, %v1215_v31  ;;  %vm8563_vm8 = vmmov %vm8539_vm0 }
 0x2de   : > { %v6717_v23 = vadd.f32 %v1448_v18, %v1213_v16  ;;  %vm8564_vm7 = vmmov %vm8539_vm0 }
 0x2df   : > { %1497 = vmax.xlane.f32.xlu1 %v6714_v8 }
 0x2e0   : > { %1499 = vmax.xlane.f32.xlu0 %v6717_v23 }
 0x2e3   : > { %1501 = vmax.xlane.f32.xlu1 %v6727_v35 }
 0x2e4   : > { %1503 = vmax.xlane.f32.xlu0 %v6729_v63 }
 0x350   : > { %v1474_v20 = vpop.xlane.xlu0 %1473 }
 0x351   : > { %v1505_v16 = vsub.f32 %v6609_v46, %v1474_v20 }
 0x353   : > { %v1521_v18 = vmul.f32 1.442695, %v1505_v16 }
 0x354   : > { %v1478_v4 = vpop.xlane.xlu0 %1477  ;;  %v1476_v36 = vpop.xlane.xlu1 %1475 }
 0x355   : > { %5430 = vpow2.f32 %v1521_v18  ;;  %v1507_v61 = vsub.f32 %v6619_v13, %v1478_v4  ;;  %v1506_v19 = vsub.f32 %v6621_v39, %v1476_v36 }
 0x357   : > { %v1525_v42 = vmul.f32 1.442695, %v1507_v61  ;;  %v1523_v51 = vmul.f32 1.442695, %v1506_v19 }
 0x358   : > { %v1480_v37 = vpop.xlane.xlu0 %1479 }
 0x359   : > { %5432 = vpow2.f32 %v1525_v42  ;;  %v1508_v31 = vsub.f32 %v6632_v28, %v1480_v37 }
 0x35a   : > { %5434 = vpow2.f32 %v1523_v51 }
 0x35b   : > { %v1527_v26 = vmul.f32 1.442695, %v1508_v31 }
 0x35c   : > { %v1482_v32 = vpop.xlane.xlu1 %1481 }
 0x35d   : > { %5436 = vpow2.f32 %v1527_v26  ;;  %v1484_v34 = vpop.xlane.xlu0 %1483  ;;  %v1509_v13 = vsub.f32 %v6645_v48, %v1482_v32 }
 0x35e   : > { %v1510_v46 = vsub.f32 %v6650_v24, %v1484_v34 }
 0x35f   : > { %v6738_v20 = vpop.eup %5430  ;;  %v1529_v42 = vmul.f32 1.442695, %v1509_v13 }
 0x360   : > { %v1531_v16 = vmul.f32 1.442695, %v1510_v46  ;;  %v1486_v18 = vpop.xlane.xlu1 %1485  ;;  %1553 = vadd.xlane.f32.xlu1 %v6738_v20 }
 0x361   : > { %v1511_v19 = vsub.f32 %v6661_v33, %v1486_v18  ;;  %v1488_v39 = vpop.xlane.xlu0 %1487 }
 0x362   : > { %5438 = vpow2.f32 %v1531_v16  ;;  %v1512_v28 = vsub.f32 %v6666_v55, %v1488_v39 }
 0x363   : > { %v6744_v4 = vpop.eup %5432  ;;  %v1533_v61 = vmul.f32 1.442695, %v1511_v19 }
 0x364   : > { %v6746_v36 = vpop.eup %5434  ;;  %v1535_v24 = vmul.f32 1.442695, %v1512_v28  ;;  %v1490_v34 = vpop.xlane.xlu1 %1489  ;;  %1557 = vadd.xlane.f32.xlu1 %v6744_v4 }
 0x365   : > { %5440 = vpow2.f32 %v1533_v61  ;;  %1555 = vadd.xlane.f32.xlu0 %v6746_v36  ;;  %v1492_v32 = vpop.xlane.xlu0 %1491  ;;  %v1513_v37 = vsub.f32 %v6678_v59, %v1490_v34 }
 0x366   : > { %5442 = vpow2.f32 %v1535_v24  ;;  %v1514_v48 = vsub.f32 %v6683_v62, %v1492_v32 }
 0x367   : > { %v6751_v33 = vpop.eup %5436  ;;  %5444 = vpow2.f32 %v1529_v42  ;;  %v1537_v19 = vmul.f32 1.442695, %v1513_v37 }
 0x368   : > { %v1539_v55 = vmul.f32 1.442695, %v1514_v48  ;;  %v1494_v51 = vpop.xlane.xlu1 %1493 }
 0x369   : > { %v1515_v31 = vsub.f32 %v6696_v58, %v1494_v51  ;;  %1559 = vadd.xlane.f32.xlu0 %v6751_v33  ;;  %v1496_v26 = vpop.xlane.xlu0 %1495 }
 0x36a   : > { %5446 = vpow2.f32 %v1539_v55  ;;  %v1516_v46 = vsub.f32 %v6701_v57, %v1496_v26 }
 0x36b   : > { %v1541_v16 = vmul.f32 1.442695, %v1515_v31 }
 0x36c   : > { %v6757_v18 = vpop.eup %5438  ;;  %v1543_v13 = vmul.f32 1.442695, %v1516_v46  ;;  %v1498_v62 = vpop.xlane.xlu1 %1497 }
 0x36d   : > { %5448 = vpow2.f32 %v1541_v16  ;;  %1563 = vadd.xlane.f32.xlu0 %v6757_v18  ;;  %v1500_v39 = vpop.xlane.xlu0 %1499  ;;  %v1517_v24 = vsub.f32 %v6714_v8, %v1498_v62 }
 0x36e   : > { %5450 = vpow2.f32 %v1543_v13  ;;  %v1518_v59 = vsub.f32 %v6717_v23, %v1500_v39 }
 0x36f   : > { %v6761_v58 = vpop.eup %5440  ;;  %5452 = vpow2.f32 %v1537_v19  ;;  %v1545_v37 = vmul.f32 1.442695, %v1517_v24 }
 0x370   : > { %v6763_v28 = vpop.eup %5442  ;;  %v1547_v61 = vmul.f32 1.442695, %v1518_v59  ;;  %1565 = vadd.xlane.f32.xlu1 %v6761_v58  ;;  %v1502_v57 = vpop.xlane.xlu1 %1501 }
 0x371   : > { %v1519_v34 = vsub.f32 %v6727_v35, %v1502_v57  ;;  %1567 = vadd.xlane.f32.xlu0 %v6763_v28  ;;  %v1504_v42 = vpop.xlane.xlu0 %1503  ;;  %v6770_v23 = vpop.eup %5444 }
 0x372   : > { %5454 = vpow2.f32 %v1547_v61  ;;  %v1520_v32 = vsub.f32 %v6729_v63, %v1504_v42 }
 0x373   : > { %v1549_v48 = vmul.f32 1.442695, %v1519_v34 }
 0x374   : > { %v6772_v55 = vpop.eup %5446  ;;  %v1551_v51 = vmul.f32 1.442695, %v1520_v32  ;;  %1561 = vadd.xlane.f32.xlu1 %v6770_v23 }
 0x375   : > { %5456 = vpow2.f32 %v1549_v48  ;;  %1571 = vadd.xlane.f32.xlu0 %v6772_v55 }
 0x376   : > { %5458 = vpow2.f32 %v1551_v51 }
 0x377   : > { %v6776_v8 = vpop.eup %5448  ;;  %5460 = vpow2.f32 %v1545_v37 }
 0x378   : > { %v6778_v35 = vpop.eup %5450  ;;  %1573 = vadd.xlane.f32.xlu1 %v6776_v8 }
 0x379   : > { %1575 = vadd.xlane.f32.xlu0 %v6778_v35  ;;  %v6782_v63 = vpop.eup %5452 }
 0x37c   : > { %v6784_v31 = vpop.eup %5454  ;;  %1569 = vadd.xlane.f32.xlu1 %v6782_v63 }
 0x37d   : > { %1579 = vadd.xlane.f32.xlu0 %v6784_v31 }
 0x37f   : > { %v6788_v26 = vpop.eup %5456 }
 0x380   : > { %v6790_v46 = vpop.eup %5458  ;;  %1581 = vadd.xlane.f32.xlu1 %v6788_v26 }
 0x381   : > { %1583 = vadd.xlane.f32.xlu0 %v6790_v46  ;;  %v6794_v16 = vpop.eup %5460 }
 0x384   : > { %1577 = vadd.xlane.f32.xlu1 %v6794_v16 }
 0x395   : > { %1770 = vrot.lane.b32.xlu1 %v6269_v52, %s8374_s15 }
 0x397   : > { %1746 = vrot.lane.b32.xlu0 %v6271_v53, %s8374_s15 }
 0x399   : > { %1748 = vrot.lane.b32.xlu1 %v6266_v50, %s8374_s15 }
 0x39b   : > { %1774 = vrot.lane.b32.xlu0 %v6319_v43, %s8374_s15 }
 0x39d   : > { %1772 = vrot.lane.b32.xlu1 %v6295_v14, %s8374_s15 }
 0x39f   : > { %1778 = vrot.lane.b32.xlu0 %v6361_v29, %s8374_s15 }
 0x3a1   : > { %1776 = vrot.lane.b32.xlu1 %v6343_v9, %s8374_s15 }
 0x3a3   : > { %1750 = vrot.lane.b32.xlu0 %v6297_v15, %s8374_s15 }
 0x3a5   : > { %1780 = vrot.lane.b32.xlu1 %v6373_v49, %s8374_s15 }
 0x3a7   : > { %1782 = vrot.lane.b32.xlu0 %v6385_v3, %s8374_s15 }
 0x3a9   : > { %1752 = vrot.lane.b32.xlu1 %v6292_v11, %s8374_s15 }
 0x3ab   : > { %1756 = vrot.lane.b32.xlu0 %v6316_v41, %s8374_s15 }
 0x3ad   : > { %1754 = vrot.lane.b32.xlu1 %v6321_v44, %s8374_s15 }
 0x3af   : > { %1758 = vrot.lane.b32.xlu0 %v6345_v10, %s8374_s15 }
 0x3b1   : > { %1784 = vrot.lane.b32.xlu1 %v6397_v27, %s8374_s15 }
 0x3b5   : > { %1760 = vrot.lane.b32.xlu1 %v6340_v6, %s8374_s15 }
 0x3b9   : > { %2300 = vrot.lane.b32.xlu1 %v6273_v54, %s8374_s15  ;;  %s8588_s15 = smov 353  }
 0x3ed   : > { %v1554_v13 = vpop.xlane.xlu1 %1553 }
 0x3ee   : > { %5462 = vrcp.f32 %v1554_v13 }
 0x3f1   : > { %v1558_v62 = vpop.xlane.xlu1 %1557 }
 0x3f2   : > { %v1556_v19 = vpop.xlane.xlu0 %1555 }
 0x3f3   : > { %5464 = vrcp.f32 %v1556_v19 }
 0x3f4   : > { %5466 = vrcp.f32 %v1558_v62 }
 0x3f6   : > { %v1560_v39 = vpop.xlane.xlu0 %1559 }
 0x3f7   : > { %5468 = vrcp.f32 %v1560_v39 }
 0x3f8   : > { %v5463_v61 = vpop.eup %5462 }
 0x3f9   : > { %v1601_v42 = vmul.f32 %v5463_v61, %v6738_v20 }
 0x3fa   : > { %v1564_v59 = vpop.xlane.xlu0 %1563 }
 0x3fd   : > { %v5465_v57 = vpop.eup %5464  ;;  %v1566_v24 = vpop.xlane.xlu1 %1565 }
 0x3fe   : > { %5470 = vrcp.f32 %v1566_v24  ;;  %v1568_v34 = vpop.xlane.xlu0 %1567  ;;  %v1602_v32 = vmul.f32 %v5465_v57, %v6746_v36  ;;  %v5467_v48 = vpop.eup %5466 }
 0x3ff   : > { %5472 = vrcp.f32 %v1568_v34  ;;  %v1603_v62 = vmul.f32 %v5467_v48, %v6744_v4 }
 0x400   : > { %5474 = vrcp.f32 %v1564_v59  ;;  %v1617_v51 = vpack.c.bf16 %v1602_v32, %v1601_v42  ;;  %v6839_v59 = vld [vmem:[%s8279_s6 + $0x8] sm:$0xff]  }
 0x401   : > { %v5469_v37 = vpop.eup %5468  ;;  %v1562_v13 = vpop.xlane.xlu1 %1561 }
 0x402   : > { %v1604_v19 = vmul.f32 %v5469_v37, %v6751_v33  ;;  %5476 = vrcp.f32 %v1562_v13  ;;  %4893 = vmatprep.mubr.bf16.mxu0 %v1617_v51  ;;  %v1572_v39 = vpop.xlane.xlu0 %1571 }
 0x404   : > { %v1618_v54 = vpack.c.bf16 %v1604_v19, %v1603_v62 }
 0x405   : > { %v1574_v24 = vpop.xlane.xlu1 %1573 }
 0x406   : > { %5478 = vrcp.f32 %v1574_v24  ;;  %4894 = vmatmul.mubr.bf16.vlgmr.msra.gmra.mrb[32].mxu0 %v1618_v54  ;;  %v1576_v20 = vpop.xlane.xlu0 %1575 }
 0x407   : > { %4942 = vmatpush3.bf16.xpose.msra.mxu0 %v6159_v45  ;;  %5480 = vrcp.f32 %v1576_v20 }
 0x408   : > { %v5471_v36 = vpop.eup %5470  ;;  %5482 = vrcp.f32 %v1572_v39  ;;  %5270 = vmatprep.subr.msk.bf16.mxu0 %vm8532_vm15, %v6839_v59 }
 0x409   : > { %v5473_v4 = vpop.eup %5472  ;;  %v1570_v33 = vpop.xlane.xlu1 %1569  ;;  %v1607_v34 = vmul.f32 %v5471_v36, %v6761_v58  ;;  %v6851_v58 = vld [vmem:[%s8279_s6 + $0x10] sm:$0xff]  }
 0x40a   : > { %v5475_v61 = vpop.eup %5474  ;;  %5484 = vrcp.f32 %v1570_v33  ;;  %v1580_v57 = vpop.xlane.xlu0 %1579  ;;  %v1608_v42 = vmul.f32 %v5473_v4, %v6763_v28 }
 0x40b   : > { %v1606_v51 = vmul.f32 %v5475_v61, %v6757_v18 }
 0x40c   : > { %v5477_v54 = vpop.eup %5476  ;;  %v1620_v19 = vpack.c.bf16 %v1608_v42, %v1607_v34 }
 0x40d   : > { %v1582_v32 = vpop.xlane.xlu1 %1581  ;;  %v1605_v48 = vmul.f32 %v5477_v54, %v6770_v23 }
 0x40e   : > { %5486 = vrcp.f32 %v1582_v32  ;;  %v1584_v37 = vpop.xlane.xlu0 %1583 }
 0x40f   : > { %4944 = vmatpush3.bf16.xpose.msra.mxu0 %v6174_v56  ;;  %5488 = vrcp.f32 %v1584_v37  ;;  %v1619_v13 = vpack.c.bf16 %v1606_v51, %v1605_v48 }
 0x410   : > { %v5479_v62 = vpop.eup %5478  ;;  %5490 = vrcp.f32 %v1580_v57  ;;  %5271 = vmatprep.subr.msk.bf16.mxu0 %vm8532_vm15, %v6851_v58  ;;  %vm8534_vm15 = vmmov %vm8533_vm14 }
 0x411   : > { %v5481_v28 = vpop.eup %5480  ;;  %v1578_v23 = vpop.xlane.xlu1 %1577  ;;  %4897 = vmatprep.mubr.bf16.mxu0 %v1619_v13  ;;  %v1611_v20 = vmul.f32 %v5479_v62, %v6776_v8  ;;  %v6866_v8 = vld [vmem:[%s8279_s6 + $0x18] sm:$0xff]  }
 0x412   : > { %v5483_v18 = vpop.eup %5482  ;;  %5492 = vrcp.f32 %v1578_v23  ;;  %4898 = vmatmul.mubr.bf16.gmra.mrb[36].mxu0 %v1620_v19  ;;  %v1747_v39 = vpop.permute.xlu0 %1746  ;;  %v1612_v36 = vmul.f32 %v5481_v28, %v6778_v35 }
 0x413   : > { %4925 = vmatprep.mubr.msk.bf16.mxu1 %vm8533_vm14, %v1747_v39  ;;  %v1610_v61 = vmul.f32 %v5483_v18, %v6772_v55  ;;  %vm8536_vm14 = vmmov %vm8535_vm13 }
 0x414   : > { %v5485_v24 = vpop.eup %5484  ;;  %v1622_v42 = vpack.c.bf16 %v1612_v36, %v1611_v20 }
 0x415   : > { %v1771_v4 = vpop.permute.xlu1 %1770  ;;  %v1609_v33 = vmul.f32 %v5485_v24, %v6782_v63 }
 0x416   : > { %5261 = vmatprep.subr.msk.bf16.mxu1 %vm8534_vm15, %v1771_v4  ;;  %v1811_v57 = vsel %vm8535_vm13, %v1771_v4, 0  ;;  %vm8537_vm15 = vmmov %vm8535_vm13  ;;  %v1775_v28 = vpop.permute.xlu0 %1774 }
 0x417   : > { %4946 = vmatpush3.bf16.xpose.msra.mxu0 %v6187_v2  ;;  %4910 = vmatpush3.bf16.xpose.msra.mxu1 %v1811_v57  ;;  %v1621_v54 = vpack.c.bf16 %v1610_v61, %v1609_v33  ;;  %v6914_v61 = vld [vmem:[%s8279_s6 + $0x38] sm:$0xff]  }
 0x418   : > { %v5487_v34 = vpop.eup %5486  ;;  %5272 = vmatprep.subr.msk.bf16.mxu0 %vm8536_vm14, %v6866_v8  ;;  %vm8538_vm14 = vmmov %vm8535_vm13 }
 0x419   : > { %v5489_v35 = vpop.eup %5488  ;;  %v6870_v55 = vpop.permute.xlu1 %1748  ;;  %4901 = vmatprep.mubr.bf16.mxu0 %v1621_v54  ;;  %v1615_v48 = vmul.f32 %v5487_v34, %v6788_v26  ;;  %v6883_v26 = vld [vmem:[%s8279_s6 + $0x20] sm:$0xff]  }
 0x41a   : > { %v5491_v63 = vpop.eup %5490  ;;  %4902 = vmatmul.mubr.bf16.gmra.mrb[40].mxu0 %v1622_v42  ;;  %v1616_v51 = vmul.f32 %v5489_v35, %v6790_v46  ;;  %v1779_v20 = vpop.permute.xlu0 %1778 }
 0x41b   : > { %v1614_v62 = vmul.f32 %v5491_v63, %v6784_v31 }
 0x41c   : > { %v5493_v32 = vpop.eup %5492  ;;  %v1624_v18 = vpack.c.bf16 %v1616_v51, %v1615_v48 }
 0x41d   : > { %v1773_v37 = vpop.permute.xlu1 %1772  ;;  %v1613_v13 = vmul.f32 %v5493_v32, %v6794_v16  ;;  %v6894_v16 = vld [vmem:[%s8279_s6 + $0x28] sm:$0xff]  }
 0x41e   : > { %5262 = vmatprep.subr.msk.bf16.mxu1 %vm8535_vm13, %v1773_v37  ;;  %v1814_v19 = vsel %vm8537_vm15, %v1773_v37, 0  ;;  %vm8540_vm13 = vmmov %vm8539_vm0  ;;  %v1751_v57 = vpop.permute.xlu0 %1750 }
 0x41f   : > { %4948 = vmatpush3.bf16.xpose.msra.mxu0 %v6198_v7  ;;  %4912 = vmatpush3.bf16.xpose.msra.mxu1 %v1814_v19  ;;  %v1623_v23 = vpack.c.bf16 %v1614_v62, %v1613_v13  ;;  %vm8541_vm15 = vmmov %vm8539_vm0 }
 0x420   : > { %5263 = vmatprep.subr.msk.bf16.mxu1 %vm8538_vm14, %v1775_v28  ;;  %5273 = vmatprep.subr.msk.bf16.mxu0 %vm8539_vm0, %v6883_v26  ;;  %v1817_v31 = vsel %vm8541_vm15, %v1775_v28, 0  ;;  %vm8542_vm14 = vmmov %vm8539_vm0 }
 0x421   : > { %4905 = vmatprep.mubr.bf16.mxu0 %v1623_v23  ;;  %v1777_v46 = vpop.permute.xlu1 %1776  ;;  %vm8545_vm15 = vmmov %vm8539_vm0 }
 0x422   : > { %4906 = vmatmul.mubr.bf16.gmra.mrb[44].mxu0 %v1624_v18  ;;  %v1820_v24 = vsel %vm8539_vm0, %v1777_v46, 0  ;;  %v1783_v42 = vpop.permute.xlu0 %1782 }
 0x423   : > { %4957 = vmatprep.mubr.msk.bf16.mxu0 %vm8540_vm13, %v1747_v39  ;;  %vm8544_vm13 = vmmov %vm8539_vm0  ;;  %v6904_v39 = vld [vmem:[%s8279_s6 + $0x30] sm:$0xff]  }
 0x425   : > { %v1781_v36 = vpop.permute.xlu1 %1780 }
 0x426   : > { %v1757_v37 = vpop.permute.xlu0 %1756 }
 0x427   : > { %4950 = vmatpush3.bf16.xpose.msra.mxu0 %v6209_v12  ;;  %4914 = vmatpush3.bf16.xpose.msra.mxu1 %v1817_v31 }
 0x428   : > { %5264 = vmatprep.subr.msk.bf16.mxu1 %vm8542_vm14, %v1777_v46  ;;  %5274 = vmatprep.subr.msk.bf16.mxu0 %vm8543_vm12, %v6894_v16  ;;  %vm8546_vm14 = vmmov %vm8539_vm0 }
 0x429   : > { %v1823_v4 = vsel %vm8546_vm14, %v1779_v20, 0  ;;  %v1753_v33 = vpop.permute.xlu1 %1752  ;;  %vm8547_vm12 = vmmov %vm8539_vm0 }
 0x42a   : > { %vm8550_vm14 = vmmov %vm8539_vm0  ;;  %v1759_v13 = vpop.permute.xlu0 %1758 }
 0x42d   : > { %v1755_v54 = vpop.permute.xlu1 %1754 }
 0x42f   : > { %4952 = vmatpush3.bf16.xpose.msra.mxu0 %v6220_v17  ;;  %4916 = vmatpush3.bf16.xpose.msra.mxu1 %v1820_v24 }
 0x430   : > { %5265 = vmatprep.subr.msk.bf16.mxu1 %vm8544_vm13, %v1779_v20  ;;  %5275 = vmatprep.subr.msk.bf16.mxu0 %vm8545_vm15, %v6904_v39  ;;  %vm8548_vm13 = vmmov %vm8539_vm0 }
 0x431   : > { %v1826_v34 = vsel %vm8548_vm13, %v1781_v36, 0  ;;  %vm8549_vm15 = vmmov %vm8539_vm0  ;;  %v1785_v35 = vpop.permute.xlu1 %1784 }
 0x432   : > { %vm8554_vm13 = vmmov %vm8539_vm0 }
 0x433   : > { %v1832_v48 = vsel %vm8554_vm13, %v1785_v35, 0  ;;  %vm8561_vm13 = vmmov %vm8539_vm0 }
 0x435   : > { %v1761_v32 = vpop.permute.xlu1 %1760 }
 0x437   : > { %4954 = vmatpush3.bf16.xpose.msra.mxu0 %v6231_v22  ;;  %4918 = vmatpush3.bf16.xpose.msra.mxu1 %v1823_v4 }
 0x438   : > { %5266 = vmatprep.subr.msk.bf16.mxu1 %vm8547_vm12, %v1781_v36  ;;  %5276 = vmatprep.subr.msk.bf16.mxu0 %vm8539_vm0, %v6914_v61  ;;  %vm8551_vm12 = vmmov %vm8539_vm0 }
 0x439   : > { %v1829_v63 = vsel %vm8551_vm12, %v1783_v42, 0  ;;  %v2301_v51 = vpop.permute.xlu1 %2300  ;;  %vm8559_vm12 = vmmov %vm8539_vm0 }
 0x43f   : > { %4956 = vmatpush3.bf16.xpose.msra.mxu0 %v6239_v25  ;;  %4920 = vmatpush3.bf16.xpose.msra.mxu1 %v1826_v34 }
 0x440   : > { %5267 = vmatprep.subr.msk.bf16.mxu1 %vm8549_vm15, %v1783_v42  ;;  %vm8556_vm15 = vmmov %vm8539_vm0 }
 0x446   : > { %4958 = vmatmul.mubr.msk.bf16.vlgmr.msra.gmra.mrb[48].mxu0 %vm8550_vm14, %v6870_v55  ;;  %vm8557_vm14 = vmmov %vm8539_vm0 }
 0x447   : > { %4961 = vmatprep.mubr.msk.bf16.mxu0 %vm8552_vm11, %v1751_v57  ;;  %4922 = vmatpush3.bf16.xpose.msra.mxu1 %v1829_v63  ;;  %vm8558_vm11 = vmmov %vm8539_vm0 }
 0x448   : > { %5268 = vmatprep.subr.msk.bf16.mxu1 %vm8539_vm0, %v1785_v35 }
 0x44e   : > { %4962 = vmatmul.mubr.msk.bf16.gmra.mrb[52].mxu0 %vm8553_vm10, %v1753_v33  ;;  %vm8560_vm10 = vmmov %vm8539_vm0 }
 0x44f   : > { %4965 = vmatprep.mubr.msk.bf16.mxu0 %vm8555_vm9, %v1755_v54  ;;  %4924 = vmatpush3.bf16.xpose.msra.mxu1 %v1832_v48  ;;  %vm8562_vm9 = vmmov %vm8539_vm0 }
 0x450   : > { %4973 = vmatprep.subr.bf16.mxu1 %v2301_v51 }
 0x456   : > { %4966 = vmatmul.mubr.msk.bf16.gmra.mrb[56].mxu0 %vm8556_vm15, %v1757_v37  ;;  %4926 = vmatmul.mubr.msk.bf16.vlgmr.msra.gmra.mrb[48].mxu1 %vm8557_vm14, %v6870_v55  ;;  %vm8565_vm15 = vmmov %vm8539_vm0 }
 0x457   : > { %4969 = vmatprep.mubr.msk.bf16.mxu0 %vm8558_vm11, %v1759_v13  ;;  %4929 = vmatprep.mubr.msk.bf16.mxu1 %vm8559_vm12, %v1751_v57  ;;  %vm8566_vm14 = vmmov %vm8539_vm0 }
 0x458   : > { %4974 = vmatpush3.bf16.msra.mxu1 %v2301_v51  ;;  %vm8567_vm11 = vmmov %vm8539_vm0 }
 0x459   : > { %vm8570_vm12 = vmmov %vm8539_vm0 }
 0x45e   : > { %4970 = vmatmul.mubr.msk.bf16.gmra.mrb[60].mxu0 %vm8560_vm10, %v1761_v32  ;;  %4930 = vmatmul.mubr.msk.bf16.gmra.mrb[52].mxu1 %vm8539_vm0, %v1753_v33  ;;  %vm8571_vm10 = vmmov %vm8539_vm0 }
 0x45f   : > { %4933 = vmatprep.mubr.msk.bf16.mxu1 %vm8561_vm13, %v1755_v54  ;;  %vm8572_vm13 = vnez %v8487_v38 }
 0x466   : > { %4934 = vmatmul.mubr.msk.bf16.gmra.mrb[56].mxu1 %vm8562_vm9, %v1757_v37  ;;  %vm8573_vm9 = vnez %v8490_v0  ;;  %v8596_v0 = vld [vmem:[#allocation39_spill] sm:$0xff] }
 0x467   : > { %4937 = vmatprep.mubr.msk.bf16.mxu1 %vm8563_vm8, %v1759_v13  ;;  %vm8568_vm8 = vmmov %vm8539_vm0 }
 0x46e   : > { %4938 = vmatmul.mubr.msk.bf16.gmra.mrb[60].mxu1 %vm8564_vm7, %v1761_v32  ;;  %vm8569_vm7 = vmmov %vm8539_vm0 }
 0x4d9   : > { %v4895_v62 = vpop.f32.mrb[32].mxu0 }
 0x4da   : > { %v1659_v19 = vpop.f32.mrb[33].mxu0 }
 0x4db   : > { %v4896_v55 = vpop.f32.mrb[34].mxu0 }
 0x4dc   : > { %v1723_v28 = vpack.c.bf16 %v4896_v55, %v4895_v62  ;;  %v1662_v23 = vpop.f32.mrb[35].mxu0 }
 0x4dd   : > { %v1722_v18 = vpack.c.bf16 %v1662_v23, %v1659_v19 }
 0x4de   : > { %1731 = vst.msk [vmem:[#allocation2 + $0x8] sm:$0xff] %vm8565_vm15, %v1723_v28  ;;  %vm8574_vm15 = vnez %v8493_v1 }
 0x4df   : > { %1730 = vst.msk [vmem:[#allocation2] sm:$0xff] %vm8566_vm14, %v1722_v18 }
 0x4e5   : > { %v4899_v31 = vpop.f32.mrb[36].mxu0 }
 0x4e6   : > { %v1675_v46 = vpop.f32.mrb[37].mxu0 }
 0x4e7   : > { %v4900_v24 = vpop.f32.mrb[38].mxu0 }
 0x4e8   : > { %v1725_v20 = vpack.c.bf16 %v4900_v24, %v4899_v31  ;;  %v1678_v36 = vpop.f32.mrb[39].mxu0 }
 0x4e9   : > { %v1724_v4 = vpack.c.bf16 %v1678_v36, %v1675_v46 }
 0x4ea   : > { %1733 = vst.msk [vmem:[#allocation2 + $0x18] sm:$0xff] %vm8567_vm11, %v1725_v20 }
 0x4eb   : > { %1732 = vst.msk [vmem:[#allocation2 + $0x10] sm:$0xff] %vm8568_vm8, %v1724_v4 }
 0x4ed   : > { %v4903_v33 = vpop.f32.mrb[40].mxu0 }
 0x4ee   : > { %v1691_v57 = vpop.f32.mrb[41].mxu0 }
 0x4ef   : > { %v4904_v54 = vpop.f32.mrb[42].mxu0 }
 0x4f0   : > { %v1727_v34 = vpack.c.bf16 %v4904_v54, %v4903_v33  ;;  %v1694_v42 = vpop.f32.mrb[43].mxu0 }
 0x4f1   : > { %v1726_v35 = vpack.c.bf16 %v1694_v42, %v1691_v57 }
 0x4f2   : > { %1735 = vst.msk [vmem:[#allocation2 + $0x28] sm:$0xff] %vm8569_vm7, %v1727_v34 }
 0x4f3   : > { %1734 = vst.msk [vmem:[#allocation2 + $0x20] sm:$0xff] %vm8570_vm12, %v1726_v35 }
 0x4f5   : > { %v4907_v63 = vpop.f32.mrb[44].mxu0 }
 0x4f6   : > { %v1707_v32 = vpop.f32.mrb[45].mxu0 }
 0x4f7   : > { %v4908_v48 = vpop.f32.mrb[46].mxu0 }
 0x4f8   : > { %v1729_v51 = vpack.c.bf16 %v4908_v48, %v4907_v63  ;;  %v1710_v37 = vpop.f32.mrb[47].mxu0 }
 0x4f9   : > { %v1728_v13 = vpack.c.bf16 %v1710_v37, %v1707_v32 }
 0x4fa   : > { %1737 = vst.msk [vmem:[#allocation2 + $0x38] sm:$0xff] %vm8571_vm10, %v1729_v51 }
 0x4fb   : > { %1736 = vst.msk [vmem:[#allocation2 + $0x30] sm:$0xff] %vm8539_vm0, %v1728_v13  ;;  %v8575_v13 = vld [vmem:[#allocation30_spill] sm:$0xff] }
 0x4fc   : > { %vm8576_vm14 = vnez %v8575_v13 }
 0x519   : > { %v4959_v62 = vpop.f32.mrb[48].mxu0 }
 0x51a   : > { %v2046_v19 = vsel %vm6445_vm1, %v4959_v62, 0.0  ;;  %v1981_v55 = vpop.f32.mrb[49].mxu0 }
 0x51b   : > { %2070 = vrot.lane.b32.xlu0 %v2046_v19, %s5890_s16  ;;  %v4960_v28 = vpop.f32.mrb[50].mxu0  ;;  %v2044_v31 = vsel %vm6451_vm2, %v1981_v55, 0.0 }
 0x51c   : > { %v2047_v23 = vsel %vm6461_vm3, %v4960_v28, 0.0  ;;  %v1984_v18 = vpop.f32.mrb[51].mxu0  ;;  %v8577_v28 = vld [vmem:[#allocation31_spill] sm:$0xff] }
 0x51d   : > { %2074 = vrot.lane.b32.xlu1 %v2047_v23, %s5892_s20  ;;  %v2045_v46 = vsel %vm6470_vm4, %v1984_v18, 0.0  ;;  %vm8578_vm11 = vnez %v8577_v28  ;;  %v8579_v18 = vld [vmem:[#allocation32_spill] sm:$0xff] }
 0x51e   : > { %vm8580_vm8 = vnez %v8579_v18 }
 0x51f   : > { %2062 = vrot.lane.b32.xlu0 %v2044_v31, %s5891_s19 }
 0x521   : > { %2066 = vrot.lane.b32.xlu1 %v2045_v46, %s5893_s22  ;;  %v4963_v24 = vpop.f32.mrb[52].mxu0 }
 0x522   : > { %v2050_v20 = vsel %vm6480_vm5, %v4963_v24, 0.0  ;;  %v1997_v36 = vpop.f32.mrb[53].mxu0 }
 0x523   : > { %2086 = vrot.lane.b32.xlu0 %v2050_v20, %s8444_s23  ;;  %v4964_v4 = vpop.f32.mrb[54].mxu0  ;;  %v2048_v54 = vsel %vm8572_vm13, %v1997_v36, 0.0  ;;  %v8581_v20 = vld [vmem:[#allocation33_spill] sm:$0xff] }
 0x524   : > { %v2051_v33 = vsel %vm6487_vm6, %v4964_v4, 0.0  ;;  %v2000_v57 = vpop.f32.mrb[55].mxu0  ;;  %vm8582_vm7 = vnez %v8581_v20 }
 0x525   : > { %2090 = vrot.lane.b32.xlu1 %v2051_v33, %s8441_s27  ;;  %v2049_v34 = vsel %vm8573_vm9, %v2000_v57, 0.0 }
 0x527   : > { %2078 = vrot.lane.b32.xlu0 %v2048_v54, %s8442_s4 }
 0x529   : > { %2082 = vrot.lane.b32.xlu1 %v2049_v34, %s8443_s30  ;;  %v4967_v42 = vpop.f32.mrb[56].mxu0  ;;  %v4927_v35 = vpop.f32.mrb[48].mxu1  ;;  %v8583_v34 = vld [vmem:[#allocation34_spill] sm:$0xff] }
 0x52a   : > { %v2054_v63 = vsel %vm8574_vm15, %v4967_v42, 0.0  ;;  %v2013_v32 = vpop.f32.mrb[57].mxu0  ;;  %v1868_v48 = vpop.f32.mrb[49].mxu1  ;;  %vm8584_vm12 = vnez %v8583_v34 }
 0x52b   : > { %2102 = vrot.lane.b32.xlu0 %v2054_v63, %s8440_s26  ;;  %v4968_v51 = vpop.f32.mrb[58].mxu0  ;;  %v4928_v37 = vpop.f32.mrb[50].mxu1  ;;  %v2052_v23 = vsel %vm8578_vm11, %v2013_v32, 0.0 }
 0x52c   : > { %v2055_v62 = vsel %vm8576_vm14, %v4968_v51, 0.0  ;;  %v2016_v19 = vpop.f32.mrb[59].mxu0  ;;  %v1871_v55 = vpop.f32.mrb[51].mxu1  ;;  %v8586_v51 = vld [vmem:[#allocation35_spill] sm:$0xff] }
 0x52d   : > { %2106 = vrot.lane.b32.xlu1 %v2055_v62, %s8436_s28  ;;  %v2053_v31 = vsel %vm8580_vm8, %v2016_v19, 0.0  ;;  %vm8587_vm10 = vnez %v8586_v51  ;;  %v8589_v19 = vld [vmem:[#allocation36_spill] sm:$0xff] }
 0x52e   : > { %vm8590_vm0 = vnez %v8589_v19 }
 0x52f   : > { %2094 = vrot.lane.b32.xlu0 %v2052_v23, %s8437_s18 }
 0x531   : > { %2098 = vrot.lane.b32.xlu1 %v2053_v31, %s8418_s24  ;;  %v4971_v46 = vpop.f32.mrb[60].mxu0  ;;  %v4931_v24 = vpop.f32.mrb[52].mxu1  ;;  %s8698_s24 = smov 329  }
 0x532   : > { %v2058_v36 = vsel %vm8582_vm7, %v4971_v46, 0.0  ;;  %v2029_v4 = vpop.f32.mrb[61].mxu0  ;;  %v1884_v33 = vpop.f32.mrb[53].mxu1 }
 0x533   : > { %2118 = vrot.lane.b32.xlu0 %v2058_v36, %s8414_s21  ;;  %v4972_v57 = vpop.f32.mrb[62].mxu0  ;;  %v4932_v54 = vpop.f32.mrb[54].mxu1  ;;  %v2056_v62 = vsel %vm8587_vm10, %v2029_v4, 0.0  ;;  %vm8597_vm10 = vcmp.eq.f32.partialorder %v8596_v0, 0.0  ;;  %s8416_s21 = smov 64  }
 0x534   : > { %v2059_v42 = vsel %vm8584_vm12, %v4972_v57, 0.0  ;;  %v2032_v63 = vpop.f32.mrb[63].mxu0  ;;  %v1887_v32 = vpop.f32.mrb[55].mxu1  ;;  %v1932_v38 = vsel %vm8597_vm10, -1e+09, %v1871_v55 }
 0x535   : > { %2122 = vrot.lane.b32.xlu1 %v2059_v42, %s8585_s29  ;;  %v2057_v23 = vsel %vm8590_vm0, %v2032_v63, 0.0  ;;  %v8592_v42 = vld [vmem:[#allocation38_spill] sm:$0xff]  ;;  %v8594_v63 = vld [vmem:[#allocation37_spill] sm:$0xff] }
 0x536   : > { %vm8593_vm12 = vcmp.eq.f32.partialorder %v8592_v42, 0.0  ;;  %vm8595_vm0 = vcmp.eq.f32.partialorder %v8594_v63, 0.0 }
 0x537   : > { %2110 = vrot.lane.b32.xlu0 %v2056_v62, %s8588_s15  ;;  %v1933_v51 = vsel %vm8593_vm12, -1e+09, %v4927_v35  ;;  %v8598_v35 = vld [vmem:[#allocation40_spill] sm:$0xff] }
 0x538   : > { %vm8599_vm12 = vcmp.eq.f32.partialorder %v8598_v35, 0.0 }
 0x539   : > { %2114 = vrot.lane.b32.xlu1 %v2057_v23, %s8591_s17  ;;  %v4935_v31 = vpop.f32.mrb[56].mxu1  ;;  %v1931_v23 = vsel %vm8595_vm0, -1e+09, %v1868_v48  ;;  %v8601_v48 = vld [vmem:[#allocation16_spill] sm:$0xff] }
 0x53a   : > { %v1900_v46 = vpop.f32.mrb[57].mxu1 }
 0x53b   : > { %v4936_v36 = vpop.f32.mrb[58].mxu1 }
 0x53c   : > { %v1903_v20 = vpop.f32.mrb[59].mxu1 }
 0x541   : > { %v4939_v34 = vpop.f32.mrb[60].mxu1 }
 0x542   : > { %v1916_v57 = vpop.f32.mrb[61].mxu1 }
 0x543   : > { %v4940_v18 = vpop.f32.mrb[62].mxu1 }
 0x544   : > { %v6996_v28 = vpop.f32.mrb[63].mxu1 }
 0x58d   : > { %v2071_v4 = vpop.permute.xlu0 %2070 }
 0x58e   : > { %v7000_v13 = vadd.f32 %v2071_v4, %v1933_v51  ;;  %v1934_v51 = vsel %vm8599_vm12, -1e+09, %v4928_v37  ;;  %vm8608_vm12 = vcmp.eq.f32.partialorder %v8607_v5, 0.0 }
 0x58f   : > { %v2075_v62 = vpop.permute.xlu1 %2074 }
 0x590   : > { %2144 = vmax.xlane.f32.xlu0 %v7000_v13  ;;  %v7015_v4 = vadd.f32 %v2075_v62, %v1934_v51  ;;  %v8605_v62 = vld [vmem:[#allocation44_spill] sm:$0xff] }
 0x591   : > { %v2063_v19 = vpop.permute.xlu0 %2062  ;;  %vm8606_vm0 = vcmp.eq.f32.partialorder %v8605_v62, 0.0 }
 0x592   : > { %v7005_v1 = vadd.f32 %v2063_v19, %v1931_v23  ;;  %v8602_v19 = vld [vmem:[#allocation15_spill] sm:$0xff]  ;;  %v1938_v51 = vsel %vm8606_vm0, -1e+09, %v4932_v54 }
 0x593   : > { %v2067_v30 = vpop.permute.xlu1 %2066  ;;  %v8611_v54 = vld [vmem:[#allocation47_spill] sm:$0xff] }
 0x594   : > { %2140 = vmax.xlane.f32.xlu0 %v7005_v1  ;;  %v7010_v42 = vadd.f32 %v2067_v30, %v1932_v38  ;;  %v8603_v38 = vld [vmem:[#allocation43_spill] sm:$0xff]  ;;  %vm8612_vm0 = vcmp.eq.f32.partialorder %v8611_v54, 0.0 }
 0x595   : > { %v2087_v55 = vpop.permute.xlu0 %2086  ;;  %vm8604_vm10 = vcmp.eq.f32.partialorder %v8603_v38, 0.0  ;;  %v8609_v38 = vld [vmem:[#allocation42_spill] sm:$0xff]  ;;  %v1941_v62 = vsel %vm8612_vm0, -1e+09, %v4935_v31 }
 0x596   : > { %2142 = vmax.xlane.f32.xlu1 %v7010_v42  ;;  %v1937_v35 = vsel %vm8604_vm10, -1e+09, %v4931_v24  ;;  %vm8610_vm10 = vcmp.eq.f32.partialorder %v8609_v38, 0.0  ;;  %v8617_v31 = vld [vmem:[#allocation46_spill] sm:$0xff] }
 0x597   : > { %v2091_v23 = vpop.permute.xlu1 %2090  ;;  %v7024_v63 = vadd.f32 %v2087_v55, %v1937_v35  ;;  %v1936_v24 = vsel %vm8610_vm10, -1e+09, %v1887_v32  ;;  %v8615_v32 = vld [vmem:[#allocation45_spill] sm:$0xff]  ;;  %vm8618_vm0 = vcmp.eq.f32.partialorder %v8617_v31, 0.0 }
 0x598   : > { %2146 = vmax.xlane.f32.xlu0 %v7015_v4  ;;  %vm8616_vm10 = vcmp.eq.f32.partialorder %v8615_v32, 0.0  ;;  %v1940_v54 = vsel %vm8618_vm0, -1e+09, %v1903_v20  ;;  %v8623_v20 = vld [vmem:[#allocation49_spill] sm:$0xff] }
 0x599   : > { %v2079_v0 = vpop.permute.xlu0 %2078  ;;  %v1939_v38 = vsel %vm8616_vm10, -1e+09, %v1900_v46  ;;  %v8621_v46 = vld [vmem:[#allocation52_spill] sm:$0xff]  ;;  %vm8624_vm0 = vcmp.eq.f32.partialorder %v8623_v20, 0.0 }
 0x59a   : > { %vm8622_vm10 = vcmp.eq.f32.partialorder %v8621_v46, 0.0  ;;  %v1943_v31 = vsel %vm8624_vm0, -1e+09, %v1916_v57 }
 0x59b   : > { %v2083_v30 = vpop.permute.xlu1 %2082  ;;  %v1946_v32 = vsel %vm8622_vm10, -1e+09, %v4940_v18  ;;  %vm8633_vm10 = vcmask 261120  }
 0x59c   : > { %v7039_v55 = vadd.f32 %v2083_v30, %v1936_v24  ;;  %vm8634_vm0 = vmmov %vm8633_vm10 }
 0x59d   : > { %v2103_v37 = vpop.permute.xlu0 %2102  ;;  %vm8636_vm7 = vmmov %vm8634_vm0 }
 0x59e   : > { %vm8647_vm8 = vmmov %vm8634_vm0 }
 0x59f   : > { %v2107_v21 = vpop.permute.xlu1 %2106  ;;  %vm8648_vm11 = vmmov %vm8634_vm0 }
 0x5a0   : > { %vm8649_vm14 = vmmov %vm8634_vm0 }
 0x5a1   : > { %v2095_v35 = vpop.permute.xlu0 %2094  ;;  %vm8653_vm15 = vmmov %vm8634_vm0 }
 0x5a2   : > { %v7054_v24 = vadd.f32 %v2095_v35, %v1939_v38 }
 0x5a5   : > { %v2119_v30 = vpop.permute.xlu0 %2118 }
 0x5a7   : > { %2304 = vrot.lane.b32.xlu1 %v8601_v48, %s8600_s14  ;;  %v7029_v48 = vadd.f32 %v2091_v23, %v1938_v51  ;;  %v2099_v23 = vpop.permute.xlu1 %2098  ;;  %v7044_v51 = vadd.f32 %v2103_v37, %v1941_v62 }
 0x5a8   : > { %v7059_v62 = vadd.f32 %v2099_v23, %v1940_v54 }
 0x5a9   : > { %v2111_v38 = vpop.permute.xlu0 %2110 }
 0x5aa   : > { %v7074_v23 = vadd.f32 %v2111_v38, %v1943_v31 }
 0x5ab   : > { %v2123_v37 = vpop.permute.xlu1 %2122 }
 0x5ac   : > { %v7069_v35 = vadd.f32 %v2123_v37, %v1946_v32 }
 0x5ae   : > { %2302 = vrot.lane.b32.xlu0 %v8602_v19, %s8600_s14  ;;  %v1935_v19 = vsel %vm8608_vm12, -1e+09, %v1884_v33  ;;  %v8613_v33 = vld [vmem:[#allocation48_spill] sm:$0xff] }
 0x5af   : > { %v7034_v47 = vadd.f32 %v2079_v0, %v1935_v19  ;;  %vm8614_vm12 = vcmp.eq.f32.partialorder %v8613_v33, 0.0  ;;  %v2115_v54 = vpop.permute.xlu1 %2114 }
 0x5b0   : > { %v1942_v0 = vsel %vm8614_vm12, -1e+09, %v4936_v36  ;;  %v8619_v36 = vld [vmem:[#allocation51_spill] sm:$0xff] }
 0x5b1   : > { %v7049_v19 = vadd.f32 %v2107_v21, %v1942_v0  ;;  %vm8620_vm12 = vcmp.eq.f32.partialorder %v8619_v36, 0.0 }
 0x5b2   : > { %v1945_v21 = vsel %vm8620_vm12, -1e+09, %v4939_v34  ;;  %v8625_v34 = vld [vmem:[#allocation50_spill] sm:$0xff] }
 0x5b3   : > { %v7064_v0 = vadd.f32 %v2119_v30, %v1945_v21  ;;  %vm8626_vm12 = vcmp.eq.f32.partialorder %v8625_v34, 0.0 }
 0x5b4   : > { %v1944_v30 = vsel %vm8626_vm12, -1e+09, %v6996_v28  ;;  %vm8635_vm12 = vmmov %vm8634_vm0 }
 0x5b5   : > { %v7079_v21 = vadd.f32 %v2115_v54, %v1944_v30 }
 0x5cb   : > { %2152 = vmax.xlane.f32.xlu1 %v7024_v63 }
 0x5cd   : > { %2154 = vmax.xlane.f32.xlu0 %v7029_v48 }
 0x5cf   : > { %2148 = vmax.xlane.f32.xlu1 %v7034_v47 }
 0x5d1   : > { %2150 = vmax.xlane.f32.xlu0 %v7039_v55 }
 0x5d3   : > { %2160 = vmax.xlane.f32.xlu1 %v7044_v51 }
 0x5d5   : > { %2162 = vmax.xlane.f32.xlu0 %v7049_v19 }
 0x5d7   : > { %2156 = vmax.xlane.f32.xlu1 %v7054_v24 }
 0x5d9   : > { %2158 = vmax.xlane.f32.xlu0 %v7059_v62 }
 0x5db   : > { %2168 = vmax.xlane.f32.xlu1 %v7064_v0 }
 0x5dd   : > { %2170 = vmax.xlane.f32.xlu0 %v7069_v35 }
 0x5df   : > { %2164 = vmax.xlane.f32.xlu1 %v7074_v23 }
 0x5e1   : > { %2166 = vmax.xlane.f32.xlu0 %v7079_v21 }
 0x61d   : > { %v2145_v18 = vpop.xlane.xlu0 %2144 }
 0x61e   : > { %v2174_v32 = vsub.f32 %v7000_v13, %v2145_v18 }
 0x620   : > { %v2192_v37 = vmul.f32 1.442695, %v2174_v32 }
 0x621   : > { %v2141_v57 = vpop.xlane.xlu0 %2140 }
 0x622   : > { %5494 = vpow2.f32 %v2192_v37  ;;  %v2172_v20 = vsub.f32 %v7005_v1, %v2141_v57 }
 0x623   : > { %v2143_v31 = vpop.xlane.xlu1 %2142 }
 0x624   : > { %v2188_v38 = vmul.f32 1.442695, %v2172_v20  ;;  %v2173_v28 = vsub.f32 %v7010_v42, %v2143_v31  ;;  %v8628_v20 = vld [vmem:[#allocation19_spill] sm:$0xff] }
 0x625   : > { %v2147_v46 = vpop.xlane.xlu0 %2146 }
 0x626   : > { %5496 = vpow2.f32 %v2188_v38  ;;  %v2175_v54 = vsub.f32 %v7015_v4, %v2147_v46  ;;  %v2190_v36 = vmul.f32 1.442695, %v2173_v28  ;;  %v8627_v46 = vld [vmem:[#allocation18_spill] sm:$0xff] }
 0x627   : > { %v2305_v33 = vpop.permute.xlu1 %2304 }
 0x628   : > { %v2194_v30 = vmul.f32 1.442695, %v2175_v54 }
 0x629   : > { %v2303_v34 = vpop.permute.xlu0 %2302 }
 0x62a   : > { %5498 = vpow2.f32 %v2194_v30  ;;  %4975 = vmatprep.subr.bf16.mxu1 %v2303_v34 }
 0x62b   : > { %4976 = vmatpush3.bf16.msra.mxu1 %v2303_v34  ;;  %5500 = vpow2.f32 %v2190_v36  ;;  %v8630_v36 = vld [vmem:[#allocation21_spill] sm:$0xff] }
 0x62c   : > { %v7087_v13 = vpop.eup %5494  ;;  %4977 = vmatprep.subr.bf16.mxu1 %v2305_v33  ;;  %v8631_v34 = vld [vmem:[#allocation17_spill] sm:$0xff] }
 0x62d   : > { %2224 = vadd.xlane.f32.xlu0 %v7087_v13 }
 0x62f   : > { %4978 = vmatpush3.bf16.msra.mxu1 %v2305_v33  ;;  %v8629_v33 = vld [vmem:[#allocation20_spill] sm:$0xff] }
 0x630   : > { %v7090_v1 = vpop.eup %5496 }
 0x631   : > { %2220 = vadd.xlane.f32.xlu1 %v7090_v1 }
 0x634   : > { %v7093_v42 = vpop.eup %5498 }
 0x635   : > { %2226 = vadd.xlane.f32.xlu0 %v7093_v42  ;;  %v7096_v4 = vpop.eup %5500 }
 0x639   : > { %2222 = vadd.xlane.f32.xlu0 %v7096_v4 }
 0x642   : > { %2308 = vrot.lane.b32.xlu1 %v8627_v46, %s8600_s14 }
 0x646   : > { %2310 = vrot.lane.b32.xlu1 %v8628_v20, %s8600_s14 }
 0x64a   : > { %2312 = vrot.lane.b32.xlu1 %v8629_v33, %s8600_s14 }
 0x64e   : > { %2314 = vrot.lane.b32.xlu1 %v8630_v36, %s8600_s14 }
 0x64f   : > { %2306 = vrot.lane.b32.xlu0 %v8631_v34, %s8600_s14 }
 0x658   : > { %v2153_v18 = vpop.xlane.xlu1 %2152 }
 0x659   : > { %v2178_v37 = vsub.f32 %v7024_v63, %v2153_v18 }
 0x65a   : > { %v2155_v32 = vpop.xlane.xlu0 %2154 }
 0x65b   : > { %v2200_v28 = vmul.f32 1.442695, %v2178_v37  ;;  %v2179_v33 = vsub.f32 %v7029_v48, %v2155_v32 }
 0x65c   : > { %v2149_v57 = vpop.xlane.xlu1 %2148 }
 0x65d   : > { %v2176_v31 = vsub.f32 %v7034_v47, %v2149_v57  ;;  %5502 = vpow2.f32 %v2200_v28  ;;  %v2202_v60 = vmul.f32 1.442695, %v2179_v33 }
 0x65e   : > { %v2151_v38 = vpop.xlane.xlu0 %2150 }
 0x65f   : > { %v2177_v54 = vsub.f32 %v7039_v55, %v2151_v38  ;;  %v2196_v20 = vmul.f32 1.442695, %v2176_v31 }
 0x660   : > { %v2161_v30 = vpop.xlane.xlu1 %2160 }
 0x661   : > { %v2198_v36 = vmul.f32 1.442695, %v2177_v54  ;;  %v2182_v34 = vsub.f32 %v7044_v51, %v2161_v30  ;;  %5504 = vpow2.f32 %v2196_v20 }
 0x662   : > { %v2163_v46 = vpop.xlane.xlu0 %2162 }
 0x663   : > { %5506 = vpow2.f32 %v2198_v36  ;;  %v2208_v47 = vmul.f32 1.442695, %v2182_v34  ;;  %v2183_v48 = vsub.f32 %v7049_v19, %v2163_v46 }
 0x664   : > { %v2157_v5 = vpop.xlane.xlu1 %2156  ;;  %5508 = vpow2.f32 %v2202_v60 }
 0x665   : > { %v2180_v63 = vsub.f32 %v7054_v24, %v2157_v5  ;;  %5510 = vpow2.f32 %v2208_v47  ;;  %v2210_v20 = vmul.f32 1.442695, %v2183_v48 }
 0x666   : > { %v2159_v18 = vpop.xlane.xlu0 %2158 }
 0x667   : > { %v2181_v37 = vsub.f32 %v7059_v62, %v2159_v18  ;;  %v2204_v32 = vmul.f32 1.442695, %v2180_v63  ;;  %v7118_v33 = vpop.eup %5502 }
 0x668   : > { %v2169_v55 = vpop.xlane.xlu1 %2168 }
 0x669   : > { %v2206_v31 = vmul.f32 1.442695, %v2181_v37  ;;  %v2186_v51 = vsub.f32 %v7064_v0, %v2169_v55  ;;  %5512 = vpow2.f32 %v2204_v32  ;;  %v8632_v55 = vld [vmem:[#allocation14_spill] sm:$0xff] }
 0x66a   : > { %v2171_v57 = vpop.xlane.xlu0 %2170 }
 0x66b   : > { %5514 = vpow2.f32 %v2206_v31  ;;  %v2216_v60 = vmul.f32 1.442695, %v2186_v51  ;;  %v7123_v62 = vpop.eup %5504 }
 0x66c   : > { %v2165_v38 = vpop.xlane.xlu1 %2164  ;;  %5516 = vpow2.f32 %v2210_v20 }
 0x66d   : > { %v2184_v5 = vsub.f32 %v7074_v23, %v2165_v38  ;;  %v7125_v46 = vpop.eup %5506  ;;  %5518 = vpow2.f32 %v2216_v60  ;;  %v2187_v23 = vsub.f32 %v7069_v35, %v2171_v57 }
 0x66e   : > { %2232 = vadd.xlane.f32.xlu0 %v7118_v33  ;;  %v2167_v24 = vpop.xlane.xlu0 %2166  ;;  %v7130_v34 = vpop.eup %5508 }
 0x66f   : > { %v2185_v19 = vsub.f32 %v7079_v21, %v2167_v24  ;;  %v2212_v0 = vmul.f32 1.442695, %v2184_v5  ;;  %v7132_v28 = vpop.eup %5510  ;;  %v2218_v21 = vmul.f32 1.442695, %v2187_v23 }
 0x671   : > { %v2214_v36 = vmul.f32 1.442695, %v2185_v19  ;;  %5520 = vpow2.f32 %v2212_v0 }
 0x672   : > { %2228 = vadd.xlane.f32.xlu0 %v7123_v62  ;;  %2230 = vadd.xlane.f32.xlu1 %v7125_v46 }
 0x673   : > { %5522 = vpow2.f32 %v2214_v36  ;;  %v7136_v54 = vpop.eup %5512 }
 0x674   : > { %5524 = vpow2.f32 %v2218_v21 }
 0x675   : > { %v7138_v30 = vpop.eup %5514 }
 0x676   : > { %2234 = vadd.xlane.f32.xlu0 %v7130_v34  ;;  %2240 = vadd.xlane.f32.xlu1 %v7132_v28  ;;  %v7142_v35 = vpop.eup %5516 }
 0x677   : > { %v7144_v63 = vpop.eup %5518 }
 0x67a   : > { %2236 = vadd.xlane.f32.xlu1 %v7136_v54  ;;  %2238 = vadd.xlane.f32.xlu0 %v7138_v30 }
 0x67b   : > { %v7148_v18 = vpop.eup %5520 }
 0x67d   : > { %v7150_v47 = vpop.eup %5522 }
 0x67e   : > { %2248 = vadd.xlane.f32.xlu1 %v7144_v63  ;;  %2242 = vadd.xlane.f32.xlu0 %v7142_v35  ;;  %v7154_v37 = vpop.eup %5524 }
 0x682   : > { %2244 = vadd.xlane.f32.xlu1 %v7148_v18  ;;  %2246 = vadd.xlane.f32.xlu0 %v7150_v47 }
 0x686   : > { %2250 = vadd.xlane.f32.xlu0 %v7154_v37 }
 0x693   : > { %2486 = vrot.lane.b32.xlu1 %v6269_v52, %s8416_s21 }
 0x697   : > { %2472 = vrot.lane.b32.xlu1 %v6266_v50, %s8416_s21 }
 0x69b   : > { %2488 = vrot.lane.b32.xlu1 %v6295_v14, %s8416_s21 }
 0x69c   : > { %2470 = vrot.lane.b32.xlu0 %v6271_v53, %s8416_s21 }
 0x69f   : > { %2492 = vrot.lane.b32.xlu1 %v6343_v9, %s8416_s21 }
 0x6a0   : > { %2490 = vrot.lane.b32.xlu0 %v6319_v43, %s8416_s21 }
 0x6a3   : > { %2496 = vrot.lane.b32.xlu1 %v6373_v49, %s8416_s21 }
 0x6a4   : > { %2494 = vrot.lane.b32.xlu0 %v6361_v29, %s8416_s21 }
 0x6a7   : > { %2476 = vrot.lane.b32.xlu1 %v6292_v11, %s8416_s21 }
 0x6a8   : > { %2474 = vrot.lane.b32.xlu0 %v6297_v15, %s8416_s21 }
 0x6ab   : > { %2478 = vrot.lane.b32.xlu1 %v6321_v44, %s8416_s21 }
 0x6ac   : > { %2498 = vrot.lane.b32.xlu0 %v6385_v3, %s8416_s21 }
 0x6af   : > { %2500 = vrot.lane.b32.xlu1 %v6397_v27, %s8416_s21 }
 0x6b0   : > { %2480 = vrot.lane.b32.xlu0 %v6316_v41, %s8416_s21 }
 0x6b3   : > { %2484 = vrot.lane.b32.xlu1 %v6340_v6, %s8416_s21 }
 0x6b4   : > { %2482 = vrot.lane.b32.xlu0 %v6345_v10, %s8416_s21 }
 0x6b7   : > { %3008 = vrot.lane.b32.xlu1 %v8632_v55, %s8416_s21  ;;  %s8701_s21 = smov 369  }
 0x6ba   : > { %v2225_v48 = vpop.xlane.xlu0 %2224 }
 0x6be   : > { %v2221_v32 = vpop.xlane.xlu1 %2220 }
 0x6bf   : > { %5526 = vrcp.f32 %v2221_v32 }
 0x6c2   : > { %v2227_v57 = vpop.xlane.xlu0 %2226  ;;  %v2309_v31 = vpop.permute.xlu1 %2308 }
 0x6c6   : > { %v2223_v51 = vpop.xlane.xlu0 %2222  ;;  %v2311_v20 = vpop.permute.xlu1 %2310 }
 0x6c7   : > { %5528 = vrcp.f32 %v2223_v51 }
 0x6c8   : > { %5530 = vrcp.f32 %v2227_v57 }
 0x6c9   : > { %5532 = vrcp.f32 %v2225_v48  ;;  %v5527_v5 = vpop.eup %5526 }
 0x6ca   : > { %v2307_v38 = vpop.permute.xlu0 %2306  ;;  %v2313_v60 = vpop.permute.xlu1 %2312  ;;  %v2268_v19 = vmul.f32 %v5527_v5, %v7090_v1  ;;  %v7198_v1 = vld [vmem:[%s8279_s6] sm:$0xff]  }
 0x6cb   : > { %4979 = vmatprep.subr.bf16.mxu1 %v2307_v38 }
 0x6cc   : > { %4980 = vmatpush3.bf16.msra.mxu1 %v2307_v38 }
 0x6cd   : > { %4981 = vmatprep.subr.bf16.mxu1 %v2309_v31 }
 0x6ce   : > { %v2315_v32 = vpop.permute.xlu1 %2314 }
 0x6d0   : > { %4982 = vmatpush3.bf16.msra.mxu1 %v2309_v31 }
 0x6d1   : > { %v5529_v24 = vpop.eup %5528  ;;  %4983 = vmatprep.subr.bf16.mxu1 %v2311_v20 }
 0x6d2   : > { %v2269_v0 = vmul.f32 %v5529_v24, %v7096_v4  ;;  %v5531_v36 = vpop.eup %5530 }
 0x6d3   : > { %v5533_v21 = vpop.eup %5532  ;;  %v2271_v57 = vmul.f32 %v5531_v36, %v7093_v42 }
 0x6d4   : > { %4984 = vmatpush3.bf16.msra.mxu1 %v2311_v20  ;;  %v2284_v23 = vpack.c.bf16 %v2269_v0, %v2268_v19  ;;  %v2270_v48 = vmul.f32 %v5533_v21, %v7087_v13 }
 0x6d5   : > { %4985 = vmatprep.subr.bf16.mxu1 %v2313_v60 }
 0x6d6   : > { %4989 = vmatprep.mubr.bf16.mxu1 %v2284_v23  ;;  %v2285_v31 = vpack.c.bf16 %v2271_v57, %v2270_v48 }
 0x6d8   : > { %4986 = vmatpush3.bf16.msra.mxu1 %v2313_v60 }
 0x6d9   : > { %4987 = vmatprep.subr.bf16.mxu1 %v2315_v32 }
 0x6dc   : > { %4988 = vmatpush3.bf16.msra.mxu1 %v2315_v32 }
 0x6dd   : > { %5285 = vmatprep.subr.msk.bf16.mxu1 %vm8633_vm10, %v7198_v1  ;;  %vm8637_vm10 = vmmov %vm8634_vm0 }
 0x6df   : > { %4990 = vmatmul.mubr.bf16.vlgmr.msra.gmra.mrb[64].mxu1 %v2285_v31 }
 0x6e5   : > { %5038 = vmatpush3.bf16.xpose.msra.mxu1 %v6159_v45 }
 0x6e6   : > { %5286 = vmatprep.subr.msk.bf16.mxu1 %vm8634_vm0, %v6839_v59 }
 0x6ed   : > { %5040 = vmatpush3.bf16.xpose.msra.mxu1 %v6174_v56 }
 0x6ee   : > { %5287 = vmatprep.subr.msk.bf16.mxu1 %vm8635_vm12, %v6851_v58  ;;  %vm8639_vm12 = vmmov %vm8634_vm0 }
 0x6f5   : > { %5042 = vmatpush3.bf16.xpose.msra.mxu1 %v6187_v2 }
 0x6f6   : > { %5288 = vmatprep.subr.msk.bf16.mxu1 %vm8636_vm7, %v6866_v8  ;;  %vm8638_vm7 = vmmov %vm8634_vm0 }
 0x6fb   : > { %v2233_v13 = vpop.xlane.xlu0 %2232 }
 0x6fd   : > { %5044 = vmatpush3.bf16.xpose.msra.mxu1 %v6198_v7 }
 0x6fe   : > { %5289 = vmatprep.subr.msk.bf16.mxu1 %vm8637_vm10, %v6883_v26  ;;  %vm8640_vm10 = vmmov %vm8634_vm0 }
 0x6ff   : > { %v2231_v42 = vpop.xlane.xlu1 %2230  ;;  %v2229_v4 = vpop.xlane.xlu0 %2228 }
 0x700   : > { %5534 = vrcp.f32 %v2231_v42 }
 0x701   : > { %5536 = vrcp.f32 %v2229_v4 }
 0x702   : > { %5538 = vrcp.f32 %v2233_v13 }
 0x703   : > { %v2241_v59 = vpop.xlane.xlu1 %2240  ;;  %v2235_v51 = vpop.xlane.xlu0 %2234 }
 0x704   : > { %5540 = vrcp.f32 %v2235_v51 }
 0x705   : > { %5046 = vmatpush3.bf16.xpose.msra.mxu1 %v6209_v12 }
 0x706   : > { %5290 = vmatprep.subr.msk.bf16.mxu1 %vm8634_vm0, %v6894_v16 }
 0x707   : > { %v2237_v58 = vpop.xlane.xlu1 %2236  ;;  %v2239_v8 = vpop.xlane.xlu0 %2238 }
 0x708   : > { %5542 = vrcp.f32 %v2237_v58 }
 0x709   : > { %5544 = vrcp.f32 %v2239_v8 }
 0x70a   : > { %v5535_v38 = vpop.eup %5534  ;;  %5546 = vrcp.f32 %v2241_v59 }
 0x70b   : > { %v5537_v20 = vpop.eup %5536  ;;  %v2249_v26 = vpop.xlane.xlu1 %2248  ;;  %v2273_v24 = vmul.f32 %v5535_v38, %v7125_v46 }
 0x70c   : > { %v2243_v5 = vpop.xlane.xlu0 %2242  ;;  %v2272_v60 = vmul.f32 %v5537_v20, %v7123_v62  ;;  %v5539_v19 = vpop.eup %5538 }
 0x70d   : > { %5548 = vrcp.f32 %v2243_v5  ;;  %5048 = vmatpush3.bf16.xpose.msra.mxu1 %v6220_v17  ;;  %v2274_v21 = vmul.f32 %v5539_v19, %v7118_v33 }
 0x70e   : > { %v2286_v0 = vpack.c.bf16 %v2273_v24, %v2272_v60  ;;  %5291 = vmatprep.subr.msk.bf16.mxu1 %vm8638_vm7, %v6904_v39  ;;  %v5541_v16 = vpop.eup %5540  ;;  %vm8641_vm7 = vmmov %vm8634_vm0 }
 0x70f   : > { %v2245_v23 = vpop.xlane.xlu1 %2244  ;;  %v2275_v32 = vmul.f32 %v5541_v16, %v7130_v34 }
 0x710   : > { %v2247_v36 = vpop.xlane.xlu0 %2246  ;;  %5550 = vrcp.f32 %v2245_v23  ;;  %4993 = vmatprep.mubr.bf16.mxu1 %v2286_v0 }
 0x711   : > { %5552 = vrcp.f32 %v2247_v36  ;;  %v2287_v62 = vpack.c.bf16 %v2275_v32, %v2274_v21 }
 0x712   : > { %v5543_v46 = vpop.eup %5542  ;;  %5554 = vrcp.f32 %v2249_v26 }
 0x713   : > { %v5545_v57 = vpop.eup %5544  ;;  %v2487_v48 = vpop.permute.xlu1 %2486  ;;  %v2276_v13 = vmul.f32 %v5543_v46, %v7136_v54  ;;  %4994 = vmatmul.mubr.bf16.gmra.mrb[68].mxu1 %v2287_v62 }
 0x714   : > { %v2251_v31 = vpop.xlane.xlu0 %2250  ;;  %5277 = vmatprep.subr.msk.bf16.mxu0 %vm8639_vm12, %v2487_v48  ;;  %v2527_v39 = vsel %vm8640_vm10, %v2487_v48, 0  ;;  %v2277_v42 = vmul.f32 %v5545_v57, %v7138_v30  ;;  %v5547_v33 = vpop.eup %5546  ;;  %vm8642_vm12 = vmmov %vm8634_vm0 }
 0x715   : > { %5556 = vrcp.f32 %v2251_v31  ;;  %5006 = vmatpush3.bf16.xpose.msra.mxu0 %v2527_v39  ;;  %5050 = vmatpush3.bf16.xpose.msra.mxu1 %v6231_v22  ;;  %v2278_v51 = vmul.f32 %v5547_v33, %v7132_v28  ;;  %vm8643_vm10 = vmmov %vm8634_vm0 }
 0x716   : > { %v2288_v34 = vpack.c.bf16 %v2277_v42, %v2276_v13  ;;  %5292 = vmatprep.subr.msk.bf16.mxu1 %vm8634_vm0, %v6914_v61 }
 0x717   : > { %v5549_v4 = vpop.eup %5548  ;;  %v7231_v59 = vpop.permute.xlu1 %2472 }
 0x718   : > { %v2471_v54 = vpop.permute.xlu0 %2470  ;;  %4997 = vmatprep.mubr.bf16.mxu1 %v2288_v34  ;;  %v2279_v58 = vmul.f32 %v5549_v4, %v7142_v35 }
 0x719   : > { %5021 = vmatprep.mubr.msk.bf16.mxu0 %vm8641_vm7, %v2471_v54  ;;  %vm8644_vm7 = vmmov %vm8634_vm0 }
 0x71a   : > { %v5551_v30 = vpop.eup %5550  ;;  %v2289_v8 = vpack.c.bf16 %v2279_v58, %v2278_v51 }
 0x71b   : > { %v5553_v38 = vpop.eup %5552  ;;  %v2489_v20 = vpop.permute.xlu1 %2488  ;;  %v2280_v26 = vmul.f32 %v5551_v30, %v7148_v18 }
 0x71c   : > { %v5555_v5 = vpop.eup %5554  ;;  %4998 = vmatmul.mubr.bf16.gmra.mrb[72].mxu1 %v2289_v8  ;;  %5278 = vmatprep.subr.msk.bf16.mxu0 %vm8642_vm12, %v2489_v20  ;;  %v2530_v61 = vsel %vm8643_vm10, %v2489_v20, 0  ;;  %v2281_v24 = vmul.f32 %v5553_v38, %v7150_v47  ;;  %v2491_v60 = vpop.permute.xlu0 %2490  ;;  %vm8645_vm12 = vmmov %vm8634_vm0 }
 0x71d   : > { %5008 = vmatpush3.bf16.xpose.msra.mxu0 %v2530_v61  ;;  %5052 = vmatpush3.bf16.xpose.msra.mxu1 %v6239_v25  ;;  %v2282_v19 = vmul.f32 %v5555_v5, %v7144_v63  ;;  %v2533_v36 = vsel %vm8644_vm7, %v2491_v60, 0  ;;  %vm8646_vm10 = vmmov %vm8634_vm0 }
 0x71e   : > { %5279 = vmatprep.subr.msk.bf16.mxu0 %vm8634_vm0, %v2491_v60  ;;  %v2290_v35 = vpack.c.bf16 %v2281_v24, %v2280_v26  ;;  %vm8650_vm7 = vmmov %vm8634_vm0 }
 0x71f   : > { %v5557_v28 = vpop.eup %5556  ;;  %v2493_v16 = vpop.permute.xlu1 %2492 }
 0x720   : > { %v2283_v18 = vmul.f32 %v5557_v28, %v7154_v37  ;;  %5001 = vmatprep.mubr.bf16.mxu1 %v2290_v35  ;;  %v2495_v23 = vpop.permute.xlu0 %2494  ;;  %v2536_v63 = vsel %vm8647_vm8, %v2493_v16, 0  ;;  %vm8654_vm8 = vmmov %vm8634_vm0 }
 0x722   : > { %v2291_v0 = vpack.c.bf16 %v2283_v18, %v2282_v19  ;;  %v8699_v18 = vld [vmem:[#allocation33_spill] sm:$0xff] }
 0x723   : > { %v2497_v47 = vpop.permute.xlu1 %2496 }
 0x724   : > { %5002 = vmatmul.mubr.bf16.gmra.mrb[76].mxu1 %v2291_v0  ;;  %v2475_v21 = vpop.permute.xlu0 %2474 }
 0x725   : > { %5053 = vmatprep.mubr.msk.bf16.mxu1 %vm8645_vm12, %v2471_v54  ;;  %5010 = vmatpush3.bf16.xpose.msra.mxu0 %v2533_v36  ;;  %vm8651_vm12 = vmmov %vm8634_vm0  ;;  %v8690_v36 = vld [vmem:[#allocation29_spill] sm:$0xff] }
 0x726   : > { %5280 = vmatprep.subr.msk.bf16.mxu0 %vm8646_vm10, %v2493_v16  ;;  %v2539_v62 = vsel %vm8651_vm12, %v2495_v23, 0  ;;  %vm8652_vm10 = vmmov %vm8634_vm0 }
 0x727   : > { %v2477_v37 = vpop.permute.xlu1 %2476  ;;  %vm8658_vm12 = vmmov %vm8634_vm0 }
 0x728   : > { %v2499_v32 = vpop.permute.xlu0 %2498 }
 0x729   : > { %v2545_v42 = vsel %vm8658_vm12, %v2499_v32, 0  ;;  %vm8665_vm12 = vmmov %vm8634_vm0 }
 0x72b   : > { %v2479_v46 = vpop.permute.xlu1 %2478 }
 0x72c   : > { %5054 = vmatmul.mubr.msk.bf16.vlgmr.msra.gmra.mrb[80].mxu1 %vm8634_vm0, %v7231_v59  ;;  %v2481_v57 = vpop.permute.xlu0 %2480 }
 0x72d   : > { %5057 = vmatprep.mubr.msk.bf16.mxu1 %vm8648_vm11, %v2475_v21  ;;  %5012 = vmatpush3.bf16.xpose.msra.mxu0 %v2536_v63  ;;  %vm8655_vm11 = vmmov %vm8634_vm0 }
 0x72e   : > { %5281 = vmatprep.subr.msk.bf16.mxu0 %vm8649_vm14, %v2495_v23  ;;  %v2542_v31 = vsel %vm8655_vm11, %v2497_v47, 0  ;;  %vm8656_vm14 = vmmov %vm8634_vm0 }
 0x72f   : > { %v2501_v13 = vpop.permute.xlu1 %2500  ;;  %vm8662_vm11 = vmmov %vm8634_vm0 }
 0x730   : > { %v2483_v48 = vpop.permute.xlu0 %2482 }
 0x733   : > { %v2485_v39 = vpop.permute.xlu1 %2484 }
 0x734   : > { %5058 = vmatmul.mubr.msk.bf16.gmra.mrb[84].mxu1 %vm8650_vm7, %v2477_v37  ;;  %vm8657_vm7 = vmmov %vm8634_vm0 }
 0x735   : > { %5061 = vmatprep.mubr.msk.bf16.mxu1 %vm8652_vm10, %v2479_v46  ;;  %5014 = vmatpush3.bf16.xpose.msra.mxu0 %v2539_v62  ;;  %vm8659_vm10 = vmmov %vm8634_vm0  ;;  %v8785_v62 = vld [vmem:[#allocation26_spill] sm:$0xff] }
 0x736   : > { %5282 = vmatprep.subr.msk.bf16.mxu0 %vm8653_vm15, %v2497_v47  ;;  %vm8660_vm15 = vmmov %vm8634_vm0 }
 0x737   : > { %v2548_v33 = vsel %vm8660_vm15, %v2501_v13, 0  ;;  %v3009_v34 = vpop.permute.xlu1 %3008  ;;  %vm8691_vm15 = vnez %v8690_v36 }
 0x73c   : > { %5062 = vmatmul.mubr.msk.bf16.gmra.mrb[88].mxu1 %vm8654_vm8, %v2481_v57  ;;  %vm8661_vm8 = vmmov %vm8634_vm0 }
 0x73d   : > { %5065 = vmatprep.mubr.msk.bf16.mxu1 %vm8634_vm0, %v2483_v48  ;;  %5016 = vmatpush3.bf16.xpose.msra.mxu0 %v2542_v31 }
 0x73e   : > { %5283 = vmatprep.subr.msk.bf16.mxu0 %vm8656_vm14, %v2499_v32  ;;  %vm8663_vm14 = vmmov %vm8634_vm0 }
 0x744   : > { %5066 = vmatmul.mubr.msk.bf16.gmra.mrb[92].mxu1 %vm8657_vm7, %v2485_v39  ;;  %vm8664_vm7 = vmmov %vm8634_vm0 }
 0x745   : > { %5018 = vmatpush3.bf16.xpose.msra.mxu0 %v2545_v42 }
 0x746   : > { %5284 = vmatprep.subr.msk.bf16.mxu0 %vm8659_vm10, %v2501_v13  ;;  %vm8666_vm10 = vmmov %vm8634_vm0 }
 0x74d   : > { %5020 = vmatpush3.bf16.xpose.msra.mxu0 %v2548_v33 }
 0x74e   : > { %5069 = vmatprep.subr.bf16.mxu0 %v3009_v34 }
 0x754   : > { %5022 = vmatmul.mubr.msk.bf16.vlgmr.msra.gmra.mrb[64].mxu0 %vm8661_vm8, %v7231_v59  ;;  %v8692_v59 = vld [vmem:[#allocation30_spill] sm:$0xff] }
 0x755   : > { %5025 = vmatprep.mubr.msk.bf16.mxu0 %vm8662_vm11, %v2475_v21  ;;  %5070 = vmatpush3.bf16.msra.mxu0 %v3009_v34  ;;  %vm8693_vm8 = vnez %v8692_v59 }
 0x75c   : > { %5026 = vmatmul.mubr.msk.bf16.gmra.mrb[68].mxu0 %vm8634_vm0, %v2477_v37 }
 0x75d   : > { %5029 = vmatprep.mubr.msk.bf16.mxu0 %vm8663_vm14, %v2479_v46  ;;  %vm8700_vm14 = vnez %v8699_v18 }
 0x764   : > { %5030 = vmatmul.mubr.msk.bf16.gmra.mrb[72].mxu0 %vm8664_vm7, %v2481_v57 }
 0x765   : > { %5033 = vmatprep.mubr.msk.bf16.mxu0 %vm8665_vm12, %v2483_v48 }
 0x76c   : > { %5034 = vmatmul.mubr.msk.bf16.gmra.mrb[76].mxu0 %vm8666_vm10, %v2485_v39 }
 0x7b2   : > { %v7272_v4 = vpop.f32.mrb[64].mxu1 }
 0x7b3   : > { %8667 = vst [vmem:[#allocation53_spill] sm:$0xff] %v7272_v4  ;;  %v7274_v54 = vpop.f32.mrb[65].mxu1 }
 0x7b4   : > { %8668 = vst [vmem:[#allocation54_spill] sm:$0xff] %v7274_v54  ;;  %v7276_v51 = vpop.f32.mrb[66].mxu1 }
 0x7b5   : > { %8669 = vst [vmem:[#allocation55_spill] sm:$0xff] %v7276_v51  ;;  %v7280_v58 = vpop.f32.mrb[67].mxu1 }
 0x7b6   : > { %8670 = vst [vmem:[#allocation56_spill] sm:$0xff] %v7280_v58  ;;  %v8710_v58 = vld [vmem:[#allocation37_spill] sm:$0xff] }
 0x7e6   : > { %v7284_v8 = vpop.f32.mrb[68].mxu1 }
 0x7e7   : > { %8671 = vst [vmem:[#allocation57_spill] sm:$0xff] %v7284_v8  ;;  %v7286_v38 = vpop.f32.mrb[69].mxu1  ;;  %v8702_v8 = vld [vmem:[#allocation34_spill] sm:$0xff] }
 0x7e8   : > { %8672 = vst [vmem:[#allocation58_spill] sm:$0xff] %v7286_v38  ;;  %v7288_v20 = vpop.f32.mrb[70].mxu1  ;;  %vm8703_vm7 = vnez %v8702_v8 }
 0x7e9   : > { %8673 = vst [vmem:[#allocation59_spill] sm:$0xff] %v7288_v20  ;;  %v7292_v5 = vpop.f32.mrb[71].mxu1 }
 0x7ea   : > { %8674 = vst [vmem:[#allocation60_spill] sm:$0xff] %v7292_v5 }
 0x7ef   : > { %v7296_v24 = vpop.f32.mrb[72].mxu1 }
 0x7f0   : > { %8675 = vst [vmem:[#allocation61_spill] sm:$0xff] %v7296_v24  ;;  %v7298_v60 = vpop.f32.mrb[73].mxu1 }
 0x7f1   : > { %8676 = vst [vmem:[#allocation62_spill] sm:$0xff] %v7298_v60  ;;  %v7300_v28 = vpop.f32.mrb[74].mxu1 }
 0x7f2   : > { %8677 = vst [vmem:[#allocation63_spill] sm:$0xff] %v7300_v28  ;;  %v7304_v19 = vpop.f32.mrb[75].mxu1 }
 0x7f3   : > { %8678 = vst [vmem:[#allocation64_spill] sm:$0xff] %v7304_v19 }
 0x7f7   : > { %v7308_v0 = vpop.f32.mrb[76].mxu1 }
 0x7f8   : > { %8679 = vst [vmem:[#allocation65_spill] sm:$0xff] %v7308_v0  ;;  %v7310_v16 = vpop.f32.mrb[77].mxu1 }
 0x7f9   : > { %8680 = vst [vmem:[#allocation66_spill] sm:$0xff] %v7310_v16  ;;  %v7312_v23 = vpop.f32.mrb[78].mxu1 }
 0x7fa   : > { %8681 = vst [vmem:[#allocation67_spill] sm:$0xff] %v7312_v23  ;;  %v7316_v47 = vpop.f32.mrb[79].mxu1 }
 0x7fb   : > { %8682 = vst [vmem:[#allocation68_spill] sm:$0xff] %v7316_v47 }
 0x7ff   : > { %v5055_v63 = vpop.f32.mrb[80].mxu1 }
 0x800   : > { %v2762_v37 = vsel %vm6445_vm1, %v5055_v63, 0.0  ;;  %v2697_v32 = vpop.f32.mrb[81].mxu1 }
 0x801   : > { %2786 = vrot.lane.b32.xlu0 %v2762_v37, %s5890_s16  ;;  %v5056_v46 = vpop.f32.mrb[82].mxu1  ;;  %v2760_v13 = vsel %vm6451_vm2, %v2697_v32, 0.0  ;;  %v8791_v32 = vld [vmem:[#allocation32_spill] sm:$0xff] }
 0x802   : > { %v2763_v57 = vsel %vm6461_vm3, %v5056_v46, 0.0  ;;  %v2700_v48 = vpop.f32.mrb[83].mxu1 }
 0x803   : > { %2790 = vrot.lane.b32.xlu1 %v2763_v57, %s5892_s20  ;;  %v2761_v42 = vsel %vm6470_vm4, %v2700_v48, 0.0 }
 0x805   : > { %2778 = vrot.lane.b32.xlu0 %v2760_v13, %s5891_s19 }
 0x807   : > { %2782 = vrot.lane.b32.xlu1 %v2761_v42, %s5893_s22  ;;  %v5059_v33 = vpop.f32.mrb[84].mxu1 }
 0x808   : > { %v2766_v63 = vsel %vm6480_vm5, %v5059_v33, 0.0  ;;  %v2713_v37 = vpop.f32.mrb[85].mxu1 }
 0x809   : > { %2802 = vrot.lane.b32.xlu0 %v2766_v63, %s8444_s23  ;;  %v5060_v46 = vpop.f32.mrb[86].mxu1  ;;  %v2764_v13 = vsel %vm8572_vm13, %v2713_v37, 0.0  ;;  %v8694_v37 = vld [vmem:[#allocation31_spill] sm:$0xff]  ;;  %s8790_s23 = smov 337  }
 0x80a   : > { %v2767_v57 = vsel %vm6487_vm6, %v5060_v46, 0.0  ;;  %v2716_v61 = vpop.f32.mrb[87].mxu1  ;;  %vm8695_vm11 = vnez %v8694_v37 }
 0x80b   : > { %2806 = vrot.lane.b32.xlu1 %v2767_v57, %s8441_s27  ;;  %v2765_v42 = vsel %vm8573_vm9, %v2716_v61, 0.0  ;;  %v8696_v61 = vld [vmem:[#allocation32_spill] sm:$0xff]  ;;  %s8795_s27 = smov 321  }
 0x80c   : > { %vm8697_vm0 = vnez %v8696_v61 }
 0x80d   : > { %2794 = vrot.lane.b32.xlu0 %v2764_v13, %s8442_s4  ;;  %s8800_s4 = smov 345  }
 0x80f   : > { %2798 = vrot.lane.b32.xlu1 %v2765_v42, %s8443_s30  ;;  %v5063_v33 = vpop.f32.mrb[88].mxu1 }
 0x810   : > { %v2770_v63 = vsel %vm8691_vm15, %v5063_v33, 0.0  ;;  %v2729_v21 = vpop.f32.mrb[89].mxu1 }
 0x811   : > { %2818 = vrot.lane.b32.xlu0 %v2770_v63, %s8440_s26  ;;  %v5064_v46 = vpop.f32.mrb[90].mxu1  ;;  %v2768_v13 = vsel %vm8695_vm11, %v2729_v21, 0.0  ;;  %v8704_v21 = vld [vmem:[#allocation35_spill] sm:$0xff]  ;;  %s8206_s26 = scalar_lea.vmem %s8285_s12, %s6121_s25 }
 0x812   : > { %v2771_v57 = vsel %vm8693_vm8, %v5064_v46, 0.0  ;;  %v2732_v35 = vpop.f32.mrb[91].mxu1  ;;  %vm8705_vm12 = vnez %v8704_v21 }
 0x813   : > { %2822 = vrot.lane.b32.xlu1 %v2771_v57, %s8436_s28  ;;  %v2769_v42 = vsel %vm8697_vm0, %v2732_v35, 0.0  ;;  %v8706_v35 = vld [vmem:[#allocation36_spill] sm:$0xff]  ;;  %s8716_s28 = smov 64  }
 0x814   : > { %vm8707_vm10 = vnez %v8706_v35  ;;  %v8712_v35 = vld [vmem:[#allocation39_spill] sm:$0xff] }
 0x815   : > { %2810 = vrot.lane.b32.xlu0 %v2768_v13, %s8437_s18  ;;  %s8438_s18 = smov 32  }
 0x817   : > { %2814 = vrot.lane.b32.xlu1 %v2769_v42, %s8698_s24  ;;  %v5067_v33 = vpop.f32.mrb[92].mxu1 }
 0x818   : > { %v2774_v63 = vsel %vm8700_vm14, %v5067_v33, 0.0  ;;  %v2745_v30 = vpop.f32.mrb[93].mxu1 }
 0x819   : > { %2834 = vrot.lane.b32.xlu0 %v2774_v63, %s8701_s21  ;;  %v5068_v46 = vpop.f32.mrb[94].mxu1  ;;  %v2772_v13 = vsel %vm8705_vm12, %v2745_v30, 0.0  ;;  %vm8711_vm12 = vcmp.eq.f32.partialorder %v8710_v58, 0.0  ;;  %v8719_v58 = vld [vmem:[#allocation43_spill] sm:$0xff] }
 0x81a   : > { %v2775_v57 = vsel %vm8703_vm7, %v5068_v46, 0.0  ;;  %v2748_v20 = vpop.f32.mrb[95].mxu1 }
 0x81b   : > { %2838 = vrot.lane.b32.xlu1 %v2775_v57, %s8585_s29  ;;  %v2773_v42 = vsel %vm8707_vm10, %v2748_v20, 0.0  ;;  %v8708_v20 = vld [vmem:[#allocation38_spill] sm:$0xff]  ;;  %vm8713_vm10 = vcmp.eq.f32.partialorder %v8712_v35, 0.0 }
 0x81c   : > { %vm8709_vm7 = vcmp.eq.f32.partialorder %v8708_v20, 0.0 }
 0x81d   : > { %2826 = vrot.lane.b32.xlu0 %v2772_v13, %s8588_s15 }
 0x81f   : > { %2830 = vrot.lane.b32.xlu1 %v2773_v42, %s8591_s17 }
 0x827   : > { %v5023_v33 = vpop.f32.mrb[64].mxu0 }
 0x828   : > { %v2584_v38 = vpop.f32.mrb[65].mxu0  ;;  %v2649_v42 = vsel %vm8709_vm7, -1e+09, %v5023_v33  ;;  %v8714_v33 = vld [vmem:[#allocation40_spill] sm:$0xff] }
 0x829   : > { %v5024_v63 = vpop.f32.mrb[66].mxu0  ;;  %v2647_v55 = vsel %vm8711_vm12, -1e+09, %v2584_v38  ;;  %vm8715_vm7 = vcmp.eq.f32.partialorder %v8714_v33, 0.0  ;;  %vm8720_vm12 = vcmp.eq.f32.partialorder %v8719_v58, 0.0  ;;  %v8725_v58 = vld [vmem:[#allocation42_spill] sm:$0xff] }
 0x82a   : > { %v2587_v5 = vpop.f32.mrb[67].mxu0 }
 0x82b   : > { %v2648_v18 = vsel %vm8713_vm10, -1e+09, %v2587_v5 }
 0x82f   : > { %v5027_v0 = vpop.f32.mrb[68].mxu0 }
 0x830   : > { %v2600_v23 = vpop.f32.mrb[69].mxu0  ;;  %v2653_v33 = vsel %vm8720_vm12, -1e+09, %v5027_v0  ;;  %vm8726_vm12 = vcmp.eq.f32.partialorder %v8725_v58, 0.0 }
 0x831   : > { %v5028_v46 = vpop.f32.mrb[70].mxu0 }
 0x832   : > { %v2603_v16 = vpop.f32.mrb[71].mxu0 }
 0x833   : > { %v2652_v0 = vsel %vm8726_vm12, -1e+09, %v2603_v16  ;;  %v8731_v16 = vld [vmem:[#allocation45_spill] sm:$0xff] }
 0x834   : > { %vm8732_vm12 = vcmp.eq.f32.partialorder %v8731_v16, 0.0 }
 0x837   : > { %v5031_v47 = vpop.f32.mrb[72].mxu0 }
 0x838   : > { %v2616_v57 = vpop.f32.mrb[73].mxu0 }
 0x839   : > { %v5032_v4 = vpop.f32.mrb[74].mxu0 }
 0x83a   : > { %v2619_v51 = vpop.f32.mrb[75].mxu0 }
 0x83f   : > { %v5035_v30 = vpop.f32.mrb[76].mxu0 }
 0x840   : > { %v2632_v24 = vpop.f32.mrb[77].mxu0 }
 0x841   : > { %v5036_v13 = vpop.f32.mrb[78].mxu0 }
 0x842   : > { %v7368_v28 = vpop.f32.mrb[79].mxu0 }
 0x873   : > { %v2787_v60 = vpop.permute.xlu0 %2786 }
 0x874   : > { %v7372_v19 = vadd.f32 %v2787_v60, %v2649_v42  ;;  %v2650_v60 = vsel %vm8715_vm7, -1e+09, %v5024_v63 }
 0x875   : > { %v2791_v54 = vpop.permute.xlu1 %2790 }
 0x876   : > { %2860 = vmax.xlane.f32.xlu0 %v7372_v19  ;;  %v7386_v42 = vadd.f32 %v2791_v54, %v2650_v60  ;;  %v8721_v60 = vld [vmem:[#allocation44_spill] sm:$0xff] }
 0x877   : > { %v2779_v8 = vpop.permute.xlu0 %2778  ;;  %vm8722_vm10 = vcmp.eq.f32.partialorder %v8721_v60, 0.0 }
 0x878   : > { %v7377_v21 = vadd.f32 %v2779_v8, %v2647_v55  ;;  %v8717_v55 = vld [vmem:[#allocation16_spill] sm:$0xff]  ;;  %v8718_v8 = vld [vmem:[#allocation15_spill] sm:$0xff]  ;;  %v2654_v35 = vsel %vm8722_vm10, -1e+09, %v5028_v46 }
 0x879   : > { %v2783_v59 = vpop.permute.xlu1 %2782  ;;  %v8727_v46 = vld [vmem:[#allocation47_spill] sm:$0xff] }
 0x87a   : > { %v7381_v37 = vadd.f32 %v2783_v59, %v2648_v18  ;;  %2856 = vmax.xlane.f32.xlu0 %v7377_v21  ;;  %vm8728_vm10 = vcmp.eq.f32.partialorder %v8727_v46, 0.0 }
 0x87b   : > { %v2803_v38 = vpop.permute.xlu0 %2802 }
 0x87c   : > { %2858 = vmax.xlane.f32.xlu1 %v7381_v37  ;;  %v7396_v54 = vadd.f32 %v2803_v38, %v2653_v33 }
 0x87d   : > { %v2807_v59 = vpop.permute.xlu1 %2806 }
 0x87e   : > { %2862 = vmax.xlane.f32.xlu0 %v7386_v42  ;;  %v7400_v61 = vadd.f32 %v2807_v59, %v2654_v35  ;;  %v2657_v35 = vsel %vm8728_vm10, -1e+09, %v5031_v47  ;;  %v8733_v47 = vld [vmem:[#allocation46_spill] sm:$0xff] }
 0x87f   : > { %v2795_v5 = vpop.permute.xlu0 %2794  ;;  %vm8734_vm10 = vcmp.eq.f32.partialorder %v8733_v47, 0.0 }
 0x881   : > { %v2799_v18 = vpop.permute.xlu1 %2798 }
 0x882   : > { %v7410_v38 = vadd.f32 %v2799_v18, %v2652_v0  ;;  %v2655_v18 = vsel %vm8732_vm12, -1e+09, %v2616_v57  ;;  %v8737_v57 = vld [vmem:[#allocation52_spill] sm:$0xff] }
 0x883   : > { %v2819_v63 = vpop.permute.xlu0 %2818  ;;  %vm8738_vm12 = vcmp.eq.f32.partialorder %v8737_v57, 0.0 }
 0x884   : > { %v7415_v60 = vadd.f32 %v2819_v63, %v2657_v35  ;;  %v2656_v63 = vsel %vm8734_vm10, -1e+09, %v2619_v51  ;;  %v8739_v51 = vld [vmem:[#allocation49_spill] sm:$0xff] }
 0x885   : > { %v2823_v20 = vpop.permute.xlu1 %2822  ;;  %vm8740_vm10 = vcmp.eq.f32.partialorder %v8739_v51, 0.0 }
 0x887   : > { %v2811_v33 = vpop.permute.xlu0 %2810 }
 0x888   : > { %v7425_v58 = vadd.f32 %v2811_v33, %v2655_v18  ;;  %v2662_v33 = vsel %vm8738_vm12, -1e+09, %v5036_v13  ;;  %vm8748_vm12 = vcmask 261120  }
 0x889   : > { %v2815_v59 = vpop.permute.xlu1 %2814 }
 0x88a   : > { %v7430_v46 = vadd.f32 %v2815_v59, %v2656_v63  ;;  %v2659_v59 = vsel %vm8740_vm10, -1e+09, %v2632_v24  ;;  %vm8749_vm10 = vmmov %vm8748_vm12 }
 0x88b   : > { %v2835_v0 = vpop.permute.xlu0 %2834 }
 0x88d   : > { %3012 = vrot.lane.b32.xlu1 %v8717_v55, %s8716_s28  ;;  %v8723_v55 = vld [vmem:[#allocation41_spill] sm:$0xff]  ;;  %v2839_v35 = vpop.permute.xlu1 %2838 }
 0x88e   : > { %vm8724_vm7 = vcmp.eq.f32.partialorder %v8723_v55, 0.0 }
 0x88f   : > { %v2827_v18 = vpop.permute.xlu0 %2826 }
 0x890   : > { %v7445_v47 = vadd.f32 %v2827_v18, %v2659_v59 }
 0x891   : > { %v2831_v63 = vpop.permute.xlu1 %2830 }
 0x894   : > { %3010 = vrot.lane.b32.xlu0 %v8718_v8, %s8716_s28  ;;  %v2651_v8 = vsel %vm8724_vm7, -1e+09, %v2600_v23  ;;  %v8729_v23 = vld [vmem:[#allocation48_spill] sm:$0xff] }
 0x895   : > { %v7405_v36 = vadd.f32 %v2795_v5, %v2651_v8  ;;  %vm8730_vm7 = vcmp.eq.f32.partialorder %v8729_v23, 0.0  ;;  %v7440_v23 = vadd.f32 %v2839_v35, %v2662_v33 }
 0x896   : > { %v2658_v8 = vsel %vm8730_vm7, -1e+09, %v5032_v4  ;;  %v8735_v4 = vld [vmem:[#allocation51_spill] sm:$0xff] }
 0x897   : > { %v7420_v5 = vadd.f32 %v2823_v20, %v2658_v8  ;;  %vm8736_vm7 = vcmp.eq.f32.partialorder %v8735_v4, 0.0 }
 0x898   : > { %v2661_v20 = vsel %vm8736_vm7, -1e+09, %v5035_v30  ;;  %v8741_v30 = vld [vmem:[#allocation50_spill] sm:$0xff] }
 0x899   : > { %v7435_v8 = vadd.f32 %v2835_v0, %v2661_v20  ;;  %vm8742_vm7 = vcmp.eq.f32.partialorder %v8741_v30, 0.0 }
 0x89a   : > { %v2660_v0 = vsel %vm8742_vm7, -1e+09, %v7368_v28  ;;  %vm8750_vm7 = vmmov %vm8749_vm10 }
 0x89b   : > { %v7451_v20 = vadd.f32 %v2831_v63, %v2660_v0  ;;  %vm8760_vm14 = vmmov %vm8750_vm7 }
 0x89c   : > { %vm8761_vm8 = vmmov %vm8750_vm7 }
 0x89d   : > { %vm8762_vm11 = vmmov %vm8750_vm7 }
 0x89e   : > { %vm8764_vm0 = vmmov %vm8750_vm7 }
 0x89f   : > { %vm8767_vm15 = vmmov %vm8764_vm0 }
 0x8a0   : > { %vm8772_vm6 = vmmov %vm8764_vm0 }
 0x8b1   : > { %2868 = vmax.xlane.f32.xlu1 %v7396_v54 }
 0x8b3   : > { %2870 = vmax.xlane.f32.xlu0 %v7400_v61 }
 0x8b5   : > { %2864 = vmax.xlane.f32.xlu1 %v7405_v36 }
 0x8b7   : > { %2866 = vmax.xlane.f32.xlu0 %v7410_v38 }
 0x8b9   : > { %2876 = vmax.xlane.f32.xlu1 %v7415_v60 }
 0x8bb   : > { %2878 = vmax.xlane.f32.xlu0 %v7420_v5 }
 0x8bd   : > { %2872 = vmax.xlane.f32.xlu1 %v7425_v58 }
 0x8bf   : > { %2874 = vmax.xlane.f32.xlu0 %v7430_v46 }
 0x8c1   : > { %2884 = vmax.xlane.f32.xlu1 %v7435_v8 }
 0x8c3   : > { %2886 = vmax.xlane.f32.xlu0 %v7440_v23 }
 0x8c5   : > { %2880 = vmax.xlane.f32.xlu1 %v7445_v47 }
 0x8c7   : > { %2882 = vmax.xlane.f32.xlu0 %v7451_v20 }
 0x903   : > { %v2861_v13 = vpop.xlane.xlu0 %2860 }
 0x904   : > { %v2890_v35 = vsub.f32 %v7372_v19, %v2861_v13 }
 0x906   : > { %v2908_v33 = vmul.f32 1.442695, %v2890_v35 }
 0x907   : > { %v2857_v24 = vpop.xlane.xlu0 %2856 }
 0x908   : > { %5558 = vpow2.f32 %v2908_v33  ;;  %v2888_v18 = vsub.f32 %v7377_v21, %v2857_v24 }
 0x909   : > { %v2859_v59 = vpop.xlane.xlu1 %2858 }
 0x90a   : > { %v2904_v57 = vmul.f32 1.442695, %v2888_v18  ;;  %v2889_v28 = vsub.f32 %v7381_v37, %v2859_v59 }
 0x90b   : > { %v2863_v51 = vpop.xlane.xlu0 %2862 }
 0x90c   : > { %5560 = vpow2.f32 %v2904_v57  ;;  %v2891_v63 = vsub.f32 %v7386_v42, %v2863_v51  ;;  %v2906_v4 = vmul.f32 1.442695, %v2889_v28  ;;  %v8743_v57 = vld [vmem:[#allocation18_spill] sm:$0xff]  ;;  %v8744_v51 = vld [vmem:[#allocation19_spill] sm:$0xff] }
 0x90d   : > { %v3013_v16 = vpop.permute.xlu1 %3012 }
 0x90e   : > { %v2910_v0 = vmul.f32 1.442695, %v2891_v63 }
 0x90f   : > { %v3011_v30 = vpop.permute.xlu0 %3010 }
 0x910   : > { %5562 = vpow2.f32 %v2910_v0  ;;  %5071 = vmatprep.subr.bf16.mxu0 %v3011_v30 }
 0x911   : > { %5072 = vmatpush3.bf16.msra.mxu0 %v3011_v30  ;;  %5564 = vpow2.f32 %v2906_v4  ;;  %v8746_v4 = vld [vmem:[#allocation21_spill] sm:$0xff] }
 0x912   : > { %v7459_v19 = vpop.eup %5558  ;;  %5073 = vmatprep.subr.bf16.mxu0 %v3013_v16  ;;  %v8747_v30 = vld [vmem:[#allocation17_spill] sm:$0xff] }
 0x913   : > { %2940 = vadd.xlane.f32.xlu0 %v7459_v19 }
 0x915   : > { %5074 = vmatpush3.bf16.msra.mxu0 %v3013_v16  ;;  %v8745_v16 = vld [vmem:[#allocation20_spill] sm:$0xff] }
 0x916   : > { %v7462_v21 = vpop.eup %5560 }
 0x917   : > { %2936 = vadd.xlane.f32.xlu1 %v7462_v21 }
 0x91a   : > { %v7465_v37 = vpop.eup %5562 }
 0x91b   : > { %2942 = vadd.xlane.f32.xlu0 %v7465_v37  ;;  %v7468_v42 = vpop.eup %5564 }
 0x91f   : > { %2938 = vadd.xlane.f32.xlu0 %v7468_v42 }
 0x928   : > { %3016 = vrot.lane.b32.xlu1 %v8743_v57, %s8716_s28 }
 0x92c   : > { %3018 = vrot.lane.b32.xlu1 %v8744_v51, %s8716_s28 }
 0x930   : > { %3020 = vrot.lane.b32.xlu1 %v8745_v16, %s8716_s28 }
 0x934   : > { %3022 = vrot.lane.b32.xlu1 %v8746_v4, %s8716_s28 }
 0x935   : > { %3014 = vrot.lane.b32.xlu0 %v8747_v30, %s8716_s28 }
 0x93e   : > { %v2869_v13 = vpop.xlane.xlu1 %2868 }
 0x93f   : > { %v2894_v33 = vsub.f32 %v7396_v54, %v2869_v13 }
 0x940   : > { %v2871_v35 = vpop.xlane.xlu0 %2870 }
 0x941   : > { %v2916_v28 = vmul.f32 1.442695, %v2894_v33  ;;  %v2895_v51 = vsub.f32 %v7400_v61, %v2871_v35 }
 0x942   : > { %v2865_v24 = vpop.xlane.xlu1 %2864 }
 0x943   : > { %v2892_v18 = vsub.f32 %v7405_v36, %v2865_v24  ;;  %5566 = vpow2.f32 %v2916_v28  ;;  %v2918_v26 = vmul.f32 1.442695, %v2895_v51 }
 0x944   : > { %v2867_v59 = vpop.xlane.xlu0 %2866 }
 0x945   : > { %v2893_v63 = vsub.f32 %v7410_v38, %v2867_v59  ;;  %v2912_v16 = vmul.f32 1.442695, %v2892_v18 }
 0x946   : > { %v2877_v0 = vpop.xlane.xlu1 %2876 }
 0x947   : > { %v2914_v4 = vmul.f32 1.442695, %v2893_v63  ;;  %v2898_v30 = vsub.f32 %v7415_v60, %v2877_v0  ;;  %5568 = vpow2.f32 %v2912_v16 }
 0x948   : > { %v2879_v57 = vpop.xlane.xlu0 %2878 }
 0x949   : > { %5570 = vpow2.f32 %v2914_v4  ;;  %v2924_v36 = vmul.f32 1.442695, %v2898_v30  ;;  %v2899_v61 = vsub.f32 %v7420_v5, %v2879_v57 }
 0x94a   : > { %v2873_v55 = vpop.xlane.xlu1 %2872  ;;  %5572 = vpow2.f32 %v2918_v26 }
 0x94b   : > { %v2896_v54 = vsub.f32 %v7425_v58, %v2873_v55  ;;  %5574 = vpow2.f32 %v2924_v36  ;;  %v2926_v16 = vmul.f32 1.442695, %v2899_v61 }
 0x94c   : > { %v2875_v13 = vpop.xlane.xlu0 %2874 }
 0x94d   : > { %v2897_v33 = vsub.f32 %v7430_v46, %v2875_v13  ;;  %v2920_v35 = vmul.f32 1.442695, %v2896_v54  ;;  %v7490_v51 = vpop.eup %5566 }
 0x94e   : > { %v2885_v38 = vpop.xlane.xlu1 %2884 }
 0x94f   : > { %v2922_v18 = vmul.f32 1.442695, %v2897_v33  ;;  %v2902_v60 = vsub.f32 %v7435_v8, %v2885_v38  ;;  %5576 = vpow2.f32 %v2920_v35 }
 0x950   : > { %v2887_v24 = vpop.xlane.xlu0 %2886 }
 0x951   : > { %5578 = vpow2.f32 %v2922_v18  ;;  %v2932_v26 = vmul.f32 1.442695, %v2902_v60  ;;  %v7495_v5 = vpop.eup %5568 }
 0x952   : > { %v2881_v59 = vpop.xlane.xlu1 %2880  ;;  %5580 = vpow2.f32 %v2926_v16 }
 0x953   : > { %v2900_v58 = vsub.f32 %v7445_v47, %v2881_v59  ;;  %v7497_v57 = vpop.eup %5570  ;;  %5582 = vpow2.f32 %v2932_v26  ;;  %v2903_v47 = vsub.f32 %v7440_v23, %v2887_v24 }
 0x954   : > { %2948 = vadd.xlane.f32.xlu0 %v7490_v51  ;;  %v2883_v55 = vpop.xlane.xlu0 %2882  ;;  %v7502_v30 = vpop.eup %5572 }
 0x955   : > { %v2901_v46 = vsub.f32 %v7451_v20, %v2883_v55  ;;  %v2928_v8 = vmul.f32 1.442695, %v2900_v58  ;;  %v7504_v28 = vpop.eup %5574  ;;  %v2934_v20 = vmul.f32 1.442695, %v2903_v47  ;;  %v5731_v47 = vld [vmem:[%s8279_s6 + $0x30] sm:$0xff]  }
 0x957   : > { %v2930_v4 = vmul.f32 1.442695, %v2901_v46  ;;  %5584 = vpow2.f32 %v2928_v8 }
 0x958   : > { %2944 = vadd.xlane.f32.xlu0 %v7495_v5  ;;  %2946 = vadd.xlane.f32.xlu1 %v7497_v57 }
 0x959   : > { %5586 = vpow2.f32 %v2930_v4  ;;  %v7508_v63 = vpop.eup %5576 }
 0x95a   : > { %5588 = vpow2.f32 %v2934_v20 }
 0x95b   : > { %v7510_v0 = vpop.eup %5578 }
 0x95c   : > { %2950 = vadd.xlane.f32.xlu0 %v7502_v30  ;;  %2956 = vadd.xlane.f32.xlu1 %v7504_v28  ;;  %v7514_v23 = vpop.eup %5580 }
 0x95d   : > { %v7516_v54 = vpop.eup %5582 }
 0x960   : > { %2952 = vadd.xlane.f32.xlu1 %v7508_v63  ;;  %2954 = vadd.xlane.f32.xlu0 %v7510_v0 }
 0x961   : > { %v7520_v13 = vpop.eup %5584 }
 0x963   : > { %v7522_v36 = vpop.eup %5586 }
 0x964   : > { %2964 = vadd.xlane.f32.xlu1 %v7516_v54  ;;  %2958 = vadd.xlane.f32.xlu0 %v7514_v23  ;;  %v7526_v33 = vpop.eup %5588 }
 0x968   : > { %2960 = vadd.xlane.f32.xlu1 %v7520_v13  ;;  %2962 = vadd.xlane.f32.xlu0 %v7522_v36 }
 0x96c   : > { %2966 = vadd.xlane.f32.xlu0 %v7526_v33 }
 0x979   : > { %3194 = vrot.lane.b32.xlu1 %v6269_v52, %s8438_s18 }
 0x97d   : > { %3180 = vrot.lane.b32.xlu1 %v6266_v50, %s8438_s18 }
 0x981   : > { %3196 = vrot.lane.b32.xlu1 %v6295_v14, %s8438_s18 }
 0x982   : > { %3178 = vrot.lane.b32.xlu0 %v6271_v53, %s8438_s18 }
 0x985   : > { %3184 = vrot.lane.b32.xlu1 %v6292_v11, %s8438_s18 }
 0x986   : > { %3182 = vrot.lane.b32.xlu0 %v6297_v15, %s8438_s18 }
 0x989   : > { %3186 = vrot.lane.b32.xlu1 %v6321_v44, %s8438_s18 }
 0x98a   : > { %3198 = vrot.lane.b32.xlu0 %v6319_v43, %s8438_s18 }
 0x98d   : > { %3200 = vrot.lane.b32.xlu1 %v6343_v9, %s8438_s18 }
 0x98e   : > { %3188 = vrot.lane.b32.xlu0 %v6316_v41, %s8438_s18 }
 0x991   : > { %3192 = vrot.lane.b32.xlu1 %v6340_v6, %s8438_s18 }
 0x992   : > { %3190 = vrot.lane.b32.xlu0 %v6345_v10, %s8438_s18 }
 0x995   : > { %3204 = vrot.lane.b32.xlu1 %v6373_v49, %s8438_s18 }
 0x996   : > { %3202 = vrot.lane.b32.xlu0 %v6361_v29, %s8438_s18 }
 0x999   : > { %3208 = vrot.lane.b32.xlu1 %v6397_v27, %s8438_s18 }
 0x99a   : > { %3206 = vrot.lane.b32.xlu0 %v6385_v3, %s8438_s18 }
 0x9a0   : > { %v2941_v50 = vpop.xlane.xlu0 %2940 }
 0x9a4   : > { %v2937_v52 = vpop.xlane.xlu1 %2936 }
 0x9a5   : > { %5590 = vrcp.f32 %v2937_v52 }
 0x9a8   : > { %v2943_v53 = vpop.xlane.xlu0 %2942  ;;  %v3017_v11 = vpop.permute.xlu1 %3016 }
 0x9ac   : > { %v2939_v14 = vpop.xlane.xlu0 %2938  ;;  %v3019_v41 = vpop.permute.xlu1 %3018 }
 0x9ad   : > { %5592 = vrcp.f32 %v2939_v14 }
 0x9ae   : > { %5594 = vrcp.f32 %v2943_v53 }
 0x9af   : > { %5596 = vrcp.f32 %v2941_v50  ;;  %v5591_v43 = vpop.eup %5590 }
 0x9b0   : > { %v3015_v15 = vpop.permute.xlu0 %3014  ;;  %v3021_v6 = vpop.permute.xlu1 %3020  ;;  %v2984_v9 = vmul.f32 %v5591_v43, %v7462_v21  ;;  %v5726_v21 = vld [vmem:[%s8279_s6 + $0x8] sm:$0xff]  }
 0x9b1   : > { %5075 = vmatprep.subr.bf16.mxu0 %v3015_v15 }
 0x9b2   : > { %5076 = vmatpush3.bf16.msra.mxu0 %v3015_v15 }
 0x9b3   : > { %5077 = vmatprep.subr.bf16.mxu0 %v3017_v11 }
 0x9b4   : > { %v3023_v27 = vpop.permute.xlu1 %3022 }
 0x9b6   : > { %5078 = vmatpush3.bf16.msra.mxu0 %v3017_v11 }
 0x9b7   : > { %v5593_v44 = vpop.eup %5592  ;;  %5079 = vmatprep.subr.bf16.mxu0 %v3019_v41 }
 0x9b8   : > { %v2985_v10 = vmul.f32 %v5593_v44, %v7468_v42  ;;  %v5595_v49 = vpop.eup %5594  ;;  %v5732_v44 = vld [vmem:[%s8279_s6 + $0x38] sm:$0xff]  }
 0x9b9   : > { %v5597_v3 = vpop.eup %5596  ;;  %v2987_v38 = vmul.f32 %v5595_v49, %v7465_v37 }
 0x9ba   : > { %5080 = vmatpush3.bf16.msra.mxu0 %v3019_v41  ;;  %v3000_v29 = vpack.c.bf16 %v2985_v10, %v2984_v9  ;;  %v2986_v61 = vmul.f32 %v5597_v3, %v7459_v19  ;;  %v5727_v19 = vld [vmem:[%s8279_s6 + $0x10] sm:$0xff]  }
 0x9bb   : > { %5081 = vmatprep.subr.bf16.mxu0 %v3021_v6 }
 0x9bc   : > { %5085 = vmatprep.mubr.bf16.mxu0 %v3000_v29  ;;  %v3001_v35 = vpack.c.bf16 %v2987_v38, %v2986_v61 }
 0x9be   : > { %5082 = vmatpush3.bf16.msra.mxu0 %v3021_v6 }
 0x9bf   : > { %5083 = vmatprep.subr.bf16.mxu0 %v3023_v27 }
 0x9c2   : > { %5084 = vmatpush3.bf16.msra.mxu0 %v3023_v27 }
 0x9c3   : > { %5301 = vmatprep.subr.msk.bf16.mxu0 %vm8748_vm12, %v7198_v1  ;;  %vm8751_vm12 = vmmov %vm8750_vm7 }
 0x9c5   : > { %5086 = vmatmul.mubr.bf16.vlgmr.msra.gmra.mrb[80].mxu0 %v3001_v35 }
 0x9cb   : > { %5134 = vmatpush3.bf16.xpose.msra.mxu0 %v6159_v45  ;;  %v5728_v45 = vld [vmem:[%s8279_s6 + $0x18] sm:$0xff]  }
 0x9cc   : > { %5302 = vmatprep.subr.msk.bf16.mxu0 %vm8749_vm10, %v5726_v21  ;;  %vm8752_vm10 = vmmov %vm8750_vm7 }
 0x9d3   : > { %5136 = vmatpush3.bf16.xpose.msra.mxu0 %v6174_v56  ;;  %v5729_v56 = vld [vmem:[%s8279_s6 + $0x20] sm:$0xff]  }
 0x9d4   : > { %5303 = vmatprep.subr.msk.bf16.mxu0 %vm8750_vm7, %v5727_v19 }
 0x9db   : > { %5138 = vmatpush3.bf16.xpose.msra.mxu0 %v6187_v2 }
 0x9dc   : > { %5304 = vmatprep.subr.msk.bf16.mxu0 %vm8751_vm12, %v5728_v45  ;;  %vm8753_vm12 = vmmov %vm8750_vm7 }
 0x9e1   : > { %v2949_v1 = vpop.xlane.xlu0 %2948 }
 0x9e3   : > { %5140 = vmatpush3.bf16.xpose.msra.mxu0 %v6198_v7  ;;  %v5730_v7 = vld [vmem:[%s8279_s6 + $0x28] sm:$0xff]  }
 0x9e4   : > { %5305 = vmatprep.subr.msk.bf16.mxu0 %vm8752_vm10, %v5729_v56  ;;  %vm8754_vm10 = vmmov %vm8750_vm7 }
 0x9e5   : > { %v2947_v37 = vpop.xlane.xlu1 %2946  ;;  %v2945_v42 = vpop.xlane.xlu0 %2944 }
 0x9e6   : > { %5598 = vrcp.f32 %v2947_v37 }
 0x9e7   : > { %5600 = vrcp.f32 %v2945_v42 }
 0x9e8   : > { %5602 = vrcp.f32 %v2949_v1 }
 0x9e9   : > { %v2957_v2 = vpop.xlane.xlu1 %2956  ;;  %v2951_v24 = vpop.xlane.xlu0 %2950 }
 0x9ea   : > { %5604 = vrcp.f32 %v2951_v24 }
 0x9eb   : > { %5142 = vmatpush3.bf16.xpose.msra.mxu0 %v6209_v12 }
 0x9ec   : > { %5306 = vmatprep.subr.msk.bf16.mxu0 %vm8750_vm7, %v5730_v7 }
 0x9ed   : > { %v2953_v18 = vpop.xlane.xlu1 %2952  ;;  %v2955_v60 = vpop.xlane.xlu0 %2954 }
 0x9ee   : > { %5606 = vrcp.f32 %v2953_v18 }
 0x9ef   : > { %5608 = vrcp.f32 %v2955_v60 }
 0x9f0   : > { %v5599_v59 = vpop.eup %5598  ;;  %5610 = vrcp.f32 %v2957_v2 }
 0x9f1   : > { %v5601_v16 = vpop.eup %5600  ;;  %v2965_v58 = vpop.xlane.xlu1 %2964  ;;  %v2989_v26 = vmul.f32 %v5599_v59, %v7497_v57 }
 0x9f2   : > { %v2959_v55 = vpop.xlane.xlu0 %2958  ;;  %v2988_v46 = vmul.f32 %v5601_v16, %v7495_v5  ;;  %v5603_v12 = vpop.eup %5602 }
 0x9f3   : > { %5612 = vrcp.f32 %v2959_v55  ;;  %5144 = vmatpush3.bf16.xpose.msra.mxu0 %v6220_v17  ;;  %v2990_v57 = vmul.f32 %v5603_v12, %v7490_v51 }
 0x9f4   : > { %v3002_v8 = vpack.c.bf16 %v2989_v26, %v2988_v46  ;;  %5307 = vmatprep.subr.msk.bf16.mxu0 %vm8753_vm12, %v5731_v47  ;;  %v5605_v4 = vpop.eup %5604  ;;  %vm8755_vm12 = vmmov %vm8750_vm7 }
 0x9f5   : > { %v2961_v20 = vpop.xlane.xlu1 %2960  ;;  %v2991_v5 = vmul.f32 %v5605_v4, %v7502_v30 }
 0x9f6   : > { %v2963_v50 = vpop.xlane.xlu0 %2962  ;;  %5614 = vrcp.f32 %v2961_v20  ;;  %5089 = vmatprep.mubr.bf16.mxu0 %v3002_v8 }
 0x9f7   : > { %5616 = vrcp.f32 %v2963_v50  ;;  %v3003_v17 = vpack.c.bf16 %v2991_v5, %v2990_v57 }
 0x9f8   : > { %v5607_v52 = vpop.eup %5606  ;;  %5618 = vrcp.f32 %v2965_v58 }
 0x9f9   : > { %v5609_v53 = vpop.eup %5608  ;;  %v3195_v11 = vpop.permute.xlu1 %3194  ;;  %v2992_v15 = vmul.f32 %v5607_v52, %v7508_v63  ;;  %5090 = vmatmul.mubr.bf16.gmra.mrb[84].mxu0 %v3003_v17 }
 0x9fa   : > { %v2967_v14 = vpop.xlane.xlu0 %2966  ;;  %5293 = vmatprep.subr.msk.bf16.mxu1 %vm8754_vm10, %v3195_v11  ;;  %v3235_v41 = vsel %vm8750_vm7, %v3195_v11, 0  ;;  %v2993_v43 = vmul.f32 %v5609_v53, %v7510_v0  ;;  %v5611_v51 = vpop.eup %5610  ;;  %vm8756_vm10 = vmmov %vm8750_vm7 }
 0x9fb   : > { %5620 = vrcp.f32 %v2967_v14  ;;  %5102 = vmatpush3.bf16.xpose.msra.mxu1 %v3235_v41  ;;  %5146 = vmatpush3.bf16.xpose.msra.mxu0 %v6231_v22  ;;  %v2994_v0 = vmul.f32 %v5611_v51, %v7504_v28 }
 0x9fc   : > { %v3004_v30 = vpack.c.bf16 %v2993_v43, %v2992_v15  ;;  %5308 = vmatprep.subr.msk.bf16.mxu0 %vm8755_vm12, %v5732_v44  ;;  %vm8757_vm12 = vmmov %vm8750_vm7 }
 0x9fd   : > { %v5613_v63 = vpop.eup %5612  ;;  %v7610_v6 = vpop.permute.xlu1 %3180 }
 0x9fe   : > { %v3179_v9 = vpop.permute.xlu0 %3178  ;;  %5093 = vmatprep.mubr.bf16.mxu0 %v3004_v30  ;;  %v2995_v10 = vmul.f32 %v5613_v63, %v7514_v23 }
 0x9ff   : > { %5117 = vmatprep.mubr.msk.bf16.mxu1 %vm8756_vm10, %v3179_v9  ;;  %vm8758_vm10 = vmmov %vm8750_vm7 }
 0xa00   : > { %v5615_v29 = vpop.eup %5614  ;;  %v3005_v22 = vpack.c.bf16 %v2995_v10, %v2994_v0 }
 0xa01   : > { %v5617_v49 = vpop.eup %5616  ;;  %v3197_v3 = vpop.permute.xlu1 %3196  ;;  %v2996_v38 = vmul.f32 %v5615_v29, %v7520_v13 }
 0xa02   : > { %v3183_v27 = vpop.permute.xlu0 %3182  ;;  %v5619_v61 = vpop.eup %5618  ;;  %5094 = vmatmul.mubr.bf16.gmra.mrb[88].mxu0 %v3005_v22  ;;  %5294 = vmatprep.subr.msk.bf16.mxu1 %vm8750_vm7, %v3197_v3  ;;  %v3238_v35 = vsel %vm8757_vm12, %v3197_v3, 0  ;;  %v2997_v21 = vmul.f32 %v5617_v49, %v7522_v36  ;;  %vm8759_vm12 = vmmov %vm8750_vm7 }
 0xa03   : > { %5104 = vmatpush3.bf16.xpose.msra.mxu1 %v3238_v35  ;;  %5148 = vmatpush3.bf16.xpose.msra.mxu0 %v6239_v25  ;;  %v2998_v1 = vmul.f32 %v5619_v61, %v7516_v54 }
 0xa04   : > { %v3006_v23 = vpack.c.bf16 %v2997_v21, %v2996_v38 }
 0xa05   : > { %v5621_v28 = vpop.eup %5620  ;;  %v3185_v19 = vpop.permute.xlu1 %3184 }
 0xa06   : > { %v3199_v45 = vpop.permute.xlu0 %3198  ;;  %v2999_v56 = vmul.f32 %v5621_v28, %v7526_v33  ;;  %5097 = vmatprep.mubr.bf16.mxu0 %v3006_v23 }
 0xa07   : > { %5295 = vmatprep.subr.msk.bf16.mxu1 %vm8758_vm10, %v3199_v45  ;;  %v3241_v36 = vsel %vm8750_vm7, %v3199_v45, 0  ;;  %vm8763_vm10 = vmmov %vm8750_vm7 }
 0xa08   : > { %v3007_v13 = vpack.c.bf16 %v2999_v56, %v2998_v1  ;;  %vm8765_vm7 = vmmov %vm8764_vm0 }
 0xa09   : > { %v3187_v37 = vpop.permute.xlu1 %3186 }
 0xa0a   : > { %v3189_v42 = vpop.permute.xlu0 %3188  ;;  %5098 = vmatmul.mubr.bf16.gmra.mrb[92].mxu0 %v3007_v13 }
 0xa0b   : > { %5149 = vmatprep.mubr.msk.bf16.mxu0 %vm8759_vm12, %v3179_v9  ;;  %5106 = vmatpush3.bf16.xpose.msra.mxu1 %v3241_v36  ;;  %vm8766_vm12 = vmmov %vm8764_vm0  ;;  %v8796_v36 = vld [vmem:[#allocation30_spill] sm:$0xff] }
 0xa0d   : > { %v3201_v25 = vpop.permute.xlu1 %3200 }
 0xa0e   : > { %v3191_v2 = vpop.permute.xlu0 %3190  ;;  %5296 = vmatprep.subr.msk.bf16.mxu1 %vm8760_vm14, %v3201_v25  ;;  %v3244_v54 = vsel %vm8762_vm11, %v3201_v25, 0  ;;  %vm8768_vm14 = vmmov %vm8764_vm0 }
 0xa0f   : > { %vm8770_vm11 = vmmov %vm8764_vm0 }
 0xa11   : > { %v3193_v24 = vpop.permute.xlu1 %3192 }
 0xa12   : > { %5150 = vmatmul.mubr.msk.bf16.vlgmr.msra.gmra.mrb[96].mxu0 %vm8761_vm8, %v7610_v6  ;;  %v3203_v33 = vpop.permute.xlu0 %3202  ;;  %vm8769_vm8 = vmmov %vm8764_vm0 }
 0xa13   : > { %5153 = vmatprep.mubr.msk.bf16.mxu0 %vm8763_vm10, %v3183_v27  ;;  %5108 = vmatpush3.bf16.xpose.msra.mxu1 %v3244_v54  ;;  %v3247_v7 = vsel %vm8766_vm12, %v3203_v33, 0  ;;  %vm8771_vm10 = vmmov %vm8764_vm0  ;;  %v8798_v54 = vld [vmem:[#allocation33_spill] sm:$0xff] }
 0xa14   : > { %5297 = vmatprep.subr.msk.bf16.mxu1 %vm8764_vm0, %v3203_v33  ;;  %vm8775_vm12 = vmmov %vm8764_vm0 }
 0xa15   : > { %v3205_v18 = vpop.permute.xlu1 %3204 }
 0xa16   : > { %v3250_v60 = vsel %vm8770_vm11, %v3205_v18, 0  ;;  %v3207_v59 = vpop.permute.xlu0 %3206  ;;  %vm8778_vm11 = vmmov %vm8764_vm0 }
 0xa19   : > { %v3209_v58 = vpop.permute.xlu1 %3208 }
 0xa1a   : > { %5154 = vmatmul.mubr.msk.bf16.gmra.mrb[100].mxu0 %vm8765_vm7, %v3185_v19  ;;  %vm8773_vm7 = vmmov %vm8764_vm0  ;;  %v3256_v55 = vsel %vm8775_vm12, %v3209_v58, 0 }
 0xa1b   : > { %5157 = vmatprep.mubr.msk.bf16.mxu0 %vm8767_vm15, %v3187_v37  ;;  %5110 = vmatpush3.bf16.xpose.msra.mxu1 %v3247_v7  ;;  %v3253_v16 = vsel %vm8773_vm7, %v3207_v59, 0  ;;  %vm8774_vm15 = vmmov %vm8764_vm0 }
 0xa1c   : > { %5298 = vmatprep.subr.msk.bf16.mxu1 %vm8768_vm14, %v3205_v18  ;;  %vm8776_vm14 = vmmov %vm8764_vm0 }
 0xa1d   : > { %vm8781_vm7 = vmmov %vm8764_vm0 }
 0xa22   : > { %5158 = vmatmul.mubr.msk.bf16.gmra.mrb[104].mxu0 %vm8769_vm8, %v3189_v42  ;;  %vm8777_vm8 = vmmov %vm8764_vm0 }
 0xa23   : > { %5161 = vmatprep.mubr.msk.bf16.mxu0 %vm8771_vm10, %v3191_v2  ;;  %5112 = vmatpush3.bf16.xpose.msra.mxu1 %v3250_v60  ;;  %vm8779_vm10 = vmmov %vm8764_vm0  ;;  %v8801_v60 = vld [vmem:[#allocation36_spill] sm:$0xff] }
 0xa24   : > { %5299 = vmatprep.subr.msk.bf16.mxu1 %vm8764_vm0, %v3207_v59 }
 0xa2a   : > { %5162 = vmatmul.mubr.msk.bf16.gmra.mrb[108].mxu0 %vm8772_vm6, %v3193_v24  ;;  %vm8780_vm6 = vmmov %vm8764_vm0 }
 0xa2b   : > { %5114 = vmatpush3.bf16.xpose.msra.mxu1 %v3253_v16  ;;  %v8803_v16 = vld [vmem:[#allocation35_spill] sm:$0xff] }
 0xa2c   : > { %5300 = vmatprep.subr.msk.bf16.mxu1 %vm8774_vm15, %v3209_v58  ;;  %vm8804_vm15 = vnez %v8803_v16 }
 0xa33   : > { %5116 = vmatpush3.bf16.xpose.msra.mxu1 %v3256_v55  ;;  %v8805_v55 = vld [vmem:[#allocation34_spill] sm:$0xff] }
 0xa34   : > { %vm8806_vm12 = vnez %v8805_v55  ;;  %v8819_v55 = vld [vmem:[#allocation41_spill] sm:$0xff] }
 0xa3a   : > { %5118 = vmatmul.mubr.msk.bf16.vlgmr.msra.gmra.mrb[96].mxu1 %vm8776_vm14, %v7610_v6 }
 0xa3b   : > { %5121 = vmatprep.mubr.msk.bf16.mxu1 %vm8777_vm8, %v3183_v27 }
 0xa42   : > { %5122 = vmatmul.mubr.msk.bf16.gmra.mrb[100].mxu1 %vm8778_vm11, %v3185_v19  ;;  %v8787_v19 = vld [vmem:[#allocation29_spill] sm:$0xff] }
 0xa43   : > { %5125 = vmatprep.mubr.msk.bf16.mxu1 %vm8779_vm10, %v3187_v37  ;;  %v8793_v37 = vld [vmem:[#allocation31_spill] sm:$0xff] }
 0xa4a   : > { %5126 = vmatmul.mubr.msk.bf16.gmra.mrb[104].mxu1 %vm8764_vm0, %v3189_v42 }
 0xa4b   : > { %5129 = vmatprep.mubr.msk.bf16.mxu1 %vm8780_vm6, %v3191_v2  ;;  %vm8820_vm6 = vcmp.eq.f32.partialorder %v8819_v55, 0.0 }
 0xa52   : > { %5130 = vmatmul.mubr.msk.bf16.gmra.mrb[108].mxu1 %vm8781_vm7, %v3193_v24 }
 0xa98   : > { %v7651_v26 = vpop.f32.mrb[80].mxu0 }
 0xa99   : > { %v7653_v46 = vpop.f32.mrb[81].mxu0 }
 0xa9a   : > { %v7655_v12 = vpop.f32.mrb[82].mxu0 }
 0xa9b   : > { %v3130_v8 = vpack.c.bf16 %v7655_v12, %v7651_v26  ;;  %v7659_v47 = vpop.f32.mrb[83].mxu0 }
 0xa9c   : > { %v3129_v4 = vpack.c.bf16 %v7659_v47, %v7653_v46  ;;  %v8869_v47 = vld [vmem:[#allocation59_spill] sm:$0xff] }
 0xacc   : > { %v7663_v20 = vpop.f32.mrb[84].mxu0 }
 0xacd   : > { %v7665_v50 = vpop.f32.mrb[85].mxu0 }
 0xace   : > { %v7667_v57 = vpop.f32.mrb[86].mxu0 }
 0xacf   : > { %v3132_v5 = vpack.c.bf16 %v7667_v57, %v7663_v20  ;;  %v7671_v52 = vpop.f32.mrb[87].mxu0 }
 0xad0   : > { %v3131_v17 = vpack.c.bf16 %v7671_v52, %v7665_v50 }
 0xad5   : > { %v7675_v53 = vpop.f32.mrb[88].mxu0 }
 0xad6   : > { %v7677_v11 = vpop.f32.mrb[89].mxu0 }
 0xad7   : > { %v7679_v14 = vpop.f32.mrb[90].mxu0 }
 0xad8   : > { %v3134_v15 = vpack.c.bf16 %v7679_v14, %v7675_v53  ;;  %v7683_v41 = vpop.f32.mrb[91].mxu0  ;;  %v8866_v14 = vld [vmem:[#allocation60_spill] sm:$0xff] }
 0xad9   : > { %v3133_v43 = vpack.c.bf16 %v7683_v41, %v7677_v11  ;;  %v8863_v41 = vld [vmem:[#allocation67_spill] sm:$0xff] }
 0xadd   : > { %v7687_v51 = vpop.f32.mrb[92].mxu0 }
 0xade   : > { %v7689_v30 = vpop.f32.mrb[93].mxu0 }
 0xadf   : > { %v7691_v44 = vpop.f32.mrb[94].mxu0 }
 0xae0   : > { %v3136_v63 = vpack.c.bf16 %v7691_v44, %v7687_v51  ;;  %v7695_v6 = vpop.f32.mrb[95].mxu0 }
 0xae1   : > { %v3135_v9 = vpack.c.bf16 %v7695_v6, %v7689_v30 }
 0xae5   : > { %v5151_v0 = vpop.f32.mrb[96].mxu0 }
 0xae6   : > { %v3470_v10 = vsel %vm6445_vm1, %v5151_v0, 0.0  ;;  %v3405_v29 = vpop.f32.mrb[97].mxu0  ;;  %vm8786_vm1 = vnez %v8785_v62 }
 0xae7   : > { %3494 = vrot.lane.b32.xlu0 %v3470_v10, %s5890_s16  ;;  %v5152_v22 = vpop.f32.mrb[98].mxu0  ;;  %v3468_v27 = vsel %vm6451_vm2, %v3405_v29, 0.0  ;;  %s8782_s16 = smov 305   ;;  %vm8788_vm2 = vnez %v8787_v19  ;;  %v8808_v10 = vld [vmem:[#allocation14_spill] sm:$0xff] }
 0xae8   : > { %v3408_v49 = vpop.f32.mrb[99].mxu0  ;;  %v3471_v38 = vsel %vm6461_vm3, %v5152_v22, 0.0  ;;  %vm8792_vm3 = vnez %v8791_v32  ;;  %v8809_v19 = vld [vmem:[#allocation38_spill] sm:$0xff] }
 0xae9   : > { %v3469_v3 = vsel %vm6470_vm4, %v3408_v49, 0.0  ;;  %vm8794_vm4 = vnez %v8793_v37  ;;  %vm8810_vm14 = vcmp.eq.f32.partialorder %v8809_v19, 0.0  ;;  %v8813_v37 = vld [vmem:[#allocation37_spill] sm:$0xff] }
 0xaea   : > { %3490 = vrot.lane.b32.xlu1 %v3469_v3, %s5893_s22  ;;  %s8784_s22 = smov 289   ;;  %vm8814_vm11 = vcmp.eq.f32.partialorder %v8813_v37, 0.0 }
 0xaeb   : > { %3486 = vrot.lane.b32.xlu0 %v3468_v27, %s5891_s19  ;;  %s8783_s19 = smov 297  }
 0xaed   : > { %v5155_v40 = vpop.f32.mrb[100].mxu0 }
 0xaee   : > { %v3474_v61 = vsel %vm6480_vm5, %v5155_v40, 0.0  ;;  %3498 = vrot.lane.b32.xlu1 %v3471_v38, %s5892_s20  ;;  %v3421_v35 = vpop.f32.mrb[101].mxu0  ;;  %s8789_s20 = smov 313   ;;  %vm8797_vm5 = vnez %v8796_v36 }
 0xaef   : > { %3510 = vrot.lane.b32.xlu0 %v3474_v61, %s8782_s16  ;;  %v5156_v39 = vpop.f32.mrb[102].mxu0  ;;  %v3472_v28 = vsel %vm8572_vm13, %v3421_v35, 0.0  ;;  %vm8799_vm13 = vnez %v8798_v54  ;;  %v8815_v54 = vld [vmem:[#allocation40_spill] sm:$0xff] }
 0xaf0   : > { %v3424_v21 = vpop.f32.mrb[103].mxu0  ;;  %v3475_v34 = vsel %vm8786_vm1, %v5156_v39, 0.0  ;;  %vm8816_vm10 = vcmp.eq.f32.partialorder %v8815_v54, 0.0  ;;  %v8829_v54 = vld [vmem:[#allocation48_spill] sm:$0xff] }
 0xaf1   : > { %v3473_v31 = vsel %vm8573_vm9, %v3424_v21, 0.0  ;;  %vm8802_vm9 = vnez %v8801_v60 }
 0xaf2   : > { %3506 = vrot.lane.b32.xlu1 %v3473_v31, %s8783_s19 }
 0xaf3   : > { %3502 = vrot.lane.b32.xlu0 %v3472_v28, %s8784_s22 }
 0xaf5   : > { %v5159_v23 = vpop.f32.mrb[104].mxu0 }
 0xaf6   : > { %v3478_v45 = vsel %vm8788_vm2, %v5159_v23, 0.0  ;;  %3514 = vrot.lane.b32.xlu1 %v3475_v34, %s8789_s20  ;;  %v3437_v1 = vpop.f32.mrb[105].mxu0 }
 0xaf7   : > { %3526 = vrot.lane.b32.xlu0 %v3478_v45, %s8790_s23  ;;  %v5160_v48 = vpop.f32.mrb[106].mxu0  ;;  %v3476_v42 = vsel %vm8794_vm4, %v3437_v1, 0.0  ;;  %vm8830_vm4 = vcmp.eq.f32.partialorder %v8829_v54, 0.0 }
 0xaf8   : > { %v3440_v56 = vpop.f32.mrb[107].mxu0  ;;  %v3479_v25 = vsel %vm8797_vm5, %v5160_v48, 0.0 }
 0xaf9   : > { %v3477_v13 = vsel %vm8792_vm3, %v3440_v56, 0.0  ;;  %v8811_v56 = vld [vmem:[#allocation39_spill] sm:$0xff] }
 0xafa   : > { %3522 = vrot.lane.b32.xlu1 %v3477_v13, %s8698_s24  ;;  %s8807_s24 = smov 32   ;;  %vm8812_vm8 = vcmp.eq.f32.partialorder %v8811_v56, 0.0 }
 0xafb   : > { %3518 = vrot.lane.b32.xlu0 %v3476_v42, %s8795_s27 }
 0xafd   : > { %v5163_v2 = vpop.f32.mrb[108].mxu0 }
 0xafe   : > { %v3482_v33 = vsel %vm8799_vm13, %v5163_v2, 0.0  ;;  %3530 = vrot.lane.b32.xlu1 %v3479_v25, %s8800_s4  ;;  %v3453_v24 = vpop.f32.mrb[109].mxu0 }
 0xaff   : > { %3542 = vrot.lane.b32.xlu0 %v3482_v33, %s8701_s21  ;;  %v5164_v7 = vpop.f32.mrb[110].mxu0  ;;  %v3480_v58 = vsel %vm8804_vm15, %v3453_v24, 0.0 }
 0xb00   : > { %v3456_v18 = vpop.f32.mrb[111].mxu0  ;;  %v3483_v0 = vsel %vm8806_vm12, %v5164_v7, 0.0  ;;  %v8817_v7 = vld [vmem:[#allocation43_spill] sm:$0xff] }
 0xb01   : > { %v3481_v59 = vsel %vm8802_vm9, %v3456_v18, 0.0  ;;  %vm8818_vm0 = vcmp.eq.f32.partialorder %v8817_v7, 0.0 }
 0xb02   : > { %3538 = vrot.lane.b32.xlu1 %v3481_v59, %s8591_s17 }
 0xb03   : > { %3534 = vrot.lane.b32.xlu0 %v3480_v58, %s8588_s15 }
 0xb06   : > { %3546 = vrot.lane.b32.xlu1 %v3483_v0, %s8585_s29 }
 0xb0a   : > { %3716 = vrot.lane.b32.xlu1 %v8808_v10, %s8807_s24 }
 0xb0d   : > { %v5119_v29 = vpop.f32.mrb[96].mxu1 }
 0xb0e   : > { %v3292_v22 = vpop.f32.mrb[97].mxu1  ;;  %v3357_v45 = vsel %vm8810_vm14, -1e+09, %v5119_v29  ;;  %vm2461_vm14 = vcmask 523520  }
 0xb0f   : > { %v5120_v49 = vpop.f32.mrb[98].mxu1  ;;  %v3355_v42 = vsel %vm8814_vm11, -1e+09, %v3292_v22  ;;  %v8821_v22 = vld [vmem:[#allocation44_spill] sm:$0xff]  ;;  %vm3877_vm11 = vcmask 1048320  }
 0xb10   : > { %v3295_v3 = vpop.f32.mrb[99].mxu1  ;;  %v3358_v33 = vsel %vm8816_vm10, -1e+09, %v5120_v49  ;;  %vm8822_vm7 = vcmp.eq.f32.partialorder %v8821_v22, 0.0 }
 0xb11   : > { %v3356_v32 = vsel %vm8812_vm8, -1e+09, %v3295_v3  ;;  %vm3169_vm8 = vcmask 785920  }
 0xb15   : > { %v5123_v27 = vpop.f32.mrb[100].mxu1 }
 0xb16   : > { %v3308_v38 = vpop.f32.mrb[101].mxu1  ;;  %v3361_v18 = vsel %vm8818_vm0, -1e+09, %v5123_v27  ;;  %v8823_v27 = vld [vmem:[#allocation47_spill] sm:$0xff] }
 0xb17   : > { %v5124_v40 = vpop.f32.mrb[102].mxu1  ;;  %v3359_v0 = vsel %vm8820_vm6, -1e+09, %v3308_v38  ;;  %vm8824_vm1 = vcmp.eq.f32.partialorder %v8823_v27, 0.0  ;;  %v8825_v38 = vld [vmem:[#allocation42_spill] sm:$0xff] }
 0xb18   : > { %v3311_v61 = vpop.f32.mrb[103].mxu1  ;;  %v3362_v49 = vsel %vm8822_vm7, -1e+09, %v5124_v40  ;;  %vm8826_vm2 = vcmp.eq.f32.partialorder %v8825_v38, 0.0  ;;  %v8827_v40 = vld [vmem:[#allocation45_spill] sm:$0xff]  ;;  %v8841_v38 = vld [vmem:[#allocation20_spill] sm:$0xff] }
 0xb19   : > { %vm8828_vm3 = vcmp.eq.f32.partialorder %v8827_v40, 0.0 }
 0xb1d   : > { %v5127_v35 = vpop.f32.mrb[104].mxu1 }
 0xb1e   : > { %v3324_v39 = vpop.f32.mrb[105].mxu1  ;;  %v3365_v19 = vsel %vm8824_vm1, -1e+09, %v5127_v35 }
 0xb1f   : > { %v5128_v21 = vpop.f32.mrb[106].mxu1  ;;  %v3363_v37 = vsel %vm8828_vm3, -1e+09, %v3324_v39 }
 0xb20   : > { %v3327_v31 = vpop.f32.mrb[107].mxu1 }
 0xb25   : > { %v5131_v28 = vpop.f32.mrb[108].mxu1 }
 0xb26   : > { %v3340_v62 = vpop.f32.mrb[109].mxu1 }
 0xb27   : > { %v7749_v34 = vpop.f32.mrb[110].mxu1 }
 0xb28   : > { %v7751_v23 = vpop.f32.mrb[111].mxu1 }
 0xb59   : > { %v3495_v1 = vpop.permute.xlu0 %3494 }
 0xb5a   : > { %v7755_v48 = vadd.f32 %v3495_v1, %v3357_v45 }
 0xb5c   : > { %v3491_v13 = vpop.permute.xlu1 %3490  ;;  %3568 = vmax.xlane.f32.xlu0 %v7755_v48 }
 0xb5d   : > { %v7762_v36 = vadd.f32 %v3491_v13, %v3356_v32  ;;  %v3487_v25 = vpop.permute.xlu0 %3486  ;;  %v3360_v32 = vsel %vm8826_vm2, -1e+09, %v3311_v61  ;;  %v8831_v61 = vld [vmem:[#allocation51_spill] sm:$0xff] }
 0xb5e   : > { %v7764_v2 = vadd.f32 %v3487_v25, %v3355_v42  ;;  %vm8832_vm5 = vcmp.eq.f32.partialorder %v8831_v61, 0.0 }
 0xb5f   : > { %3566 = vmax.xlane.f32.xlu1 %v7762_v36  ;;  %v3369_v7 = vsel %vm8832_vm5, -1e+09, %v5131_v28 }
 0xb60   : > { %v3499_v24 = vpop.permute.xlu1 %3498  ;;  %3564 = vmax.xlane.f32.xlu0 %v7764_v2 }
 0xb61   : > { %v7772_v60 = vadd.f32 %v3499_v24, %v3358_v33  ;;  %v3511_v59 = vpop.permute.xlu0 %3510  ;;  %v3366_v33 = vsel %vm8830_vm4, -1e+09, %v5128_v21  ;;  %v8835_v21 = vld [vmem:[#allocation49_spill] sm:$0xff] }
 0xb62   : > { %v7774_v16 = vadd.f32 %v3511_v59, %v3361_v18  ;;  %vm8836_vm9 = vcmp.eq.f32.partialorder %v8835_v21, 0.0 }
 0xb64   : > { %v3507_v58 = vpop.permute.xlu1 %3506  ;;  %3570 = vmax.xlane.f32.xlu0 %v7772_v60  ;;  %3576 = vmax.xlane.f32.xlu1 %v7774_v16 }
 0xb65   : > { %v3503_v10 = vpop.permute.xlu0 %3502  ;;  %v7797_v42 = vadd.f32 %v3507_v58, %v3360_v32  ;;  %v8833_v58 = vld [vmem:[#allocation46_spill] sm:$0xff]  ;;  %v8842_v32 = vld [vmem:[#allocation52_spill] sm:$0xff] }
 0xb66   : > { %v7780_v29 = vadd.f32 %v3503_v10, %v3359_v0  ;;  %vm8834_vm13 = vcmp.eq.f32.partialorder %v8833_v58, 0.0  ;;  %v3367_v10 = vsel %vm8836_vm9, -1e+09, %v3340_v62  ;;  %v8839_v62 = vld [vmem:[#allocation17_spill] sm:$0xff]  ;;  %vm8843_vm15 = vcmp.eq.f32.partialorder %v8842_v32, 0.0 }
 0xb67   : > { %v3364_v55 = vsel %vm8834_vm13, -1e+09, %v3327_v31  ;;  %v8837_v31 = vld [vmem:[#allocation15_spill] sm:$0xff] }
 0xb68   : > { %v3515_v3 = vpop.permute.xlu1 %3514  ;;  %3572 = vmax.xlane.f32.xlu1 %v7780_v29 }
 0xb69   : > { %v7787_v45 = vadd.f32 %v3515_v3, %v3362_v49  ;;  %v3527_v1 = vpop.permute.xlu0 %3526 }
 0xb6a   : > { %v7789_v56 = vadd.f32 %v3527_v1, %v3365_v19  ;;  %v8838_v19 = vld [vmem:[#allocation16_spill] sm:$0xff]  ;;  %v8840_v1 = vld [vmem:[#allocation18_spill] sm:$0xff] }
 0xb6b   : > { %3578 = vmax.xlane.f32.xlu0 %v7787_v45 }
 0xb6c   : > { %v3523_v13 = vpop.permute.xlu1 %3522  ;;  %3584 = vmax.xlane.f32.xlu1 %v7789_v56 }
 0xb6d   : > { %v3519_v25 = vpop.permute.xlu0 %3518  ;;  %v7817_v22 = vadd.f32 %v3523_v13, %v3364_v55  ;;  %v3370_v13 = vsel %vm8843_vm15, -1e+09, %v7749_v34 }
 0xb6e   : > { %v7799_v35 = vadd.f32 %v3519_v25, %v3363_v37  ;;  %v8844_v37 = vld [vmem:[#allocation50_spill] sm:$0xff] }
 0xb6f   : > { %3574 = vmax.xlane.f32.xlu0 %v7797_v42  ;;  %vm8845_vm12 = vcmp.eq.f32.partialorder %v8844_v37, 0.0 }
 0xb70   : > { %v3531_v24 = vpop.permute.xlu1 %3530  ;;  %3580 = vmax.xlane.f32.xlu1 %v7799_v35  ;;  %v3368_v25 = vsel %vm8845_vm12, -1e+09, %v7751_v23 }
 0xb71   : > { %v7807_v18 = vadd.f32 %v3531_v24, %v3366_v33  ;;  %v3543_v59 = vpop.permute.xlu0 %3542  ;;  %v8846_v33 = vld [vmem:[#allocation19_spill] sm:$0xff] }
 0xb72   : > { %v7809_v39 = vadd.f32 %v3543_v59, %v3369_v7 }
 0xb73   : > { %3586 = vmax.xlane.f32.xlu0 %v7807_v18 }
 0xb74   : > { %v3539_v0 = vpop.permute.xlu1 %3538  ;;  %3592 = vmax.xlane.f32.xlu1 %v7809_v39 }
 0xb75   : > { %v3535_v49 = vpop.permute.xlu0 %3534  ;;  %v7842_v54 = vadd.f32 %v3539_v0, %v3368_v25 }
 0xb76   : > { %v7819_v28 = vadd.f32 %v3535_v49, %v3367_v10 }
 0xb77   : > { %3582 = vmax.xlane.f32.xlu0 %v7817_v22 }
 0xb78   : > { %v3547_v3 = vpop.permute.xlu1 %3546  ;;  %3588 = vmax.xlane.f32.xlu1 %v7819_v28 }
 0xb79   : > { %v7836_v40 = vadd.f32 %v3547_v3, %v3370_v13 }
 0xb7c   : > { %v3717_v27 = vpop.permute.xlu1 %3716 }
 0xb7d   : > { %5165 = vmatprep.subr.bf16.mxu1 %v3717_v27 }
 0xb7e   : > { %5166 = vmatpush3.bf16.msra.mxu1 %v3717_v27 }
 0xb89   : > { %3718 = vrot.lane.b32.xlu1 %v8837_v31, %s8807_s24 }
 0xb8d   : > { %3720 = vrot.lane.b32.xlu0 %v8838_v19, %s8807_s24  ;;  %3722 = vrot.lane.b32.xlu1 %v8839_v62, %s8807_s24 }
 0xb91   : > { %3724 = vrot.lane.b32.xlu0 %v8840_v1, %s8807_s24  ;;  %3728 = vrot.lane.b32.xlu1 %v8841_v38, %s8807_s24 }
 0xbb0   : > { %3594 = vmax.xlane.f32.xlu0 %v7836_v40 }
 0xbb4   : > { %3590 = vmax.xlane.f32.xlu0 %v7842_v54 }
 0xbca   : > { %3726 = vrot.lane.b32.xlu0 %v8846_v33, %s8807_s24 }
 0xbe9   : > { %v3569_v24 = vpop.xlane.xlu0 %3568 }
 0xbea   : > { %v3598_v61 = vsub.f32 %v7755_v48, %v3569_v24 }
 0xbec   : > { %v3616_v7 = vmul.f32 1.442695, %v3598_v61  ;;  %v3567_v34 = vpop.xlane.xlu1 %3566 }
 0xbed   : > { %v3565_v59 = vpop.xlane.xlu0 %3564  ;;  %v3597_v49 = vsub.f32 %v7762_v36, %v3567_v34 }
 0xbee   : > { %5622 = vpow2.f32 %v3616_v7  ;;  %v3596_v58 = vsub.f32 %v7764_v2, %v3565_v59 }
 0xbef   : > { %v3614_v19 = vmul.f32 1.442695, %v3597_v49 }
 0xbf0   : > { %v3612_v55 = vmul.f32 1.442695, %v3596_v58 }
 0xbf1   : > { %v3577_v21 = vpop.xlane.xlu1 %3576  ;;  %v3571_v10 = vpop.xlane.xlu0 %3570 }
 0xbf2   : > { %5624 = vpow2.f32 %v3612_v55  ;;  %v3602_v23 = vsub.f32 %v7774_v16, %v3577_v21  ;;  %v3599_v0 = vsub.f32 %v7772_v60, %v3571_v10 }
 0xbf4   : > { %v3624_v3 = vmul.f32 1.442695, %v3602_v23  ;;  %v3618_v27 = vmul.f32 1.442695, %v3599_v0 }
 0xbf5   : > { %v3573_v31 = vpop.xlane.xlu1 %3572 }
 0xbf6   : > { %5626 = vpow2.f32 %v3624_v3  ;;  %v3600_v48 = vsub.f32 %v7780_v29, %v3573_v31 }
 0xbf7   : > { %5628 = vpow2.f32 %v3618_v27 }
 0xbf8   : > { %v7853_v62 = vpop.eup %5622  ;;  %v3620_v2 = vmul.f32 1.442695, %v3600_v48  ;;  %v3579_v1 = vpop.xlane.xlu0 %3578 }
 0xbf9   : > { %v3603_v38 = vsub.f32 %v7787_v45, %v3579_v1  ;;  %v3585_v32 = vpop.xlane.xlu1 %3584  ;;  %3648 = vadd.xlane.f32.xlu0 %v7853_v62 }
 0xbfa   : > { %5630 = vpow2.f32 %v3620_v2  ;;  %v3606_v36 = vsub.f32 %v7789_v56, %v3585_v32 }
 0xbfb   : > { %5632 = vpow2.f32 %v3614_v19  ;;  %v3626_v60 = vmul.f32 1.442695, %v3603_v38 }
 0xbfc   : > { %v7858_v16 = vpop.eup %5624  ;;  %v3575_v13 = vpop.xlane.xlu0 %3574  ;;  %v3632_v25 = vmul.f32 1.442695, %v3606_v36 }
 0xbfd   : > { %5634 = vpow2.f32 %v3626_v60  ;;  %v3601_v29 = vsub.f32 %v7797_v42, %v3575_v13  ;;  %v3581_v37 = vpop.xlane.xlu1 %3580  ;;  %3644 = vadd.xlane.f32.xlu0 %v7858_v16 }
 0xbfe   : > { %v3604_v45 = vsub.f32 %v7799_v35, %v3581_v37 }
 0xbff   : > { %v3622_v33 = vmul.f32 1.442695, %v3601_v29 }
 0xc00   : > { %v7863_v24 = vpop.eup %5626  ;;  %v3587_v61 = vpop.xlane.xlu0 %3586  ;;  %v3628_v34 = vmul.f32 1.442695, %v3604_v45 }
 0xc01   : > { %v7865_v7 = vpop.eup %5628  ;;  %5636 = vpow2.f32 %v3622_v33  ;;  %v3593_v56 = vpop.xlane.xlu1 %3592  ;;  %3656 = vadd.xlane.f32.xlu1 %v7863_v24  ;;  %v3607_v42 = vsub.f32 %v7807_v18, %v3587_v61 }
 0xc02   : > { %5638 = vpow2.f32 %v3632_v25  ;;  %3650 = vadd.xlane.f32.xlu0 %v7865_v7  ;;  %v3610_v55 = vsub.f32 %v7809_v39, %v3593_v56 }
 0xc03   : > { %5640 = vpow2.f32 %v3628_v34  ;;  %v3634_v23 = vmul.f32 1.442695, %v3607_v42  ;;  %v8848_v42 = vld [vmem:[#allocation54_spill] sm:$0xff] }
 0xc04   : > { %v7870_v59 = vpop.eup %5630  ;;  %v3583_v58 = vpop.xlane.xlu0 %3582  ;;  %v3640_v3 = vmul.f32 1.442695, %v3610_v55  ;;  %v8851_v55 = vld [vmem:[#allocation62_spill] sm:$0xff] }
 0xc05   : > { %v7872_v35 = vpop.eup %5632  ;;  %v3605_v21 = vsub.f32 %v7817_v22, %v3583_v58  ;;  %3652 = vadd.xlane.f32.xlu1 %v7870_v59  ;;  %v3589_v10 = vpop.xlane.xlu1 %3588  ;;  %v8850_v58 = vld [vmem:[#allocation64_spill] sm:$0xff] }
 0xc06   : > { %v3608_v0 = vsub.f32 %v7819_v28, %v3589_v10  ;;  %3646 = vadd.xlane.f32.xlu0 %v7872_v35  ;;  %v8853_v10 = vld [vmem:[#allocation63_spill] sm:$0xff] }
 0xc07   : > { %v7879_v18 = vpop.eup %5634  ;;  %v3630_v49 = vmul.f32 1.442695, %v3605_v21  ;;  %v8852_v21 = vpack.c.bf16 %v8850_v58, %v8851_v55 }
 0xc08   : > { %v3636_v39 = vmul.f32 1.442695, %v3608_v0  ;;  %v3721_v31 = vpop.permute.xlu0 %3720 }
 0xc09   : > { %5642 = vpow2.f32 %v3630_v49  ;;  %v3719_v27 = vpop.permute.xlu1 %3718  ;;  %3658 = vadd.xlane.f32.xlu1 %v7879_v18  ;;  %v8856_v49 = vld [vmem:[#allocation21_spill] sm:$0xff] }
 0xc0a   : > { %5644 = vpow2.f32 %v3634_v23  ;;  %5167 = vmatprep.subr.bf16.mxu1 %v3719_v27  ;;  %v8854_v23 = vld [vmem:[#allocation61_spill] sm:$0xff] }
 0xc0b   : > { %v7882_v22 = vpop.eup %5636  ;;  %5168 = vmatpush3.bf16.msra.mxu1 %v3719_v27  ;;  %5646 = vpow2.f32 %v3640_v3  ;;  %v8855_v0 = vpack.c.bf16 %v8853_v10, %v8854_v23  ;;  %v8857_v3 = vld [vmem:[#allocation55_spill] sm:$0xff]  ;;  %v8858_v27 = vld [vmem:[#allocation53_spill] sm:$0xff] }
 0xc0c   : > { %v7884_v48 = vpop.eup %5638  ;;  %3654 = vadd.xlane.f32.xlu0 %v7882_v22  ;;  %5169 = vmatprep.subr.bf16.mxu1 %v3721_v31  ;;  %5648 = vpow2.f32 %v3636_v39  ;;  %v3725_v1 = vpop.permute.xlu0 %3724  ;;  %v8859_v39 = vpack.c.bf16 %v8857_v3, %v8858_v27 }
 0xc0d   : > { %3664 = vadd.xlane.f32.xlu1 %v7884_v48  ;;  %v3723_v28 = vpop.permute.xlu1 %3722  ;;  %v7888_v19 = vpop.eup %5640 }
 0xc0f   : > { %5170 = vmatpush3.bf16.msra.mxu1 %v3721_v31  ;;  %v8860_v31 = vld [vmem:[#allocation68_spill] sm:$0xff] }
 0xc10   : > { %5171 = vmatprep.subr.bf16.mxu1 %v3723_v28 }
 0xc11   : > { %3660 = vadd.xlane.f32.xlu1 %v7888_v19  ;;  %v3729_v61 = vpop.permute.xlu1 %3728 }
 0xc13   : > { %v7891_v2 = vpop.eup %5642  ;;  %5172 = vmatpush3.bf16.msra.mxu1 %v3723_v28  ;;  %v8861_v28 = vld [vmem:[#allocation66_spill] sm:$0xff] }
 0xc14   : > { %v7893_v38 = vpop.eup %5644  ;;  %3662 = vadd.xlane.f32.xlu0 %v7891_v2  ;;  %5173 = vmatprep.subr.bf16.mxu1 %v3725_v1  ;;  %v8862_v11 = vpack.c.bf16 %v8860_v31, %v8861_v28 }
 0xc15   : > { %3666 = vadd.xlane.f32.xlu1 %v7893_v38  ;;  %v7897_v32 = vpop.eup %5646 }
 0xc16   : > { %v7899_v36 = vpop.eup %5648 }
 0xc17   : > { %5174 = vmatpush3.bf16.msra.mxu1 %v3725_v1 }
 0xc18   : > { %3672 = vadd.xlane.f32.xlu0 %v7897_v32 }
 0xc19   : > { %3668 = vadd.xlane.f32.xlu1 %v7899_v36 }
 0xc3d   : > { %v3595_v60 = vpop.xlane.xlu0 %3594 }
 0xc3e   : > { %v3611_v13 = vsub.f32 %v7836_v40, %v3595_v60  ;;  %v8847_v40 = vld [vmem:[#allocation56_spill] sm:$0xff] }
 0xc40   : > { %v3642_v29 = vmul.f32 1.442695, %v3611_v13 }
 0xc41   : > { %v3591_v37 = vpop.xlane.xlu0 %3590 }
 0xc42   : > { %5650 = vpow2.f32 %v3642_v29  ;;  %v3609_v25 = vsub.f32 %v7842_v54, %v3591_v37  ;;  %v8849_v54 = vpack.c.bf16 %v8847_v40, %v8848_v42 }
 0xc44   : > { %v3638_v45 = vmul.f32 1.442695, %v3609_v25 }
 0xc45   : > { %v3727_v33 = vpop.permute.xlu0 %3726 }
 0xc46   : > { %5652 = vpow2.f32 %v3638_v45  ;;  %5175 = vmatprep.subr.bf16.mxu1 %v3727_v33 }
 0xc47   : > { %5176 = vmatpush3.bf16.msra.mxu1 %v3727_v33 }
 0xc48   : > { %5177 = vmatprep.subr.bf16.mxu1 %v3729_v61 }
 0xc4b   : > { %5178 = vmatpush3.bf16.msra.mxu1 %v3729_v61 }
 0xc4c   : > { %v7905_v56 = vpop.eup %5650 }
 0xc4d   : > { %3674 = vadd.xlane.f32.xlu1 %v7905_v56 }
 0xc50   : > { %v7908_v34 = vpop.eup %5652 }
 0xc51   : > { %3670 = vadd.xlane.f32.xlu0 %v7908_v34 }
 0xc5e   : > { %2437 = vrot.lane.b32.xlu1 %v8849_v54, %s8807_s24 }
 0xc62   : > { %2445 = vrot.lane.b32.xlu1 %v8852_v21, %s8807_s24 }
 0xc66   : > { %2447 = vrot.lane.b32.xlu1 %v8855_v0, %s8807_s24 }
 0xc67   : > { %3730 = vrot.lane.b32.xlu0 %v8856_v49, %s8807_s24 }
 0xc6a   : > { %3153 = vrot.lane.b32.xlu1 %v3133_v43, %s8716_s28  ;;  %v8864_v43 = vld [vmem:[#allocation65_spill] sm:$0xff] }
 0xc6b   : > { %2439 = vrot.lane.b32.xlu0 %v8859_v39, %s8807_s24  ;;  %v8865_v53 = vpack.c.bf16 %v8863_v41, %v8864_v43 }
 0xc6e   : > { %3155 = vrot.lane.b32.xlu1 %v3134_v15, %s8716_s28  ;;  %v8867_v15 = vld [vmem:[#allocation58_spill] sm:$0xff] }
 0xc6f   : > { %3145 = vrot.lane.b32.xlu0 %v3129_v4, %s8716_s28  ;;  %v8868_v46 = vpack.c.bf16 %v8866_v14, %v8867_v15  ;;  %v8870_v4 = vld [vmem:[#allocation57_spill] sm:$0xff] }
 0xc70   : > { %v8871_v26 = vpack.c.bf16 %v8869_v47, %v8870_v4 }
 0xc72   : > { %2449 = vrot.lane.b32.xlu1 %v8862_v11, %s8807_s24 }
 0xc73   : > { %3147 = vrot.lane.b32.xlu0 %v3130_v8, %s8716_s28 }
 0xc76   : > { %2451 = vrot.lane.b32.xlu1 %v8865_v53, %s8807_s24 }
 0xc77   : > { %2441 = vrot.lane.b32.xlu0 %v8868_v46, %s8807_s24 }
 0xc7a   : > { %3157 = vrot.lane.b32.xlu1 %v3135_v9, %s8716_s28 }
 0xc7b   : > { %2443 = vrot.lane.b32.xlu0 %v8871_v26, %s8807_s24 }
 0xc7f   : > { %3149 = vrot.lane.b32.xlu0 %v3131_v17, %s8716_s28 }
 0xc86   : > { %v3649_v12 = vpop.xlane.xlu0 %3648 }
 0xc87   : > { %5654 = vrcp.f32 %v3649_v12 }
 0xc8a   : > { %v3645_v8 = vpop.xlane.xlu0 %3644 }
 0xc8e   : > { %v3657_v45 = vpop.xlane.xlu1 %3656 }
 0xc8f   : > { %v3651_v1 = vpop.xlane.xlu0 %3650 }
 0xc90   : > { %5656 = vrcp.f32 %v3651_v1 }
 0xc91   : > { %5658 = vrcp.f32 %v3645_v8  ;;  %v5655_v30 = vpop.eup %5654 }
 0xc92   : > { %v3694_v9 = vmul.f32 %v5655_v30, %v7853_v62  ;;  %v3653_v33 = vpop.xlane.xlu1 %3652 }
 0xc93   : > { %v3647_v60 = vpop.xlane.xlu0 %3646 }
 0xc94   : > { %5660 = vrcp.f32 %v3647_v60 }
 0xc96   : > { %v3659_v61 = vpop.xlane.xlu1 %3658 }
 0xc99   : > { %v3655_v54 = vpop.xlane.xlu0 %3654 }
 0xc9a   : > { %v5657_v6 = vpop.eup %5656  ;;  %v3665_v40 = vpop.xlane.xlu1 %3664  ;;  %5662 = vrcp.f32 %v3655_v54  ;;  %v5428_v54 = vld [vmem:[#allocation8 + $0x30] sm:$0xff]  }
 0xc9b   : > { %v3695_v13 = vmul.f32 %v5657_v6, %v7865_v7  ;;  %v5659_v29 = vpop.eup %5658  ;;  %5664 = vrcp.f32 %v3653_v33  ;;  %v5422_v33 = vld [vmem:[#allocation8] sm:$0xff]  }
 0xc9c   : > { %v3692_v50 = vmul.f32 %v5659_v29, %v7858_v16  ;;  %5666 = vrcp.f32 %v3659_v61  ;;  %v5423_v61 = vld [vmem:[#allocation8 + $0x8] sm:$0xff]   ;;  %5197 = vmatprep.subr.bf16.mxu0 %v5422_v33 }
 0xc9d   : > { %v3709_v37 = vpack.c.bf16 %v3695_v13, %v3694_v9  ;;  %5198 = vmatpush3.bf16.msra.mxu0 %v5422_v33 }
 0xc9e   : > { %v5661_v25 = vpop.eup %5660  ;;  %v3661_v42 = vpop.xlane.xlu1 %3660  ;;  %5199 = vmatprep.subr.bf16.mxu0 %v5423_v61 }
 0xc9f   : > { %v3693_v52 = vmul.f32 %v5661_v25, %v7872_v35 }
 0xca1   : > { %v3708_v17 = vpack.c.bf16 %v3693_v52, %v3692_v50  ;;  %v3663_v55 = vpop.xlane.xlu0 %3662  ;;  %5200 = vmatpush3.bf16.msra.mxu0 %v5423_v61 }
 0xca2   : > { %v3667_v58 = vpop.xlane.xlu1 %3666  ;;  %5668 = vrcp.f32 %v3663_v55  ;;  %v5429_v55 = vld [vmem:[#allocation8 + $0x38] sm:$0xff]  }
 0xca3   : > { %5181 = vmatprep.mubr.bf16.mxu1 %v3708_v17  ;;  %5670 = vrcp.f32 %v3657_v45 }
 0xca4   : > { %v5663_v10 = vpop.eup %5662  ;;  %5672 = vrcp.f32 %v3661_v42  ;;  %v5427_v42 = vld [vmem:[#allocation8 + $0x28] sm:$0xff]  }
 0xca5   : > { %v3673_v7 = vpop.xlane.xlu0 %3672  ;;  %v5665_v23 = vpop.eup %5664  ;;  %v3697_v3 = vmul.f32 %v5663_v10, %v7882_v22  ;;  %5674 = vrcp.f32 %v3667_v58 }
 0xca6   : > { %v3669_v62 = vpop.xlane.xlu1 %3668  ;;  %v3696_v27 = vmul.f32 %v5665_v23, %v7870_v59  ;;  %v5667_v39 = vpop.eup %5666 }
 0xca7   : > { %v3699_v53 = vmul.f32 %v5667_v39, %v7879_v18 }
 0xca8   : > { %v3710_v11 = vpack.c.bf16 %v3697_v3, %v3696_v27 }
 0xcac   : > { %v5669_v41 = vpop.eup %5668 }
 0xcad   : > { %v5671_v22 = vpop.eup %5670  ;;  %v3701_v15 = vmul.f32 %v5669_v41, %v7891_v2 }
 0xcae   : > { %v5673_v43 = vpop.eup %5672  ;;  %v3698_v46 = vmul.f32 %v5671_v22, %v7863_v24 }
 0xcaf   : > { %v3700_v47 = vmul.f32 %v5673_v43, %v7888_v19  ;;  %v5675_v26 = vpop.eup %5674 }
 0xcb0   : > { %v3711_v4 = vpack.c.bf16 %v3699_v53, %v3698_v46  ;;  %v3703_v24 = vmul.f32 %v5675_v26, %v7893_v38 }
 0xcb1   : > { %v3712_v1 = vpack.c.bf16 %v3701_v15, %v3700_v47 }
 0xcda   : > { %v3675_v21 = vpop.xlane.xlu1 %3674 }
 0xcde   : > { %v2438_v16 = vpop.permute.xlu1 %2437  ;;  %v3671_v35 = vpop.xlane.xlu0 %3670 }
 0xcdf   : > { %2462 = vst.msk [vmem:[#allocation2] sm:$0xff] %vm2461_vm14, %v2438_v16  ;;  %5676 = vrcp.f32 %v3671_v35 }
 0xce0   : > { %5678 = vrcp.f32 %v3665_v40  ;;  %v5424_v40 = vld [vmem:[#allocation8 + $0x10] sm:$0xff]  }
 0xce1   : > { %5680 = vrcp.f32 %v3669_v62  ;;  %5201 = vmatprep.subr.bf16.mxu0 %v5424_v40 }
 0xce2   : > { %v2446_v0 = vpop.permute.xlu1 %2445  ;;  %v3731_v49 = vpop.permute.xlu0 %3730  ;;  %5682 = vrcp.f32 %v3675_v21  ;;  %5202 = vmatpush3.bf16.msra.mxu0 %v5424_v40 }
 0xce3   : > { %2466 = vst.msk [vmem:[#allocation2 + $0x20] sm:$0xff] %vm2461_vm14, %v2446_v0  ;;  %5179 = vmatprep.subr.bf16.mxu1 %v3731_v49  ;;  %5684 = vrcp.f32 %v3673_v7 }
 0xce4   : > { %5180 = vmatpush3.bf16.msra.mxu1 %v3731_v49 }
 0xce5   : > { %5229 = vmatprep.subr.bf16.mxu1 %v5422_v33 }
 0xce6   : > { %v2448_v31 = vpop.permute.xlu1 %2447  ;;  %v2440_v28 = vpop.permute.xlu0 %2439 }
 0xce7   : > { %2467 = vst.msk [vmem:[#allocation2 + $0x28] sm:$0xff] %vm2461_vm14, %v2448_v31  ;;  %2463 = vst.msk [vmem:[#allocation2 + $0x8] sm:$0xff] %vm2461_vm14, %v2440_v28  ;;  %5182 = vmatmul.mubr.bf16.vlgmr.msra.gmra.mrb[112].mxu1 %v3709_v37 }
 0xce8   : > { %5185 = vmatprep.mubr.bf16.mxu1 %v3710_v11  ;;  %5237 = vmatpush3.bf16.msra.mxu1 %v5422_v33 }
 0xce9   : > { %v5677_v18 = vpop.eup %5676  ;;  %5230 = vmatprep.subr.bf16.mxu1 %v5423_v61 }
 0xcea   : > { %v3154_v59 = vpop.permute.xlu1 %3153  ;;  %v3146_v14 = vpop.permute.xlu0 %3145  ;;  %v3705_v19 = vmul.f32 %v5677_v18, %v7908_v34 }
 0xceb   : > { %3174 = vst.msk [vmem:[#allocation2 + $0x20] sm:$0xff] %vm3169_vm8, %v3154_v59  ;;  %3170 = vst.msk [vmem:[#allocation2] sm:$0xff] %vm3169_vm8, %v3146_v14  ;;  %v5679_v2 = vpop.eup %5678 }
 0xcec   : > { %v5681_v60 = vpop.eup %5680  ;;  %v3702_v9 = vmul.f32 %v5679_v2, %v7884_v48  ;;  %5238 = vmatpush3.bf16.msra.mxu1 %v5423_v61  ;;  %v5736_v61 = vld [vmem:[%s6127_s13 + $0x18] sm:$0xff] }
 0xced   : > { %v3704_v13 = vmul.f32 %v5681_v60, %v7899_v36  ;;  %v5683_v37 = vpop.eup %5682  ;;  %5231 = vmatprep.subr.bf16.mxu1 %v5424_v40 }
 0xcee   : > { %v3156_v12 = vpop.permute.xlu1 %3155  ;;  %v3148_v8 = vpop.permute.xlu0 %3147  ;;  %v3713_v29 = vpack.c.bf16 %v3703_v24, %v3702_v9  ;;  %v3707_v34 = vmul.f32 %v5683_v37, %v7905_v56  ;;  %v5425_v56 = vld [vmem:[#allocation8 + $0x18] sm:$0xff]  }
 0xcef   : > { %3175 = vst.msk [vmem:[#allocation2 + $0x28] sm:$0xff] %vm3169_vm8, %v3156_v12  ;;  %3171 = vst.msk [vmem:[#allocation2 + $0x8] sm:$0xff] %vm3169_vm8, %v3148_v8  ;;  %5186 = vmatmul.mubr.bf16.gmra.mrb[116].mxu1 %v3711_v4  ;;  %v3714_v52 = vpack.c.bf16 %v3705_v19, %v3704_v13  ;;  %v5685_v38 = vpop.eup %5684  ;;  %5203 = vmatprep.subr.bf16.mxu0 %v5425_v56  ;;  %v8028_v19 = vld [vmem:[%s8282_s9] ss:$0 sm:$0xff] }
 0xcf0   : > { %5189 = vmatprep.mubr.bf16.mxu1 %v3712_v1  ;;  %v3706_v48 = vmul.f32 %v5685_v38, %v7897_v32  ;;  %5239 = vmatpush3.bf16.msra.mxu1 %v5424_v40  ;;  %v5426_v32 = vld [vmem:[#allocation8 + $0x20] sm:$0xff]  }
 0xcf1   : > { %5232 = vmatprep.subr.bf16.mxu1 %v5425_v56  ;;  %5204 = vmatpush3.bf16.msra.mxu0 %v5425_v56 }
 0xcf2   : > { %v2450_v30 = vpop.permute.xlu1 %2449  ;;  %v2442_v6 = vpop.permute.xlu0 %2441  ;;  %v3715_v36 = vpack.c.bf16 %v3707_v34, %v3706_v48  ;;  %5205 = vmatprep.subr.bf16.mxu0 %v5426_v32  ;;  %v5735_v48 = vld [vmem:[%s6127_s13] sm:$0xff] }
 0xcf3   : > { %2468 = vst.msk [vmem:[#allocation2 + $0x30] sm:$0xff] %vm2461_vm14, %v2450_v30  ;;  %2464 = vst.msk [vmem:[#allocation2 + $0x10] sm:$0xff] %vm2461_vm14, %v2442_v6 }
 0xcf4   : > { %5240 = vmatpush3.bf16.msra.mxu1 %v5425_v56 }
 0xcf5   : > { %5233 = vmatprep.subr.bf16.mxu1 %v5426_v32  ;;  %5206 = vmatpush3.bf16.msra.mxu0 %v5426_v32 }
 0xcf6   : > { %v2452_v25 = vpop.permute.xlu1 %2451  ;;  %v2444_v50 = vpop.permute.xlu0 %2443  ;;  %5207 = vmatprep.subr.bf16.mxu0 %v5427_v42 }
 0xcf7   : > { %2469 = vst.msk [vmem:[#allocation2 + $0x38] sm:$0xff] %vm2461_vm14, %v2452_v25  ;;  %2465 = vst.msk [vmem:[#allocation2 + $0x18] sm:$0xff] %vm2461_vm14, %v2444_v50  ;;  %5190 = vmatmul.mubr.bf16.gmra.mrb[120].mxu1 %v3713_v29  ;;  %v5733_v25 = vld [vmem:[%s6127_s13 + $0x10] sm:$0xff] }
 0xcf8   : > { %5193 = vmatprep.mubr.bf16.mxu1 %v3714_v52  ;;  %5241 = vmatpush3.bf16.msra.mxu1 %v5426_v32 }
 0xcf9   : > { %5234 = vmatprep.subr.bf16.mxu1 %v5427_v42  ;;  %5208 = vmatpush3.bf16.msra.mxu0 %v5427_v42 }
 0xcfa   : > { %v3158_v17 = vpop.permute.xlu1 %3157  ;;  %v3150_v45 = vpop.permute.xlu0 %3149  ;;  %5209 = vmatprep.subr.bf16.mxu0 %v5428_v54 }
 0xcfb   : > { %3176 = vst.msk [vmem:[#allocation2 + $0x30] sm:$0xff] %vm3169_vm8, %v3158_v17  ;;  %3172 = vst.msk [vmem:[#allocation2 + $0x10] sm:$0xff] %vm3169_vm8, %v3150_v45  ;;  %v5734_v17 = vld [vmem:[%s6127_s13 + $0x8] sm:$0xff] }
 0xcfc   : > { %5242 = vmatpush3.bf16.msra.mxu1 %v5427_v42 }
 0xcfd   : > { %5235 = vmatprep.subr.bf16.mxu1 %v5428_v54  ;;  %5210 = vmatpush3.bf16.msra.mxu0 %v5428_v54 }
 0xcfe   : > { %5211 = vmatprep.subr.bf16.mxu0 %v5429_v55 }
 0xcff   : > { %5194 = vmatmul.mubr.bf16.gmra.mrb[124].mxu1 %v3715_v36 }
 0xd00   : > { %5243 = vmatpush3.bf16.msra.mxu1 %v5428_v54 }
 0xd01   : > { %5236 = vmatprep.subr.bf16.mxu1 %v5429_v55  ;;  %5212 = vmatpush3.bf16.msra.mxu0 %v5429_v55 }
 0xd04   : > { %5244 = vmatpush3.bf16.msra.mxu1 %v5429_v55 }
 0xdba   : > { %v5183_v58 = vpop.f32.mrb[112].mxu1 }
 0xdbb   : > { %v3774_v62 = vpop.f32.mrb[113].mxu1 }
 0xdbc   : > { %v5184_v7 = vpop.f32.mrb[114].mxu1 }
 0xdbd   : > { %v3838_v21 = vpack.c.bf16 %v5184_v7, %v5183_v58  ;;  %v3777_v16 = vpop.f32.mrb[115].mxu1  ;;  %v5737_v58 = vld [vmem:[%s6127_s13 + $0x30] sm:$0xff] }
 0xdbe   : > { %v3837_v35 = vpack.c.bf16 %v3777_v16, %v3774_v62  ;;  %v5738_v16 = vld [vmem:[%s6127_s13 + $0x38] sm:$0xff] }
 0xdbf   : > { %3855 = vrot.lane.b32.xlu0 %v3838_v21, %s8600_s14 }
 0xdc2   : > { %v5187_v10 = vpop.f32.mrb[116].mxu1 }
 0xdc3   : > { %3853 = vrot.lane.b32.xlu0 %v3837_v35, %s8600_s14  ;;  %v3790_v23 = vpop.f32.mrb[117].mxu1 }
 0xdc4   : > { %v5188_v0 = vpop.f32.mrb[118].mxu1 }
 0xdc5   : > { %v3840_v49 = vpack.c.bf16 %v5188_v0, %v5187_v10  ;;  %v3793_v3 = vpop.f32.mrb[119].mxu1 }
 0xdc6   : > { %v3839_v27 = vpack.c.bf16 %v3793_v3, %v3790_v23 }
 0xdc7   : > { %3151 = vrot.lane.b32.xlu0 %v3132_v5, %s8716_s28 }
 0xdca   : > { %v5191_v39 = vpop.f32.mrb[120].mxu1 }
 0xdcb   : > { %3857 = vrot.lane.b32.xlu0 %v3839_v27, %s8600_s14  ;;  %v3806_v31 = vpop.f32.mrb[121].mxu1 }
 0xdcc   : > { %v5192_v28 = vpop.f32.mrb[122].mxu1 }
 0xdcd   : > { %v3842_v11 = vpack.c.bf16 %v5192_v28, %v5191_v39  ;;  %v3809_v41 = vpop.f32.mrb[123].mxu1  ;;  %v5740_v28 = vld [vmem:[%s6127_s13 + $0x28] sm:$0xff] }
 0xdce   : > { %v3841_v22 = vpack.c.bf16 %v3809_v41, %v3806_v31 }
 0xdcf   : > { %3859 = vrot.lane.b32.xlu0 %v3840_v49, %s8600_s14  ;;  %3863 = vrot.lane.b32.xlu1 %v3842_v11, %s8600_s14  ;;  %v5739_v49 = vld [vmem:[%s6127_s13 + $0x20] sm:$0xff] }
 0xdd2   : > { %v5195_v43 = vpop.f32.mrb[124].mxu1 }
 0xdd3   : > { %3861 = vrot.lane.b32.xlu1 %v3841_v22, %s8600_s14  ;;  %v3822_v53 = vpop.f32.mrb[125].mxu1  ;;  %v5741_v22 = vld [vmem:[%s6127_s13 + $0x50] sm:$0xff] }
 0xdd4   : > { %v5196_v59 = vpop.f32.mrb[126].mxu1 }
 0xdd5   : > { %v3844_v14 = vpack.c.bf16 %v5196_v59, %v5195_v43  ;;  %v3825_v20 = vpop.f32.mrb[127].mxu1  ;;  %v5742_v59 = vld [vmem:[%s6127_s13 + $0x58] sm:$0xff] }
 0xdd6   : > { %v3843_v57 = vpack.c.bf16 %v3825_v20, %v3822_v53 }
 0xdd7   : > { %3159 = vrot.lane.b32.xlu1 %v3136_v63, %s8716_s28 }
 0xddb   : > { %3865 = vrot.lane.b32.xlu1 %v3843_v57, %s8600_s14  ;;  %v5743_v57 = vld [vmem:[%s6127_s13 + $0x40] sm:$0xff] }
 0xddf   : > { %3867 = vrot.lane.b32.xlu1 %v3844_v14, %s8600_s14 }
 0xe31   : > { %v3856_v5 = vpop.permute.xlu0 %3855 }
 0xe32   : > { %3879 = vst.msk [vmem:[#allocation2 + $0x8] sm:$0xff] %vm3877_vm11, %v3856_v5 }
 0xe35   : > { %v3854_v15 = vpop.permute.xlu0 %3853 }
 0xe36   : > { %3878 = vst.msk [vmem:[#allocation2] sm:$0xff] %vm3877_vm11, %v3854_v15 }
 0xe39   : > { %v3152_v46 = vpop.permute.xlu0 %3151  ;;  %v3887_v51 = vld [vmem:[#allocation2 + $0x8] sm:$0xff] }
 0xe3a   : > { %3173 = vst.msk [vmem:[#allocation2 + $0x18] sm:$0xff] %vm3169_vm8, %v3152_v46  ;;  %v5744_v46 = vld [vmem:[%s6127_s13 + $0x48] sm:$0xff] }
 0xe3d   : > { %v3858_v47 = vpop.permute.xlu0 %3857  ;;  %v3886_v4 = vld [vmem:[#allocation2] sm:$0xff] }
 0xe3e   : > { %3880 = vst.msk [vmem:[#allocation2 + $0x10] sm:$0xff] %vm3877_vm11, %v3858_v47  ;;  %5213 = vmatprep.mubr.bf16.mxu0 %v3886_v4 }
 0xe3f   : > { %5214 = vmatmul.mubr.bf16.vlgmr.msra.gmra.mrb[112].mxu0 %v3887_v51 }
 0xe41   : > { %v3864_v44 = vpop.permute.xlu1 %3863  ;;  %v3860_v63 = vpop.permute.xlu0 %3859 }
 0xe42   : > { %3883 = vst.msk [vmem:[#allocation2 + $0x28] sm:$0xff] %vm3877_vm11, %v3864_v44  ;;  %3881 = vst.msk [vmem:[#allocation2 + $0x18] sm:$0xff] %vm3877_vm11, %v3860_v63 }
 0xe45   : > { %v3862_v26 = vpop.permute.xlu1 %3861  ;;  %v3888_v12 = vld [vmem:[#allocation2 + $0x10] sm:$0xff] }
 0xe46   : > { %3882 = vst.msk [vmem:[#allocation2 + $0x20] sm:$0xff] %vm3877_vm11, %v3862_v26  ;;  %5217 = vmatprep.mubr.bf16.mxu0 %v3888_v12  ;;  %v5745_v12 = vld [vmem:[%s6127_s13 + $0x60] sm:$0xff] }
 0xe49   : > { %v3160_v8 = vpop.permute.xlu1 %3159  ;;  %v3889_v1 = vld [vmem:[#allocation2 + $0x18] sm:$0xff]  ;;  %v3891_v60 = vld [vmem:[#allocation2 + $0x28] sm:$0xff] }
 0xe4a   : > { %3177 = vst.msk [vmem:[#allocation2 + $0x38] sm:$0xff] %vm3169_vm8, %v3160_v8  ;;  %5218 = vmatmul.mubr.bf16.gmra.mrb[116].mxu0 %v3889_v1 }
 0xe4d   : > { %v3866_v18 = vpop.permute.xlu1 %3865  ;;  %v3890_v2 = vld [vmem:[#allocation2 + $0x20] sm:$0xff] }
 0xe4e   : > { %3884 = vst.msk [vmem:[#allocation2 + $0x30] sm:$0xff] %vm3877_vm11, %v3866_v18  ;;  %5221 = vmatprep.mubr.bf16.mxu1 %v3890_v2  ;;  %v5746_v2 = vld [vmem:[%s6127_s13 + $0x68] sm:$0xff] }
 0xe4f   : > { %5222 = vmatmul.mubr.bf16.vlgmr.msra.gmra.mrb[128].mxu1 %v3891_v60 }
 0xe51   : > { %v3868_v24 = vpop.permute.xlu1 %3867 }
 0xe52   : > { %3885 = vst.msk [vmem:[#allocation2 + $0x38] sm:$0xff] %vm3877_vm11, %v3868_v24  ;;  %v5747_v24 = vld [vmem:[%s6127_s13 + $0x70] sm:$0xff] }
 0xe55   : > { %v3892_v30 = vld [vmem:[#allocation2 + $0x30] sm:$0xff] }
 0xe56   : > { %5225 = vmatprep.mubr.bf16.mxu1 %v3892_v30 }
 0xe59   : > { %v3893_v6 = vld [vmem:[#allocation2 + $0x38] sm:$0xff] }
 0xe5a   : > { %5226 = vmatmul.mubr.bf16.gmra.mrb[132].mxu1 %v3893_v6  ;;  %v5748_v6 = vld [vmem:[%s6127_s13 + $0x78] sm:$0xff] }
 0xf12   : > { %v5215_v9 = vpop.f32.mrb[112].mxu0 }
 0xf13   : > { %v4008_v13 = vadd.f32 %v5215_v9, %v8028_v19  ;;  %v3999_v29 = vpop.f32.mrb[113].mxu0 }
 0xf14   : > { %v5216_v37 = vpop.f32.mrb[114].mxu0  ;;  %v4000_v52 = vadd.f32 %v8028_v19, %v3999_v29 }
 0xf15   : > { %v8032_v50 = vadd.f32 %v5733_v25, %v4008_v13  ;;  %v4002_v38 = vpop.f32.mrb[115].mxu0  ;;  %v4011_v33 = vadd.f32 %v5216_v37, %v8028_v19 }
 0xf16   : > { %v4003_v34 = vadd.f32 %v8028_v19, %v4002_v38  ;;  %v8041_v36 = vadd.f32 %v5735_v48, %v4000_v52 }
 0xf17   : > { %4082 = vadd.xlane.f32.xlu0 %v8032_v50  ;;  %v8047_v40 = vadd.f32 %v5736_v61, %v4011_v33 }
 0xf18   : > { %v8038_v45 = vadd.f32 %v5734_v17, %v4003_v34 }
 0xf1a   : > { %4080 = vadd.xlane.f32.xlu1 %v8038_v45 }
 0xf1b   : > { %4078 = vadd.xlane.f32.xlu0 %v8041_v36 }
 0xf1d   : > { %v5219_v56 = vpop.f32.mrb[116].mxu0 }
 0xf1e   : > { %v4024_v32 = vadd.f32 %v5219_v56, %v8028_v19  ;;  %v4015_v42 = vpop.f32.mrb[117].mxu0 }
 0xf1f   : > { %4084 = vadd.xlane.f32.xlu0 %v8047_v40  ;;  %v5220_v54 = vpop.f32.mrb[118].mxu0  ;;  %v4016_v62 = vadd.f32 %v8028_v19, %v4015_v42 }
 0xf20   : > { %v8052_v55 = vadd.f32 %v5737_v58, %v4024_v32  ;;  %v4027_v7 = vadd.f32 %v5220_v54, %v8028_v19  ;;  %v4018_v21 = vpop.f32.mrb[119].mxu0 }
 0xf21   : > { %v4019_v10 = vadd.f32 %v8028_v19, %v4018_v21  ;;  %v8062_v3 = vadd.f32 %v5739_v49, %v4016_v62 }
 0xf22   : > { %v8057_v35 = vadd.f32 %v5738_v16, %v4027_v7  ;;  %v5223_v23 = vpop.f32.mrb[128].mxu1  ;;  %4090 = vadd.xlane.f32.xlu1 %v8052_v55 }
 0xf23   : > { %v4031_v0 = vpop.f32.mrb[129].mxu1  ;;  %v4040_v27 = vadd.f32 %v5223_v23, %v8028_v19  ;;  %v8067_v11 = vadd.f32 %v5740_v28, %v4019_v10 }
 0xf24   : > { %v5224_v39 = vpop.f32.mrb[130].mxu1  ;;  %4092 = vadd.xlane.f32.xlu0 %v8057_v35  ;;  %v4032_v53 = vadd.f32 %v8028_v19, %v4031_v0 }
 0xf25   : > { %v4034_v31 = vpop.f32.mrb[131].mxu1  ;;  %v4043_v41 = vadd.f32 %v5224_v39, %v8028_v19  ;;  %v8072_v43 = vadd.f32 %v5741_v22, %v4040_v27 }
 0xf26   : > { %4086 = vadd.xlane.f32.xlu1 %v8062_v3  ;;  %v4035_v20 = vadd.f32 %v8028_v19, %v4034_v31  ;;  %v8082_v5 = vadd.f32 %v5743_v57, %v4032_v53 }
 0xf27   : > { %v8077_v14 = vadd.f32 %v5742_v59, %v4043_v41 }
 0xf28   : > { %4088 = vadd.xlane.f32.xlu0 %v8067_v11  ;;  %v8086_v47 = vadd.f32 %v5744_v46, %v4035_v20 }
 0xf2a   : > { %4098 = vadd.xlane.f32.xlu1 %v8072_v43 }
 0xf2c   : > { %4100 = vadd.xlane.f32.xlu0 %v8077_v14 }
 0xf2d   : > { %v5227_v15 = vpop.f32.mrb[132].mxu1 }
 0xf2e   : > { %v4047_v4 = vpop.f32.mrb[133].mxu1  ;;  %4094 = vadd.xlane.f32.xlu1 %v8082_v5  ;;  %v4056_v26 = vadd.f32 %v5227_v15, %v8028_v19 }
 0xf2f   : > { %v4048_v51 = vadd.f32 %v8028_v19, %v4047_v4  ;;  %v5228_v44 = vpop.f32.mrb[134].mxu1 }
 0xf30   : > { %v4050_v63 = vpop.f32.mrb[135].mxu1  ;;  %4096 = vadd.xlane.f32.xlu0 %v8086_v47  ;;  %v4059_v18 = vadd.f32 %v5228_v44, %v8028_v19  ;;  %v8102_v30 = vadd.f32 %v5747_v24, %v4056_v26 }
 0xf31   : > { %v8093_v8 = vadd.f32 %v5745_v12, %v4048_v51  ;;  %v4051_v1 = vadd.f32 %v8028_v19, %v4050_v63 }
 0xf32   : > { %v8106_v9 = vadd.f32 %v5748_v6, %v4059_v18 }
 0xf33   : > { %v8098_v60 = vadd.f32 %v5746_v2, %v4051_v1  ;;  %4102 = vadd.xlane.f32.xlu1 %v8093_v8 }
 0xf35   : > { %4104 = vadd.xlane.f32.xlu0 %v8098_v60 }
 0xf37   : > { %4106 = vadd.xlane.f32.xlu1 %v8102_v30 }
 0xf39   : > { %4108 = vadd.xlane.f32.xlu0 %v8106_v9 }
 0xfa4   : > { %v4083_v13 = vpop.xlane.xlu0 %4082 }
 0xfa5   : > { %v4113_v29 = vmul.f32 0.0078125, %v4083_v13 }
 0xfa7   : > { %v8111_v19 = vsub.f32 %v8032_v50, %v4113_v29  ;;  %v4081_v38 = vpop.xlane.xlu1 %4080 }
 0xfa8   : > { %v4079_v37 = vpop.xlane.xlu0 %4078  ;;  %v4112_v48 = vmul.f32 0.0078125, %v4081_v38 }
 0xfa9   : > { %v4111_v25 = vmul.f32 0.0078125, %v4079_v37  ;;  %v4145_v52 = vmul.f32 %v8111_v19, %v8111_v19 }
 0xfaa   : > { %v8124_v42 = vsub.f32 %v8038_v45, %v4112_v48 }
 0xfab   : > { %v8116_v34 = vsub.f32 %v8041_v36, %v4111_v25  ;;  %4163 = vadd.xlane.f32.xlu1 %v4145_v52 }
 0xfac   : > { %v4085_v17 = vpop.xlane.xlu0 %4084  ;;  %v4144_v45 = vmul.f32 %v8124_v42, %v8124_v42 }
 0xfad   : > { %v4114_v33 = vmul.f32 0.0078125, %v4085_v17  ;;  %v4143_v61 = vmul.f32 %v8116_v34, %v8116_v34 }
 0xfaf   : > { %v8121_v56 = vsub.f32 %v8047_v40, %v4114_v33  ;;  %v4091_v50 = vpop.xlane.xlu1 %4090  ;;  %4159 = vadd.xlane.f32.xlu1 %v4143_v61 }
 0xfb0   : > { %v4117_v32 = vmul.f32 0.0078125, %v4091_v50 }
 0xfb1   : > { %v4093_v54 = vpop.xlane.xlu0 %4092  ;;  %v4146_v36 = vmul.f32 %v8121_v56, %v8121_v56 }
 0xfb2   : > { %v8129_v58 = vsub.f32 %v8052_v55, %v4117_v32  ;;  %v4118_v62 = vmul.f32 0.0078125, %v4093_v54 }
 0xfb3   : > { %v4087_v7 = vpop.xlane.xlu1 %4086  ;;  %4165 = vadd.xlane.f32.xlu0 %v4146_v36 }
 0xfb4   : > { %v4115_v21 = vmul.f32 0.0078125, %v4087_v7  ;;  %v4149_v40 = vmul.f32 %v8129_v58, %v8129_v58  ;;  %v8134_v16 = vsub.f32 %v8057_v35, %v4118_v62  ;;  %v8193_v7 = vld [vmem:[%s8283_s10] ss:$0 sm:$0xff] }
 0xfb5   : > { %v4089_v10 = vpop.xlane.xlu0 %4088 }
 0xfb6   : > { %v8139_v23 = vsub.f32 %v8062_v3, %v4115_v21  ;;  %v4116_v0 = vmul.f32 0.0078125, %v4089_v10  ;;  %4171 = vadd.xlane.f32.xlu1 %v4149_v40  ;;  %v4150_v31 = vmul.f32 %v8134_v16, %v8134_v16 }
 0xfb7   : > { %v4099_v55 = vpop.xlane.xlu1 %4098  ;;  %4161 = vadd.xlane.f32.xlu0 %v4144_v45 }
 0xfb8   : > { %v4121_v49 = vmul.f32 0.0078125, %v4099_v55  ;;  %v4147_v27 = vmul.f32 %v8139_v23, %v8139_v23  ;;  %v8144_v39 = vsub.f32 %v8067_v11, %v4116_v0  ;;  %v8199_v55 = vld [vmem:[%s8284_s11] ss:$0 sm:$0xff] }
 0xfb9   : > { %v4101_v35 = vpop.xlane.xlu0 %4100 }
 0xfba   : > { %v8149_v28 = vsub.f32 %v8072_v43, %v4121_v49  ;;  %v4122_v3 = vmul.f32 0.0078125, %v4101_v35  ;;  %4167 = vadd.xlane.f32.xlu1 %v4147_v27  ;;  %v4148_v20 = vmul.f32 %v8144_v39, %v8144_v39 }
 0xfbb   : > { %v4095_v41 = vpop.xlane.xlu1 %4094  ;;  %4173 = vadd.xlane.f32.xlu0 %v4150_v31 }
 0xfbc   : > { %v4119_v22 = vmul.f32 0.0078125, %v4095_v41  ;;  %v4153_v53 = vmul.f32 %v8149_v28, %v8149_v28  ;;  %v8154_v59 = vsub.f32 %v8077_v14, %v4122_v3 }
 0xfbd   : > { %v4097_v11 = vpop.xlane.xlu0 %4096 }
 0xfbe   : > { %v8159_v57 = vsub.f32 %v8082_v5, %v4119_v22  ;;  %v4120_v43 = vmul.f32 0.0078125, %v4097_v11  ;;  %4179 = vadd.xlane.f32.xlu1 %v4153_v53  ;;  %v4154_v14 = vmul.f32 %v8154_v59, %v8154_v59 }
 0xfbf   : > { %4169 = vadd.xlane.f32.xlu0 %v4148_v20 }
 0xfc0   : > { %v4103_v15 = vpop.xlane.xlu1 %4102  ;;  %v4151_v46 = vmul.f32 %v8159_v57, %v8159_v57  ;;  %v8164_v4 = vsub.f32 %v8086_v47, %v4120_v43 }
 0xfc1   : > { %v4123_v51 = vmul.f32 0.0078125, %v4103_v15 }
 0xfc2   : > { %4175 = vadd.xlane.f32.xlu1 %v4151_v46  ;;  %v4105_v44 = vpop.xlane.xlu0 %4104  ;;  %v4152_v18 = vmul.f32 %v8164_v4, %v8164_v4 }
 0xfc3   : > { %v8169_v63 = vsub.f32 %v8093_v8, %v4123_v51  ;;  %v4124_v5 = vmul.f32 0.0078125, %v4105_v44  ;;  %4181 = vadd.xlane.f32.xlu0 %v4154_v14 }
 0xfc4   : > { %v4107_v26 = vpop.xlane.xlu1 %4106 }
 0xfc5   : > { %v8172_v12 = vsub.f32 %v8098_v60, %v4124_v5  ;;  %v4125_v1 = vmul.f32 0.0078125, %v4107_v26  ;;  %v4155_v47 = vmul.f32 %v8169_v63, %v8169_v63 }
 0xfc6   : > { %v4109_v2 = vpop.xlane.xlu0 %4108 }
 0xfc7   : > { %v8179_v24 = vsub.f32 %v8102_v30, %v4125_v1  ;;  %v4126_v6 = vmul.f32 0.0078125, %v4109_v2  ;;  %4183 = vadd.xlane.f32.xlu1 %v4155_v47  ;;  %4177 = vadd.xlane.f32.xlu0 %v4152_v18  ;;  %v4156_v13 = vmul.f32 %v8172_v12, %v8172_v12 }
 0xfc9   : > { %v8182_v8 = vsub.f32 %v8106_v9, %v4126_v6  ;;  %v4157_v60 = vmul.f32 %v8179_v24, %v8179_v24 }
 0xfcb   : > { %4187 = vadd.xlane.f32.xlu1 %v4157_v60  ;;  %4185 = vadd.xlane.f32.xlu0 %v4156_v13  ;;  %v4158_v29 = vmul.f32 %v8182_v8, %v8182_v8 }
 0xfcf   : > { %4189 = vadd.xlane.f32.xlu0 %v4158_v29 }
0x1038   : > { %v4164_v30 = vpop.xlane.xlu1 %4163 }
0x1039   : > { %v4193_v37 = vmul.f32 0.0078125, %v4164_v30 }
0x103b   : > { %v4209_v25 = vadd.f32 1e-05, %v4193_v37 }
0x103c   : > { %v4160_v52 = vpop.xlane.xlu1 %4159 }
0x103d   : > { %5686 = vrsqrt.f32 %v4209_v25  ;;  %v4191_v38 = vmul.f32 0.0078125, %v4160_v52 }
0x103f   : > { %v4207_v9 = vadd.f32 1e-05, %v4191_v38 }
0x1040   : > { %v4166_v17 = vpop.xlane.xlu0 %4165 }
0x1041   : > { %5688 = vrsqrt.f32 %v4207_v9  ;;  %v4194_v48 = vmul.f32 0.0078125, %v4166_v17 }
0x1043   : > { %v4210_v33 = vadd.f32 1e-05, %v4194_v48  ;;  %v4172_v61 = vpop.xlane.xlu1 %4171 }
0x1044   : > { %v4197_v50 = vmul.f32 0.0078125, %v4172_v61  ;;  %v4162_v32 = vpop.xlane.xlu0 %4161 }
0x1045   : > { %5690 = vrsqrt.f32 %v4210_v33  ;;  %v4192_v54 = vmul.f32 0.0078125, %v4162_v32 }
0x1046   : > { %v4213_v36 = vadd.f32 1e-05, %v4197_v50 }
0x1047   : > { %v5687_v62 = vpop.eup %5686  ;;  %v4208_v21 = vadd.f32 1e-05, %v4192_v54  ;;  %v4168_v40 = vpop.xlane.xlu1 %4167 }
0x1048   : > { %v4241_v10 = vmul.f32 %v5687_v62, %v8111_v19  ;;  %5692 = vrsqrt.f32 %v4213_v36  ;;  %v4195_v45 = vmul.f32 0.0078125, %v4168_v40  ;;  %v4174_v0 = vpop.xlane.xlu0 %4173 }
0x1049   : > { %5694 = vrsqrt.f32 %v4208_v21  ;;  %v4198_v49 = vmul.f32 0.0078125, %v4174_v0 }
0x104a   : > { %v4264_v27 = vmul.f32 %v8193_v7, %v4241_v10  ;;  %v4211_v35 = vadd.f32 1e-05, %v4195_v45 }
0x104b   : > { %v5689_v31 = vpop.eup %5688  ;;  %v4214_v19 = vadd.f32 1e-05, %v4198_v49  ;;  %v4180_v3 = vpop.xlane.xlu1 %4179 }
0x104c   : > { %v4287_v41 = vadd.f32 %v8199_v55, %v4264_v27  ;;  %v4239_v22 = vmul.f32 %v5689_v31, %v8116_v34  ;;  %5696 = vrsqrt.f32 %v4211_v35  ;;  %v4201_v53 = vmul.f32 0.0078125, %v4180_v3  ;;  %v4170_v11 = vpop.xlane.xlu0 %4169 }
0x104d   : > { %5698 = vrsqrt.f32 %v4214_v19  ;;  %v4196_v20 = vmul.f32 0.0078125, %v4170_v11 }
0x104e   : > { %4303 = vst [vmem:[%s8206_s26 + $0x10] sm:$0xff] %v4287_v41  ;;  %v4262_v43 = vmul.f32 %v8193_v7, %v4239_v22  ;;  %v4217_v15 = vadd.f32 1e-05, %v4201_v53 }
0x104f   : > { %v5691_v46 = vpop.eup %5690  ;;  %v4212_v51 = vadd.f32 1e-05, %v4196_v20  ;;  %v4176_v14 = vpop.xlane.xlu1 %4175 }
0x1050   : > { %v4285_v44 = vadd.f32 %v8199_v55, %v4262_v43  ;;  %v4242_v5 = vmul.f32 %v5691_v46, %v8121_v56  ;;  %5700 = vrsqrt.f32 %v4217_v15  ;;  %v4199_v26 = vmul.f32 0.0078125, %v4176_v14  ;;  %v4182_v34 = vpop.xlane.xlu0 %4181 }
0x1051   : > { %5702 = vrsqrt.f32 %v4212_v51  ;;  %v4202_v1 = vmul.f32 0.0078125, %v4182_v34 }
0x1052   : > { %v5693_v47 = vpop.eup %5692  ;;  %4301 = vst [vmem:[%s8206_s26] sm:$0xff] %v4285_v44  ;;  %v4265_v18 = vmul.f32 %v8193_v7, %v4242_v5  ;;  %v4215_v2 = vadd.f32 1e-05, %v4199_v26 }
0x1053   : > { %v5695_v6 = vpop.eup %5694  ;;  %v4245_v60 = vmul.f32 %v5693_v47, %v8129_v58  ;;  %v4218_v13 = vadd.f32 1e-05, %v4202_v1 }
0x1054   : > { %v4288_v29 = vadd.f32 %v8199_v55, %v4265_v18  ;;  %v4240_v30 = vmul.f32 %v5695_v6, %v8124_v42  ;;  %5704 = vrsqrt.f32 %v4215_v2  ;;  %v4184_v56 = vpop.xlane.xlu1 %4183  ;;  %v4178_v37 = vpop.xlane.xlu0 %4177 }
0x1055   : > { %v4268_v25 = vmul.f32 %v8193_v7, %v4245_v60  ;;  %5706 = vrsqrt.f32 %v4218_v13  ;;  %v4203_v52 = vmul.f32 0.0078125, %v4184_v56  ;;  %v4200_v38 = vmul.f32 0.0078125, %v4178_v37 }
0x1056   : > { %v5697_v9 = vpop.eup %5696  ;;  %4304 = vst [vmem:[%s8206_s26 + $0x18] sm:$0xff] %v4288_v29  ;;  %v4263_v17 = vmul.f32 %v8193_v7, %v4240_v30 }
0x1057   : > { %v5699_v58 = vpop.eup %5698  ;;  %v4291_v48 = vadd.f32 %v8199_v55, %v4268_v25  ;;  %v4243_v33 = vmul.f32 %v5697_v9, %v8139_v23  ;;  %v4219_v42 = vadd.f32 1e-05, %v4203_v52  ;;  %v4216_v61 = vadd.f32 1e-05, %v4200_v38 }
0x1058   : > { %v4286_v50 = vadd.f32 %v8199_v55, %v4263_v17  ;;  %v4246_v32 = vmul.f32 %v5699_v58, %v8134_v16  ;;  %v4188_v54 = vpop.xlane.xlu1 %4187  ;;  %v4186_v36 = vpop.xlane.xlu0 %4185 }
0x1059   : > { %4307 = vst [vmem:[%s8206_s26 + $0x30] sm:$0xff] %v4291_v48  ;;  %v4266_v62 = vmul.f32 %v8193_v7, %v4243_v33  ;;  %5708 = vrsqrt.f32 %v4219_v42  ;;  %v4205_v21 = vmul.f32 0.0078125, %v4188_v54  ;;  %v4204_v40 = vmul.f32 0.0078125, %v4186_v36 }
0x105a   : > { %v5701_v10 = vpop.eup %5700  ;;  %4302 = vst [vmem:[%s8206_s26 + $0x8] sm:$0xff] %v4286_v50  ;;  %v4269_v23 = vmul.f32 %v8193_v7, %v4246_v32  ;;  %5710 = vrsqrt.f32 %v4216_v61 }
0x105b   : > { %v5703_v45 = vpop.eup %5702  ;;  %v4289_v0 = vadd.f32 %v8199_v55, %v4266_v62  ;;  %v4249_v16 = vmul.f32 %v5701_v10, %v8149_v28  ;;  %v4221_v49 = vadd.f32 1e-05, %v4205_v21  ;;  %v4220_v27 = vadd.f32 1e-05, %v4204_v40 }
0x105c   : > { %v4292_v35 = vadd.f32 %v8199_v55, %v4269_v23  ;;  %v4244_v31 = vmul.f32 %v5703_v45, %v8144_v39  ;;  %v4190_v19 = vpop.xlane.xlu0 %4189 }
0x105d   : > { %4305 = vst [vmem:[%s8206_s26 + $0x20] sm:$0xff] %v4289_v0  ;;  %v4272_v3 = vmul.f32 %v8193_v7, %v4249_v16  ;;  %5712 = vrsqrt.f32 %v4221_v49  ;;  %v4206_v41 = vmul.f32 0.0078125, %v4190_v19 }
0x105e   : > { %v5705_v22 = vpop.eup %5704  ;;  %4308 = vst [vmem:[%s8206_s26 + $0x38] sm:$0xff] %v4292_v35  ;;  %v4267_v53 = vmul.f32 %v8193_v7, %v4244_v31  ;;  %5714 = vrsqrt.f32 %v4220_v27 }
0x105f   : > { %v5707_v28 = vpop.eup %5706  ;;  %v4295_v11 = vadd.f32 %v8199_v55, %v4272_v3  ;;  %v4247_v20 = vmul.f32 %v5705_v22, %v8159_v57  ;;  %v4222_v39 = vadd.f32 1e-05, %v4206_v41 }
0x1060   : > { %v4290_v43 = vadd.f32 %v8199_v55, %v4267_v53  ;;  %v4250_v15 = vmul.f32 %v5707_v28, %v8154_v59 }
0x1061   : > { %4311 = vst [vmem:[%s8206_s26 + $0x50] sm:$0xff] %v4295_v11  ;;  %v4270_v46 = vmul.f32 %v8193_v7, %v4247_v20  ;;  %5716 = vrsqrt.f32 %v4222_v39 }
0x1062   : > { %4306 = vst [vmem:[%s8206_s26 + $0x28] sm:$0xff] %v4290_v43  ;;  %v4273_v51 = vmul.f32 %v8193_v7, %v4250_v15 }
0x1063   : > { %v5709_v14 = vpop.eup %5708  ;;  %v4293_v44 = vadd.f32 %v8199_v55, %v4270_v46 }
0x1064   : > { %v5711_v5 = vpop.eup %5710  ;;  %v4296_v57 = vadd.f32 %v8199_v55, %v4273_v51  ;;  %v4251_v26 = vmul.f32 %v5709_v14, %v8169_v63 }
0x1065   : > { %4309 = vst [vmem:[%s8206_s26 + $0x40] sm:$0xff] %v4293_v44  ;;  %v4248_v59 = vmul.f32 %v5711_v5, %v8164_v4 }
0x1066   : > { %4312 = vst [vmem:[%s8206_s26 + $0x58] sm:$0xff] %v4296_v57  ;;  %v4274_v34 = vmul.f32 %v8193_v7, %v4251_v26 }
0x1067   : > { %v5713_v1 = vpop.eup %5712  ;;  %v4271_v47 = vmul.f32 %v8193_v7, %v4248_v59 }
0x1068   : > { %v5715_v18 = vpop.eup %5714  ;;  %v4297_v2 = vadd.f32 %v8199_v55, %v4274_v34  ;;  %v4253_v6 = vmul.f32 %v5713_v1, %v8179_v24 }
0x1069   : > { %v4294_v60 = vadd.f32 %v8199_v55, %v4271_v47  ;;  %v4252_v63 = vmul.f32 %v5715_v18, %v8172_v12 }
0x106a   : > { %4313 = vst [vmem:[%s8206_s26 + $0x60] sm:$0xff] %v4297_v2  ;;  %v4276_v4 = vmul.f32 %v8193_v7, %v4253_v6 }
0x106b   : > { %v5717_v13 = vpop.eup %5716  ;;  %4310 = vst [vmem:[%s8206_s26 + $0x48] sm:$0xff] %v4294_v60  ;;  %v4275_v29 = vmul.f32 %v8193_v7, %v4252_v63 }
0x106c   : > { %v4299_v30 = vadd.f32 %v8199_v55, %v4276_v4  ;;  %v4254_v56 = vmul.f32 %v5717_v13, %v8182_v8 }
0x106d   : > { %v4298_v37 = vadd.f32 %v8199_v55, %v4275_v29 }
0x106e   : > { %4315 = vst [vmem:[%s8206_s26 + $0x70] sm:$0xff] %v4299_v30  ;;  %v4277_v24 = vmul.f32 %v8193_v7, %v4254_v56 }
0x106f   : > { %4314 = vst [vmem:[%s8206_s26 + $0x68] sm:$0xff] %v4298_v37 }
0x1070   : > { %v4300_v25 = vadd.f32 %v8199_v55, %v4277_v24 }
0x1072   : > { %4316 = vst [vmem:[%s8206_s26 + $0x78] sm:$0xff] %v4300_v25 }
0x1073 PF: > { %s8872_s25 = sld [smem:[#allocation13_spill]] }
0x1079   : > { %s25_s21 = sadd.s32 1, %s8872_s25  }
0x107a   : > { %p22_p1 = scmp.ge.s32.totalorder %s25_s21, 4  }
0x107c   :  { %24 = sbr.rel (!%p22_p1) target bundleno = 5 (0x5), region = 118 }
0x1083   :  { %4338 = vsyncpa [#allocation4], 1 }
0x1084   :  { %4340 = vsyncpa [#allocation4 + $0x1], 1 }
0x1085   :  { %4341 = vsyncpa [#allocation6], 1 }
0x1086   :  { %4342 = vsyncpa [#allocation9], 1 }

</bundles_post_ra>
